<compile_context>
chip_gen: v5e
topology: v5e:2x2
jax: 0.10.0
libtpu: 0.0.40
codegen_flags: <defaults>
</compile_context>

<pallas_src>
import numpy as np

import jax
import jax.numpy as jnp
from jax import lax
from jax.experimental import pallas as pl
from jax.experimental.pallas import tpu as pltpu


# ----------------------------------------------------------------------------
# Fused kernel (one grid step == B images)
# ----------------------------------------------------------------------------
def _make_kernel(batch_tile):
    B = batch_tile
    R = 8 * B                      # rows per step: b*8 + hq, hq = h//4 = pooled-twice row
    f32 = jnp.float32
    bf16 = jnp.bfloat16

    def kernel(x_ref, amain_ref, aprev_ref, anext_ref, bias1_ref,
               b2_ref, bias2_ref, perm_ref, u_ref, fc1b_ref,
               fc2w_ref, fc2b_ref, o_ref):

        def mm(a, b):
            return jnp.dot(a, b, preferred_element_type=f32)

        x = x_ref[...]                                          # (8B,128) f32, lanes (h%4)*32+w
        hq = lax.broadcasted_iota(jnp.int32, (R, 1), 0) & 7     # row index inside each image
        first = hq == 0
        last = hq == 7
        xb = x.astype(bf16)
        # halo rows (previous / next hq), wrap rows zeroed (= height padding)
        x_up = jnp.where(first, 0.0, pltpu.roll(x, 1, 0)).astype(bf16)      # row hq-1
        x_dn = jnp.where(last, 0.0, pltpu.roll(x, R - 1, 0)).astype(bf16)   # row hq+1

        # ---- conv1: 8 output groups (mu = h%4, par = w%2), each (8B,160) ----
        q = []
        for mu in range(4):
            for par in range(2):
                acc = mm(xb, amain_ref[2 * mu + par])
                if mu == 0:
                    acc = acc + mm(x_up, aprev_ref[par])
                if mu == 3:
                    acc = acc + mm(x_dn, anext_ref[par])
                q.append(acc)

        # ---- maxpool 2x2 + bias + relu (pure element-wise maxima) ----------
        l1_e = jnp.maximum(jnp.maximum(q[0], q[1]), jnp.maximum(q[2], q[3]))  # h1 even
        l1_o = jnp.maximum(jnp.maximum(q[4], q[5]), jnp.maximum(q[6], q[7]))  # h1 odd
        l1_e = jnp.maximum(l1_e + bias1_ref[...], 0.0)          # (8B,160) lanes c*16+w1
        l1_o = jnp.maximum(l1_o + bias1_ref[...], 0.0)
        l1_e_b = l1_e.astype(bf16)
        l1_o_b = l1_o.astype(bf16)
        l1_o_up = jnp.where(first, 0.0, pltpu.roll(l1_o, 1, 0)).astype(bf16)      # h1 = 2hq-1
        l1_e_dn = jnp.where(last, 0.0, pltpu.roll(l1_e, R - 1, 0)).astype(bf16)   # h1 = 2hq+2

        # ---- conv2: 4 output groups (lam = h2%2, par = w2%2); pool2 = max ---
        m2 = None
        for par in range(2):
            g0 = (mm(l1_o_up, b2_ref[0 + par]) + mm(l1_e_b, b2_ref[2 + par])
                  + mm(l1_o_b, b2_ref[4 + par]))                 # h2 even
            g1 = (mm(l1_e_b, b2_ref[0 + par]) + mm(l1_o_b, b2_ref[2 + par])
                  + mm(l1_e_dn, b2_ref[4 + par]))                # h2 odd
            gm = jnp.maximum(g0, g1)
            m2 = gm if m2 is None else jnp.maximum(m2, gm)
        # TODO(synk): nn.Dropout2d after conv2 is identity (inference mode only).
        r2 = jnp.maximum(m2 + bias2_ref[...], 0.0)               # (8B,160) rows b*8+h3, lanes c*8+w3

        # ---- fc1: permute rows to h3-major once, then 8 (B,160)x(160,100) ---
        r2p = mm(perm_ref[...], r2.astype(bf16)).astype(bf16)    # rows h3*B + b
        acc1 = jnp.zeros((B, 100), f32)
        for h3 in range(8):
            acc1 = acc1 + mm(r2p[h3 * B:(h3 + 1) * B, :], u_ref[h3])
        z1 = jnp.maximum(acc1 + fc1b_ref[...], 0.0)              # (B,100)
        # TODO(synk): F.dropout after fc1 is identity (inference mode only).

        # ---- fc2 (classes padded to 128 lanes, pads biased to -1e30) + log_softmax
        logits = mm(z1.astype(bf16), fc2w_ref[...]) + fc2b_ref[...]   # (B,128)
        mx = jnp.max(logits, axis=-1, keepdims=True)
        s = logits - mx
        lse = jnp.log(jnp.sum(jnp.exp(s), axis=-1, keepdims=True))
        o_ref[...] = (s - lse).astype(o_ref.dtype)

    return kernel


# ----------------------------------------------------------------------------
# One-time host-side weight preparation
# ----------------------------------------------------------------------------
def _band_split(wconv, win):
    """(Co,Ci,3,3) conv weights -> (3, 2, Ci*win, Co*(win//2)) banded matrices.

    band[kh, par][ci*win + p, co*(win//2) + wp] = wconv[co, ci, kh, kw]
    with kw = p - (2*wp + par) + 1 when 0 <= kw <= 2 (padding=1), else 0.
    Output columns are pre-split by width-pool parity so 2x2 max-pooling needs
    no selector matmul.
    """
    w = np.asarray(wconv, np.float32)
    co_n, ci_n = w.shape[0], w.shape[1]
    wp_n = win // 2
    out = np.zeros((3, 2, ci_n * win, co_n * wp_n), np.float32)
    rows = np.arange(ci_n) * win
    cols = np.arange(co_n) * wp_n
    for kh in range(3):
        for par in range(2):
            for p in range(win):
                for wp in range(wp_n):
                    kw = p - (2 * wp + par) + 1
                    if 0 <= kw <= 2:
                        out[kh, par][np.ix_(rows + p, cols + wp)] = w[:, :, kh, kw].T
    return out


def pack_params(params, batch_tile=16):
    """Precompute the constant (bf16) matrices consumed by the fused kernel."""
    assert batch_tile > 0 and batch_tile % 8 == 0
    bf16 = jnp.bfloat16
    f32 = jnp.float32

    band1 = _band_split(params["conv1_w"], 32)     # (3,2, 32,160)
    band2 = _band_split(params["conv2_w"], 16)     # (3,2,160,160)

    # conv1 input lanes are (h%4)*32 + w; stack the per-kh bands per output quarter.
    a_main = np.zeros((4, 2, 128, 160), np.float32)
    for mu in range(4):
        for nu in range(max(0, mu - 1), min(3, mu + 1) + 1):
            kh = nu - mu + 1
            a_main[mu, :, nu * 32:(nu + 1) * 32, :] = band1[kh]
    a_prev = np.zeros((2, 128, 160), np.float32)   # taps into previous row block (kh=0, mu=0)
    a_prev[:, 96:128, :] = band1[0]
    a_next = np.zeros((2, 128, 160), np.float32)   # taps into next row block (kh=2, mu=3)
    a_next[:, 0:32, :] = band1[2]

    bt = batch_tile
    perm = np.zeros((8 * bt, 8 * bt), np.float32)  # rows b*8+h3 -> rows h3*bt+b
    for b in range(bt):
        for h3 in range(8):
            perm[h3 * bt + b, b * 8 + h3] = 1.0

    fc1_w = np.asarray(params["fc1_w"], np.float32)                  # (100,1280) torch layout
    u = fc1_w.reshape(100, 20, 8, 8).transpose(2, 1, 3, 0).reshape(8, 160, 100)

    fc2_w = np.asarray(params["fc2_w"], np.float32)                  # (10,100)
    fc2w_pad = np.zeros((100, 128), np.float32)
    fc2w_pad[:, :10] = fc2_w.T
    fc2b_pad = np.full((1, 128), -1e30, np.float32)                  # pad classes -> prob 0
    fc2b_pad[0, :10] = np.asarray(params["fc2_b"], np.float32)

    return {
        "a_main": jnp.asarray(a_main.reshape(8, 128, 160), bf16),
        "a_prev": jnp.asarray(a_prev, bf16),
        "a_next": jnp.asarray(a_next, bf16),
        "bias1": jnp.asarray(np.repeat(np.asarray(params["conv1_b"], np.float32), 16)
                             .reshape(1, 160), f32),
        "b2": jnp.asarray(band2.reshape(6, 160, 160), bf16),
        "bias2": jnp.asarray(np.repeat(np.asarray(params["conv2_b"], np.float32), 8)
                             .reshape(1, 160), f32),
        "perm": jnp.asarray(perm, bf16),
        "u": jnp.asarray(u, bf16),
        "fc1_b": jnp.asarray(np.asarray(params["fc1_b"], np.float32).reshape(1, 100), f32),
        "fc2_w": jnp.asarray(fc2w_pad, bf16),
        "fc2_b": jnp.asarray(fc2b_pad, f32),
    }


# ----------------------------------------------------------------------------
# Forward pass (single fused pallas_call, batch-tiled grid)
# ----------------------------------------------------------------------------
def net_forward(x, packed):
    """x: (N, 1, 32, 32) float32 -> (N, 10) log-probabilities."""
    n = x.shape[0]
    bt = packed["perm"].shape[0] // 8
    n_pad = ((n + bt - 1) // bt) * bt

    xi = x.reshape(n, 32, 32)
    if n_pad != n:
        xi = jnp.concatenate([xi, jnp.zeros((n_pad - n, 32, 32), xi.dtype)], axis=0)
    # rows = image*8 + (h//4), lanes = (h%4)*32 + w   (pure reshape, no transpose)
    xr = xi.reshape(n_pad * 8, 128)

    args = (xr, packed["a_main"], packed["a_prev"], packed["a_next"],
            packed["bias1"], packed["b2"], packed["bias2"], packed["perm"],
            packed["u"], packed["fc1_b"], packed["fc2_w"], packed["fc2_b"])

    in_specs = [pl.BlockSpec((bt * 8, 128), lambda i: (i, 0))]
    for a in args[1:]:
        in_specs.append(pl.BlockSpec(a.shape, lambda i, _n=a.ndim: (0,) * _n))

    out = pl.pallas_call(
        _make_kernel(bt),
        out_shape=jax.ShapeDtypeStruct((n_pad, 128), jnp.float32),
        grid=(n_pad // bt,),
        in_specs=in_specs,
        out_specs=pl.BlockSpec((bt, 128), lambda i: (i, 0)),
        compiler_params=pltpu.CompilerParams(
            dimension_semantics=("parallel",)),
    )(*args)
    return out[:n, :10]


# ----------------------------------------------------------------------------
# Parameters (PyTorch default-style init, PyTorch layouts)
# ----------------------------------------------------------------------------
def init_params(key):
    ks = jax.random.split(key, 8)

    def u(k, shape, fan_in):
        bound = 1.0 / np.sqrt(float(fan_in))
        return jax.random.uniform(k, shape, jnp.float32, -bound, bound)

    return {
        "conv1_w": u(ks[0], (10, 1, 3, 3), 9),
        "conv1_b": u(ks[1], (10,), 9),
        "conv2_w": u(ks[2], (20, 10, 3, 3), 90),
        "conv2_b": u(ks[3], (20,), 90),
        "fc1_w": u(ks[4], (100, 1280), 1280),   # (out, in) like nn.Linear
        "fc1_b": u(ks[5], (100,), 1280),
        "fc2_w": u(ks[6], (10, 100), 100),
        "fc2_b": u(ks[7], (10,), 100),
    }


# ----------------------------------------------------------------------------
# Pure-JAX reference (numerical validation only)
# ----------------------------------------------------------------------------
def _maxpool2(y):
    n, c, h, w = y.shape
    return jnp.max(y.reshape(n, c, h // 2, 2, w // 2, 2), axis=(3, 5))


def reference_forward(x, params):
    dn = ("NCHW", "OIHW", "NCHW")
    y = lax.conv_general_dilated(x, params["conv1_w"], (1, 1),
                                 ((1, 1), (1, 1)), dimension_numbers=dn)
    y = y + params["conv1_b"][None, :, None, None]
    y = jnp.maximum(_maxpool2(y), 0.0)
    y = lax.conv_general_dilated(y, params["conv2_w"], (1, 1),
                                 ((1, 1), (1, 1)), dimension_numbers=dn)
    y = y + params["conv2_b"][None, :, None, None]
    y = jnp.maximum(_maxpool2(y), 0.0)
    y = y.reshape(-1, 1280)
    y = jnp.maximum(y @ params["fc1_w"].T + params["fc1_b"], 0.0)
    y = y @ params["fc2_w"].T + params["fc2_b"]
    return jax.nn.log_softmax(y, axis=1)


if __name__ == "__main__":
    key = jax.random.PRNGKey(0)
    k_params, k_x = jax.random.split(key)
    params = init_params(k_params)
    x = jax.random.normal(k_x, (2, 1, 32, 32), dtype=jnp.float32)

    packed = pack_params(params, batch_tile=16)   # use 32 on v6e/v7x for full MXU rows
    fwd = jax.jit(net_forward)
    out = jax.block_until_ready(fwd(x, packed))

    assert out.shape == (2, 10), out.shape
    row_sums = jnp.sum(jnp.exp(out), axis=1)
    assert bool(jnp.all(jnp.abs(row_sums - 1.0) < 1e-4)), row_sums

    ref = reference_forward(x, params)
    err = jnp.max(jnp.abs(out - ref))
    assert bool(err < 3e-2), (err, out, ref)

    print("KERNEL_OK")
</pallas_src>

<mosaic_0001>
module attributes {stable_mosaic.version = 11 : i64} {
  func.func @kernel(%arg0: i32, %arg1: memref<128x128xf32, #tpu.memory_space<vmem>>, %arg2: memref<8x128x160xbf16, #tpu.memory_space<vmem>>, %arg3: memref<2x128x160xbf16, #tpu.memory_space<vmem>>, %arg4: memref<2x128x160xbf16, #tpu.memory_space<vmem>>, %arg5: memref<1x160xf32, #tpu.memory_space<vmem>>, %arg6: memref<6x160x160xbf16, #tpu.memory_space<vmem>>, %arg7: memref<1x160xf32, #tpu.memory_space<vmem>>, %arg8: memref<128x128xbf16, #tpu.memory_space<vmem>>, %arg9: memref<8x160x100xbf16, #tpu.memory_space<vmem>>, %arg10: memref<1x100xf32, #tpu.memory_space<vmem>>, %arg11: memref<100x128xbf16, #tpu.memory_space<vmem>>, %arg12: memref<1x128xf32, #tpu.memory_space<vmem>>, %arg13: memref<16x128xf32, #tpu.memory_space<vmem>>) attributes {dimension_semantics = [#tpu.dimension_semantics<parallel>], iteration_bounds = array<i64: 1>, scalar_prefetch = 0 : i64, scratch_operands = 0 : i64, tpu.core_type = #tpu.core_type<tc>, window_params = [{transform_indices = @transform_0, window_bounds = array<i64: 128, 128>}, {pipeline_mode = #tpu.pipeline_mode<synchronous>, transform_indices = @transform_1, window_bounds = array<i64: 8, 128, 160>}, {pipeline_mode = #tpu.pipeline_mode<synchronous>, transform_indices = @transform_2, window_bounds = array<i64: 2, 128, 160>}, {pipeline_mode = #tpu.pipeline_mode<synchronous>, transform_indices = @transform_3, window_bounds = array<i64: 2, 128, 160>}, {pipeline_mode = #tpu.pipeline_mode<synchronous>, transform_indices = @transform_4, window_bounds = array<i64: 1, 160>}, {pipeline_mode = #tpu.pipeline_mode<synchronous>, transform_indices = @transform_5, window_bounds = array<i64: 6, 160, 160>}, {pipeline_mode = #tpu.pipeline_mode<synchronous>, transform_indices = @transform_6, window_bounds = array<i64: 1, 160>}, {pipeline_mode = #tpu.pipeline_mode<synchronous>, transform_indices = @transform_7, window_bounds = array<i64: 128, 128>}, {pipeline_mode = #tpu.pipeline_mode<synchronous>, transform_indices = @transform_8, window_bounds = array<i64: 8, 160, 100>}, {pipeline_mode = #tpu.pipeline_mode<synchronous>, transform_indices = @transform_9, window_bounds = array<i64: 1, 100>}, {pipeline_mode = #tpu.pipeline_mode<synchronous>, transform_indices = @transform_10, window_bounds = array<i64: 100, 128>}, {pipeline_mode = #tpu.pipeline_mode<synchronous>, transform_indices = @transform_11, window_bounds = array<i64: 1, 128>}, {transform_indices = @transform_12, window_bounds = array<i64: 16, 128>}]} {
    %c0 = arith.constant 0 : index
    %c0_0 = arith.constant 0 : index
    %0 = vector.load %arg1[%c0, %c0_0] : memref<128x128xf32, #tpu.memory_space<vmem>>, vector<128x128xf32>
    %1 = tpu.iota {dimensions = array<i32: 0>} : vector<128x1xi32>
    %c7_i32 = arith.constant 7 : i32
    %2 = vector.broadcast %c7_i32 : i32 to vector<128x1xi32>
    %3 = arith.andi %1, %2 : vector<128x1xi32>
    %c0_i32 = arith.constant 0 : i32
    %4 = vector.broadcast %c0_i32 : i32 to vector<128x1xi32>
    %5 = arith.cmpi eq, %3, %4 : vector<128x1xi32>
    %c7_i32_1 = arith.constant 7 : i32
    %6 = vector.broadcast %c7_i32_1 : i32 to vector<128x1xi32>
    %7 = arith.cmpi eq, %3, %6 : vector<128x1xi32>
    %8 = arith.truncf %0 : vector<128x128xf32> to vector<128x128xbf16>
    %c1_i32 = arith.constant 1 : i32
    %9 = tpu.dynamic_rotate %0 by %c1_i32 dim 0 : vector<128x128xf32>, i32 -> vector<128x128xf32>
    %cst = arith.constant 0.000000e+00 : f32
    %10 = vector.shape_cast %5 : vector<128x1xi1> to vector<128x1xi1>
    %11 = vector.broadcast %10 : vector<128x1xi1> to vector<128x128xi1>
    %12 = vector.broadcast %cst : f32 to vector<128x128xf32>
    %13 = arith.select %11, %12, %9 : vector<128x128xi1>, vector<128x128xf32>
    %14 = arith.truncf %13 : vector<128x128xf32> to vector<128x128xbf16>
    %c127_i32 = arith.constant 127 : i32
    %15 = tpu.dynamic_rotate %0 by %c127_i32 dim 0 : vector<128x128xf32>, i32 -> vector<128x128xf32>
    %cst_2 = arith.constant 0.000000e+00 : f32
    %16 = vector.shape_cast %7 : vector<128x1xi1> to vector<128x1xi1>
    %17 = vector.broadcast %16 : vector<128x1xi1> to vector<128x128xi1>
    %18 = vector.broadcast %cst_2 : f32 to vector<128x128xf32>
    %19 = arith.select %17, %18, %15 : vector<128x128xi1>, vector<128x128xf32>
    %20 = arith.truncf %19 : vector<128x128xf32> to vector<128x128xbf16>
    %c0_3 = arith.constant 0 : index
    %c0_4 = arith.constant 0 : index
    %c0_5 = arith.constant 0 : index
    %21 = vector.load %arg2[%c0_3, %c0_4, %c0_5] : memref<8x128x160xbf16, #tpu.memory_space<vmem>>, vector<1x128x160xbf16>
    %22 = vector.shape_cast %21 : vector<1x128x160xbf16> to vector<128x160xbf16>
    %cst_6 = arith.constant dense<0.000000e+00> : vector<128x160xf32>
    %23 = tpu.matmul %8, %22, %cst_6 {dimension_numbers = #tpu.dot_dimension_numbers<[1], [0], [0], [1], [0, 0, 1, 1], [], []>} : vector<128x128xbf16>, vector<128x160xbf16>, vector<128x160xf32> -> vector<128x160xf32>
    %c0_7 = arith.constant 0 : index
    %c0_8 = arith.constant 0 : index
    %c0_9 = arith.constant 0 : index
    %24 = vector.load %arg3[%c0_7, %c0_8, %c0_9] : memref<2x128x160xbf16, #tpu.memory_space<vmem>>, vector<1x128x160xbf16>
    %25 = vector.shape_cast %24 : vector<1x128x160xbf16> to vector<128x160xbf16>
    %cst_10 = arith.constant dense<0.000000e+00> : vector<128x160xf32>
    %26 = tpu.matmul %14, %25, %cst_10 {dimension_numbers = #tpu.dot_dimension_numbers<[1], [0], [0], [1], [0, 0, 1, 1], [], []>} : vector<128x128xbf16>, vector<128x160xbf16>, vector<128x160xf32> -> vector<128x160xf32>
    %27 = arith.addf %23, %26 : vector<128x160xf32>
    %c1 = arith.constant 1 : index
    %c0_11 = arith.constant 0 : index
    %c0_12 = arith.constant 0 : index
    %28 = vector.load %arg2[%c1, %c0_11, %c0_12] : memref<8x128x160xbf16, #tpu.memory_space<vmem>>, vector<1x128x160xbf16>
    %29 = vector.shape_cast %28 : vector<1x128x160xbf16> to vector<128x160xbf16>
    %cst_13 = arith.constant dense<0.000000e+00> : vector<128x160xf32>
    %30 = tpu.matmul %8, %29, %cst_13 {dimension_numbers = #tpu.dot_dimension_numbers<[1], [0], [0], [1], [0, 0, 1, 1], [], []>} : vector<128x128xbf16>, vector<128x160xbf16>, vector<128x160xf32> -> vector<128x160xf32>
    %c1_14 = arith.constant 1 : index
    %c0_15 = arith.constant 0 : index
    %c0_16 = arith.constant 0 : index
    %31 = vector.load %arg3[%c1_14, %c0_15, %c0_16] : memref<2x128x160xbf16, #tpu.memory_space<vmem>>, vector<1x128x160xbf16>
    %32 = vector.shape_cast %31 : vector<1x128x160xbf16> to vector<128x160xbf16>
    %cst_17 = arith.constant dense<0.000000e+00> : vector<128x160xf32>
    %33 = tpu.matmul %14, %32, %cst_17 {dimension_numbers = #tpu.dot_dimension_numbers<[1], [0], [0], [1], [0, 0, 1, 1], [], []>} : vector<128x128xbf16>, vector<128x160xbf16>, vector<128x160xf32> -> vector<128x160xf32>
    %34 = arith.addf %30, %33 : vector<128x160xf32>
    %c2 = arith.constant 2 : index
    %c0_18 = arith.constant 0 : index
    %c0_19 = arith.constant 0 : index
    %35 = vector.load %arg2[%c2, %c0_18, %c0_19] : memref<8x128x160xbf16, #tpu.memory_space<vmem>>, vector<1x128x160xbf16>
    %36 = vector.shape_cast %35 : vector<1x128x160xbf16> to vector<128x160xbf16>
    %cst_20 = arith.constant dense<0.000000e+00> : vector<128x160xf32>
    %37 = tpu.matmul %8, %36, %cst_20 {dimension_numbers = #tpu.dot_dimension_numbers<[1], [0], [0], [1], [0, 0, 1, 1], [], []>} : vector<128x128xbf16>, vector<128x160xbf16>, vector<128x160xf32> -> vector<128x160xf32>
    %c3 = arith.constant 3 : index
    %c0_21 = arith.constant 0 : index
    %c0_22 = arith.constant 0 : index
    %38 = vector.load %arg2[%c3, %c0_21, %c0_22] : memref<8x128x160xbf16, #tpu.memory_space<vmem>>, vector<1x128x160xbf16>
    %39 = vector.shape_cast %38 : vector<1x128x160xbf16> to vector<128x160xbf16>
    %cst_23 = arith.constant dense<0.000000e+00> : vector<128x160xf32>
    %40 = tpu.matmul %8, %39, %cst_23 {dimension_numbers = #tpu.dot_dimension_numbers<[1], [0], [0], [1], [0, 0, 1, 1], [], []>} : vector<128x128xbf16>, vector<128x160xbf16>, vector<128x160xf32> -> vector<128x160xf32>
    %c4 = arith.constant 4 : index
    %c0_24 = arith.constant 0 : index
    %c0_25 = arith.constant 0 : index
    %41 = vector.load %arg2[%c4, %c0_24, %c0_25] : memref<8x128x160xbf16, #tpu.memory_space<vmem>>, vector<1x128x160xbf16>
    %42 = vector.shape_cast %41 : vector<1x128x160xbf16> to vector<128x160xbf16>
    %cst_26 = arith.constant dense<0.000000e+00> : vector<128x160xf32>
    %43 = tpu.matmul %8, %42, %cst_26 {dimension_numbers = #tpu.dot_dimension_numbers<[1], [0], [0], [1], [0, 0, 1, 1], [], []>} : vector<128x128xbf16>, vector<128x160xbf16>, vector<128x160xf32> -> vector<128x160xf32>
    %c5 = arith.constant 5 : index
    %c0_27 = arith.constant 0 : index
    %c0_28 = arith.constant 0 : index
    %44 = vector.load %arg2[%c5, %c0_27, %c0_28] : memref<8x128x160xbf16, #tpu.memory_space<vmem>>, vector<1x128x160xbf16>
    %45 = vector.shape_cast %44 : vector<1x128x160xbf16> to vector<128x160xbf16>
    %cst_29 = arith.constant dense<0.000000e+00> : vector<128x160xf32>
    %46 = tpu.matmul %8, %45, %cst_29 {dimension_numbers = #tpu.dot_dimension_numbers<[1], [0], [0], [1], [0, 0, 1, 1], [], []>} : vector<128x128xbf16>, vector<128x160xbf16>, vector<128x160xf32> -> vector<128x160xf32>
    %c6 = arith.constant 6 : index
    %c0_30 = arith.constant 0 : index
    %c0_31 = arith.constant 0 : index
    %47 = vector.load %arg2[%c6, %c0_30, %c0_31] : memref<8x128x160xbf16, #tpu.memory_space<vmem>>, vector<1x128x160xbf16>
    %48 = vector.shape_cast %47 : vector<1x128x160xbf16> to vector<128x160xbf16>
    %cst_32 = arith.constant dense<0.000000e+00> : vector<128x160xf32>
    %49 = tpu.matmul %8, %48, %cst_32 {dimension_numbers = #tpu.dot_dimension_numbers<[1], [0], [0], [1], [0, 0, 1, 1], [], []>} : vector<128x128xbf16>, vector<128x160xbf16>, vector<128x160xf32> -> vector<128x160xf32>
    %c0_33 = arith.constant 0 : index
    %c0_34 = arith.constant 0 : index
    %c0_35 = arith.constant 0 : index
    %50 = vector.load %arg4[%c0_33, %c0_34, %c0_35] : memref<2x128x160xbf16, #tpu.memory_space<vmem>>, vector<1x128x160xbf16>
    %51 = vector.shape_cast %50 : vector<1x128x160xbf16> to vector<128x160xbf16>
    %cst_36 = arith.constant dense<0.000000e+00> : vector<128x160xf32>
    %52 = tpu.matmul %20, %51, %cst_36 {dimension_numbers = #tpu.dot_dimension_numbers<[1], [0], [0], [1], [0, 0, 1, 1], [], []>} : vector<128x128xbf16>, vector<128x160xbf16>, vector<128x160xf32> -> vector<128x160xf32>
    %53 = arith.addf %49, %52 : vector<128x160xf32>
    %c7 = arith.constant 7 : index
    %c0_37 = arith.constant 0 : index
    %c0_38 = arith.constant 0 : index
    %54 = vector.load %arg2[%c7, %c0_37, %c0_38] : memref<8x128x160xbf16, #tpu.memory_space<vmem>>, vector<1x128x160xbf16>
    %55 = vector.shape_cast %54 : vector<1x128x160xbf16> to vector<128x160xbf16>
    %cst_39 = arith.constant dense<0.000000e+00> : vector<128x160xf32>
    %56 = tpu.matmul %8, %55, %cst_39 {dimension_numbers = #tpu.dot_dimension_numbers<[1], [0], [0], [1], [0, 0, 1, 1], [], []>} : vector<128x128xbf16>, vector<128x160xbf16>, vector<128x160xf32> -> vector<128x160xf32>
    %c1_40 = arith.constant 1 : index
    %c0_41 = arith.constant 0 : index
    %c0_42 = arith.constant 0 : index
    %57 = vector.load %arg4[%c1_40, %c0_41, %c0_42] : memref<2x128x160xbf16, #tpu.memory_space<vmem>>, vector<1x128x160xbf16>
    %58 = vector.shape_cast %57 : vector<1x128x160xbf16> to vector<128x160xbf16>
    %cst_43 = arith.constant dense<0.000000e+00> : vector<128x160xf32>
    %59 = tpu.matmul %20, %58, %cst_43 {dimension_numbers = #tpu.dot_dimension_numbers<[1], [0], [0], [1], [0, 0, 1, 1], [], []>} : vector<128x128xbf16>, vector<128x160xbf16>, vector<128x160xf32> -> vector<128x160xf32>
    %60 = arith.addf %56, %59 : vector<128x160xf32>
    %61 = arith.maximumf %27, %34 : vector<128x160xf32>
    %62 = arith.maximumf %37, %40 : vector<128x160xf32>
    %63 = arith.maximumf %61, %62 : vector<128x160xf32>
    %64 = arith.maximumf %43, %46 : vector<128x160xf32>
    %65 = arith.maximumf %53, %60 : vector<128x160xf32>
    %66 = arith.maximumf %64, %65 : vector<128x160xf32>
    %c0_44 = arith.constant 0 : index
    %c0_45 = arith.constant 0 : index
    %67 = vector.load %arg5[%c0_44, %c0_45] : memref<1x160xf32, #tpu.memory_space<vmem>>, vector<1x160xf32>
    %68 = vector.broadcast %67 : vector<1x160xf32> to vector<128x160xf32>
    %69 = arith.addf %63, %68 : vector<128x160xf32>
    %cst_46 = arith.constant 0.000000e+00 : f32
    %70 = vector.broadcast %cst_46 : f32 to vector<128x160xf32>
    %71 = arith.maximumf %69, %70 : vector<128x160xf32>
    %c0_47 = arith.constant 0 : index
    %c0_48 = arith.constant 0 : index
    %72 = vector.load %arg5[%c0_47, %c0_48] : memref<1x160xf32, #tpu.memory_space<vmem>>, vector<1x160xf32>
    %73 = vector.broadcast %72 : vector<1x160xf32> to vector<128x160xf32>
    %74 = arith.addf %66, %73 : vector<128x160xf32>
    %cst_49 = arith.constant 0.000000e+00 : f32
    %75 = vector.broadcast %cst_49 : f32 to vector<128x160xf32>
    %76 = arith.maximumf %74, %75 : vector<128x160xf32>
    %77 = arith.truncf %71 : vector<128x160xf32> to vector<128x160xbf16>
    %78 = arith.truncf %76 : vector<128x160xf32> to vector<128x160xbf16>
    %c1_i32_50 = arith.constant 1 : i32
    %79 = tpu.dynamic_rotate %76 by %c1_i32_50 dim 0 : vector<128x160xf32>, i32 -> vector<128x160xf32>
    %cst_51 = arith.constant 0.000000e+00 : f32
    %80 = vector.shape_cast %5 : vector<128x1xi1> to vector<128x1xi1>
    %81 = vector.broadcast %80 : vector<128x1xi1> to vector<128x160xi1>
    %82 = vector.broadcast %cst_51 : f32 to vector<128x160xf32>
    %83 = arith.select %81, %82, %79 : vector<128x160xi1>, vector<128x160xf32>
    %84 = arith.truncf %83 : vector<128x160xf32> to vector<128x160xbf16>
    %c127_i32_52 = arith.constant 127 : i32
    %85 = tpu.dynamic_rotate %71 by %c127_i32_52 dim 0 : vector<128x160xf32>, i32 -> vector<128x160xf32>
    %cst_53 = arith.constant 0.000000e+00 : f32
    %86 = vector.shape_cast %7 : vector<128x1xi1> to vector<128x1xi1>
    %87 = vector.broadcast %86 : vector<128x1xi1> to vector<128x160xi1>
    %88 = vector.broadcast %cst_53 : f32 to vector<128x160xf32>
    %89 = arith.select %87, %88, %85 : vector<128x160xi1>, vector<128x160xf32>
    %90 = arith.truncf %89 : vector<128x160xf32> to vector<128x160xbf16>
    %c0_54 = arith.constant 0 : index
    %c0_55 = arith.constant 0 : index
    %c0_56 = arith.constant 0 : index
    %91 = vector.load %arg6[%c0_54, %c0_55, %c0_56] : memref<6x160x160xbf16, #tpu.memory_space<vmem>>, vector<1x160x160xbf16>
    %92 = vector.shape_cast %91 : vector<1x160x160xbf16> to vector<160x160xbf16>
    %cst_57 = arith.constant dense<0.000000e+00> : vector<128x160xf32>
    %93 = tpu.matmul %84, %92, %cst_57 {dimension_numbers = #tpu.dot_dimension_numbers<[1], [0], [0], [1], [0, 0, 1, 1], [], []>} : vector<128x160xbf16>, vector<160x160xbf16>, vector<128x160xf32> -> vector<128x160xf32>
    %c2_58 = arith.constant 2 : index
    %c0_59 = arith.constant 0 : index
    %c0_60 = arith.constant 0 : index
    %94 = vector.load %arg6[%c2_58, %c0_59, %c0_60] : memref<6x160x160xbf16, #tpu.memory_space<vmem>>, vector<1x160x160xbf16>
    %95 = vector.shape_cast %94 : vector<1x160x160xbf16> to vector<160x160xbf16>
    %cst_61 = arith.constant dense<0.000000e+00> : vector<128x160xf32>
    %96 = tpu.matmul %77, %95, %cst_61 {dimension_numbers = #tpu.dot_dimension_numbers<[1], [0], [0], [1], [0, 0, 1, 1], [], []>} : vector<128x160xbf16>, vector<160x160xbf16>, vector<128x160xf32> -> vector<128x160xf32>
    %97 = arith.addf %93, %96 : vector<128x160xf32>
    %c4_62 = arith.constant 4 : index
    %c0_63 = arith.constant 0 : index
    %c0_64 = arith.constant 0 : index
    %98 = vector.load %arg6[%c4_62, %c0_63, %c0_64] : memref<6x160x160xbf16, #tpu.memory_space<vmem>>, vector<1x160x160xbf16>
    %99 = vector.shape_cast %98 : vector<1x160x160xbf16> to vector<160x160xbf16>
    %cst_65 = arith.constant dense<0.000000e+00> : vector<128x160xf32>
    %100 = tpu.matmul %78, %99, %cst_65 {dimension_numbers = #tpu.dot_dimension_numbers<[1], [0], [0], [1], [0, 0, 1, 1], [], []>} : vector<128x160xbf16>, vector<160x160xbf16>, vector<128x160xf32> -> vector<128x160xf32>
    %101 = arith.addf %97, %100 : vector<128x160xf32>
    %c0_66 = arith.constant 0 : index
    %c0_67 = arith.constant 0 : index
    %c0_68 = arith.constant 0 : index
    %102 = vector.load %arg6[%c0_66, %c0_67, %c0_68] : memref<6x160x160xbf16, #tpu.memory_space<vmem>>, vector<1x160x160xbf16>
    %103 = vector.shape_cast %102 : vector<1x160x160xbf16> to vector<160x160xbf16>
    %cst_69 = arith.constant dense<0.000000e+00> : vector<128x160xf32>
    %104 = tpu.matmul %77, %103, %cst_69 {dimension_numbers = #tpu.dot_dimension_numbers<[1], [0], [0], [1], [0, 0, 1, 1], [], []>} : vector<128x160xbf16>, vector<160x160xbf16>, vector<128x160xf32> -> vector<128x160xf32>
    %c2_70 = arith.constant 2 : index
    %c0_71 = arith.constant 0 : index
    %c0_72 = arith.constant 0 : index
    %105 = vector.load %arg6[%c2_70, %c0_71, %c0_72] : memref<6x160x160xbf16, #tpu.memory_space<vmem>>, vector<1x160x160xbf16>
    %106 = vector.shape_cast %105 : vector<1x160x160xbf16> to vector<160x160xbf16>
    %cst_73 = arith.constant dense<0.000000e+00> : vector<128x160xf32>
    %107 = tpu.matmul %78, %106, %cst_73 {dimension_numbers = #tpu.dot_dimension_numbers<[1], [0], [0], [1], [0, 0, 1, 1], [], []>} : vector<128x160xbf16>, vector<160x160xbf16>, vector<128x160xf32> -> vector<128x160xf32>
    %108 = arith.addf %104, %107 : vector<128x160xf32>
    %c4_74 = arith.constant 4 : index
    %c0_75 = arith.constant 0 : index
    %c0_76 = arith.constant 0 : index
    %109 = vector.load %arg6[%c4_74, %c0_75, %c0_76] : memref<6x160x160xbf16, #tpu.memory_space<vmem>>, vector<1x160x160xbf16>
    %110 = vector.shape_cast %109 : vector<1x160x160xbf16> to vector<160x160xbf16>
    %cst_77 = arith.constant dense<0.000000e+00> : vector<128x160xf32>
    %111 = tpu.matmul %90, %110, %cst_77 {dimension_numbers = #tpu.dot_dimension_numbers<[1], [0], [0], [1], [0, 0, 1, 1], [], []>} : vector<128x160xbf16>, vector<160x160xbf16>, vector<128x160xf32> -> vector<128x160xf32>
    %112 = arith.addf %108, %111 : vector<128x160xf32>
    %113 = arith.maximumf %101, %112 : vector<128x160xf32>
    %c1_78 = arith.constant 1 : index
    %c0_79 = arith.constant 0 : index
    %c0_80 = arith.constant 0 : index
    %114 = vector.load %arg6[%c1_78, %c0_79, %c0_80] : memref<6x160x160xbf16, #tpu.memory_space<vmem>>, vector<1x160x160xbf16>
    %115 = vector.shape_cast %114 : vector<1x160x160xbf16> to vector<160x160xbf16>
    %cst_81 = arith.constant dense<0.000000e+00> : vector<128x160xf32>
    %116 = tpu.matmul %84, %115, %cst_81 {dimension_numbers = #tpu.dot_dimension_numbers<[1], [0], [0], [1], [0, 0, 1, 1], [], []>} : vector<128x160xbf16>, vector<160x160xbf16>, vector<128x160xf32> -> vector<128x160xf32>
    %c3_82 = arith.constant 3 : index
    %c0_83 = arith.constant 0 : index
    %c0_84 = arith.constant 0 : index
    %117 = vector.load %arg6[%c3_82, %c0_83, %c0_84] : memref<6x160x160xbf16, #tpu.memory_space<vmem>>, vector<1x160x160xbf16>
    %118 = vector.shape_cast %117 : vector<1x160x160xbf16> to vector<160x160xbf16>
    %cst_85 = arith.constant dense<0.000000e+00> : vector<128x160xf32>
    %119 = tpu.matmul %77, %118, %cst_85 {dimension_numbers = #tpu.dot_dimension_numbers<[1], [0], [0], [1], [0, 0, 1, 1], [], []>} : vector<128x160xbf16>, vector<160x160xbf16>, vector<128x160xf32> -> vector<128x160xf32>
    %120 = arith.addf %116, %119 : vector<128x160xf32>
    %c5_86 = arith.constant 5 : index
    %c0_87 = arith.constant 0 : index
    %c0_88 = arith.constant 0 : index
    %121 = vector.load %arg6[%c5_86, %c0_87, %c0_88] : memref<6x160x160xbf16, #tpu.memory_space<vmem>>, vector<1x160x160xbf16>
    %122 = vector.shape_cast %121 : vector<1x160x160xbf16> to vector<160x160xbf16>
    %cst_89 = arith.constant dense<0.000000e+00> : vector<128x160xf32>
    %123 = tpu.matmul %78, %122, %cst_89 {dimension_numbers = #tpu.dot_dimension_numbers<[1], [0], [0], [1], [0, 0, 1, 1], [], []>} : vector<128x160xbf16>, vector<160x160xbf16>, vector<128x160xf32> -> vector<128x160xf32>
    %124 = arith.addf %120, %123 : vector<128x160xf32>
    %c1_90 = arith.constant 1 : index
    %c0_91 = arith.constant 0 : index
    %c0_92 = arith.constant 0 : index
    %125 = vector.load %arg6[%c1_90, %c0_91, %c0_92] : memref<6x160x160xbf16, #tpu.memory_space<vmem>>, vector<1x160x160xbf16>
    %126 = vector.shape_cast %125 : vector<1x160x160xbf16> to vector<160x160xbf16>
    %cst_93 = arith.constant dense<0.000000e+00> : vector<128x160xf32>
    %127 = tpu.matmul %77, %126, %cst_93 {dimension_numbers = #tpu.dot_dimension_numbers<[1], [0], [0], [1], [0, 0, 1, 1], [], []>} : vector<128x160xbf16>, vector<160x160xbf16>, vector<128x160xf32> -> vector<128x160xf32>
    %c3_94 = arith.constant 3 : index
    %c0_95 = arith.constant 0 : index
    %c0_96 = arith.constant 0 : index
    %128 = vector.load %arg6[%c3_94, %c0_95, %c0_96] : memref<6x160x160xbf16, #tpu.memory_space<vmem>>, vector<1x160x160xbf16>
    %129 = vector.shape_cast %128 : vector<1x160x160xbf16> to vector<160x160xbf16>
    %cst_97 = arith.constant dense<0.000000e+00> : vector<128x160xf32>
    %130 = tpu.matmul %78, %129, %cst_97 {dimension_numbers = #tpu.dot_dimension_numbers<[1], [0], [0], [1], [0, 0, 1, 1], [], []>} : vector<128x160xbf16>, vector<160x160xbf16>, vector<128x160xf32> -> vector<128x160xf32>
    %131 = arith.addf %127, %130 : vector<128x160xf32>
    %c5_98 = arith.constant 5 : index
    %c0_99 = arith.constant 0 : index
    %c0_100 = arith.constant 0 : index
    %132 = vector.load %arg6[%c5_98, %c0_99, %c0_100] : memref<6x160x160xbf16, #tpu.memory_space<vmem>>, vector<1x160x160xbf16>
    %133 = vector.shape_cast %132 : vector<1x160x160xbf16> to vector<160x160xbf16>
    %cst_101 = arith.constant dense<0.000000e+00> : vector<128x160xf32>
    %134 = tpu.matmul %90, %133, %cst_101 {dimension_numbers = #tpu.dot_dimension_numbers<[1], [0], [0], [1], [0, 0, 1, 1], [], []>} : vector<128x160xbf16>, vector<160x160xbf16>, vector<128x160xf32> -> vector<128x160xf32>
    %135 = arith.addf %131, %134 : vector<128x160xf32>
    %136 = arith.maximumf %124, %135 : vector<128x160xf32>
    %137 = arith.maximumf %113, %136 : vector<128x160xf32>
    %c0_102 = arith.constant 0 : index
    %c0_103 = arith.constant 0 : index
    %138 = vector.load %arg7[%c0_102, %c0_103] : memref<1x160xf32, #tpu.memory_space<vmem>>, vector<1x160xf32>
    %139 = vector.broadcast %138 : vector<1x160xf32> to vector<128x160xf32>
    %140 = arith.addf %137, %139 : vector<128x160xf32>
    %cst_104 = arith.constant 0.000000e+00 : f32
    %141 = vector.broadcast %cst_104 : f32 to vector<128x160xf32>
    %142 = arith.maximumf %140, %141 : vector<128x160xf32>
    %c0_105 = arith.constant 0 : index
    %c0_106 = arith.constant 0 : index
    %143 = vector.load %arg8[%c0_105, %c0_106] : memref<128x128xbf16, #tpu.memory_space<vmem>>, vector<128x128xbf16>
    %144 = arith.truncf %142 : vector<128x160xf32> to vector<128x160xbf16>
    %cst_107 = arith.constant dense<0.000000e+00> : vector<128x160xf32>
    %145 = tpu.matmul %143, %144, %cst_107 {dimension_numbers = #tpu.dot_dimension_numbers<[1], [0], [0], [1], [0, 0, 1, 1], [], []>} : vector<128x128xbf16>, vector<128x160xbf16>, vector<128x160xf32> -> vector<128x160xf32>
    %146 = arith.truncf %145 : vector<128x160xf32> to vector<128x160xbf16>
    %cst_108 = arith.constant 0.000000e+00 : f32
    %147 = vector.broadcast %cst_108 : f32 to vector<16x100xf32>
    %148 = vector.extract_strided_slice %146 {offsets = [0, 0], sizes = [16, 160], strides = [1, 1]} : vector<128x160xbf16> to vector<16x160xbf16>
    %c0_109 = arith.constant 0 : index
    %c0_110 = arith.constant 0 : index
    %c0_111 = arith.constant 0 : index
    %149 = vector.load %arg9[%c0_109, %c0_110, %c0_111] : memref<8x160x100xbf16, #tpu.memory_space<vmem>>, vector<1x160x100xbf16>
    %150 = vector.shape_cast %149 : vector<1x160x100xbf16> to vector<160x100xbf16>
    %cst_112 = arith.constant dense<0.000000e+00> : vector<16x100xf32>
    %151 = tpu.matmul %148, %150, %cst_112 {dimension_numbers = #tpu.dot_dimension_numbers<[1], [0], [0], [1], [0, 0, 1, 1], [], []>} : vector<16x160xbf16>, vector<160x100xbf16>, vector<16x100xf32> -> vector<16x100xf32>
    %152 = arith.addf %147, %151 : vector<16x100xf32>
    %153 = vector.extract_strided_slice %146 {offsets = [16, 0], sizes = [16, 160], strides = [1, 1]} : vector<128x160xbf16> to vector<16x160xbf16>
    %c1_113 = arith.constant 1 : index
    %c0_114 = arith.constant 0 : index
    %c0_115 = arith.constant 0 : index
    %154 = vector.load %arg9[%c1_113, %c0_114, %c0_115] : memref<8x160x100xbf16, #tpu.memory_space<vmem>>, vector<1x160x100xbf16>
    %155 = vector.shape_cast %154 : vector<1x160x100xbf16> to vector<160x100xbf16>
    %cst_116 = arith.constant dense<0.000000e+00> : vector<16x100xf32>
    %156 = tpu.matmul %153, %155, %cst_116 {dimension_numbers = #tpu.dot_dimension_numbers<[1], [0], [0], [1], [0, 0, 1, 1], [], []>} : vector<16x160xbf16>, vector<160x100xbf16>, vector<16x100xf32> -> vector<16x100xf32>
    %157 = arith.addf %152, %156 : vector<16x100xf32>
    %158 = vector.extract_strided_slice %146 {offsets = [32, 0], sizes = [16, 160], strides = [1, 1]} : vector<128x160xbf16> to vector<16x160xbf16>
    %c2_117 = arith.constant 2 : index
    %c0_118 = arith.constant 0 : index
    %c0_119 = arith.constant 0 : index
    %159 = vector.load %arg9[%c2_117, %c0_118, %c0_119] : memref<8x160x100xbf16, #tpu.memory_space<vmem>>, vector<1x160x100xbf16>
    %160 = vector.shape_cast %159 : vector<1x160x100xbf16> to vector<160x100xbf16>
    %cst_120 = arith.constant dense<0.000000e+00> : vector<16x100xf32>
    %161 = tpu.matmul %158, %160, %cst_120 {dimension_numbers = #tpu.dot_dimension_numbers<[1], [0], [0], [1], [0, 0, 1, 1], [], []>} : vector<16x160xbf16>, vector<160x100xbf16>, vector<16x100xf32> -> vector<16x100xf32>
    %162 = arith.addf %157, %161 : vector<16x100xf32>
    %163 = vector.extract_strided_slice %146 {offsets = [48, 0], sizes = [16, 160], strides = [1, 1]} : vector<128x160xbf16> to vector<16x160xbf16>
    %c3_121 = arith.constant 3 : index
    %c0_122 = arith.constant 0 : index
    %c0_123 = arith.constant 0 : index
    %164 = vector.load %arg9[%c3_121, %c0_122, %c0_123] : memref<8x160x100xbf16, #tpu.memory_space<vmem>>, vector<1x160x100xbf16>
    %165 = vector.shape_cast %164 : vector<1x160x100xbf16> to vector<160x100xbf16>
    %cst_124 = arith.constant dense<0.000000e+00> : vector<16x100xf32>
    %166 = tpu.matmul %163, %165, %cst_124 {dimension_numbers = #tpu.dot_dimension_numbers<[1], [0], [0], [1], [0, 0, 1, 1], [], []>} : vector<16x160xbf16>, vector<160x100xbf16>, vector<16x100xf32> -> vector<16x100xf32>
    %167 = arith.addf %162, %166 : vector<16x100xf32>
    %168 = vector.extract_strided_slice %146 {offsets = [64, 0], sizes = [16, 160], strides = [1, 1]} : vector<128x160xbf16> to vector<16x160xbf16>
    %c4_125 = arith.constant 4 : index
    %c0_126 = arith.constant 0 : index
    %c0_127 = arith.constant 0 : index
    %169 = vector.load %arg9[%c4_125, %c0_126, %c0_127] : memref<8x160x100xbf16, #tpu.memory_space<vmem>>, vector<1x160x100xbf16>
    %170 = vector.shape_cast %169 : vector<1x160x100xbf16> to vector<160x100xbf16>
    %cst_128 = arith.constant dense<0.000000e+00> : vector<16x100xf32>
    %171 = tpu.matmul %168, %170, %cst_128 {dimension_numbers = #tpu.dot_dimension_numbers<[1], [0], [0], [1], [0, 0, 1, 1], [], []>} : vector<16x160xbf16>, vector<160x100xbf16>, vector<16x100xf32> -> vector<16x100xf32>
    %172 = arith.addf %167, %171 : vector<16x100xf32>
    %173 = vector.extract_strided_slice %146 {offsets = [80, 0], sizes = [16, 160], strides = [1, 1]} : vector<128x160xbf16> to vector<16x160xbf16>
    %c5_129 = arith.constant 5 : index
    %c0_130 = arith.constant 0 : index
    %c0_131 = arith.constant 0 : index
    %174 = vector.load %arg9[%c5_129, %c0_130, %c0_131] : memref<8x160x100xbf16, #tpu.memory_space<vmem>>, vector<1x160x100xbf16>
    %175 = vector.shape_cast %174 : vector<1x160x100xbf16> to vector<160x100xbf16>
    %cst_132 = arith.constant dense<0.000000e+00> : vector<16x100xf32>
    %176 = tpu.matmul %173, %175, %cst_132 {dimension_numbers = #tpu.dot_dimension_numbers<[1], [0], [0], [1], [0, 0, 1, 1], [], []>} : vector<16x160xbf16>, vector<160x100xbf16>, vector<16x100xf32> -> vector<16x100xf32>
    %177 = arith.addf %172, %176 : vector<16x100xf32>
    %178 = vector.extract_strided_slice %146 {offsets = [96, 0], sizes = [16, 160], strides = [1, 1]} : vector<128x160xbf16> to vector<16x160xbf16>
    %c6_133 = arith.constant 6 : index
    %c0_134 = arith.constant 0 : index
    %c0_135 = arith.constant 0 : index
    %179 = vector.load %arg9[%c6_133, %c0_134, %c0_135] : memref<8x160x100xbf16, #tpu.memory_space<vmem>>, vector<1x160x100xbf16>
    %180 = vector.shape_cast %179 : vector<1x160x100xbf16> to vector<160x100xbf16>
    %cst_136 = arith.constant dense<0.000000e+00> : vector<16x100xf32>
    %181 = tpu.matmul %178, %180, %cst_136 {dimension_numbers = #tpu.dot_dimension_numbers<[1], [0], [0], [1], [0, 0, 1, 1], [], []>} : vector<16x160xbf16>, vector<160x100xbf16>, vector<16x100xf32> -> vector<16x100xf32>
    %182 = arith.addf %177, %181 : vector<16x100xf32>
    %183 = vector.extract_strided_slice %146 {offsets = [112, 0], sizes = [16, 160], strides = [1, 1]} : vector<128x160xbf16> to vector<16x160xbf16>
    %c7_137 = arith.constant 7 : index
    %c0_138 = arith.constant 0 : index
    %c0_139 = arith.constant 0 : index
    %184 = vector.load %arg9[%c7_137, %c0_138, %c0_139] : memref<8x160x100xbf16, #tpu.memory_space<vmem>>, vector<1x160x100xbf16>
    %185 = vector.shape_cast %184 : vector<1x160x100xbf16> to vector<160x100xbf16>
    %cst_140 = arith.constant dense<0.000000e+00> : vector<16x100xf32>
    %186 = tpu.matmul %183, %185, %cst_140 {dimension_numbers = #tpu.dot_dimension_numbers<[1], [0], [0], [1], [0, 0, 1, 1], [], []>} : vector<16x160xbf16>, vector<160x100xbf16>, vector<16x100xf32> -> vector<16x100xf32>
    %187 = arith.addf %182, %186 : vector<16x100xf32>
    %c0_141 = arith.constant 0 : index
    %c0_142 = arith.constant 0 : index
    %188 = vector.load %arg10[%c0_141, %c0_142] : memref<1x100xf32, #tpu.memory_space<vmem>>, vector<1x100xf32>
    %189 = vector.broadcast %188 : vector<1x100xf32> to vector<16x100xf32>
    %190 = arith.addf %187, %189 : vector<16x100xf32>
    %cst_143 = arith.constant 0.000000e+00 : f32
    %191 = vector.broadcast %cst_143 : f32 to vector<16x100xf32>
    %192 = arith.maximumf %190, %191 : vector<16x100xf32>
    %193 = arith.truncf %192 : vector<16x100xf32> to vector<16x100xbf16>
    %c0_144 = arith.constant 0 : index
    %c0_145 = arith.constant 0 : index
    %194 = vector.load %arg11[%c0_144, %c0_145] : memref<100x128xbf16, #tpu.memory_space<vmem>>, vector<100x128xbf16>
    %cst_146 = arith.constant dense<0.000000e+00> : vector<16x128xf32>
    %195 = tpu.matmul %193, %194, %cst_146 {dimension_numbers = #tpu.dot_dimension_numbers<[1], [0], [0], [1], [0, 0, 1, 1], [], []>} : vector<16x100xbf16>, vector<100x128xbf16>, vector<16x128xf32> -> vector<16x128xf32>
    %c0_147 = arith.constant 0 : index
    %c0_148 = arith.constant 0 : index
    %196 = vector.load %arg12[%c0_147, %c0_148] : memref<1x128xf32, #tpu.memory_space<vmem>>, vector<1x128xf32>
    %197 = vector.broadcast %196 : vector<1x128xf32> to vector<16x128xf32>
    %198 = arith.addf %195, %197 : vector<16x128xf32>
    %cst_149 = arith.constant dense<0xFF800000> : vector<16xf32>
    %199 = vector.multi_reduction <maximumf>, %198, %cst_149 [1] : vector<16x128xf32> to vector<16xf32>
    %200 = vector.shape_cast %199 : vector<16xf32> to vector<16x1xf32>
    %201 = vector.broadcast %200 : vector<16x1xf32> to vector<16x128xf32>
    %202 = arith.subf %198, %201 : vector<16x128xf32>
    %203 = math.exp %202 : vector<16x128xf32>
    %cst_150 = arith.constant dense<0.000000e+00> : vector<16xf32>
    %204 = vector.multi_reduction <add>, %203, %cst_150 [1] : vector<16x128xf32> to vector<16xf32>
    %205 = vector.shape_cast %204 : vector<16xf32> to vector<16x1xf32>
    %206 = math.log %205 : vector<16x1xf32>
    %207 = vector.broadcast %206 : vector<16x1xf32> to vector<16x128xf32>
    %208 = arith.subf %202, %207 : vector<16x128xf32>
    %c0_151 = arith.constant 0 : index
    %c0_152 = arith.constant 0 : index
    %209 = vector.load %arg13[%c0_151, %c0_152] : memref<16x128xf32, #tpu.memory_space<vmem>>, vector<16x128xf32>
    tpu.vector_store %arg13[%c0_151, %c0_152], %208 {strides = array<i32>} : memref<16x128xf32, #tpu.memory_space<vmem>>, vector<16x128xf32>,
    return
  }
  func.func @transform_0(%arg0: i32) -> (i32, i32) {
    %c0_i32 = arith.constant 0 : i32
    %c0_i32_0 = arith.constant 0 : i32
    return %arg0, %c0_i32 : i32, i32
  }
  func.func @transform_1(%arg0: i32) -> (i32, i32, i32) {
    %c0_i32 = arith.constant 0 : i32
    %c0_i32_0 = arith.constant 0 : i32
    %c0_i32_1 = arith.constant 0 : i32
    %c0_i32_2 = arith.constant 0 : i32
    return %c0_i32, %c0_i32_0, %c0_i32_1 : i32, i32, i32
  }
  func.func @transform_2(%arg0: i32) -> (i32, i32, i32) {
    %c0_i32 = arith.constant 0 : i32
    %c0_i32_0 = arith.constant 0 : i32
    %c0_i32_1 = arith.constant 0 : i32
    %c0_i32_2 = arith.constant 0 : i32
    return %c0_i32, %c0_i32_0, %c0_i32_1 : i32, i32, i32
  }
  func.func @transform_3(%arg0: i32) -> (i32, i32, i32) {
    %c0_i32 = arith.constant 0 : i32
    %c0_i32_0 = arith.constant 0 : i32
    %c0_i32_1 = arith.constant 0 : i32
    %c0_i32_2 = arith.constant 0 : i32
    return %c0_i32, %c0_i32_0, %c0_i32_1 : i32, i32, i32
  }
  func.func @transform_4(%arg0: i32) -> (i32, i32) {
    %c0_i32 = arith.constant 0 : i32
    %c0_i32_0 = arith.constant 0 : i32
    %c0_i32_1 = arith.constant 0 : i32
    return %c0_i32, %c0_i32_0 : i32, i32
  }
  func.func @transform_5(%arg0: i32) -> (i32, i32, i32) {
    %c0_i32 = arith.constant 0 : i32
    %c0_i32_0 = arith.constant 0 : i32
    %c0_i32_1 = arith.constant 0 : i32
    %c0_i32_2 = arith.constant 0 : i32
    return %c0_i32, %c0_i32_0, %c0_i32_1 : i32, i32, i32
  }
  func.func @transform_6(%arg0: i32) -> (i32, i32) {
    %c0_i32 = arith.constant 0 : i32
    %c0_i32_0 = arith.constant 0 : i32
    %c0_i32_1 = arith.constant 0 : i32
    return %c0_i32, %c0_i32_0 : i32, i32
  }
  func.func @transform_7(%arg0: i32) -> (i32, i32) {
    %c0_i32 = arith.constant 0 : i32
    %c0_i32_0 = arith.constant 0 : i32
    %c0_i32_1 = arith.constant 0 : i32
    return %c0_i32, %c0_i32_0 : i32, i32
  }
  func.func @transform_8(%arg0: i32) -> (i32, i32, i32) {
    %c0_i32 = arith.constant 0 : i32
    %c0_i32_0 = arith.constant 0 : i32
    %c0_i32_1 = arith.constant 0 : i32
    %c0_i32_2 = arith.constant 0 : i32
    return %c0_i32, %c0_i32_0, %c0_i32_1 : i32, i32, i32
  }
  func.func @transform_9(%arg0: i32) -> (i32, i32) {
    %c0_i32 = arith.constant 0 : i32
    %c0_i32_0 = arith.constant 0 : i32
    %c0_i32_1 = arith.constant 0 : i32
    return %c0_i32, %c0_i32_0 : i32, i32
  }
  func.func @transform_10(%arg0: i32) -> (i32, i32) {
    %c0_i32 = arith.constant 0 : i32
    %c0_i32_0 = arith.constant 0 : i32
    %c0_i32_1 = arith.constant 0 : i32
    return %c0_i32, %c0_i32_0 : i32, i32
  }
  func.func @transform_11(%arg0: i32) -> (i32, i32) {
    %c0_i32 = arith.constant 0 : i32
    %c0_i32_0 = arith.constant 0 : i32
    %c0_i32_1 = arith.constant 0 : i32
    return %c0_i32, %c0_i32_0 : i32, i32
  }
  func.func @transform_12(%arg0: i32) -> (i32, i32) {
    %c0_i32 = arith.constant 0 : i32
    %c0_i32_0 = arith.constant 0 : i32
    return %arg0, %c0_i32 : i32, i32
  }
}

</mosaic_0001>

<bundles_post_ra>
// kernel: net_forward.1
= control target key start
LH: loop header
LB: loop body
LE: loop exit
PB: predicated region body
PF: predicated region fallthrough
CT: control target
= control target key end

     0   :  { %s18160_s2 = inlined_call_operand.vmem [shape: bf16[2,128,160], index: 2, kind: input, shape index: {}]   ;;  %s18161_s1 = inlined_call_operand.vmem [shape: bf16[8,128,160], index: 1, kind: input, shape index: {}]   ;;  %s18162_s0 = inlined_call_operand.vmem [shape: f32[128,128], index: 0, kind: input, shape index: {}]   ;;  %s18163_s4 = inlined_call_operand.vmem [shape: f32[1,160], index: 4, kind: input, shape index: {}]   ;;  %s18164_s3 = inlined_call_operand.vmem [shape: bf16[2,128,160], index: 3, kind: input, shape index: {}]   ;;  %s18165_s5 = inlined_call_operand.vmem [shape: bf16[6,160,160], index: 5, kind: input, shape index: {}]   ;;  %s18166_s6 = inlined_call_operand.vmem [shape: f32[1,160], index: 6, kind: input, shape index: {}]   ;;  %s18167_s7 = inlined_call_operand.vmem [shape: bf16[128,128], index: 7, kind: input, shape index: {}]   ;;  %s18168_s8 = inlined_call_operand.vmem [shape: bf16[8,160,100], index: 8, kind: input, shape index: {}]   ;;  %s18169_s9 = inlined_call_operand.vmem [shape: f32[1,100], index: 9, kind: input, shape index: {}]   ;;  %s18170_s11 = inlined_call_operand.vmem [shape: f32[1,128], index: 11, kind: input, shape index: {}]   ;;  %s18171_s10 = inlined_call_operand.vmem [shape: bf16[100,128], index: 10, kind: input, shape index: {}]   ;;  %s18172_s12 = inlined_call_operand.vmem [shape: f32[16,128], index: 12, kind: output, shape index: {}]  }
   0x1   :  { %v8040_v0 = vld [vmem:[%s18160_s2 + $0x70] sm:$0xf]  ;;  %v10862_v1 = vld [vmem:[%s18160_s2 + $0x74] sm:$0xf0]  ;;  %v10861_v2 = vld [vmem:[%s18160_s2 + $0x74] sm:$0xf] }
   0x2   :  { %v8041_v3 = vor.u32 %v10862_v1, %v8040_v0  ;;  %v8042_v4 = vld [vmem:[%s18160_s2 + $0x78] sm:$0xf0]  ;;  %v8184_v5 = vld [vmem:[%s18161_s1 + $0x70] sm:$0xf]  ;;  %v10846_v6 = vld [vmem:[%s18161_s1 + $0x74] sm:$0xf0] }
   0x3   :  { %v8045_v7 = vor.u32 %v10861_v2, %v8042_v4  ;;  %v8185_v8 = vor.u32 %v10846_v6, %v8184_v5  ;;  %v10845_v9 = vld [vmem:[%s18161_s1 + $0x74] sm:$0xf]  ;;  %v8186_v10 = vld [vmem:[%s18161_s1 + $0x78] sm:$0xf0]  ;;  %v8032_v11 = vld [vmem:[%s18160_s2 + $0x60] sm:$0xf]  ;;  %v58_v2 = vlaneseq }
   0x4   :  { %421 = vmatpush.bf16.msra.mxu0 %v8041_v3  ;;  %v8189_v12 = vor.u32 %v10845_v9, %v8186_v10  ;;  %v10860_v13 = vld [vmem:[%s18160_s2 + $0x64] sm:$0xf0]  ;;  %v10859_v14 = vld [vmem:[%s18160_s2 + $0x64] sm:$0xf]  ;;  %v8034_v15 = vld [vmem:[%s18160_s2 + $0x68] sm:$0xf0] }
   0x5   :  { %470 = vmatpush.bf16.msra.mxu1 %v8045_v7  ;;  %599 = vmatpush.bf16.msra.mxu2 %v8185_v8  ;;  %v8033_v16 = vor.u32 %v10860_v13, %v8032_v11  ;;  %v8037_v17 = vor.u32 %v10859_v14, %v8034_v15  ;;  %v8176_v18 = vld [vmem:[%s18161_s1 + $0x60] sm:$0xf]  ;;  %v10844_v19 = vld [vmem:[%s18161_s1 + $0x64] sm:$0xf0]  ;;  %v10843_v20 = vld [vmem:[%s18161_s1 + $0x64] sm:$0xf] }
   0x6   :  { %648 = vmatpush.bf16.msra.mxu3 %v8189_v12  ;;  %v8177_v21 = vor.u32 %v10844_v19, %v8176_v18  ;;  %v8178_v22 = vld [vmem:[%s18161_s1 + $0x68] sm:$0xf0]  ;;  %v8024_v23 = vld [vmem:[%s18160_s2 + $0x50] sm:$0xf]  ;;  %v10858_v24 = vld [vmem:[%s18160_s2 + $0x54] sm:$0xf0] }
   0x7   :  { %v8181_v25 = vor.u32 %v10843_v20, %v8178_v22  ;;  %v10857_v26 = vld [vmem:[%s18160_s2 + $0x54] sm:$0xf]  ;;  %v8026_v27 = vld [vmem:[%s18160_s2 + $0x58] sm:$0xf0]  ;;  %v8168_v28 = vld [vmem:[%s18161_s1 + $0x50] sm:$0xf]  ;;  %v8025_v29 = vor.u32 %v10858_v24, %v8024_v23 }
   0x8   :  { %422 = vmatpush.bf16.msra.mxu0 %v8033_v16  ;;  %v10842_v30 = vld [vmem:[%s18161_s1 + $0x54] sm:$0xf0]  ;;  %v10841_v31 = vld [vmem:[%s18161_s1 + $0x54] sm:$0xf]  ;;  %v8170_v32 = vld [vmem:[%s18161_s1 + $0x58] sm:$0xf0]  ;;  %v8029_v33 = vor.u32 %v10857_v26, %v8026_v27 }
   0x9   :  { %471 = vmatpush.bf16.msra.mxu1 %v8037_v17  ;;  %600 = vmatpush.bf16.msra.mxu2 %v8177_v21  ;;  %v8169_v34 = vor.u32 %v10842_v30, %v8168_v28  ;;  %v8016_v35 = vld [vmem:[%s18160_s2 + $0x40] sm:$0xf]  ;;  %v10856_v36 = vld [vmem:[%s18160_s2 + $0x44] sm:$0xf0]  ;;  %v10855_v37 = vld [vmem:[%s18160_s2 + $0x44] sm:$0xf]  ;;  %v8173_v38 = vor.u32 %v10841_v31, %v8170_v32 }
   0xa   :  { %649 = vmatpush.bf16.msra.mxu3 %v8181_v25  ;;  %v8018_v39 = vld [vmem:[%s18160_s2 + $0x48] sm:$0xf0]  ;;  %v8160_v40 = vld [vmem:[%s18161_s1 + $0x40] sm:$0xf]  ;;  %v10840_v41 = vld [vmem:[%s18161_s1 + $0x44] sm:$0xf0]  ;;  %v8017_v44 = vor.u32 %v10856_v36, %v8016_v35 }
   0xb   :  { %v10839_v42 = vld [vmem:[%s18161_s1 + $0x44] sm:$0xf]  ;;  %v8162_v43 = vld [vmem:[%s18161_s1 + $0x48] sm:$0xf0]  ;;  %v8021_v45 = vor.u32 %v10855_v37, %v8018_v39  ;;  %v8161_v46 = vor.u32 %v10840_v41, %v8160_v40  ;;  %v8008_v47 = vld [vmem:[%s18160_s2 + $0x30] sm:$0xf] }
   0xc   :  { %423 = vmatpush.bf16.msra.mxu0 %v8025_v29  ;;  %v10854_v48 = vld [vmem:[%s18160_s2 + $0x34] sm:$0xf0]  ;;  %v10853_v49 = vld [vmem:[%s18160_s2 + $0x34] sm:$0xf]  ;;  %v8165_v50 = vor.u32 %v10839_v42, %v8162_v43  ;;  %v8010_v51 = vld [vmem:[%s18160_s2 + $0x38] sm:$0xf0] }
   0xd   :  { %472 = vmatpush.bf16.msra.mxu1 %v8029_v33  ;;  %601 = vmatpush.bf16.msra.mxu2 %v8169_v34  ;;  %v8152_v52 = vld [vmem:[%s18161_s1 + $0x30] sm:$0xf]  ;;  %v10838_v53 = vld [vmem:[%s18161_s1 + $0x34] sm:$0xf0]  ;;  %v10837_v54 = vld [vmem:[%s18161_s1 + $0x34] sm:$0xf]  ;;  %v8009_v56 = vor.u32 %v10854_v48, %v8008_v47  ;;  %v8013_v57 = vor.u32 %v10853_v49, %v8010_v51 }
   0xe   :  { %650 = vmatpush.bf16.msra.mxu3 %v8173_v38  ;;  %v8154_v55 = vld [vmem:[%s18161_s1 + $0x38] sm:$0xf0]  ;;  %v8153_v58 = vor.u32 %v10838_v53, %v8152_v52  ;;  %v8000_v59 = vld [vmem:[%s18160_s2 + $0x20] sm:$0xf]  ;;  %v10852_v60 = vld [vmem:[%s18160_s2 + $0x24] sm:$0xf0] }
   0xf   :  { %v10851_v61 = vld [vmem:[%s18160_s2 + $0x24] sm:$0xf]  ;;  %v8157_v62 = vor.u32 %v10837_v54, %v8154_v55  ;;  %v8002_v63 = vld [vmem:[%s18160_s2 + $0x28] sm:$0xf0]  ;;  %v8144_v0 = vld [vmem:[%s18161_s1 + $0x20] sm:$0xf]  ;;  %v8001_v5 = vor.u32 %v10852_v60, %v8000_v59 }
  0x10   :  { %424 = vmatpush.bf16.msra.mxu0 %v8017_v44  ;;  %v10836_v1 = vld [vmem:[%s18161_s1 + $0x24] sm:$0xf0]  ;;  %v10835_v3 = vld [vmem:[%s18161_s1 + $0x24] sm:$0xf]  ;;  %v8146_v4 = vld [vmem:[%s18161_s1 + $0x28] sm:$0xf0]  ;;  %v8005_v9 = vor.u32 %v10851_v61, %v8002_v63 }
  0x11   :  { %473 = vmatpush.bf16.msra.mxu1 %v8021_v45  ;;  %602 = vmatpush.bf16.msra.mxu2 %v8161_v46  ;;  %v7992_v6 = vld [vmem:[%s18160_s2 + $0x10] sm:$0xf]  ;;  %v10850_v7 = vld [vmem:[%s18160_s2 + $0x14] sm:$0xf0]  ;;  %v10849_v8 = vld [vmem:[%s18160_s2 + $0x14] sm:$0xf]  ;;  %v8145_v10 = vor.u32 %v10836_v1, %v8144_v0  ;;  %v8149_v14 = vor.u32 %v10835_v3, %v8146_v4 }
  0x12   :  { %651 = vmatpush.bf16.msra.mxu3 %v8165_v50  ;;  %v7994_v11 = vld [vmem:[%s18160_s2 + $0x18] sm:$0xf0]  ;;  %v8136_v12 = vld [vmem:[%s18161_s1 + $0x10] sm:$0xf]  ;;  %v10834_v13 = vld [vmem:[%s18161_s1 + $0x14] sm:$0xf0]  ;;  %v7993_v19 = vor.u32 %v10850_v7, %v7992_v6 }
  0x13   :  { %v10833_v15 = vld [vmem:[%s18161_s1 + $0x14] sm:$0xf]  ;;  %v42_v16 = vld [vmem:[%s18162_s0] sm:$0xff]  ;;  %v11507_v17 = vld [vmem:[%s18162_s0 + $0x8] sm:$0xff]  ;;  %v11509_v18 = vshrl.u32 %v58_v2, 7  ;;  %v7997_v29 = vor.u32 %v10849_v8, %v7994_v11  ;;  %v8137_v30 = vor.u32 %v10834_v13, %v8136_v12  ;;  %v18702_v37 = vmov 0 }
  0x14   :  { %425 = vmatpush.bf16.msra.mxu0 %v8009_v56  ;;  %v8138_v20 = vld [vmem:[%s18161_s1 + $0x18] sm:$0xf0]  ;;  %v7984_v21 = vld [vmem:[%s18160_s2] sm:$0xf]  ;;  %v131_v23 = vrot.slane %v42_v16, 7  ;;  %v132_v27 = vrot.slane %v11507_v17, 7  ;;  %v11576_v48 = vpack.c.bf16 %v11507_v17, %v42_v16 }
  0x15   :  { %474 = vmatpush.bf16.msra.mxu1 %v8013_v57  ;;  %603 = vmatpush.bf16.msra.mxu2 %v8153_v58  ;;  %v11520_v22 = vld [vmem:[%s18162_s0 + $0x78] sm:$0xff]  ;;  %v10848_v24 = vld [vmem:[%s18160_s2 + $0x4] sm:$0xf0]  ;;  %v11526_v25 = vadd.s32 8, %v11509_v18  ;;  %v18192_v26 = vand.u32 7, %v11509_v18  ;;  %vm18174_vm0 = vcmp.lt.s32.totalorder %v11509_v18, 1  ;;  %v8141_v33 = vor.u32 %v10833_v15, %v8138_v20 }
  0x16   :  { %652 = vmatpush.bf16.msra.mxu3 %v8157_v62  ;;  %v18193_v28 = vrot.slane %v11520_v22, 7  ;;  %v10847_v31 = vld [vmem:[%s18160_s2 + $0x4] sm:$0xf]  ;;  %v7986_v32 = vld [vmem:[%s18160_s2 + $0x8] sm:$0xf0]  ;;  %v7985_v40 = vor.u32 %v10848_v24, %v7984_v21  ;;  %v18705_v41 = vmov 0  ;;  %v162_v42 = vsel %vm18174_vm0, %v131_v23, %v132_v27 }
  0x17   :  { %v8128_v34 = vld [vmem:[%s18161_s1] sm:$0xf]  ;;  %v10832_v35 = vld [vmem:[%s18161_s1 + $0x4] sm:$0xf0]  ;;  %v18187_v36 = vand.u32 7, %v11526_v25  ;;  %vm11547_vm1 = vcmp.eq.s32.totalorder %v18192_v26, 0  ;;  %v7989_v44 = vor.u32 %v10847_v31, %v7986_v32 }
  0x18   :  { %426 = vmatpush.bf16.msra.mxu0 %v8001_v5  ;;  %v18703_v37 = vsel %vm11547_vm1, 4294967295, %v18702_v37  ;;  %v10831_v38 = vld [vmem:[%s18161_s1 + $0x4] sm:$0xf]  ;;  %v8130_v39 = vld [vmem:[%s18161_s1 + $0x8] sm:$0xf0]  ;;  %v163_v43 = vsel %vm18174_vm0, %v18193_v28, %v131_v23  ;;  %vm8047_vm3 = vmneg %vm11547_vm1  ;;  %v8129_v45 = vor.u32 %v10832_v35, %v8128_v34  ;;  %18708 = vst [vmem:[#allocation4_spill] sm:$0xff] %v11576_v48 }
  0x19   :  { %475 = vmatpush.bf16.msra.mxu1 %v8005_v9  ;;  %604 = vmatpush.bf16.msra.mxu2 %v8145_v10  ;;  %18704 = vst [vmem:[#allocation2_spill] sm:$0xff] %v18703_v37  ;;  %vm11559_vm2 = vcmp.eq.s32.totalorder %v18187_v36, 0  ;;  %v8133_v46 = vor.u32 %v10831_v38, %v8130_v39  ;;  %v11573_v47 = vpack.c.bf16 %v162_v42, %v163_v43  ;;  %v18709_v49 = vmov 0  ;;  %v44_v52 = vld [vmem:[%s18162_s0 + $0x10] sm:$0xff]  ;;  %v45_v53 = vld [vmem:[%s18162_s0 + $0x18] sm:$0xff]  ;;  %v46_v3 = vld [vmem:[%s18162_s0 + $0x20] sm:$0xff] }
  0x1a   :  { %653 = vmatpush.bf16.msra.mxu3 %v8149_v14  ;;  %v18706_v41 = vsel %vm11559_vm2, 4294967295, %v18705_v41  ;;  %vm8046_vm4 = vmneg %vm11559_vm2  ;;  %v11583_v50 = vadd.s32 16, %v11509_v18  ;;  %v11586_v51 = vadd.s32 24, %v11509_v18  ;;  %v133_v56 = vrot.slane %v44_v52, 7  ;;  %v47_v4 = vld [vmem:[%s18162_s0 + $0x28] sm:$0xff]  ;;  %v49_v20 = vld [vmem:[%s18162_s0 + $0x38] sm:$0xff] }
  0x1b   :  { %18707 = vst [vmem:[#allocation3_spill] sm:$0xff] %v18706_v41  ;;  %vm11578_vm5 = vmpackc.low %vm8046_vm4, %vm8047_vm3  ;;  %v134_v57 = vrot.slane %v45_v53, 7  ;;  %v18714_v58 = vmov 0  ;;  %v18717_v59 = vmov 0  ;;  %v11626_v63 = vpack.c.bf16 %v45_v53, %v44_v52  ;;  %v11752_v42 = vld [vmem:[%s18162_s0 + $0x48] sm:$0xff] }
  0x1c   :  { %427 = vmatpush.bf16.msra.mxu0 %v7993_v19  ;;  %v18710_v49 = vsel %vm11578_vm5, 4294967295, %v18709_v49  ;;  %18712 = vst [vmem:[#allocation6_spill] sm:$0xff] %v11583_v50  ;;  %v18186_v54 = vand.u32 7, %v11583_v50  ;;  %v18185_v55 = vand.u32 7, %v11586_v51  ;;  %v161_v61 = vsel %vm18174_vm0, %v132_v27, %v133_v56  ;;  %v48_v19 = vld [vmem:[%s18162_s0 + $0x30] sm:$0xff] }
  0x1d   :  { %476 = vmatpush.bf16.msra.mxu1 %v7997_v29  ;;  %605 = vmatpush.bf16.msra.mxu2 %v8137_v30  ;;  %18711 = vst [vmem:[#allocation5_spill] sm:$0xff] %v18710_v49  ;;  %v160_v60 = vsel %vm18174_vm0, %v133_v56, %v134_v57  ;;  %v18720_v0 = vmov 0  ;;  %v11633_v1 = vadd.s32 40, %v11509_v18  ;;  %v11636_v2 = vadd.s32 32, %v11509_v18 }
  0x1e   :  { %654 = vmatpush.bf16.msra.mxu3 %v8141_v33  ;;  %18713 = vst [vmem:[#allocation7_spill] sm:$0xff] %v11586_v51  ;;  %vm11606_vm6 = vcmp.eq.s32.totalorder %v18186_v54, 0  ;;  %vm11612_vm7 = vcmp.eq.s32.totalorder %v18185_v55, 0  ;;  %v11624_v62 = vpack.c.bf16 %v160_v60, %v161_v61  ;;  %v135_v7 = vrot.slane %v46_v3, 7 }
  0x1f   :  { %v18715_v58 = vsel %vm11606_vm6, 4294967295, %v18714_v58  ;;  %v18718_v59 = vsel %vm11612_vm7, 4294967295, %v18717_v59  ;;  %vm8052_vm8 = vmneg %vm11606_vm6  ;;  %18723 = vst [vmem:[#allocation11_spill] sm:$0xff] %v11633_v1  ;;  %v18183_v5 = vand.u32 7, %v11633_v1  ;;  %v18184_v6 = vand.u32 7, %v11636_v2 }
  0x20   :  { %428 = vmatpush.bf16.msra.mxu0 %v7985_v40  ;;  %18716 = vst [vmem:[#allocation8_spill] sm:$0xff] %v18715_v58  ;;  %vm8051_vm9 = vmneg %vm11612_vm7  ;;  %v136_v8 = vrot.slane %v47_v4, 7  ;;  %v18725_v9 = vmov 0  ;;  %v18728_v10 = vmov 0  ;;  %v159_v12 = vsel %vm18174_vm0, %v134_v57, %v135_v7  ;;  %v50_v40 = vld [vmem:[%s18162_s0 + $0x40] sm:$0xff] }
  0x21   :  { %477 = vmatpush.bf16.msra.mxu1 %v7989_v44  ;;  %606 = vmatpush.bf16.msra.mxu2 %v8129_v45  ;;  %18719 = vst [vmem:[#allocation9_spill] sm:$0xff] %v18718_v59  ;;  %vm11628_vm10 = vmpackc.low %vm8051_vm9, %vm8052_vm8  ;;  %vm11656_vm11 = vcmp.eq.s32.totalorder %v18183_v5, 0  ;;  %vm11662_vm12 = vcmp.eq.s32.totalorder %v18184_v6, 0  ;;  %v11676_v14 = vpack.c.bf16 %v47_v4, %v46_v3  ;;  %v18732_v15 = vmov 0  ;;  %v11788_v3 = vld [vmem:[%s18162_s0 + $0x50] sm:$0xff] }
  0x22   :  { %655 = vmatpush.bf16.msra.mxu3 %v8133_v46  ;;  %v18721_v0 = vsel %vm11628_vm10, 4294967295, %v18720_v0  ;;  %18724 = vst [vmem:[#allocation12_spill] sm:$0xff] %v11636_v2  ;;  %v18726_v9 = vsel %vm11656_vm11, 4294967295, %v18725_v9  ;;  %v18729_v10 = vsel %vm11662_vm12, 4294967295, %v18728_v10  ;;  %v158_v11 = vsel %vm18174_vm0, %v135_v7, %v136_v8  ;;  %vm8056_vm13 = vmneg %vm11656_vm11  ;;  %v10892_v6 = vld [vmem:[%s18160_s2 + $0xe4] sm:$0xf0] }
  0x23   :  { %8050 = vmatmul.msk.bf16.vlgmr.msra.gmra.mxu0 %vm11578_vm5, %v11573_v47  ;;  %18722 = vst [vmem:[#allocation10_spill] sm:$0xff] %v18721_v0  ;;  %vm8057_vm14 = vmneg %vm11662_vm12  ;;  %v11674_v13 = vpack.c.bf16 %v158_v11, %v159_v12  ;;  %v11683_v16 = vadd.s32 56, %v11509_v18  ;;  %v11686_v17 = vadd.s32 48, %v11509_v18  ;;  %v137_v24 = vrot.slane %v48_v19, 7  ;;  %v11797_v11 = vld [vmem:[%s18162_s0 + $0x58] sm:$0xff] }
  0x24   :  { %8090 = vmatmul.msk.bf16.vlgmr.msra.gmra.mxu1 %vm11578_vm5, %v11573_v47  ;;  %607 = vmatmul.bf16.vlgmr.msra.gmra.mxu2 %v11576_v48  ;;  %18727 = vst [vmem:[#allocation13_spill] sm:$0xff] %v18726_v9  ;;  %vm11678_vm15 = vmpackc.low %vm8056_vm13, %vm8057_vm14  ;;  %v138_v27 = vrot.slane %v49_v20, 7  ;;  %v18737_v29 = vmov 0  ;;  %v18740_v30 = vmov 0  ;;  %v11726_v34 = vpack.c.bf16 %v49_v20, %v48_v19 }
  0x25   :  { %656 = vmatmul.bf16.vlgmr.msra.gmra.mxu3 %v11576_v48  ;;  %18730 = vst [vmem:[#allocation14_spill] sm:$0xff] %v18729_v10  ;;  %v18733_v15 = vsel %vm11678_vm15, 4294967295, %v18732_v15  ;;  %v18181_v21 = vand.u32 7, %v11683_v16  ;;  %v18182_v23 = vand.u32 7, %v11686_v17  ;;  %v157_v32 = vsel %vm18174_vm0, %v136_v8, %v137_v24 }
  0x26   :  { %18731 = vst [vmem:[#allocation15_spill] sm:$0xff] %v11676_v14  ;;  %v156_v31 = vsel %vm18174_vm0, %v137_v24, %v138_v27  ;;  %v18744_v35 = vmov 0  ;;  %v11733_v38 = vadd.s32 72, %v11509_v18  ;;  %v11736_v39 = vadd.s32 64, %v11509_v18 }
  0x27   :  { %18734 = vst [vmem:[#allocation16_spill] sm:$0xff] %v18733_v15  ;;  %vm11706_vm3 = vcmp.eq.s32.totalorder %v18181_v21, 0  ;;  %vm11712_vm4 = vcmp.eq.s32.totalorder %v18182_v23, 0  ;;  %v11724_v33 = vpack.c.bf16 %v156_v31, %v157_v32  ;;  %v139_v45 = vrot.slane %v50_v40, 7  ;;  %v8272_v23 = vld [vmem:[%s18160_s2 + $0xe0] sm:$0xf] }
  0x28   :  { %18735 = vst [vmem:[#allocation17_spill] sm:$0xff] %v11683_v16  ;;  %v18738_v29 = vsel %vm11706_vm3, 4294967295, %v18737_v29  ;;  %v18741_v30 = vsel %vm11712_vm4, 4294967295, %v18740_v30  ;;  %vm8061_vm8 = vmneg %vm11706_vm3  ;;  %v18179_v43 = vand.u32 7, %v11733_v38  ;;  %v18180_v44 = vand.u32 7, %v11736_v39 }
  0x29   :  { %18736 = vst [vmem:[#allocation18_spill] sm:$0xff] %v11686_v17  ;;  %vm8062_vm9 = vmneg %vm11712_vm4  ;;  %v140_v46 = vrot.slane %v11752_v42, 7  ;;  %v18749_v52 = vmov 0  ;;  %v18752_v53 = vmov 0  ;;  %v11770_v56 = vadd.s32 80, %v11509_v18 }
  0x2a   :  { %18739 = vst [vmem:[#allocation19_spill] sm:$0xff] %v18738_v29  ;;  %vm11728_vm13 = vmpackc.low %vm8061_vm8, %vm8062_vm9  ;;  %vm11759_vm14 = vcmp.eq.s32.totalorder %v18179_v43, 0  ;;  %vm11765_vm8 = vcmp.eq.s32.totalorder %v18180_v44, 0  ;;  %v11773_v57 = vadd.s32 88, %v11509_v18  ;;  %v155_v61 = vsel %vm18174_vm0, %v138_v27, %v139_v45  ;;  %v10878_v43 = vld [vmem:[%s18161_s1 + $0xf4] sm:$0xf0] }
  0x2b   :  { %18742 = vst [vmem:[#allocation20_spill] sm:$0xff] %v18741_v30  ;;  %v18745_v35 = vsel %vm11728_vm13, 4294967295, %v18744_v35  ;;  %v18750_v52 = vsel %vm11759_vm14, 4294967295, %v18749_v52  ;;  %v18753_v53 = vsel %vm11765_vm8, 4294967295, %v18752_v53  ;;  %v154_v60 = vsel %vm18174_vm0, %v139_v45, %v140_v46  ;;  %vm8066_vm9 = vmneg %vm11759_vm14  ;;  %v10894_v45 = vld [vmem:[%s18160_s2 + $0xf4] sm:$0xf0] }
  0x2c   :  { %18743 = vst [vmem:[#allocation21_spill] sm:$0xff] %v11726_v34  ;;  %vm8067_vm1 = vmneg %vm11765_vm8  ;;  %v18178_v4 = vand.u32 7, %v11770_v56  ;;  %v18177_v7 = vand.u32 7, %v11773_v57  ;;  %v11792_v8 = vpack.c.bf16 %v154_v60, %v155_v61  ;;  %v11800_v12 = vpack.c.bf16 %v11752_v42, %v50_v40  ;;  %v8280_v40 = vld [vmem:[%s18160_s2 + $0xf0] sm:$0xf] }
  0x2d   :  { %18746 = vst [vmem:[#allocation22_spill] sm:$0xff] %v18745_v35  ;;  %vm11802_vm0 = vmpackc.low %vm8066_vm9, %vm8067_vm1  ;;  %v18758_v19 = vmov 0  ;;  %v141_v20 = vrot.slane %v11788_v3, 7  ;;  %v18761_v24 = vmov 0  ;;  %v18764_v27 = vmov 0 }
  0x2e   :  { %18747 = vst [vmem:[#allocation23_spill] sm:$0xff] %v11733_v38  ;;  %v18759_v19 = vsel %vm11802_vm0, 4294967295, %v18758_v19  ;;  %vm11809_vm2 = vcmp.eq.s32.totalorder %v18178_v4, 0  ;;  %vm11815_vm14 = vcmp.eq.s32.totalorder %v18177_v7, 0  ;;  %v18194_v31 = vrot.slane %v11797_v11, 7 }
  0x2f   :  { %18748 = vst [vmem:[#allocation24_spill] sm:$0xff] %v11736_v39  ;;  %v18762_v24 = vsel %vm11809_vm2, 4294967295, %v18761_v24  ;;  %v18765_v27 = vsel %vm11815_vm14, 4294967295, %v18764_v27  ;;  %v11821_v32 = vadd.s32 104, %v11509_v18  ;;  %v10893_v60 = vld [vmem:[%s18160_s2 + $0xf4] sm:$0xf]  ;;  %v8281_v61 = vor.u32 %v10894_v45, %v8280_v40  ;;  %vm8071_vm8 = vmneg %vm11815_vm14 }
  0x30   :  { %18751 = vst [vmem:[#allocation25_spill] sm:$0xff] %v18750_v52  ;;  %v8282_v7 = vld [vmem:[%s18160_s2 + $0xf8] sm:$0xf0]  ;;  %v8424_v4 = vld [vmem:[%s18161_s1 + $0xf0] sm:$0xf]  ;;  %vm18768_vm1 = vcmp.lt.s32.totalorder %v11509_v18, 1 }
  0x31   :  { %18754 = vst [vmem:[#allocation26_spill] sm:$0xff] %v18753_v53  ;;  %v8285_v44 = vor.u32 %v10893_v60, %v8282_v7  ;;  %v8425_v21 = vor.u32 %v10878_v43, %v8424_v4  ;;  %v10877_v40 = vld [vmem:[%s18161_s1 + $0xf4] sm:$0xf]  ;;  %v8426_v45 = vld [vmem:[%s18161_s1 + $0xf8] sm:$0xf0]  ;;  %811 = vmatpush.bf16.msrb.mxu0 %v8281_v61  ;;  %v8273_v7 = vor.u32 %v10892_v6, %v8272_v23  ;;  %vm18769_vm9 = vmmov %vm18768_vm1  ;;  %v18190_v42 = vand.u32 7, %v11821_v32 }
  0x32   :  { %18755 = vst [vmem:[#allocation27_spill] sm:$0xff] %v11770_v56  ;;  %v8429_v5 = vor.u32 %v10877_v40, %v8426_v45  ;;  %v10891_v43 = vld [vmem:[%s18160_s2 + $0xe4] sm:$0xf]  ;;  %v8274_v4 = vld [vmem:[%s18160_s2 + $0xe8] sm:$0xf0] }
  0x33   :  { %8055 = vmatmul.msk.bf16.gmra.mxu0 %vm11628_vm10, %v11624_v62  ;;  %18756 = vst [vmem:[#allocation28_spill] sm:$0xff] %v11773_v57  ;;  %860 = vmatpush.bf16.msrb.mxu1 %v8285_v44  ;;  %v8277_v60 = vor.u32 %v10891_v43, %v8274_v4  ;;  %v8416_v61 = vld [vmem:[%s18161_s1 + $0xe0] sm:$0xf]  ;;  %v10876_v40 = vld [vmem:[%s18161_s1 + $0xe4] sm:$0xf0]  ;;  %vm11969_vm14 = vcmp.eq.s32.totalorder %v18190_v42, 0 }
  0x34   :  { %8095 = vmatmul.msk.bf16.gmra.mxu1 %vm11628_vm10, %v11624_v62  ;;  %612 = vmatmul.bf16.gmra.mxu2 %v11626_v63  ;;  %18757 = vst [vmem:[#allocation29_spill] sm:$0xff] %v11800_v12  ;;  %v10875_v45 = vld [vmem:[%s18161_s1 + $0xe4] sm:$0xf]  ;;  %v8417_v55 = vor.u32 %v10876_v40, %v8416_v61  ;;  %v8264_v6 = vld [vmem:[%s18160_s2 + $0xd0] sm:$0xf] }
  0x35   :  { %661 = vmatmul.bf16.gmra.mxu3 %v11626_v63  ;;  %18760 = vst [vmem:[#allocation30_spill] sm:$0xff] %v18759_v19  ;;  %989 = vmatpush.bf16.msrb.mxu2 %v8425_v21  ;;  %v8418_v21 = vld [vmem:[%s18161_s1 + $0xe8] sm:$0xf0]  ;;  %v10890_v23 = vld [vmem:[%s18160_s2 + $0xd4] sm:$0xf0] }
  0x36   :  { %18763 = vst [vmem:[#allocation31_spill] sm:$0xff] %v18762_v24  ;;  %1038 = vmatpush.bf16.msrb.mxu3 %v8429_v5  ;;  %v8421_v44 = vor.u32 %v10875_v45, %v8418_v21  ;;  %v10889_v43 = vld [vmem:[%s18160_s2 + $0xd4] sm:$0xf]  ;;  %v8266_v5 = vld [vmem:[%s18160_s2 + $0xd8] sm:$0xf0]  ;;  %812 = vmatpush.bf16.msrb.mxu0 %v8273_v7  ;;  %v8265_v61 = vor.u32 %v10890_v23, %v8264_v6 }
  0x37   :  { %18766 = vst [vmem:[#allocation32_spill] sm:$0xff] %v18765_v27  ;;  %v8408_v4 = vld [vmem:[%s18161_s1 + $0xd0] sm:$0xf]  ;;  %v10874_v40 = vld [vmem:[%s18161_s1 + $0xd4] sm:$0xf0]  ;;  %861 = vmatpush.bf16.msrb.mxu1 %v8277_v60  ;;  %v8269_v54 = vor.u32 %v10889_v43, %v8266_v5  ;;  %v152_v23 = vsel %vm18768_vm1, %v141_v20, %v18194_v31  ;;  %v11920_v60 = vadd.s32 96, %v11509_v18  ;;  %vm8072_vm1 = vmneg %vm11809_vm2 }
  0x38   :  { %18767 = vst [vmem:[#allocation33_spill] sm:$0xff] %v11821_v32  ;;  %v10873_v45 = vld [vmem:[%s18161_s1 + $0xd4] sm:$0xf]  ;;  %v8410_v21 = vld [vmem:[%s18161_s1 + $0xd8] sm:$0xf0]  ;;  %v8409_v36 = vor.u32 %v10874_v40, %v8408_v4  ;;  %vm18782_vm2 = vcmp.lt.s32.totalorder %v11509_v18, 1 }
  0x39   :  { %990 = vmatpush.bf16.msrb.mxu2 %v8417_v55  ;;  %v8256_v7 = vld [vmem:[%s18160_s2 + $0xc0] sm:$0xf]  ;;  %v10888_v6 = vld [vmem:[%s18160_s2 + $0xc4] sm:$0xf0]  ;;  %v153_v55 = vsel %vm18769_vm9, %v140_v46, %v141_v20  ;;  %18770 = vst [vmem:[#allocation34_spill] sm:$0xff] %v11920_v60  ;;  %v8413_v43 = vor.u32 %v10873_v45, %v8410_v21  ;;  %vm11952_vm9 = vmpackc.low %vm8071_vm8, %vm8072_vm1 }
  0x3a   :  { %1039 = vmatpush.bf16.msrb.mxu3 %v8421_v44  ;;  %v10887_v5 = vld [vmem:[%s18160_s2 + $0xc4] sm:$0xf]  ;;  %v8258_v4 = vld [vmem:[%s18160_s2 + $0xc8] sm:$0xf0]  ;;  %813 = vmatpush.bf16.msrb.mxu0 %v8265_v61  ;;  %v8257_v46 = vor.u32 %v10888_v6, %v8256_v7  ;;  %v8400_v20 = vld [vmem:[%s18161_s1 + $0xc0] sm:$0xf]  ;;  %v11937_v40 = vpack.c.bf16 %v152_v23, %v153_v55  ;;  %v11947_v7 = vpack.c.bf16 %v11797_v11, %v11788_v3 }
  0x3b   :  { %v10872_v44 = vld [vmem:[%s18161_s1 + $0xc4] sm:$0xf0]  ;;  %862 = vmatpush.bf16.msrb.mxu1 %v8269_v54  ;;  %v8261_v45 = vor.u32 %v10887_v5, %v8258_v4  ;;  %v10871_v21 = vld [vmem:[%s18161_s1 + $0xc4] sm:$0xf]  ;;  %v8402_v61 = vld [vmem:[%s18161_s1 + $0xc8] sm:$0xf0] }
  0x3c   :  { %18771 = vst [vmem:[#allocation35_spill] sm:$0xff] %v11947_v7  ;;  %v18772_v6 = vmov 0  ;;  %v18191_v54 = vand.u32 7, %v11920_v60  ;;  %v11965_v3 = vld [vmem:[%s18162_s0 + $0x68] sm:$0xff]  ;;  %v18775_v23 = vmov 0  ;;  %v8401_v55 = vor.u32 %v10872_v44, %v8400_v20  ;;  %vm18784_vm3 = vmmov %vm18782_vm2 }
  0x3d   :  { %991 = vmatpush.bf16.msrb.mxu2 %v8409_v36  ;;  %v18773_v6 = vsel %vm11952_vm9, 4294967295, %v18772_v6  ;;  %v11959_v36 = vld [vmem:[%s18162_s0 + $0x60] sm:$0xff]  ;;  %v18776_v23 = vsel %vm11969_vm14, 4294967295, %v18775_v23  ;;  %v8405_v5 = vor.u32 %v10871_v21, %v8402_v61  ;;  %v8248_v4 = vld [vmem:[%s18160_s2 + $0xb0] sm:$0xf] }
  0x3e   :  { %18774 = vst [vmem:[#allocation36_spill] sm:$0xff] %v18773_v6  ;;  %1040 = vmatpush.bf16.msrb.mxu3 %v8413_v43  ;;  %814 = vmatpush.bf16.msrb.mxu0 %v8257_v46  ;;  %v143_v43 = vrot.slane %v11959_v36, 7  ;;  %v10886_v42 = vld [vmem:[%s18160_s2 + $0xb4] sm:$0xf0]  ;;  %vm11989_vm8 = vcmp.eq.s32.totalorder %v18191_v54, 0  ;;  %v18778_v46 = vmov 0 }
  0x3f   :  { %18777 = vst [vmem:[#allocation37_spill] sm:$0xff] %v18776_v23  ;;  %863 = vmatpush.bf16.msrb.mxu1 %v8261_v45  ;;  %v18779_v46 = vsel %vm11989_vm8, 4294967295, %v18778_v46  ;;  %v8249_v44 = vor.u32 %v10886_v42, %v8248_v4  ;;  %v10885_v45 = vld [vmem:[%s18160_s2 + $0xb4] sm:$0xf]  ;;  %v8250_v21 = vld [vmem:[%s18160_s2 + $0xb8] sm:$0xf0]  ;;  %vm8077_vm1 = vmneg %vm11989_vm8 }
  0x40   :  { %18780 = vst [vmem:[#allocation38_spill] sm:$0xff] %v18779_v46  ;;  %v8253_v61 = vor.u32 %v10885_v45, %v8250_v21  ;;  %v8392_v54 = vld [vmem:[%s18161_s1 + $0xb0] sm:$0xf]  ;;  %v10870_v42 = vld [vmem:[%s18161_s1 + $0xb4] sm:$0xf0]  ;;  %vm18785_vm8 = vmneg %vm11969_vm14 }
  0x41   :  { %992 = vmatpush.bf16.msrb.mxu2 %v8401_v55  ;;  %v10869_v4 = vld [vmem:[%s18161_s1 + $0xb4] sm:$0xf]  ;;  %v8393_v26 = vor.u32 %v10870_v42, %v8392_v54  ;;  %v8394_v55 = vld [vmem:[%s18161_s1 + $0xb8] sm:$0xf0]  ;;  %v8240_v45 = vld [vmem:[%s18160_s2 + $0xa0] sm:$0xf] }
  0x42   :  { %1041 = vmatpush.bf16.msrb.mxu3 %v8405_v5  ;;  %815 = vmatpush.bf16.msrb.mxu0 %v8249_v44  ;;  %v10884_v21 = vld [vmem:[%s18160_s2 + $0xa4] sm:$0xf0]  ;;  %v8397_v28 = vor.u32 %v10869_v4, %v8394_v55  ;;  %v10883_v5 = vld [vmem:[%s18160_s2 + $0xa4] sm:$0xf]  ;;  %v8242_v54 = vld [vmem:[%s18160_s2 + $0xa8] sm:$0xf0] }
  0x43   :  { %8060 = vmatmul.msk.bf16.gmra.mxu0 %vm11678_vm15, %v11674_v13  ;;  %864 = vmatpush.bf16.msrb.mxu1 %v8253_v61  ;;  %v8241_v31 = vor.u32 %v10884_v21, %v8240_v45  ;;  %v8384_v44 = vld [vmem:[%s18161_s1 + $0xa0] sm:$0xf]  ;;  %v8245_v42 = vor.u32 %v10883_v5, %v8242_v54  ;;  %v10868_v20 = vld [vmem:[%s18161_s1 + $0xa4] sm:$0xf0]  ;;  %v10867_v61 = vld [vmem:[%s18161_s1 + $0xa4] sm:$0xf] }
  0x44   :  { %8100 = vmatmul.msk.bf16.gmra.mxu1 %vm11678_vm15, %v11674_v13  ;;  %617 = vmatmul.bf16.gmra.mxu2 %v11676_v14  ;;  %v8386_v4 = vld [vmem:[%s18161_s1 + $0xa8] sm:$0xf0]  ;;  %v8385_v55 = vor.u32 %v10868_v20, %v8384_v44  ;;  %v8232_v45 = vld [vmem:[%s18160_s2 + $0x90] sm:$0xf]  ;;  %v10882_v21 = vld [vmem:[%s18160_s2 + $0x94] sm:$0xf0] }
  0x45   :  { %666 = vmatmul.bf16.gmra.mxu3 %v11676_v14  ;;  %993 = vmatpush.bf16.msrb.mxu2 %v8393_v26  ;;  %v10881_v5 = vld [vmem:[%s18160_s2 + $0x94] sm:$0xf]  ;;  %v8389_v54 = vor.u32 %v10867_v61, %v8386_v4  ;;  %v8233_v37 = vor.u32 %v10882_v21, %v8232_v45  ;;  %v8234_v26 = vld [vmem:[%s18160_s2 + $0x98] sm:$0xf0]  ;;  %v8376_v20 = vld [vmem:[%s18161_s1 + $0x90] sm:$0xf] }
  0x46   :  { %1042 = vmatpush.bf16.msrb.mxu3 %v8397_v28  ;;  %816 = vmatpush.bf16.msrb.mxu0 %v8241_v31  ;;  %v10866_v44 = vld [vmem:[%s18161_s1 + $0x94] sm:$0xf0]  ;;  %v8237_v28 = vor.u32 %v10881_v5, %v8234_v26  ;;  %v10865_v31 = vld [vmem:[%s18161_s1 + $0x94] sm:$0xf]  ;;  %v8378_v61 = vld [vmem:[%s18161_s1 + $0x98] sm:$0xf0] }
  0x47   :  { %865 = vmatpush.bf16.msrb.mxu1 %v8245_v42  ;;  %v18781_v4 = vrot.slane %v11965_v3, 7  ;;  %v18783_v21 = vrot.slane %v11797_v11, 7  ;;  %v8377_v42 = vor.u32 %v10866_v44, %v8376_v20  ;;  %vm12076_vm4 = vmpackc.low %vm18785_vm8, %vm8077_vm1  ;;  %v18786_v5 = vmov 0  ;;  %v8224_v11 = vld [vmem:[%s18160_s2 + $0x80] sm:$0xf] }
  0x48   :  { %v18787_v5 = vsel %vm12076_vm4, 4294967295, %v18786_v5  ;;  %v8381_v26 = vor.u32 %v10865_v31, %v8378_v61  ;;  %v8368_v20 = vld [vmem:[%s18161_s1 + $0x80] sm:$0xf]  ;;  %v10864_v44 = vld [vmem:[%s18161_s1 + $0x84] sm:$0xf0]  ;;  %vm18798_vm8 = vcmp.lt.s32.totalorder %v11509_v18, 1 }
  0x49   :  { %v150_v45 = vsel %vm18782_vm2, %v143_v43, %v18781_v4  ;;  %v151_v41 = vsel %vm18784_vm3, %v18783_v21, %v143_v43  ;;  %994 = vmatpush.bf16.msrb.mxu2 %v8385_v55  ;;  %18788 = vst [vmem:[#allocation39_spill] sm:$0xff] %v18787_v5  ;;  %v10880_v43 = vld [vmem:[%s18160_s2 + $0x84] sm:$0xf0]  ;;  %v10879_v55 = vld [vmem:[%s18160_s2 + $0x84] sm:$0xf]  ;;  %vm18800_vm1 = vmmov %vm18798_vm8 }
  0x4a   :  { %1043 = vmatpush.bf16.msrb.mxu3 %v8389_v54  ;;  %817 = vmatpush.bf16.msrb.mxu0 %v8233_v37  ;;  %v12080_v46 = vpack.c.bf16 %v150_v45, %v151_v41  ;;  %v12093_v54 = vpack.c.bf16 %v11965_v3, %v11959_v36  ;;  %v8225_v37 = vor.u32 %v10880_v43, %v8224_v11  ;;  %v8226_v41 = vld [vmem:[%s18160_s2 + $0x88] sm:$0xf0]  ;;  %v10863_v61 = vld [vmem:[%s18161_s1 + $0x84] sm:$0xf]  ;;  %v12114_v45 = vadd.s32 120, %v11509_v18 }
  0x4b   :  { %866 = vmatpush.bf16.msrb.mxu1 %v8237_v28  ;;  %v12105_v28 = vadd.s32 112, %v11509_v18  ;;  %v8229_v31 = vor.u32 %v10879_v55, %v8226_v41  ;;  %v8369_v36 = vor.u32 %v10864_v44, %v8368_v20  ;;  %v8370_v4 = vld [vmem:[%s18161_s1 + $0x88] sm:$0xf0]  ;;  %v18791_v55 = vmov 0  ;;  %v8496_v30 = vld [vmem:[%s18161_s1 + $0x160] sm:$0xf] }
  0x4c   :  { %18790 = vst [vmem:[#allocation41_spill] sm:$0xff] %v12114_v45  ;;  %v8373_v21 = vor.u32 %v10863_v61, %v8370_v4  ;;  %v18205_v11 = vand.u32 7, %v12114_v45  ;;  %v18797_v41 = vrot.slane %v11520_v22, 7  ;;  %v18799_v44 = vrot.slane %v11965_v3, 7  ;;  %v8464_v6 = vld [vmem:[%s18161_s1 + $0x120] sm:$0xf] }
  0x4d   :  { %18789 = vst [vmem:[#allocation40_spill] sm:$0xff] %v12105_v28  ;;  %995 = vmatpush.bf16.msrb.mxu2 %v8377_v42  ;;  %v56_v42 = vld [vmem:[%s18162_s0 + $0x70] sm:$0xff]  ;;  %v18802_v4 = vmov 0 }
  0x4e   :  { %1044 = vmatpush.bf16.msrb.mxu3 %v8381_v26  ;;  %818 = vmatpush.bf16.msrb.mxu0 %v8225_v37  ;;  %v18206_v26 = vand.u32 7, %v12105_v28  ;;  %v145_v43 = vrot.slane %v56_v42, 7  ;;  %vm12137_vm3 = vcmp.eq.s32.totalorder %v18205_v11, 0  ;;  %v18794_v37 = vmov 0  ;;  %v8456_v28 = vld [vmem:[%s18161_s1 + $0x110] sm:$0xf] }
  0x4f   :  { %867 = vmatpush.bf16.msrb.mxu1 %v8229_v31  ;;  %v18795_v37 = vsel %vm12137_vm3, 4294967295, %v18794_v37  ;;  %vm8081_vm11 = vmneg %vm12137_vm3  ;;  %v12156_v61 = vpack.c.bf16 %v11520_v22, %v56_v42  ;;  %vm18953_vm3 = vcmp.lt.s32.totalorder %v11509_v18, 7 }
  0x50   :  { %vm12131_vm2 = vcmp.eq.s32.totalorder %v18206_v26, 0  ;;  %18796 = vst [vmem:[#allocation43_spill] sm:$0xff] %v18795_v37  ;;  %v148_v20 = vsel %vm18798_vm8, %v145_v43, %v18797_v41  ;;  %v149_v31 = vsel %vm18800_vm1, %v18799_v44, %v145_v43 }
  0x51   :  { %996 = vmatpush.bf16.msrb.mxu2 %v8369_v36  ;;  %v18792_v55 = vsel %vm12131_vm2, 4294967295, %v18791_v55  ;;  %vm8082_vm14 = vmneg %vm12131_vm2  ;;  %v12153_v36 = vpack.c.bf16 %v148_v20, %v149_v31  ;;  %18801 = vst [vmem:[#allocation44_spill] sm:$0xff] %v12156_v61 }
  0x52   :  { %1045 = vmatpush.bf16.msrb.mxu3 %v8373_v21  ;;  %18793 = vst [vmem:[#allocation42_spill] sm:$0xff] %v18792_v55  ;;  %vm12158_vm12 = vmpackc.low %vm8081_vm11, %vm8082_vm14  ;;  %vm18284_vm11 = vcmp.lt.s32.totalorder %v11509_v18, 7 }
  0x53   :  { %8065 = vmatmul.msk.bf16.gmra.mxu0 %vm11728_vm13, %v11724_v33  ;;  %v18803_v4 = vsel %vm12158_vm12, 4294967295, %v18802_v4  ;;  %vm18958_vm2 = vmmov %vm18953_vm3 }
  0x54   :  { %8105 = vmatmul.msk.bf16.gmra.mxu1 %vm11728_vm13, %v11724_v33  ;;  %622 = vmatmul.bf16.gmra.mxu2 %v11726_v34  ;;  %18804 = vst [vmem:[#allocation45_spill] sm:$0xff] %v18803_v4 }
  0x55   :  { %671 = vmatmul.bf16.gmra.mxu3 %v11726_v34 }
  0x63   :  { %8070 = vmatmul.msk.bf16.gmra.mxu0 %vm11802_vm0, %v11792_v8 }
  0x64   :  { %8110 = vmatmul.msk.bf16.gmra.mxu1 %vm11802_vm0, %v11792_v8  ;;  %627 = vmatmul.bf16.gmra.mxu2 %v11800_v12 }
  0x65   :  { %676 = vmatmul.bf16.gmra.mxu3 %v11800_v12 }
  0x73   :  { %8075 = vmatmul.msk.bf16.gmra.mxu0 %vm11952_vm9, %v11937_v40 }
  0x74   :  { %8115 = vmatmul.msk.bf16.gmra.mxu1 %vm11952_vm9, %v11937_v40  ;;  %632 = vmatmul.bf16.gmra.mxu2 %v11947_v7 }
  0x75   :  { %681 = vmatmul.bf16.gmra.mxu3 %v11947_v7 }
  0x83   :  { %8080 = vmatmul.msk.bf16.gmra.mxu0 %vm12076_vm4, %v12080_v46 }
  0x84   :  { %8120 = vmatmul.msk.bf16.gmra.mxu1 %vm12076_vm4, %v12080_v46  ;;  %637 = vmatmul.bf16.gmra.mxu2 %v12093_v54 }
  0x85   :  { %686 = vmatmul.bf16.gmra.mxu3 %v12093_v54 }
  0x93   :  { %8085 = vmatmul.msk.bf16.gmra.mxu0 %vm12158_vm12, %v12153_v36 }
  0x94   :  { %8125 = vmatmul.msk.bf16.gmra.mxu1 %vm12158_vm12, %v12153_v36  ;;  %642 = vmatmul.bf16.gmra.mxu2 %v12156_v61 }
  0x95   :  { %691 = vmatmul.bf16.gmra.mxu3 %v12156_v61 }
  0xa0   :  { %v430_v3 = vpop.f32.mrf.mxu0 }
  0xa1   :  { %v479_v21 = vpop.f32.mrf.mxu1 }
  0xa3   :  { %8290 = vmatmul.msk.bf16.vlgmr.msrb.gmra.mxu0 %vm11578_vm5, %v11573_v47 }
  0xa4   :  { %8330 = vmatmul.msk.bf16.vlgmr.msrb.gmra.mxu1 %vm11578_vm5, %v11573_v47  ;;  %997 = vmatmul.bf16.vlgmr.msrb.gmra.mxu2 %v11576_v48 }
  0xa5   :  { %1046 = vmatmul.bf16.vlgmr.msrb.gmra.mxu3 %v11576_v48 }
  0xa7   :  { %v608_v22 = vpop.f32.mrf.mxu2 }
  0xa8   :  { %v12178_v42 = vadd.f32 %v608_v22, %v430_v3  ;;  %v657_v43 = vpop.f32.mrf.mxu3  ;;  %v432_v41 = vpop.f32.mrf.mxu0 }
  0xa9   :  { %v12180_v20 = vadd.f32 %v657_v43, %v479_v21  ;;  %v481_v44 = vpop.f32.mrf.mxu1 }
  0xaf   :  { %v610_v31 = vpop.f32.mrf.mxu2 }
  0xb0   :  { %v12182_v11 = vadd.f32 %v610_v31, %v432_v41  ;;  %v659_v26 = vpop.f32.mrf.mxu3  ;;  %v435_v37 = vpop.f32.mrf.mxu0 }
  0xb1   :  { %v12184_v55 = vadd.f32 %v659_v26, %v481_v44  ;;  %v484_v47 = vpop.f32.mrf.mxu1 }
  0xb3   :  { %8295 = vmatmul.msk.bf16.gmra.mxu0 %vm11628_vm10, %v11624_v62 }
  0xb4   :  { %8335 = vmatmul.msk.bf16.gmra.mxu1 %vm11628_vm10, %v11624_v62  ;;  %1002 = vmatmul.bf16.gmra.mxu2 %v11626_v63 }
  0xb5   :  { %1051 = vmatmul.bf16.gmra.mxu3 %v11626_v63 }
  0xb7   :  { %v613_v3 = vpop.f32.mrf.mxu2 }
  0xb8   :  { %v12194_v21 = vadd.f32 %v613_v3, %v435_v37  ;;  %v662_v22 = vpop.f32.mrf.mxu3  ;;  %v437_v43 = vpop.f32.mrf.mxu0 }
  0xb9   :  { %v12196_v26 = vadd.f32 %v662_v22, %v484_v47  ;;  %v486_v41 = vpop.f32.mrf.mxu1 }
  0xbf   :  { %v615_v44 = vpop.f32.mrf.mxu2 }
  0xc0   :  { %v12198_v31 = vadd.f32 %v615_v44, %v437_v43  ;;  %v664_v49 = vpop.f32.mrf.mxu3  ;;  %v440_v23 = vpop.f32.mrf.mxu0 }
  0xc1   :  { %v12200_v27 = vadd.f32 %v664_v49, %v486_v41  ;;  %v489_v62 = vpop.f32.mrf.mxu1 }
  0xc3   :  { %8300 = vmatmul.msk.bf16.gmra.mxu0 %vm11678_vm15, %v11674_v13 }
  0xc4   :  { %8340 = vmatmul.msk.bf16.gmra.mxu1 %vm11678_vm15, %v11674_v13  ;;  %1007 = vmatmul.bf16.gmra.mxu2 %v11676_v14 }
  0xc5   :  { %1056 = vmatmul.bf16.gmra.mxu3 %v11676_v14 }
  0xc7   :  { %v618_v37 = vpop.f32.mrf.mxu2 }
  0xc8   :  { %v12210_v47 = vadd.f32 %v618_v37, %v440_v23  ;;  %v667_v3 = vpop.f32.mrf.mxu3  ;;  %v442_v22 = vpop.f32.mrf.mxu0 }
  0xc9   :  { %v12212_v49 = vadd.f32 %v667_v3, %v489_v62  ;;  %v491_v43 = vpop.f32.mrf.mxu1 }
  0xcf   :  { %v620_v41 = vpop.f32.mrf.mxu2 }
  0xd0   :  { %v12214_v44 = vadd.f32 %v620_v41, %v442_v22  ;;  %v669_v0 = vpop.f32.mrf.mxu3  ;;  %v445_v24 = vpop.f32.mrf.mxu0 }
  0xd1   :  { %v12216_v52 = vadd.f32 %v669_v0, %v491_v43  ;;  %v494_v13 = vpop.f32.mrf.mxu1 }
  0xd3   :  { %18805 = vst [vmem:[#allocation46_spill] sm:$0xff] %v12216_v52  ;;  %8305 = vmatmul.msk.bf16.gmra.mxu0 %vm11728_vm13, %v11724_v33 }
  0xd4   :  { %8345 = vmatmul.msk.bf16.gmra.mxu1 %vm11728_vm13, %v11724_v33  ;;  %1012 = vmatmul.bf16.gmra.mxu2 %v11726_v34  ;;  %vm18907_vm13 = vcmp.lt.s32.totalorder %v11509_v18, 7 }
  0xd5   :  { %1061 = vmatmul.bf16.gmra.mxu3 %v11726_v34  ;;  %vm18930_vm10 = vmmov %vm18907_vm13 }
  0xd6   :  { %vm18935_vm5 = vmmov %vm18930_vm10 }
  0xd7   :  { %v623_v23 = vpop.f32.mrf.mxu2 }
  0xd8   :  { %v12226_v62 = vadd.f32 %v623_v23, %v445_v24  ;;  %v672_v37 = vpop.f32.mrf.mxu3  ;;  %v447_v3 = vpop.f32.mrf.mxu0  ;;  %v8504_v24 = vld [vmem:[%s18161_s1 + $0x170] sm:$0xf]  ;;  %v10909_v23 = vld [vmem:[%s18161_s1 + $0x174] sm:$0xf] }
  0xd9   :  { %v12228_v0 = vadd.f32 %v672_v37, %v494_v13  ;;  %v496_v22 = vpop.f32.mrf.mxu1  ;;  %v10910_v13 = vld [vmem:[%s18161_s1 + $0x174] sm:$0xf0]  ;;  %v8506_v37 = vld [vmem:[%s18161_s1 + $0x178] sm:$0xf0] }
  0xdf   :  { %v625_v43 = vpop.f32.mrf.mxu2 }
  0xe0   :  { %v12230_v41 = vadd.f32 %v625_v43, %v447_v3  ;;  %v674_v15 = vpop.f32.mrf.mxu3  ;;  %v450_v53 = vpop.f32.mrf.mxu0  ;;  %v8584_v3 = vld [vmem:[%s18161_s1 + $0x1f0] sm:$0xf]  ;;  %v8509_v43 = vor.u32 %v10909_v23, %v8506_v37  ;;  %v10908_v23 = vld [vmem:[%s18161_s1 + $0x164] sm:$0xf0]  ;;  %v10907_v37 = vld [vmem:[%s18161_s1 + $0x164] sm:$0xf] }
  0xe1   :  { %v12232_v29 = vadd.f32 %v674_v15, %v496_v22  ;;  %v499_v33 = vpop.f32.mrf.mxu1  ;;  %v8505_v15 = vor.u32 %v10910_v13, %v8504_v24  ;;  %v10926_v22 = vld [vmem:[%s18161_s1 + $0x1f4] sm:$0xf0]  ;;  %v8586_v24 = vld [vmem:[%s18161_s1 + $0x1f8] sm:$0xf0] }
  0xe2   :  { %18806 = vst [vmem:[#allocation47_spill] sm:$0xff] %v12230_v41  ;;  %v8585_v19 = vor.u32 %v10926_v22, %v8584_v3  ;;  %1233 = vmatpush.bf16.msra.mxu1 %v8509_v43  ;;  %v8576_v43 = vld [vmem:[%s18161_s1 + $0x1e0] sm:$0xf] }
  0xe3   :  { %18807 = vst [vmem:[#allocation48_spill] sm:$0xff] %v12232_v29  ;;  %8310 = vmatmul.msk.bf16.gmra.mxu0 %vm11802_vm0, %v11792_v8 }
  0xe4   :  { %8350 = vmatmul.msk.bf16.gmra.mxu1 %vm11802_vm0, %v11792_v8  ;;  %1017 = vmatmul.bf16.gmra.mxu2 %v11800_v12  ;;  %v10925_v8 = vld [vmem:[%s18161_s1 + $0x1f4] sm:$0xf] }
  0xe5   :  { %1066 = vmatmul.bf16.gmra.mxu3 %v11800_v12  ;;  %1184 = vmatpush.bf16.msra.mxu0 %v8505_v15  ;;  %v8589_v13 = vor.u32 %v10925_v8, %v8586_v24  ;;  %v8497_v8 = vor.u32 %v10908_v23, %v8496_v30  ;;  %v10924_v24 = vld [vmem:[%s18161_s1 + $0x1e4] sm:$0xf0]  ;;  %v10923_v30 = vld [vmem:[%s18161_s1 + $0x1e4] sm:$0xf]  ;;  %v8488_v23 = vld [vmem:[%s18161_s1 + $0x150] sm:$0xf] }
  0xe6   :  { %1379 = vmatpush.bf16.msra.mxu2 %v8585_v19  ;;  %v8498_v19 = vld [vmem:[%s18161_s1 + $0x168] sm:$0xf0]  ;;  %v8577_v10 = vor.u32 %v10924_v24, %v8576_v43  ;;  %v10922_v24 = vld [vmem:[%s18161_s1 + $0x1d4] sm:$0xf0] }
  0xe7   :  { %v628_v35 = vpop.f32.mrf.mxu2  ;;  %1428 = vmatpush.bf16.msra.mxu3 %v8589_v13  ;;  %v8578_v13 = vld [vmem:[%s18161_s1 + $0x1e8] sm:$0xf0] }
  0xe8   :  { %v12275_v3 = vadd.f32 %v628_v35, %v450_v53  ;;  %v677_v22 = vpop.f32.mrf.mxu3  ;;  %v452_v15 = vpop.f32.mrf.mxu0  ;;  %v8501_v53 = vor.u32 %v10907_v37, %v8498_v19  ;;  %v8581_v59 = vor.u32 %v10923_v30, %v8578_v13  ;;  %v10905_v37 = vld [vmem:[%s18161_s1 + $0x154] sm:$0xf] }
  0xe9   :  { %v12286_v9 = vadd.f32 %v677_v22, %v499_v33  ;;  %v501_v35 = vpop.f32.mrf.mxu1  ;;  %1185 = vmatpush.bf16.msra.mxu0 %v8497_v8  ;;  %v10906_v33 = vld [vmem:[%s18161_s1 + $0x154] sm:$0xf0]  ;;  %v8490_v22 = vld [vmem:[%s18161_s1 + $0x158] sm:$0xf0]  ;;  %v8568_v8 = vld [vmem:[%s18161_s1 + $0x1d0] sm:$0xf] }
  0xea   :  { %1234 = vmatpush.bf16.msra.mxu1 %v8501_v53  ;;  %1380 = vmatpush.bf16.msra.mxu2 %v8577_v10  ;;  %v8489_v19 = vor.u32 %v10906_v33, %v8488_v23  ;;  %v8493_v43 = vor.u32 %v10905_v37, %v8490_v22  ;;  %v10921_v30 = vld [vmem:[%s18161_s1 + $0x1d4] sm:$0xf]  ;;  %v8569_v13 = vor.u32 %v10922_v24, %v8568_v8  ;;  %v8570_v10 = vld [vmem:[%s18161_s1 + $0x1d8] sm:$0xf0]  ;;  %v8480_v33 = vld [vmem:[%s18161_s1 + $0x140] sm:$0xf] }
  0xeb   :  { %18808 = vst [vmem:[#allocation49_spill] sm:$0xff] %v12286_v9  ;;  %1429 = vmatpush.bf16.msra.mxu3 %v8581_v59  ;;  %v8573_v53 = vor.u32 %v10921_v30, %v8570_v10  ;;  %v10904_v37 = vld [vmem:[%s18161_s1 + $0x144] sm:$0xf0]  ;;  %v10903_v59 = vld [vmem:[%s18161_s1 + $0x144] sm:$0xf] }
  0xec   :  { %v8560_v30 = vld [vmem:[%s18161_s1 + $0x1c0] sm:$0xf] }
  0xed   :  { %1186 = vmatpush.bf16.msra.mxu0 %v8489_v19  ;;  %v8481_v19 = vor.u32 %v10904_v37, %v8480_v33  ;;  %v8562_v33 = vld [vmem:[%s18161_s1 + $0x1c8] sm:$0xf0] }
  0xee   :  { %1235 = vmatpush.bf16.msra.mxu1 %v8493_v43  ;;  %1381 = vmatpush.bf16.msra.mxu2 %v8569_v13  ;;  %v8482_v43 = vld [vmem:[%s18161_s1 + $0x148] sm:$0xf0]  ;;  %v10920_v13 = vld [vmem:[%s18161_s1 + $0x1c4] sm:$0xf0] }
  0xef   :  { %v630_v23 = vpop.f32.mrf.mxu2  ;;  %1430 = vmatpush.bf16.msra.mxu3 %v8573_v53  ;;  %v8561_v58 = vor.u32 %v10920_v13, %v8560_v30  ;;  %v10919_v53 = vld [vmem:[%s18161_s1 + $0x1c4] sm:$0xf]  ;;  %v8552_v30 = vld [vmem:[%s18161_s1 + $0x1b0] sm:$0xf]  ;;  %v10918_v13 = vld [vmem:[%s18161_s1 + $0x1b4] sm:$0xf0] }
  0xf0   :  { %v12327_v22 = vadd.f32 %v630_v23, %v452_v15  ;;  %v679_v8 = vpop.f32.mrf.mxu3  ;;  %v455_v24 = vpop.f32.mrf.mxu0  ;;  %v8485_v23 = vor.u32 %v10903_v59, %v8482_v43  ;;  %v8565_v37 = vor.u32 %v10919_v53, %v8562_v33  ;;  %v10902_v59 = vld [vmem:[%s18161_s1 + $0x134] sm:$0xf0]  ;;  %v8474_v43 = vld [vmem:[%s18161_s1 + $0x138] sm:$0xf0]  ;;  %v10917_v53 = vld [vmem:[%s18161_s1 + $0x1b4] sm:$0xf] }
  0xf1   :  { %v12338_v10 = vadd.f32 %v679_v8, %v501_v35  ;;  %v504_v15 = vpop.f32.mrf.mxu1  ;;  %1187 = vmatpush.bf16.msra.mxu0 %v8481_v19  ;;  %v8472_v35 = vld [vmem:[%s18161_s1 + $0x130] sm:$0xf]  ;;  %v10901_v8 = vld [vmem:[%s18161_s1 + $0x134] sm:$0xf]  ;;  %v8554_v33 = vld [vmem:[%s18161_s1 + $0x1b8] sm:$0xf0] }
  0xf2   :  { %1236 = vmatpush.bf16.msra.mxu1 %v8485_v23  ;;  %v8473_v19 = vor.u32 %v10902_v59, %v8472_v35  ;;  %1382 = vmatpush.bf16.msra.mxu2 %v8561_v58  ;;  %v8477_v23 = vor.u32 %v10901_v8, %v8474_v43  ;;  %v8557_v35 = vor.u32 %v10917_v53, %v8554_v33  ;;  %v10900_v58 = vld [vmem:[%s18161_s1 + $0x124] sm:$0xf0]  ;;  %v10899_v8 = vld [vmem:[%s18161_s1 + $0x124] sm:$0xf] }
  0xf3   :  { %18809 = vst [vmem:[#allocation50_spill] sm:$0xff] %v12338_v10  ;;  %8315 = vmatmul.msk.bf16.gmra.mxu0 %vm11952_vm9, %v11937_v40  ;;  %1431 = vmatpush.bf16.msra.mxu3 %v8565_v37  ;;  %v10916_v53 = vld [vmem:[%s18161_s1 + $0x1a4] sm:$0xf0] }
  0xf4   :  { %8355 = vmatmul.msk.bf16.gmra.mxu1 %vm11952_vm9, %v11937_v40  ;;  %1022 = vmatmul.bf16.gmra.mxu2 %v11947_v7  ;;  %v8553_v40 = vor.u32 %v10918_v13, %v8552_v30  ;;  %v8466_v13 = vld [vmem:[%s18161_s1 + $0x128] sm:$0xf0]  ;;  %vm18884_vm9 = vcmp.lt.s32.totalorder %v11509_v18, 7 }
  0xf5   :  { %1071 = vmatmul.bf16.gmra.mxu3 %v11947_v7  ;;  %1188 = vmatpush.bf16.msra.mxu0 %v8473_v19  ;;  %v8465_v19 = vor.u32 %v10900_v58, %v8464_v6  ;;  %v10915_v6 = vld [vmem:[%s18161_s1 + $0x1a4] sm:$0xf]  ;;  %v8546_v58 = vld [vmem:[%s18161_s1 + $0x1a8] sm:$0xf0] }
  0xf6   :  { %1237 = vmatpush.bf16.msra.mxu1 %v8477_v23  ;;  %v8544_v23 = vld [vmem:[%s18161_s1 + $0x1a0] sm:$0xf]  ;;  %1383 = vmatpush.bf16.msra.mxu2 %v8553_v40  ;;  %v10898_v40 = vld [vmem:[%s18161_s1 + $0x114] sm:$0xf0] }
  0xf7   :  { %v633_v59 = vpop.f32.mrf.mxu2  ;;  %1432 = vmatpush.bf16.msra.mxu3 %v8557_v35  ;;  %v8536_v35 = vld [vmem:[%s18161_s1 + $0x190] sm:$0xf] }
  0xf8   :  { %v12387_v43 = vadd.f32 %v633_v59, %v455_v24  ;;  %v682_v30 = vpop.f32.mrf.mxu3  ;;  %v457_v37 = vpop.f32.mrf.mxu0  ;;  %v8469_v24 = vor.u32 %v10899_v8, %v8466_v13  ;;  %v8545_v59 = vor.u32 %v10916_v53, %v8544_v23  ;;  %v10897_v8 = vld [vmem:[%s18161_s1 + $0x114] sm:$0xf]  ;;  %v8457_v13 = vor.u32 %v10898_v40, %v8456_v28  ;;  %v8448_v40 = vld [vmem:[%s18161_s1 + $0x100] sm:$0xf] }
  0xf9   :  { %v12398_v33 = vadd.f32 %v682_v30, %v504_v15  ;;  %v506_v45 = vpop.f32.mrf.mxu1  ;;  %1189 = vmatpush.bf16.msra.mxu0 %v8465_v19  ;;  %v8549_v15 = vor.u32 %v10915_v6, %v8546_v58  ;;  %v8458_v30 = vld [vmem:[%s18161_s1 + $0x118] sm:$0xf0]  ;;  %v10914_v19 = vld [vmem:[%s18161_s1 + $0x194] sm:$0xf0]  ;;  %v10913_v53 = vld [vmem:[%s18161_s1 + $0x194] sm:$0xf] }
  0xfa   :  { %1238 = vmatpush.bf16.msra.mxu1 %v8469_v24  ;;  %v8461_v23 = vor.u32 %v10897_v8, %v8458_v30  ;;  %v8538_v6 = vld [vmem:[%s18161_s1 + $0x198] sm:$0xf0]  ;;  %1384 = vmatpush.bf16.msra.mxu2 %v8545_v59  ;;  %v8537_v24 = vor.u32 %v10914_v19, %v8536_v35  ;;  %v10896_v8 = vld [vmem:[%s18161_s1 + $0x104] sm:$0xf0]  ;;  %v10895_v30 = vld [vmem:[%s18161_s1 + $0x104] sm:$0xf] }
  0xfb   :  { %18810 = vst [vmem:[#allocation51_spill] sm:$0xff] %v12398_v33  ;;  %1433 = vmatpush.bf16.msra.mxu3 %v8549_v15  ;;  %v8541_v28 = vor.u32 %v10913_v53, %v8538_v6  ;;  %v8528_v35 = vld [vmem:[%s18161_s1 + $0x180] sm:$0xf]  ;;  %v10912_v19 = vld [vmem:[%s18161_s1 + $0x184] sm:$0xf0] }
  0xfd   :  { %1190 = vmatpush.bf16.msra.mxu0 %v8457_v13  ;;  %v8449_v13 = vor.u32 %v10896_v8, %v8448_v40  ;;  %v10911_v40 = vld [vmem:[%s18161_s1 + $0x184] sm:$0xf]  ;;  %v8530_v8 = vld [vmem:[%s18161_s1 + $0x188] sm:$0xf0] }
  0xfe   :  { %1239 = vmatpush.bf16.msra.mxu1 %v8461_v23  ;;  %v8450_v23 = vld [vmem:[%s18161_s1 + $0x108] sm:$0xf0]  ;;  %1385 = vmatpush.bf16.msra.mxu2 %v8537_v24  ;;  %v8533_v60 = vor.u32 %v10911_v40, %v8530_v8 }
  0xff   :  { %v635_v58 = vpop.f32.mrf.mxu2  ;;  %1434 = vmatpush.bf16.msra.mxu3 %v8541_v28 }
 0x100   :  { %v12439_v32 = vadd.f32 %v635_v58, %v457_v37  ;;  %v684_v59 = vpop.f32.mrf.mxu3  ;;  %v460_v15 = vpop.f32.mrf.mxu0  ;;  %v8453_v37 = vor.u32 %v10895_v30, %v8450_v23  ;;  %v8529_v58 = vor.u32 %v10912_v19, %v8528_v35 }
 0x101   :  { %v12450_v53 = vadd.f32 %v684_v59, %v506_v45  ;;  %v509_v6 = vpop.f32.mrf.mxu1  ;;  %1191 = vmatpush.bf16.msra.mxu0 %v8449_v13 }
 0x102   :  { %1240 = vmatpush.bf16.msra.mxu1 %v8453_v37  ;;  %1386 = vmatpush.bf16.msra.mxu2 %v8529_v58 }
 0x103   :  { %8320 = vmatmul.msk.bf16.gmra.mxu0 %vm12076_vm4, %v12080_v46  ;;  %1435 = vmatpush.bf16.msra.mxu3 %v8533_v60 }
 0x104   :  { %8360 = vmatmul.msk.bf16.gmra.mxu1 %vm12076_vm4, %v12080_v46  ;;  %1027 = vmatmul.bf16.gmra.mxu2 %v12093_v54 }
 0x105   :  { %1076 = vmatmul.bf16.gmra.mxu3 %v12093_v54 }
 0x107   :  { %v638_v45 = vpop.f32.mrf.mxu2 }
 0x108   :  { %v12466_v24 = vadd.f32 %v638_v45, %v460_v15  ;;  %v687_v28 = vpop.f32.mrf.mxu3  ;;  %v462_v30 = vpop.f32.mrf.mxu0 }
 0x109   :  { %v12468_v59 = vadd.f32 %v687_v28, %v509_v6  ;;  %v511_v13 = vpop.f32.mrf.mxu1 }
 0x10f   :  { %v640_v23 = vpop.f32.mrf.mxu2 }
 0x110   :  { %v12470_v35 = vadd.f32 %v640_v23, %v462_v30  ;;  %v689_v19 = vpop.f32.mrf.mxu3  ;;  %v465_v37 = vpop.f32.mrf.mxu0 }
 0x111   :  { %v12472_v46 = vadd.f32 %v689_v19, %v511_v13  ;;  %v514_v40 = vpop.f32.mrf.mxu1 }
 0x113   :  { %8325 = vmatmul.msk.bf16.gmra.mxu0 %vm12158_vm12, %v12153_v36 }
 0x114   :  { %8365 = vmatmul.msk.bf16.gmra.mxu1 %vm12158_vm12, %v12153_v36  ;;  %1032 = vmatmul.bf16.gmra.mxu2 %v12156_v61  ;;  %vm18859_vm12 = vcmp.lt.s32.totalorder %v11509_v18, 7 }
 0x115   :  { %1081 = vmatmul.bf16.gmra.mxu3 %v12156_v61  ;;  %vm18865_vm4 = vmmov %vm18859_vm12 }
 0x117   :  { %v643_v60 = vpop.f32.mrf.mxu2 }
 0x118   :  { %v12482_v15 = vadd.f32 %v643_v60, %v465_v37  ;;  %v692_v6 = vpop.f32.mrf.mxu3  ;;  %v467_v58 = vpop.f32.mrf.mxu0 }
 0x119   :  { %v12484_v8 = vadd.f32 %v692_v6, %v514_v40  ;;  %v516_v45 = vpop.f32.mrf.mxu1 }
 0x11f   :  { %v645_v28 = vpop.f32.mrf.mxu2 }
 0x120   :  { %v12486_v30 = vadd.f32 %v645_v28, %v467_v58  ;;  %v694_v13 = vpop.f32.mrf.mxu3  ;;  %v820_v23 = vpop.f32.mrf.mxu0 }
 0x121   :  { %v12488_v19 = vadd.f32 %v694_v13, %v516_v45  ;;  %v869_v36 = vpop.f32.mrf.mxu1 }
 0x122   :  { %18811 = vst [vmem:[#allocation52_spill] sm:$0xff] %v12486_v30 }
 0x123   :  { %18812 = vst [vmem:[#allocation53_spill] sm:$0xff] %v12488_v19  ;;  %1192 = vmatmul.bf16.vlgmr.msra.gmra.mxu0 %v11576_v48 }
 0x124   :  { %1241 = vmatmul.bf16.vlgmr.msra.gmra.mxu1 %v11576_v48  ;;  %1387 = vmatmul.bf16.vlgmr.msra.gmra.mxu2 %v11576_v48 }
 0x125   :  { %1436 = vmatmul.bf16.vlgmr.msra.gmra.mxu3 %v11576_v48 }
 0x127   :  { %v998_v37 = vpop.f32.mrf.mxu2 }
 0x128   :  { %v12494_v40 = vadd.f32 %v998_v37, %v820_v23  ;;  %v1047_v60 = vpop.f32.mrf.mxu3  ;;  %v822_v6 = vpop.f32.mrf.mxu0 }
 0x129   :  { %v12496_v58 = vadd.f32 %v1047_v60, %v869_v36  ;;  %v871_v28 = vpop.f32.mrf.mxu1 }
 0x12f   :  { %v1000_v4 = vpop.f32.mrf.mxu2 }
 0x130   :  { %v12502_v5 = vadd.f32 %v1000_v4, %v822_v6  ;;  %v1049_v57 = vpop.f32.mrf.mxu3  ;;  %v825_v56 = vpop.f32.mrf.mxu0 }
 0x131   :  { %v12504_v38 = vadd.f32 %v1049_v57, %v871_v28  ;;  %v874_v23 = vpop.f32.mrf.mxu1 }
 0x133   :  { %1197 = vmatmul.bf16.gmra.mxu0 %v11626_v63 }
 0x134   :  { %1246 = vmatmul.bf16.gmra.mxu1 %v11626_v63  ;;  %1392 = vmatmul.bf16.gmra.mxu2 %v11626_v63 }
 0x135   :  { %1441 = vmatmul.bf16.gmra.mxu3 %v11626_v63 }
 0x137   :  { %v1003_v4 = vpop.f32.mrf.mxu2 }
 0x138   :  { %v12514_v60 = vadd.f32 %v1003_v4, %v825_v56  ;;  %v1052_v57 = vpop.f32.mrf.mxu3  ;;  %v827_v6 = vpop.f32.mrf.mxu0 }
 0x139   :  { %v12516_v28 = vadd.f32 %v1052_v57, %v874_v23  ;;  %v876_v13 = vpop.f32.mrf.mxu1 }
 0x13f   :  { %v1005_v45 = vpop.f32.mrf.mxu2 }
 0x140   :  { %v12522_v39 = vadd.f32 %v1005_v45, %v827_v6  ;;  %v1054_v16 = vpop.f32.mrf.mxu3  ;;  %v830_v17 = vpop.f32.mrf.mxu0 }
 0x141   :  { %v12524_v1 = vadd.f32 %v1054_v16, %v876_v13  ;;  %v879_v56 = vpop.f32.mrf.mxu1 }
 0x143   :  { %1202 = vmatmul.bf16.gmra.mxu0 %v11676_v14 }
 0x144   :  { %1251 = vmatmul.bf16.gmra.mxu1 %v11676_v14  ;;  %1397 = vmatmul.bf16.gmra.mxu2 %v11676_v14 }
 0x145   :  { %1446 = vmatmul.bf16.gmra.mxu3 %v11676_v14 }
 0x147   :  { %v1008_v45 = vpop.f32.mrf.mxu2 }
 0x148   :  { %v12534_v57 = vadd.f32 %v1008_v45, %v830_v17  ;;  %v1057_v16 = vpop.f32.mrf.mxu3  ;;  %v832_v13 = vpop.f32.mrf.mxu0 }
 0x149   :  { %v12536_v6 = vadd.f32 %v1057_v16, %v879_v56  ;;  %v881_v36 = vpop.f32.mrf.mxu1 }
 0x14f   :  { %v1010_v37 = vpop.f32.mrf.mxu2 }
 0x150   :  { %v12542_v2 = vadd.f32 %v1010_v37, %v832_v13  ;;  %v1059_v51 = vpop.f32.mrf.mxu3  ;;  %v835_v50 = vpop.f32.mrf.mxu0 }
 0x151   :  { %v12544_v14 = vadd.f32 %v1059_v51, %v881_v36  ;;  %v884_v17 = vpop.f32.mrf.mxu1 }
 0x152   :  { %18813 = vst [vmem:[#allocation54_spill] sm:$0xff] %v12542_v2 }
 0x153   :  { %18814 = vst [vmem:[#allocation55_spill] sm:$0xff] %v12544_v14  ;;  %1207 = vmatmul.bf16.gmra.mxu0 %v11726_v34 }
 0x154   :  { %1256 = vmatmul.bf16.gmra.mxu1 %v11726_v34  ;;  %1402 = vmatmul.bf16.gmra.mxu2 %v11726_v34 }
 0x155   :  { %1451 = vmatmul.bf16.gmra.mxu3 %v11726_v34 }
 0x157   :  { %v1013_v37 = vpop.f32.mrf.mxu2 }
 0x158   :  { %v12554_v16 = vadd.f32 %v1013_v37, %v835_v50  ;;  %v1062_v51 = vpop.f32.mrf.mxu3  ;;  %v837_v36 = vpop.f32.mrf.mxu0  ;;  %v10958_v37 = vld [vmem:[%s18161_s1 + $0x2f4] sm:$0xf0] }
 0x159   :  { %v12556_v13 = vadd.f32 %v1062_v51, %v884_v17  ;;  %v886_v23 = vpop.f32.mrf.mxu1  ;;  %v8664_v51 = vld [vmem:[%s18161_s1 + $0x270] sm:$0xf] }
 0x15a   :  { %v8744_v17 = vld [vmem:[%s18161_s1 + $0x2f0] sm:$0xf] }
 0x15b   :  { %18815 = vst [vmem:[#allocation56_spill] sm:$0xff] %v12556_v13  ;;  %v8745_v45 = vor.u32 %v10958_v37, %v8744_v17  ;;  %v10940_v37 = vld [vmem:[%s18161_s1 + $0x264] sm:$0xf0]  ;;  %v10939_v17 = vld [vmem:[%s18161_s1 + $0x264] sm:$0xf] }
 0x15d   :  { %1769 = vmatpush.bf16.msrb.mxu2 %v8745_v45  ;;  %v8658_v45 = vld [vmem:[%s18161_s1 + $0x268] sm:$0xf0] }
 0x15f   :  { %v1015_v4 = vpop.f32.mrf.mxu2 }
 0x160   :  { %v12562_v14 = vadd.f32 %v1015_v4, %v837_v36  ;;  %v1064_v52 = vpop.f32.mrf.mxu3  ;;  %v840_v2 = vpop.f32.mrf.mxu0  ;;  %v10942_v4 = vld [vmem:[%s18161_s1 + $0x274] sm:$0xf0]  ;;  %v8666_v36 = vld [vmem:[%s18161_s1 + $0x278] sm:$0xf0] }
 0x161   :  { %v12564_v34 = vadd.f32 %v1064_v52, %v886_v23  ;;  %v889_v50 = vpop.f32.mrf.mxu1  ;;  %v10941_v52 = vld [vmem:[%s18161_s1 + $0x274] sm:$0xf]  ;;  %v8665_v23 = vor.u32 %v10942_v4, %v8664_v51  ;;  %v8746_v4 = vld [vmem:[%s18161_s1 + $0x2f8] sm:$0xf0] }
 0x162   :  { %18816 = vst [vmem:[#allocation57_spill] sm:$0xff] %v12562_v14  ;;  %v8669_v56 = vor.u32 %v10941_v52, %v8666_v36  ;;  %v10957_v51 = vld [vmem:[%s18161_s1 + $0x2f4] sm:$0xf]  ;;  %v8656_v14 = vld [vmem:[%s18161_s1 + $0x260] sm:$0xf] }
 0x163   :  { %18817 = vst [vmem:[#allocation58_spill] sm:$0xff] %v12564_v34  ;;  %1212 = vmatmul.bf16.gmra.mxu0 %v11800_v12  ;;  %v8749_v34 = vor.u32 %v10957_v51, %v8746_v4  ;;  %v8657_v51 = vor.u32 %v10940_v37, %v8656_v14  ;;  %v10956_v4 = vld [vmem:[%s18161_s1 + $0x2e4] sm:$0xf0]  ;;  %v10955_v14 = vld [vmem:[%s18161_s1 + $0x2e4] sm:$0xf] }
 0x164   :  { %1261 = vmatmul.bf16.gmra.mxu1 %v11800_v12  ;;  %1407 = vmatmul.bf16.gmra.mxu2 %v11800_v12 }
 0x165   :  { %1456 = vmatmul.bf16.gmra.mxu3 %v11800_v12  ;;  %1574 = vmatpush.bf16.msrb.mxu0 %v8665_v23 }
 0x166   :  { %1623 = vmatpush.bf16.msrb.mxu1 %v8669_v56  ;;  %1818 = vmatpush.bf16.msrb.mxu3 %v8749_v34  ;;  %v8736_v56 = vld [vmem:[%s18161_s1 + $0x2e0] sm:$0xf]  ;;  %v8738_v34 = vld [vmem:[%s18161_s1 + $0x2e8] sm:$0xf0] }
 0x167   :  { %v1018_v29 = vpop.f32.mrf.mxu2  ;;  %v8737_v41 = vor.u32 %v10956_v4, %v8736_v56  ;;  %v8741_v13 = vor.u32 %v10955_v14, %v8738_v34  ;;  %v8650_v56 = vld [vmem:[%s18161_s1 + $0x258] sm:$0xf0]  ;;  %v10954_v4 = vld [vmem:[%s18161_s1 + $0x2d4] sm:$0xf0]  ;;  %v10953_v34 = vld [vmem:[%s18161_s1 + $0x2d4] sm:$0xf] }
 0x168   :  { %v12607_v52 = vadd.f32 %v1018_v29, %v840_v2  ;;  %v1067_v36 = vpop.f32.mrf.mxu3  ;;  %v842_v23 = vpop.f32.mrf.mxu0  ;;  %v8661_v29 = vor.u32 %v10939_v17, %v8658_v45  ;;  %v8648_v17 = vld [vmem:[%s18161_s1 + $0x250] sm:$0xf]  ;;  %v10937_v45 = vld [vmem:[%s18161_s1 + $0x254] sm:$0xf] }
 0x169   :  { %v12618_v12 = vadd.f32 %v1067_v36, %v889_v50  ;;  %v891_v2 = vpop.f32.mrf.mxu1  ;;  %1575 = vmatpush.bf16.msrb.mxu0 %v8657_v51  ;;  %1770 = vmatpush.bf16.msrb.mxu2 %v8737_v41  ;;  %v10938_v36 = vld [vmem:[%s18161_s1 + $0x254] sm:$0xf0]  ;;  %v8728_v41 = vld [vmem:[%s18161_s1 + $0x2d0] sm:$0xf]  ;;  %v8640_v50 = vld [vmem:[%s18161_s1 + $0x240] sm:$0xf] }
 0x16a   :  { %1624 = vmatpush.bf16.msrb.mxu1 %v8661_v29  ;;  %1819 = vmatpush.bf16.msrb.mxu3 %v8741_v13  ;;  %v8649_v51 = vor.u32 %v10938_v36, %v8648_v17  ;;  %v8653_v29 = vor.u32 %v10937_v45, %v8650_v56  ;;  %v8729_v14 = vor.u32 %v10954_v4, %v8728_v41  ;;  %v8730_v13 = vld [vmem:[%s18161_s1 + $0x2d8] sm:$0xf0]  ;;  %v10936_v45 = vld [vmem:[%s18161_s1 + $0x244] sm:$0xf0]  ;;  %v10935_v56 = vld [vmem:[%s18161_s1 + $0x244] sm:$0xf] }
 0x16b   :  { %18818 = vst [vmem:[#allocation59_spill] sm:$0xff] %v12618_v12  ;;  %v8733_v17 = vor.u32 %v10953_v34, %v8730_v13  ;;  %v8641_v34 = vor.u32 %v10936_v45, %v8640_v50  ;;  %v10952_v13 = vld [vmem:[%s18161_s1 + $0x2c4] sm:$0xf0]  ;;  %v10951_v50 = vld [vmem:[%s18161_s1 + $0x2c4] sm:$0xf] }
 0x16d   :  { %1576 = vmatpush.bf16.msrb.mxu0 %v8649_v51  ;;  %1771 = vmatpush.bf16.msrb.mxu2 %v8729_v14  ;;  %v8720_v14 = vld [vmem:[%s18161_s1 + $0x2c0] sm:$0xf] }
 0x16e   :  { %1625 = vmatpush.bf16.msrb.mxu1 %v8653_v29  ;;  %1820 = vmatpush.bf16.msrb.mxu3 %v8733_v17  ;;  %v8642_v29 = vld [vmem:[%s18161_s1 + $0x248] sm:$0xf0]  ;;  %v8721_v12 = vor.u32 %v10952_v13, %v8720_v14  ;;  %v8634_v14 = vld [vmem:[%s18161_s1 + $0x238] sm:$0xf0]  ;;  %v8712_v13 = vld [vmem:[%s18161_s1 + $0x2b0] sm:$0xf] }
 0x16f   :  { %v1020_v36 = vpop.f32.mrf.mxu2  ;;  %v8722_v17 = vld [vmem:[%s18161_s1 + $0x2c8] sm:$0xf0] }
 0x170   :  { %v12663_v41 = vadd.f32 %v1020_v36, %v842_v23  ;;  %v1069_v4 = vpop.f32.mrf.mxu3  ;;  %v845_v51 = vpop.f32.mrf.mxu0  ;;  %v8645_v36 = vor.u32 %v10935_v56, %v8642_v29  ;;  %v8725_v9 = vor.u32 %v10951_v50, %v8722_v17  ;;  %v8632_v56 = vld [vmem:[%s18161_s1 + $0x230] sm:$0xf]  ;;  %v10933_v29 = vld [vmem:[%s18161_s1 + $0x234] sm:$0xf] }
 0x171   :  { %v12674_v37 = vadd.f32 %v1069_v4, %v891_v2  ;;  %v894_v23 = vpop.f32.mrf.mxu1  ;;  %1577 = vmatpush.bf16.msrb.mxu0 %v8641_v34  ;;  %v10934_v4 = vld [vmem:[%s18161_s1 + $0x234] sm:$0xf0]  ;;  %1772 = vmatpush.bf16.msrb.mxu2 %v8721_v12  ;;  %v8637_v50 = vor.u32 %v10933_v29, %v8634_v14  ;;  %v10932_v12 = vld [vmem:[%s18161_s1 + $0x224] sm:$0xf0]  ;;  %v10931_v29 = vld [vmem:[%s18161_s1 + $0x224] sm:$0xf] }
 0x172   :  { %18819 = vst [vmem:[#allocation60_spill] sm:$0xff] %v12663_v41  ;;  %1626 = vmatpush.bf16.msrb.mxu1 %v8645_v36  ;;  %v8633_v34 = vor.u32 %v10934_v4, %v8632_v56  ;;  %v10950_v36 = vld [vmem:[%s18161_s1 + $0x2b4] sm:$0xf0]  ;;  %v10949_v56 = vld [vmem:[%s18161_s1 + $0x2b4] sm:$0xf]  ;;  %1821 = vmatpush.bf16.msrb.mxu3 %v8725_v9 }
 0x173   :  { %18820 = vst [vmem:[#allocation61_spill] sm:$0xff] %v12674_v37  ;;  %1217 = vmatmul.bf16.gmra.mxu0 %v11947_v7  ;;  %v8713_v17 = vor.u32 %v10950_v36, %v8712_v13  ;;  %v8714_v4 = vld [vmem:[%s18161_s1 + $0x2b8] sm:$0xf0]  ;;  %v8626_v36 = vld [vmem:[%s18161_s1 + $0x228] sm:$0xf0] }
 0x174   :  { %1266 = vmatmul.bf16.gmra.mxu1 %v11947_v7  ;;  %1412 = vmatmul.bf16.gmra.mxu2 %v11947_v7  ;;  %v8717_v2 = vor.u32 %v10949_v56, %v8714_v4  ;;  %v10948_v56 = vld [vmem:[%s18161_s1 + $0x2a4] sm:$0xf0] }
 0x175   :  { %1461 = vmatmul.bf16.gmra.mxu3 %v11947_v7  ;;  %1578 = vmatpush.bf16.msrb.mxu0 %v8633_v34  ;;  %v8624_v7 = vld [vmem:[%s18161_s1 + $0x220] sm:$0xf] }
 0x176   :  { %1627 = vmatpush.bf16.msrb.mxu1 %v8637_v50  ;;  %v8625_v34 = vor.u32 %v10932_v12, %v8624_v7  ;;  %v8704_v50 = vld [vmem:[%s18161_s1 + $0x2a0] sm:$0xf]  ;;  %1773 = vmatpush.bf16.msrb.mxu2 %v8713_v17  ;;  %v10947_v7 = vld [vmem:[%s18161_s1 + $0x2a4] sm:$0xf]  ;;  %v8706_v12 = vld [vmem:[%s18161_s1 + $0x2a8] sm:$0xf0] }
 0x177   :  { %v1023_v45 = vpop.f32.mrf.mxu2  ;;  %1822 = vmatpush.bf16.msrb.mxu3 %v8717_v2  ;;  %v8709_v41 = vor.u32 %v10947_v7, %v8706_v12  ;;  %v8616_v17 = vld [vmem:[%s18161_s1 + $0x210] sm:$0xf]  ;;  %v8618_v2 = vld [vmem:[%s18161_s1 + $0x218] sm:$0xf0]  ;;  %v10945_v7 = vld [vmem:[%s18161_s1 + $0x294] sm:$0xf] }
 0x178   :  { %v12723_v14 = vadd.f32 %v1023_v45, %v845_v51  ;;  %v1072_v13 = vpop.f32.mrf.mxu3  ;;  %v847_v9 = vpop.f32.mrf.mxu0  ;;  %v8629_v51 = vor.u32 %v10931_v29, %v8626_v36  ;;  %v8705_v45 = vor.u32 %v10948_v56, %v8704_v50  ;;  %v10930_v29 = vld [vmem:[%s18161_s1 + $0x214] sm:$0xf0]  ;;  %v8698_v12 = vld [vmem:[%s18161_s1 + $0x298] sm:$0xf0] }
 0x179   :  { %v12734_v4 = vadd.f32 %v1072_v13, %v894_v23  ;;  %v896_v37 = vpop.f32.mrf.mxu1  ;;  %1579 = vmatpush.bf16.msrb.mxu0 %v8625_v34  ;;  %v10929_v13 = vld [vmem:[%s18161_s1 + $0x214] sm:$0xf]  ;;  %v8617_v36 = vor.u32 %v10930_v29, %v8616_v17  ;;  %v8696_v34 = vld [vmem:[%s18161_s1 + $0x290] sm:$0xf]  ;;  %v10946_v50 = vld [vmem:[%s18161_s1 + $0x294] sm:$0xf0]  ;;  %v8701_v17 = vor.u32 %v10945_v7, %v8698_v12 }
 0x17a   :  { %1628 = vmatpush.bf16.msrb.mxu1 %v8629_v51  ;;  %1774 = vmatpush.bf16.msrb.mxu2 %v8705_v45  ;;  %v8621_v56 = vor.u32 %v10929_v13, %v8618_v2  ;;  %v8697_v51 = vor.u32 %v10946_v50, %v8696_v34  ;;  %v8608_v23 = vld [vmem:[%s18161_s1 + $0x200] sm:$0xf]  ;;  %v10928_v45 = vld [vmem:[%s18161_s1 + $0x204] sm:$0xf0]  ;;  %v10927_v13 = vld [vmem:[%s18161_s1 + $0x204] sm:$0xf] }
 0x17b   :  { %18821 = vst [vmem:[#allocation62_spill] sm:$0xff] %v12734_v4  ;;  %1823 = vmatpush.bf16.msrb.mxu3 %v8709_v41  ;;  %v8610_v50 = vld [vmem:[%s18161_s1 + $0x208] sm:$0xf0]  ;;  %v10944_v7 = vld [vmem:[%s18161_s1 + $0x284] sm:$0xf0] }
 0x17d   :  { %1580 = vmatpush.bf16.msrb.mxu0 %v8617_v36  ;;  %v8609_v36 = vor.u32 %v10928_v45, %v8608_v23  ;;  %v10943_v23 = vld [vmem:[%s18161_s1 + $0x284] sm:$0xf]  ;;  %v8690_v45 = vld [vmem:[%s18161_s1 + $0x288] sm:$0xf0] }
 0x17e   :  { %1629 = vmatpush.bf16.msrb.mxu1 %v8621_v56  ;;  %v8688_v56 = vld [vmem:[%s18161_s1 + $0x280] sm:$0xf]  ;;  %1775 = vmatpush.bf16.msrb.mxu2 %v8697_v51  ;;  %v8693_v33 = vor.u32 %v10943_v23, %v8690_v45 }
 0x17f   :  { %v1025_v29 = vpop.f32.mrf.mxu2  ;;  %1824 = vmatpush.bf16.msrb.mxu3 %v8701_v17 }
 0x180   :  { %v12779_v2 = vadd.f32 %v1025_v29, %v847_v9  ;;  %v1074_v34 = vpop.f32.mrf.mxu3  ;;  %v850_v41 = vpop.f32.mrf.mxu0  ;;  %v8613_v9 = vor.u32 %v10927_v13, %v8610_v50  ;;  %v8689_v29 = vor.u32 %v10944_v7, %v8688_v56 }
 0x181   :  { %v12790_v12 = vadd.f32 %v1074_v34, %v896_v37  ;;  %v899_v10 = vpop.f32.mrf.mxu1  ;;  %1581 = vmatpush.bf16.msrb.mxu0 %v8609_v36 }
 0x182   :  { %1630 = vmatpush.bf16.msrb.mxu1 %v8613_v9  ;;  %1776 = vmatpush.bf16.msrb.mxu2 %v8689_v29 }
 0x183   :  { %1222 = vmatmul.bf16.gmra.mxu0 %v12093_v54  ;;  %1825 = vmatpush.bf16.msrb.mxu3 %v8693_v33 }
 0x184   :  { %1271 = vmatmul.bf16.gmra.mxu1 %v12093_v54  ;;  %1417 = vmatmul.bf16.gmra.mxu2 %v12093_v54 }
 0x185   :  { %1466 = vmatmul.bf16.gmra.mxu3 %v12093_v54 }
 0x187   :  { %v1028_v51 = vpop.f32.mrf.mxu2 }
 0x188   :  { %v12806_v13 = vadd.f32 %v1028_v51, %v850_v41  ;;  %v1077_v17 = vpop.f32.mrf.mxu3  ;;  %v852_v34 = vpop.f32.mrf.mxu0 }
 0x189   :  { %v12808_v36 = vadd.f32 %v1077_v17, %v899_v10  ;;  %v901_v50 = vpop.f32.mrf.mxu1 }
 0x18f   :  { %v1030_v9 = vpop.f32.mrf.mxu2 }
 0x190   :  { %v12814_v23 = vadd.f32 %v1030_v9, %v852_v34  ;;  %v1079_v45 = vpop.f32.mrf.mxu3  ;;  %v855_v29 = vpop.f32.mrf.mxu0 }
 0x191   :  { %v12816_v33 = vadd.f32 %v1079_v45, %v901_v50  ;;  %v904_v41 = vpop.f32.mrf.mxu1 }
 0x193   :  { %18822 = vst [vmem:[#allocation63_spill] sm:$0xff] %v12816_v33  ;;  %1227 = vmatmul.bf16.gmra.mxu0 %v12156_v61 }
 0x194   :  { %1276 = vmatmul.bf16.gmra.mxu1 %v12156_v61  ;;  %1422 = vmatmul.bf16.gmra.mxu2 %v12156_v61 }
 0x195   :  { %1471 = vmatmul.bf16.gmra.mxu3 %v12156_v61 }
 0x197   :  { %v1033_v17 = vpop.f32.mrf.mxu2 }
 0x198   :  { %v12826_v34 = vadd.f32 %v1033_v17, %v855_v29  ;;  %v1082_v50 = vpop.f32.mrf.mxu3  ;;  %v857_v9 = vpop.f32.mrf.mxu0  ;;  %v18826_v17 = vmax.f32 %v12178_v42, %v12494_v40 }
 0x199   :  { %v12828_v45 = vadd.f32 %v1082_v50, %v904_v41  ;;  %v906_v7 = vpop.f32.mrf.mxu1  ;;  %v2838_v41 = vld [vmem:[%s18163_s4] sm:$0x3] }
 0x19b   :  { %18823 = vst [vmem:[#allocation64_spill] sm:$0xff] %v12828_v45 }
 0x19f   :  { %v1035_v56 = vpop.f32.mrf.mxu2 }
 0x1a0   :  { %v12834_v37 = vadd.f32 %v1035_v56, %v857_v9  ;;  %v1084_v4 = vpop.f32.mrf.mxu3  ;;  %v1193_v33 = vpop.f32.mrf.mxu0 }
 0x1a1   :  { %v12836_v61 = vadd.f32 %v1084_v4, %v906_v7  ;;  %v1242_v29 = vpop.f32.mrf.mxu1 }
 0x1a2   :  { %18824 = vst [vmem:[#allocation65_spill] sm:$0xff] %v12834_v37  ;;  %v12855_v37 = vperm.slane %v2838_v41, 1 }
 0x1a3   :  { %18825 = vst [vmem:[#allocation66_spill] sm:$0xff] %v12836_v61  ;;  %1582 = vmatmul.bf16.vlgmr.msrb.gmra.mxu0 %v11576_v48  ;;  %v18827_v61 = vmax.f32 %v12180_v20, %v12496_v58 }
 0x1a4   :  { %1631 = vmatmul.bf16.vlgmr.msrb.gmra.mxu1 %v11576_v48  ;;  %1777 = vmatmul.bf16.vlgmr.msrb.gmra.mxu2 %v11576_v48 }
 0x1a5   :  { %1826 = vmatmul.bf16.vlgmr.msrb.gmra.mxu3 %v11576_v48  ;;  %v12857_v48 = vperm.slane %v2838_v41, 0 }
 0x1a7   :  { %v1388_v56 = vpop.f32.mrf.mxu2 }
 0x1a8   :  { %v2678_v50 = vmax.f32 %v1193_v33, %v1388_v56  ;;  %v1437_v9 = vpop.f32.mrf.mxu3  ;;  %v1195_v4 = vpop.f32.mrf.mxu0 }
 0x1a9   :  { %v2679_v7 = vmax.f32 %v1242_v29, %v1437_v9  ;;  %v1244_v10 = vpop.f32.mrf.mxu1 }
 0x1aa   :  { %v2710_v51 = vmax.f32 %v18826_v17, %v2678_v50  ;;  %v18828_v50 = vmax.f32 %v12182_v11, %v12502_v5 }
 0x1ab   :  { %v2711_v19 = vmax.f32 %v18827_v61, %v2679_v7  ;;  %v18829_v61 = vmax.f32 %v12184_v55, %v12504_v38  ;;  %v18831_v55 = vand.u32 7, %v11509_v18 }
 0x1ac   :  { %v2844_v17 = vadd.f32 %v12857_v48, %v2710_v51 }
 0x1ad   :  { %v2845_v30 = vadd.f32 %v12855_v37, %v2711_v19  ;;  %vm12878_vm14 = vcmp.eq.s32.totalorder %v18831_v55, 7 }
 0x1ae   :  { %v2876_v51 = vmax.f32 %v2844_v17, 0.0  ;;  %vm8831_vm7 = vmneg %vm12878_vm14 }
 0x1af   :  { %v1390_v33 = vpop.f32.mrf.mxu2  ;;  %v2877_v19 = vmax.f32 %v2845_v30, 0.0 }
 0x1b0   :  { %v2680_v56 = vmax.f32 %v1195_v4, %v1390_v33  ;;  %v1439_v29 = vpop.f32.mrf.mxu3  ;;  %v1198_v9 = vpop.f32.mrf.mxu0 }
 0x1b1   :  { %v2681_v42 = vmax.f32 %v1244_v10, %v1439_v29  ;;  %v1247_v40 = vpop.f32.mrf.mxu1  ;;  %v12882_v33 = vrot.slane %v2877_v19, 1 }
 0x1b2   :  { %v2712_v45 = vmax.f32 %v18828_v50, %v2680_v56  ;;  %v18835_v50 = vmax.f32 %v12194_v21, %v12514_v60  ;;  %v12899_v60 = vrot.slane %v2876_v51, 1 }
 0x1b3   :  { %v2713_v20 = vmax.f32 %v18829_v61, %v2681_v42  ;;  %1587 = vmatmul.bf16.gmra.mxu0 %v11626_v63 }
 0x1b4   :  { %v2846_v58 = vadd.f32 %v12857_v48, %v2712_v45  ;;  %1636 = vmatmul.bf16.gmra.mxu1 %v11626_v63  ;;  %1782 = vmatmul.bf16.gmra.mxu2 %v11626_v63 }
 0x1b5   :  { %v2847_v10 = vadd.f32 %v12855_v37, %v2713_v20  ;;  %1831 = vmatmul.bf16.gmra.mxu3 %v11626_v63 }
 0x1b6   :  { %v2878_v5 = vmax.f32 %v2846_v58, 0.0 }
 0x1b7   :  { %v2879_v11 = vmax.f32 %v2847_v10, 0.0  ;;  %v1393_v41 = vpop.f32.mrf.mxu2 }
 0x1b8   :  { %v12874_v38 = vpack.c.bf16 %v2878_v5, %v2876_v51  ;;  %v2682_v4 = vmax.f32 %v1198_v9, %v1393_v41  ;;  %v1442_v30 = vpop.f32.mrf.mxu3  ;;  %v1200_v7 = vpop.f32.mrf.mxu0  ;;  %v18836_v9 = vmax.f32 %v12196_v26, %v12516_v28  ;;  %v18837_v26 = vand.u32 7, %v11526_v25  ;;  %v18969_v28 = vld [vmem:[#allocation34_spill] sm:$0xff] }
 0x1b9   :  { %v12884_v56 = vpack.c.bf16 %v2879_v11, %v2877_v19  ;;  %v3119_v29 = vrot.slane %v2879_v11, 1  ;;  %v2683_v42 = vmax.f32 %v1247_v40, %v1442_v30  ;;  %v1249_v17 = vpop.f32.mrf.mxu1  ;;  %v3118_v11 = vrot.slane %v2878_v5, 1 }
 0x1ba   :  { %18830 = vst [vmem:[#allocation67_spill] sm:$0xff] %v12874_v38  ;;  %v2714_v61 = vmax.f32 %v18835_v50, %v2682_v4  ;;  %vm12903_vm8 = vcmp.eq.s32.totalorder %v18837_v26, 7 }
 0x1bb   :  { %18834 = vst [vmem:[#allocation68_spill] sm:$0xff] %v12884_v56  ;;  %v3177_v20 = vsel %vm18284_vm11, %v12882_v33, %v3119_v29  ;;  %v2715_v58 = vmax.f32 %v18836_v9, %v2683_v42  ;;  %v3176_v5 = vsel %vm18284_vm11, %v12899_v60, %v3118_v11  ;;  %vm8830_vm6 = vmneg %vm12903_vm8 }
 0x1bc   :  { %v3181_v10 = vsel %vm12878_vm14, 0.0, %v3177_v20  ;;  %v2848_v19 = vadd.f32 %v12857_v48, %v2714_v61 }
 0x1bd   :  { %v2849_v40 = vadd.f32 %v12855_v37, %v2715_v58 }
 0x1be   :  { %v2880_v41 = vmax.f32 %v2848_v19, 0.0 }
 0x1bf   :  { %v2881_v55 = vmax.f32 %v2849_v40, 0.0  ;;  %v1395_v21 = vpop.f32.mrf.mxu2  ;;  %v18843_v40 = vld [vmem:[#allocation15_spill] sm:$0xff] }
 0x1c0   :  { %v3120_v4 = vrot.slane %v2880_v41, 1  ;;  %v2684_v30 = vmax.f32 %v1200_v7, %v1395_v21  ;;  %v1444_v50 = vpop.f32.mrf.mxu3  ;;  %v1203_v56 = vpop.f32.mrf.mxu0  ;;  %v18840_v7 = vmax.f32 %v12198_v31, %v12522_v39 }
 0x1c1   :  { %v3121_v42 = vrot.slane %v2881_v55, 1  ;;  %v2685_v61 = vmax.f32 %v1249_v17, %v1444_v50  ;;  %v1252_v20 = vpop.f32.mrf.mxu1  ;;  %v18842_v17 = vmax.f32 %v12200_v27, %v12524_v1 }
 0x1c2   :  { %v3174_v51 = vsel %vm18284_vm11, %v3118_v11, %v3120_v4  ;;  %v2716_v9 = vmax.f32 %v18840_v7, %v2684_v30 }
 0x1c3   :  { %v12915_v58 = vpack.c.bf16 %v3174_v51, %v3176_v5  ;;  %v3175_v25 = vsel %vm18284_vm11, %v3119_v29, %v3121_v42  ;;  %v2717_v19 = vmax.f32 %v18842_v17, %v2685_v61  ;;  %1592 = vmatmul.bf16.gmra.mxu0 %v18843_v40 }
 0x1c4   :  { %v3183_v21 = vsel %vm12903_vm8, 0.0, %v3175_v25  ;;  %v2850_v11 = vadd.f32 %v12857_v48, %v2716_v9  ;;  %1641 = vmatmul.bf16.gmra.mxu1 %v18843_v40  ;;  %1787 = vmatmul.bf16.gmra.mxu2 %v18843_v40 }
 0x1c5   :  { %18841 = vst [vmem:[#allocation69_spill] sm:$0xff] %v12915_v58  ;;  %v12928_v39 = vpack.c.bf16 %v3183_v21, %v3181_v10  ;;  %v2851_v31 = vadd.f32 %v12855_v37, %v2717_v19  ;;  %1836 = vmatmul.bf16.gmra.mxu3 %v18843_v40  ;;  %v18847_v10 = vmax.f32 %v12210_v47, %v12534_v57 }
 0x1c6   :  { %v2882_v29 = vmax.f32 %v2850_v11, 0.0 }
 0x1c7   :  { %18844 = vst [vmem:[#allocation15_spill] sm:$0xff] %v12928_v39  ;;  %v2883_v1 = vmax.f32 %v2851_v31, 0.0  ;;  %v1398_v27 = vpop.f32.mrf.mxu2 }
 0x1c8   :  { %v12932_v30 = vpack.c.bf16 %v2882_v29, %v2880_v41  ;;  %v3122_v50 = vrot.slane %v2882_v29, 1  ;;  %v2686_v26 = vmax.f32 %v1203_v56, %v1398_v27  ;;  %v1447_v61 = vpop.f32.mrf.mxu3  ;;  %v1205_v5 = vpop.f32.mrf.mxu0  ;;  %v18848_v41 = vmax.f32 %v12212_v49, %v12536_v6 }
 0x1c9   :  { %v12934_v51 = vpack.c.bf16 %v2883_v1, %v2881_v55  ;;  %v3123_v7 = vrot.slane %v2883_v1, 1  ;;  %v2687_v9 = vmax.f32 %v1252_v20, %v1447_v61  ;;  %v1254_v25 = vpop.f32.mrf.mxu1 }
 0x1ca   :  { %18845 = vst [vmem:[#allocation70_spill] sm:$0xff] %v12932_v30  ;;  %v2718_v17 = vmax.f32 %v18847_v10, %v2686_v26  ;;  %v3172_v19 = vsel %vm18284_vm11, %v3120_v4, %v3122_v50  ;;  %v18849_v10 = vld [vmem:[#allocation6_spill] sm:$0xff] }
 0x1cb   :  { %18846 = vst [vmem:[#allocation71_spill] sm:$0xff] %v12934_v51  ;;  %v2719_v21 = vmax.f32 %v18848_v41, %v2687_v9  ;;  %v3173_v56 = vsel %vm18284_vm11, %v3121_v42, %v3123_v7  ;;  %v18850_v49 = vand.u32 7, %v18849_v10  ;;  %v18853_v42 = vld [vmem:[#allocation7_spill] sm:$0xff]  ;;  %v18857_v41 = vld [vmem:[#allocation54_spill] sm:$0xff]  ;;  %v18863_v10 = vld [vmem:[#allocation21_spill] sm:$0xff] }
 0x1cc   :  { %v2852_v55 = vadd.f32 %v12857_v48, %v2718_v17  ;;  %v18854_v9 = vand.u32 7, %v18853_v42 }
 0x1cd   :  { %v2853_v11 = vadd.f32 %v12855_v37, %v2719_v21  ;;  %vm12950_vm1 = vcmp.eq.s32.totalorder %v18850_v49, 7 }
 0x1ce   :  { %v2884_v20 = vmax.f32 %v2852_v55, 0.0  ;;  %vm12956_vm11 = vcmp.eq.s32.totalorder %v18854_v9, 7  ;;  %v18860_v55 = vld [vmem:[#allocation46_spill] sm:$0xff] }
 0x1cf   :  { %v2885_v31 = vmax.f32 %v2853_v11, 0.0  ;;  %v1400_v29 = vpop.f32.mrf.mxu2  ;;  %v18861_v11 = vld [vmem:[#allocation55_spill] sm:$0xff] }
 0x1d0   :  { %v3124_v1 = vrot.slane %v2884_v20, 1  ;;  %v2688_v47 = vmax.f32 %v1205_v5, %v1400_v29  ;;  %v1449_v57 = vpop.f32.mrf.mxu3  ;;  %v1208_v27 = vpop.f32.mrf.mxu0  ;;  %v18858_v5 = vmax.f32 %v12214_v44, %v18857_v41  ;;  %v18862_v29 = vmax.f32 %v18860_v55, %v18861_v11 }
 0x1d1   :  { %v3125_v26 = vrot.slane %v2885_v31, 1  ;;  %v2689_v4 = vmax.f32 %v1254_v25, %v1449_v57  ;;  %v1257_v61 = vpop.f32.mrf.mxu1  ;;  %v3185_v44 = vsel %vm12950_vm1, 0.0, %v3173_v56 }
 0x1d2   :  { %v2720_v21 = vmax.f32 %v18858_v5, %v2688_v47  ;;  %v3170_v25 = vsel %vm18859_vm12, %v3122_v50, %v3124_v1  ;;  %vm18870_vm12 = vmmov %vm18865_vm4 }
 0x1d3   :  { %v2721_v57 = vmax.f32 %v18862_v29, %v2689_v4  ;;  %1597 = vmatmul.bf16.gmra.mxu0 %v18863_v10  ;;  %v12969_v49 = vpack.c.bf16 %v3170_v25, %v3172_v19  ;;  %v3171_v42 = vsel %vm18865_vm4, %v3123_v7, %v3125_v26 }
 0x1d4   :  { %v2854_v9 = vadd.f32 %v12857_v48, %v2720_v21  ;;  %1646 = vmatmul.bf16.gmra.mxu1 %v18863_v10  ;;  %1792 = vmatmul.bf16.gmra.mxu2 %v18863_v10  ;;  %v3187_v50 = vsel %vm12956_vm11, 0.0, %v3171_v42 }
 0x1d5   :  { %18864 = vst [vmem:[#allocation6_spill] sm:$0xff] %v12969_v49  ;;  %v2855_v47 = vadd.f32 %v12855_v37, %v2721_v57  ;;  %1841 = vmatmul.bf16.gmra.mxu3 %v18863_v10  ;;  %v12982_v19 = vpack.c.bf16 %v3187_v50, %v3185_v44  ;;  %v18869_v57 = vmax.f32 %v12226_v62, %v12554_v16  ;;  %v18871_v44 = vld [vmem:[#allocation56_spill] sm:$0xff] }
 0x1d6   :  { %v2886_v4 = vmax.f32 %v2854_v9, 0.0 }
 0x1d7   :  { %18866 = vst [vmem:[#allocation7_spill] sm:$0xff] %v12982_v19  ;;  %v2887_v7 = vmax.f32 %v2855_v47, 0.0  ;;  %v1403_v41 = vpop.f32.mrf.mxu2 }
 0x1d8   :  { %v12984_v5 = vpack.c.bf16 %v2886_v4, %v2884_v20  ;;  %v3126_v21 = vrot.slane %v2886_v4, 1  ;;  %v2690_v25 = vmax.f32 %v1208_v27, %v1403_v41  ;;  %v1452_v55 = vpop.f32.mrf.mxu3  ;;  %v1210_v11 = vpop.f32.mrf.mxu0  ;;  %v18872_v20 = vmax.f32 %v12228_v0, %v18871_v44 }
 0x1d9   :  { %v12986_v29 = vpack.c.bf16 %v2887_v7, %v2885_v31  ;;  %v3127_v56 = vrot.slane %v2887_v7, 1  ;;  %v2691_v49 = vmax.f32 %v1257_v61, %v1452_v55  ;;  %v1259_v42 = vpop.f32.mrf.mxu1 }
 0x1da   :  { %18867 = vst [vmem:[#allocation54_spill] sm:$0xff] %v12984_v5  ;;  %v2722_v39 = vmax.f32 %v18869_v57, %v2690_v25  ;;  %v3168_v9 = vsel %vm18870_vm12, %v3124_v1, %v3126_v21  ;;  %v18874_v57 = vld [vmem:[#allocation57_spill] sm:$0xff] }
 0x1db   :  { %18868 = vst [vmem:[#allocation46_spill] sm:$0xff] %v12986_v29  ;;  %v2723_v50 = vmax.f32 %v18872_v20, %v2691_v49  ;;  %v3169_v27 = vsel %vm18865_vm4, %v3125_v26, %v3127_v56  ;;  %v18873_v49 = vld [vmem:[#allocation47_spill] sm:$0xff]  ;;  %v18876_v20 = vld [vmem:[#allocation12_spill] sm:$0xff] }
 0x1dc   :  { %v2856_v31 = vadd.f32 %v12857_v48, %v2722_v39  ;;  %v18875_v44 = vmax.f32 %v18873_v49, %v18874_v57  ;;  %v18877_v39 = vand.u32 7, %v18876_v20  ;;  %v18888_v57 = vld [vmem:[#allocation29_spill] sm:$0xff] }
 0x1dd   :  { %v2857_v47 = vadd.f32 %v12855_v37, %v2723_v50  ;;  %v10990_v20 = vld [vmem:[%s18164_s3 + $0x74] sm:$0xf0] }
 0x1de   :  { %v2888_v61 = vmax.f32 %v2856_v31, 0.0  ;;  %vm13009_vm12 = vcmp.eq.s32.totalorder %v18877_v39, 7  ;;  %v18880_v31 = vld [vmem:[#allocation11_spill] sm:$0xff]  ;;  %v10989_v39 = vld [vmem:[%s18164_s3 + $0x74] sm:$0xf] }
 0x1df   :  { %v2889_v4 = vmax.f32 %v2857_v47, 0.0  ;;  %v1405_v7 = vpop.f32.mrf.mxu2  ;;  %v18881_v47 = vand.u32 7, %v18880_v31  ;;  %v3189_v19 = vsel %vm13009_vm12, 0.0, %v3169_v27 }
 0x1e0   :  { %v13000_v41 = vrot.slane %v2888_v61, 1  ;;  %v2692_v62 = vmax.f32 %v1210_v11, %v1405_v7  ;;  %v1454_v16 = vpop.f32.mrf.mxu3  ;;  %v1213_v25 = vpop.f32.mrf.mxu0  ;;  %v18885_v7 = vld [vmem:[#allocation48_spill] sm:$0xff]  ;;  %v11262_v11 = vld [vmem:[%s18162_s0 + $0x38] sm:$0xff] }
 0x1e1   :  { %v13002_v1 = vrot.slane %v2889_v4, 1  ;;  %v2693_v55 = vmax.f32 %v1259_v42, %v1454_v16  ;;  %v1262_v0 = vpop.f32.mrf.mxu1  ;;  %vm13015_vm4 = vcmp.eq.s32.totalorder %v18881_v47, 7  ;;  %v18886_v16 = vld [vmem:[#allocation58_spill] sm:$0xff] }
 0x1e2   :  { %v2724_v26 = vmax.f32 %v18875_v44, %v2692_v62  ;;  %v3166_v42 = vsel %vm18884_vm9, %v3126_v21, %v13000_v41  ;;  %v18887_v49 = vmax.f32 %v18885_v7, %v18886_v16  ;;  %v8824_v44 = vld [vmem:[%s18164_s3 + $0x70] sm:$0xf]  ;;  %v8826_v7 = vld [vmem:[%s18164_s3 + $0x78] sm:$0xf0] }
 0x1e3   :  { %1602 = vmatmul.bf16.gmra.mxu0 %v18888_v57  ;;  %v13035_v31 = vpack.c.bf16 %v3166_v42, %v3168_v9  ;;  %v3167_v21 = vsel %vm18884_vm9, %v3127_v56, %v13002_v1  ;;  %v8825_v47 = vor.u32 %v10990_v20, %v8824_v44  ;;  %v8968_v9 = vld [vmem:[%s18161_s1 + $0x370] sm:$0xf]  ;;  %v10974_v42 = vld [vmem:[%s18161_s1 + $0x374] sm:$0xf0]  ;;  %v8970_v44 = vld [vmem:[%s18161_s1 + $0x378] sm:$0xf0] }
 0x1e4   :  { %v2725_v62 = vmax.f32 %v18887_v49, %v2693_v55  ;;  %v2858_v55 = vadd.f32 %v12857_v48, %v2724_v26  ;;  %1651 = vmatmul.bf16.gmra.mxu1 %v18888_v57  ;;  %1797 = vmatmul.bf16.gmra.mxu2 %v18888_v57  ;;  %v8829_v26 = vor.u32 %v10989_v39, %v8826_v7  ;;  %v10973_v49 = vld [vmem:[%s18161_s1 + $0x374] sm:$0xf]  ;;  %v8816_v7 = vld [vmem:[%s18164_s3 + $0x60] sm:$0xf] }
 0x1e5   :  { %18889 = vst [vmem:[#allocation55_spill] sm:$0xff] %v13035_v31  ;;  %1846 = vmatmul.bf16.gmra.mxu3 %v18888_v57  ;;  %v8969_v16 = vor.u32 %v10974_v42, %v8968_v9  ;;  %1980 = vmatpush.bf16.msra.mxu0 %v8825_v47  ;;  %v8973_v31 = vor.u32 %v10973_v49, %v8970_v44  ;;  %v8818_v49 = vld [vmem:[%s18164_s3 + $0x68] sm:$0xf0] }
 0x1e6   :  { %v2859_v56 = vadd.f32 %v12855_v37, %v2725_v62  ;;  %v2890_v20 = vmax.f32 %v2858_v55, 0.0  ;;  %v3191_v62 = vsel %vm13015_vm4, 0.0, %v3167_v21  ;;  %2029 = vmatpush.bf16.msra.mxu1 %v8829_v26  ;;  %v10988_v55 = vld [vmem:[%s18164_s3 + $0x64] sm:$0xf0] }
 0x1e7   :  { %v1408_v39 = vpop.f32.mrf.mxu2  ;;  %2158 = vmatpush.bf16.msra.mxu2 %v8969_v16  ;;  %v13070_v47 = vpack.c.bf16 %v3191_v62, %v3189_v19  ;;  %2207 = vmatpush.bf16.msra.mxu3 %v8973_v31  ;;  %v8817_v26 = vor.u32 %v10988_v55, %v8816_v7  ;;  %v10987_v16 = vld [vmem:[%s18164_s3 + $0x64] sm:$0xf]  ;;  %v10972_v31 = vld [vmem:[%s18161_s1 + $0x364] sm:$0xf0] }
 0x1e8   :  { %v2891_v58 = vmax.f32 %v2859_v56, 0.0  ;;  %v13072_v9 = vpack.c.bf16 %v2890_v20, %v2888_v61  ;;  %v13074_v27 = vrot.slane %v2890_v20, 1  ;;  %v2694_v42 = vmax.f32 %v1213_v25, %v1408_v39  ;;  %v1457_v21 = vpop.f32.mrf.mxu3  ;;  %v1215_v56 = vpop.f32.mrf.mxu0  ;;  %v8960_v25 = vld [vmem:[%s18161_s1 + $0x360] sm:$0xf] }
 0x1e9   :  { %18890 = vst [vmem:[#allocation21_spill] sm:$0xff] %v13070_v47  ;;  %v2695_v61 = vmax.f32 %v1262_v0, %v1457_v21  ;;  %v1264_v20 = vpop.f32.mrf.mxu1  ;;  %v8821_v62 = vor.u32 %v10987_v16, %v8818_v49  ;;  %v18893_v39 = vmax.f32 %v12275_v3, %v12607_v52  ;;  %1981 = vmatpush.bf16.msra.mxu0 %v8817_v26  ;;  %v8962_v0 = vld [vmem:[%s18161_s1 + $0x368] sm:$0xf0]  ;;  %v18894_v21 = vld [vmem:[#allocation49_spill] sm:$0xff] }
 0x1ea   :  { %18891 = vst [vmem:[#allocation56_spill] sm:$0xff] %v13072_v9  ;;  %v13082_v44 = vpack.c.bf16 %v2891_v58, %v2889_v4  ;;  %v13084_v19 = vrot.slane %v2891_v58, 1  ;;  %v8961_v4 = vor.u32 %v10972_v31, %v8960_v25  ;;  %v10971_v58 = vld [vmem:[%s18161_s1 + $0x364] sm:$0xf]  ;;  %v3164_v55 = vsel %vm18884_vm9, %v13000_v41, %v13074_v27  ;;  %v18895_v16 = vld [vmem:[#allocation59_spill] sm:$0xff]  ;;  %v18903_v9 = vld [vmem:[#allocation17_spill] sm:$0xff] }
 0x1eb   :  { %v2726_v7 = vmax.f32 %v18893_v39, %v2694_v42  ;;  %v18896_v49 = vmax.f32 %v18894_v21, %v18895_v16  ;;  %2030 = vmatpush.bf16.msra.mxu1 %v8821_v62  ;;  %v8965_v52 = vor.u32 %v10971_v58, %v8962_v0  ;;  %v8808_v42 = vld [vmem:[%s18164_s3 + $0x50] sm:$0xf]  ;;  %v10986_v26 = vld [vmem:[%s18164_s3 + $0x54] sm:$0xf0]  ;;  %v10985_v25 = vld [vmem:[%s18164_s3 + $0x54] sm:$0xf] }
 0x1ec   :  { %18892 = vst [vmem:[#allocation47_spill] sm:$0xff] %v13082_v44  ;;  %v13121_v41 = vsel %vm18884_vm9, %v13002_v1, %v13084_v19  ;;  %2159 = vmatpush.bf16.msra.mxu2 %v8961_v4  ;;  %v8809_v62 = vor.u32 %v10986_v26, %v8808_v42  ;;  %v8810_v31 = vld [vmem:[%s18164_s3 + $0x58] sm:$0xf0]  ;;  %v8952_v39 = vld [vmem:[%s18161_s1 + $0x350] sm:$0xf] }
 0x1ed   :  { %v2727_v3 = vmax.f32 %v18896_v49, %v2695_v61  ;;  %v13124_v61 = vadd.f32 %v12857_v48, %v2726_v7  ;;  %v10970_v58 = vld [vmem:[%s18161_s1 + $0x354] sm:$0xf0]  ;;  %2208 = vmatpush.bf16.msra.mxu3 %v8965_v52  ;;  %v8813_v7 = vor.u32 %v10985_v25, %v8810_v31  ;;  %v10969_v4 = vld [vmem:[%s18161_s1 + $0x354] sm:$0xf]  ;;  %v8954_v21 = vld [vmem:[%s18161_s1 + $0x358] sm:$0xf0] }
 0x1ee   :  { %v8953_v0 = vor.u32 %v10970_v58, %v8952_v39  ;;  %1982 = vmatpush.bf16.msra.mxu0 %v8809_v62  ;;  %v8957_v49 = vor.u32 %v10969_v4, %v8954_v21  ;;  %v10984_v52 = vld [vmem:[%s18164_s3 + $0x44] sm:$0xf0]  ;;  %v8802_v4 = vld [vmem:[%s18164_s3 + $0x48] sm:$0xf0] }
 0x1ef   :  { %v13136_v1 = vadd.f32 %v12855_v37, %v2727_v3  ;;  %v18296_v16 = vmax.f32 %v13124_v61, 0.0  ;;  %v1410_v26 = vpop.f32.mrf.mxu2  ;;  %2031 = vmatpush.bf16.msra.mxu1 %v8813_v7  ;;  %v8800_v3 = vld [vmem:[%s18164_s3 + $0x40] sm:$0xf]  ;;  %v10983_v7 = vld [vmem:[%s18164_s3 + $0x44] sm:$0xf] }
 0x1f0   :  { %v2696_v31 = vmax.f32 %v1215_v56, %v1410_v26  ;;  %v1459_v39 = vpop.f32.mrf.mxu3  ;;  %v13156_v62 = vpop.f32.mrf.mxu0  ;;  %2160 = vmatpush.bf16.msra.mxu2 %v8953_v0  ;;  %v8801_v58 = vor.u32 %v10984_v52, %v8800_v3  ;;  %v8805_v56 = vor.u32 %v10983_v7, %v8802_v4  ;;  %v8944_v0 = vld [vmem:[%s18161_s1 + $0x340] sm:$0xf]  ;;  %v10968_v26 = vld [vmem:[%s18161_s1 + $0x344] sm:$0xf0]  ;;  %v10967_v7 = vld [vmem:[%s18161_s1 + $0x344] sm:$0xf] }
 0x1f1   :  { %v18299_v42 = vmax.f32 %v13136_v1, 0.0  ;;  %v13154_v25 = vrot.slane %v18296_v16, 1  ;;  %v2697_v16 = vmax.f32 %v1264_v20, %v1459_v39  ;;  %v13168_v47 = vpop.f32.mrf.mxu1  ;;  %2209 = vmatpush.bf16.msra.mxu3 %v8957_v49  ;;  %v18897_v3 = vld [vmem:[#allocation18_spill] sm:$0xff]  ;;  %v18901_v20 = vld [vmem:[#allocation60_spill] sm:$0xff]  ;;  %v8945_v49 = vor.u32 %v10968_v26, %v8944_v0  ;;  %v8946_v4 = vld [vmem:[%s18161_s1 + $0x348] sm:$0xf0] }
 0x1f2   :  { %v18898_v52 = vand.u32 7, %v18897_v3  ;;  %v18902_v39 = vmax.f32 %v12327_v22, %v18901_v20  ;;  %1983 = vmatpush.bf16.msra.mxu0 %v8801_v58  ;;  %v18904_v3 = vand.u32 7, %v18903_v9  ;;  %v18909_v58 = vld [vmem:[#allocation61_spill] sm:$0xff]  ;;  %v18911_v20 = vld [vmem:[#allocation35_spill] sm:$0xff]  ;;  %v8792_v9 = vld [vmem:[%s18164_s3 + $0x30] sm:$0xf] }
 0x1f3   :  { %v13166_v21 = vrot.slane %v18299_v42, 1  ;;  %v3162_v22 = vsel %vm18907_vm13, %v13074_v27, %v13154_v25  ;;  %1607 = vmatmul.bf16.gmra.mxu0 %v18911_v20  ;;  %2032 = vmatpush.bf16.msra.mxu1 %v8805_v56  ;;  %v10981_v27 = vld [vmem:[%s18164_s3 + $0x34] sm:$0xf] }
 0x1f4   :  { %vm13178_vm9 = vcmp.eq.s32.totalorder %v18898_v52, 7  ;;  %v2728_v42 = vmax.f32 %v18902_v39, %v2696_v31  ;;  %vm13193_vm0 = vcmp.eq.s32.totalorder %v18904_v3, 7  ;;  %v18908_v31 = vld [vmem:[#allocation50_spill] sm:$0xff]  ;;  %v8949_v39 = vor.u32 %v10967_v7, %v8946_v4  ;;  %v10982_v3 = vld [vmem:[%s18164_s3 + $0x34] sm:$0xf0]  ;;  %1656 = vmatmul.bf16.gmra.mxu1 %v18911_v20  ;;  %1802 = vmatmul.bf16.gmra.mxu2 %v18911_v20  ;;  %v11264_v52 = vld [vmem:[%s18162_s0 + $0x48] sm:$0xff] }
 0x1f5   :  { %v18910_v0 = vmax.f32 %v18908_v31, %v18909_v58  ;;  %v13214_v29 = vpack.c.bf16 %v3162_v22, %v3164_v55  ;;  %v8793_v56 = vor.u32 %v10982_v3, %v8792_v9  ;;  %v8794_v7 = vld [vmem:[%s18164_s3 + $0x38] sm:$0xf0]  ;;  %v8936_v4 = vld [vmem:[%s18161_s1 + $0x330] sm:$0xf]  ;;  %v10966_v55 = vld [vmem:[%s18161_s1 + $0x334] sm:$0xf0]  ;;  %1851 = vmatmul.bf16.gmra.mxu3 %v18911_v20  ;;  %2161 = vmatpush.bf16.msra.mxu2 %v8945_v49 }
 0x1f6   :  { %v8797_v31 = vor.u32 %v10981_v27, %v8794_v7  ;;  %v8937_v58 = vor.u32 %v10966_v55, %v8936_v4  ;;  %v8938_v9 = vld [vmem:[%s18161_s1 + $0x338] sm:$0xf0]  ;;  %2210 = vmatpush.bf16.msra.mxu3 %v8949_v39  ;;  %v8784_v7 = vld [vmem:[%s18164_s3 + $0x20] sm:$0xf]  ;;  %v10980_v39 = vld [vmem:[%s18164_s3 + $0x24] sm:$0xf0] }
 0x1f7   :  { %v2729_v26 = vmax.f32 %v18910_v0, %v2697_v16  ;;  %18912 = vst [vmem:[#allocation57_spill] sm:$0xff] %v13214_v29  ;;  %v2862_v16 = vadd.f32 %v12857_v48, %v2728_v42  ;;  %v3163_v42 = vsel %vm18907_vm13, %v13084_v19, %v13166_v21  ;;  %v10965_v0 = vld [vmem:[%s18161_s1 + $0x334] sm:$0xf]  ;;  %1984 = vmatpush.bf16.msra.mxu0 %v8793_v56  ;;  %v3193_v19 = vsel %vm13178_vm9, 0.0, %v13121_v41  ;;  %v1413_v27 = vpop.f32.mrf.mxu2 }
 0x1f8   :  { %v8941_v29 = vor.u32 %v10965_v0, %v8938_v9  ;;  %v3195_v49 = vsel %vm13193_vm0, 0.0, %v3163_v42  ;;  %2033 = vmatpush.bf16.msra.mxu1 %v8797_v31  ;;  %v18914_v56 = vmax.f32 %v13124_v61, 0.0  ;;  %v2698_v55 = vmax.f32 %v13156_v62, %v1413_v27  ;;  %v1462_v42 = vpop.f32.mrf.mxu3  ;;  %v10979_v0 = vld [vmem:[%s18164_s3 + $0x24] sm:$0xf]  ;;  %v8786_v9 = vld [vmem:[%s18164_s3 + $0x28] sm:$0xf0] }
 0x1f9   :  { %v2863_v22 = vadd.f32 %v12855_v37, %v2729_v26  ;;  %v2894_v3 = vmax.f32 %v2862_v16, 0.0  ;;  %v13251_v16 = vpack.c.bf16 %v3195_v49, %v3193_v19  ;;  %v8785_v31 = vor.u32 %v10980_v39, %v8784_v7  ;;  %v13275_v49 = vpop.f32.mrf.mxu1  ;;  %2162 = vmatpush.bf16.msra.mxu2 %v8937_v58  ;;  %v8928_v7 = vld [vmem:[%s18161_s1 + $0x320] sm:$0xf]  ;;  %v10964_v39 = vld [vmem:[%s18161_s1 + $0x324] sm:$0xf0] }
 0x1fa   :  { %v18916_v61 = vmax.f32 %v13136_v1, 0.0  ;;  %v2699_v62 = vmax.f32 %v13168_v47, %v1462_v42  ;;  %v8789_v27 = vor.u32 %v10979_v0, %v8786_v9  ;;  %v18918_v1 = vmax.f32 %v12387_v43, %v12723_v14  ;;  %2211 = vmatpush.bf16.msra.mxu3 %v8941_v29  ;;  %v10963_v47 = vld [vmem:[%s18161_s1 + $0x324] sm:$0xf]  ;;  %v8930_v58 = vld [vmem:[%s18161_s1 + $0x328] sm:$0xf0] }
 0x1fb   :  { %v2895_v26 = vmax.f32 %v2863_v22, 0.0  ;;  %18913 = vst [vmem:[#allocation12_spill] sm:$0xff] %v13251_v16  ;;  %v13255_v4 = vpack.c.bf16 %v2894_v3, %v18914_v56  ;;  %v13257_v41 = vrot.slane %v2894_v3, 1  ;;  %v13260_v22 = vpop.f32.mrf.mxu0  ;;  %1985 = vmatpush.bf16.msra.mxu0 %v8785_v31  ;;  %v18919_v0 = vld [vmem:[#allocation51_spill] sm:$0xff]  ;;  %v18920_v43 = vld [vmem:[#allocation62_spill] sm:$0xff] }
 0x1fc   :  { %v2730_v56 = vmax.f32 %v18918_v1, %v2698_v55  ;;  %v18921_v14 = vmax.f32 %v18919_v0, %v18920_v43  ;;  %2034 = vmatpush.bf16.msra.mxu1 %v8789_v27  ;;  %v8933_v55 = vor.u32 %v10963_v47, %v8930_v58  ;;  %v8776_v31 = vld [vmem:[%s18164_s3 + $0x10] sm:$0xf]  ;;  %v10978_v9 = vld [vmem:[%s18164_s3 + $0x14] sm:$0xf0]  ;;  %v10961_v58 = vld [vmem:[%s18161_s1 + $0x314] sm:$0xf] }
 0x1fd   :  { %18915 = vst [vmem:[#allocation11_spill] sm:$0xff] %v13255_v4  ;;  %v13270_v19 = vpack.c.bf16 %v2895_v26, %v18916_v61  ;;  %v13272_v3 = vrot.slane %v2895_v26, 1  ;;  %v8929_v26 = vor.u32 %v10964_v39, %v8928_v7  ;;  %v13296_v42 = vsel %vm18907_vm13, %v13154_v25, %v13257_v41  ;;  %v10977_v61 = vld [vmem:[%s18164_s3 + $0x14] sm:$0xf]  ;;  %v8778_v7 = vld [vmem:[%s18164_s3 + $0x18] sm:$0xf0] }
 0x1fe   :  { %v2731_v29 = vmax.f32 %v18921_v14, %v2699_v62  ;;  %v13317_v62 = vadd.f32 %v12857_v48, %v2730_v56  ;;  %v8777_v27 = vor.u32 %v10978_v9, %v8776_v31  ;;  %v8920_v39 = vld [vmem:[%s18161_s1 + $0x310] sm:$0xf]  ;;  %v10962_v1 = vld [vmem:[%s18161_s1 + $0x314] sm:$0xf0]  ;;  %v8922_v0 = vld [vmem:[%s18161_s1 + $0x318] sm:$0xf0]  ;;  %2212 = vmatpush.bf16.msra.mxu3 %v8933_v55 }
 0x1ff   :  { %18917 = vst [vmem:[#allocation48_spill] sm:$0xff] %v13270_v19  ;;  %v13314_v25 = vsel %vm18907_vm13, %v13166_v21, %v13272_v3  ;;  %2163 = vmatpush.bf16.msra.mxu2 %v8929_v26  ;;  %v8781_v21 = vor.u32 %v10977_v61, %v8778_v7  ;;  %v8921_v56 = vor.u32 %v10962_v1, %v8920_v39  ;;  %v11255_v43 = vld [vmem:[%s18162_s0 + $0x8] sm:$0xff]  ;;  %v13350_v61 = vld [vmem:[%s18162_s0] sm:$0xff]  ;;  %v1415_v1 = vpop.f32.mrf.mxu2 }
 0x200   :  { %v13329_v47 = vadd.f32 %v12855_v37, %v2731_v29  ;;  %v221_v14 = vrot.slane %v11255_v43, 1  ;;  %v13343_v29 = vld [vmem:[%s18162_s0 + $0x10] sm:$0xff]  ;;  %v2896_v31 = vmax.f32 %v13317_v62, 0.0  ;;  %1986 = vmatpush.bf16.msra.mxu0 %v8777_v27  ;;  %v8925_v9 = vor.u32 %v10961_v58, %v8922_v0  ;;  %v8768_v43 = vld [vmem:[%s18164_s3] sm:$0xf]  ;;  %v1464_v58 = vpop.f32.mrf.mxu3 }
 0x201   :  { %2035 = vmatpush.bf16.msra.mxu1 %v8781_v21  ;;  %v10976_v55 = vld [vmem:[%s18164_s3 + $0x4] sm:$0xf0]  ;;  %v2700_v27 = vmax.f32 %v13260_v22, %v1415_v1  ;;  %v8770_v21 = vld [vmem:[%s18164_s3 + $0x8] sm:$0xf0]  ;;  %v2701_v16 = vmax.f32 %v13275_v49, %v1464_v58  ;;  %v1272_v19 = vpop.f32.mrf.mxu1  ;;  %v8912_v22 = vld [vmem:[%s18161_s1 + $0x300] sm:$0xf] }
 0x202   :  { %v2897_v39 = vmax.f32 %v13329_v47, 0.0  ;;  %v3136_v62 = vrot.slane %v2896_v31, 1  ;;  %v8769_v26 = vor.u32 %v10976_v55, %v8768_v43  ;;  %v10975_v47 = vld [vmem:[%s18164_s3 + $0x4] sm:$0xf]  ;;  %v10960_v1 = vld [vmem:[%s18161_s1 + $0x304] sm:$0xf0]  ;;  %v18922_v43 = vmax.f32 %v12439_v32, %v12779_v2  ;;  %2213 = vmatpush.bf16.msra.mxu3 %v8925_v9 }
 0x203   :  { %v1223_v0 = vpop.f32.mrf.mxu0  ;;  %2164 = vmatpush.bf16.msra.mxu2 %v8921_v56  ;;  %v8773_v4 = vor.u32 %v10975_v47, %v8770_v21  ;;  %v8913_v5 = vor.u32 %v10960_v1, %v8912_v22  ;;  %v10959_v49 = vld [vmem:[%s18161_s1 + $0x304] sm:$0xf]  ;;  %v8914_v56 = vld [vmem:[%s18161_s1 + $0x308] sm:$0xf0]  ;;  %v18923_v58 = vrot.slane %v13343_v29, 1  ;;  %v18924_v21 = vld [vmem:[#allocation24_spill] sm:$0xff]  ;;  %v18928_v2 = vmax.f32 %v12450_v53, %v12790_v12  ;;  %1612 = vmatmul.bf16.gmra.mxu0 %v12093_v54 }
 0x204   :  { %v3137_v7 = vrot.slane %v2897_v39, 1  ;;  %v2732_v55 = vmax.f32 %v18922_v43, %v2700_v27  ;;  %1987 = vmatpush.bf16.msra.mxu0 %v8769_v26  ;;  %v18925_v51 = vand.u32 7, %v18924_v21  ;;  %v8917_v9 = vor.u32 %v10959_v49, %v8914_v56  ;;  %v18931_v1 = vld [vmem:[#allocation23_spill] sm:$0xff]  ;;  %1661 = vmatmul.bf16.gmra.mxu1 %v12093_v54 }
 0x205   :  { %v250_v47 = vsel %vm18907_vm13, %v221_v14, %v18923_v58  ;;  %v2733_v26 = vmax.f32 %v18928_v2, %v2701_v16  ;;  %2036 = vmatpush.bf16.msra.mxu1 %v8773_v4  ;;  %v18929_v27 = vrot.slane %v13350_v61, 1  ;;  %v18932_v43 = vand.u32 7, %v18931_v1  ;;  %1807 = vmatmul.bf16.gmra.mxu2 %v12093_v54 }
 0x206   :  { %vm13389_vm15 = vcmp.eq.s32.totalorder %v18925_v51, 7  ;;  %v2866_v58 = vadd.f32 %v12857_v48, %v2732_v55  ;;  %v3158_v12 = vsel %vm18935_vm5, %v13257_v41, %v3136_v62  ;;  %1856 = vmatmul.bf16.gmra.mxu3 %v12093_v54  ;;  %v9066_v51 = vld [vmem:[%s18164_s3 + $0xf8] sm:$0xf0] }
 0x207   :  { %v251_v22 = vsel %vm18930_vm10, %v18929_v27, %v221_v14  ;;  %vm13403_vm13 = vcmp.eq.s32.totalorder %v18932_v43, 7  ;;  %v2867_v16 = vadd.f32 %v12855_v37, %v2733_v26  ;;  %2165 = vmatpush.bf16.msra.mxu2 %v8913_v5  ;;  %v13418_v4 = vpack.c.bf16 %v3158_v12, %v13296_v42  ;;  %vm18937_vm10 = vmmov %vm18935_vm5  ;;  %2214 = vmatpush.bf16.msra.mxu3 %v8917_v9 }
 0x208   :  { %v13410_v53 = vpack.c.bf16 %v250_v47, %v251_v22  ;;  %v3159_v14 = vsel %vm18937_vm10, %v13272_v3, %v3137_v7  ;;  %v2898_v55 = vmax.f32 %v2866_v58, 0.0  ;;  %v3197_v49 = vsel %vm13389_vm15, 0.0, %v13314_v25  ;;  %v1418_v47 = vpop.f32.mrf.mxu2  ;;  %v1467_v26 = vpop.f32.mrf.mxu3  ;;  %vm18943_vm10 = vmmov %vm18935_vm5 }
 0x209   :  { %18936 = vst [vmem:[#allocation58_spill] sm:$0xff] %v13418_v4  ;;  %v3199_v41 = vsel %vm13403_vm13, 0.0, %v3159_v14  ;;  %v2899_v56 = vmax.f32 %v2867_v16, 0.0  ;;  %v2702_v2 = vmax.f32 %v1223_v0, %v1418_v47  ;;  %v2703_v22 = vmax.f32 %v1272_v19, %v1467_v26  ;;  %v1274_v1 = vpop.f32.mrf.mxu1 }
 0x20a   :  { %v13428_v21 = vpack.c.bf16 %v3199_v41, %v3197_v49  ;;  %v13430_v5 = vpack.c.bf16 %v2898_v55, %v2896_v31  ;;  %v3138_v42 = vrot.slane %v2898_v55, 1  ;;  %v18941_v25 = vmax.f32 %v12466_v24, %v12806_v13 }
 0x20b   :  { %v1225_v27 = vpop.f32.mrf.mxu0  ;;  %v13432_v3 = vpack.c.bf16 %v2899_v56, %v2897_v39  ;;  %v3139_v9 = vrot.slane %v2899_v56, 1  ;;  %v18942_v31 = vmax.f32 %v12468_v59, %v12808_v36  ;;  %v18946_v36 = vmov 0 }
 0x20c   :  { %18938 = vst [vmem:[#allocation29_spill] sm:$0xff] %v13428_v21  ;;  %v2734_v43 = vmax.f32 %v18941_v25, %v2702_v2  ;;  %v3156_v58 = vsel %vm18935_vm5, %v3136_v62, %v3138_v42  ;;  %v18944_v2 = vld [vmem:[#allocation27_spill] sm:$0xff]  ;;  %v229_v4 = vrot.slane %v11264_v52, 1 }
 0x20d   :  { %18939 = vst [vmem:[#allocation49_spill] sm:$0xff] %v13430_v5  ;;  %v2735_v12 = vmax.f32 %v18942_v31, %v2703_v22  ;;  %v3157_v0 = vsel %vm18943_vm10, %v3137_v7, %v3139_v9  ;;  %v18945_v59 = vand.u32 7, %v18944_v2  ;;  %v18948_v7 = vld [vmem:[#allocation28_spill] sm:$0xff]  ;;  %v19028_v5 = vmov 0  ;;  %v11015_v22 = vld [vmem:[%s18164_s3 + $0xc4] sm:$0xf] }
 0x20e   :  { %18940 = vst [vmem:[#allocation59_spill] sm:$0xff] %v13432_v3  ;;  %v2868_v39 = vadd.f32 %v12857_v48, %v2734_v43  ;;  %v18949_v26 = vand.u32 7, %v18948_v7  ;;  %v18954_v43 = vld [vmem:[#allocation63_spill] sm:$0xff] }
 0x20f   :  { %v2869_v16 = vadd.f32 %v12855_v37, %v2735_v12  ;;  %vm13448_vm5 = vcmp.eq.s32.totalorder %v18945_v59, 7  ;;  %v18955_v31 = vmax.f32 %v12472_v46, %v18954_v43  ;;  %v18962_v43 = vmax.f32 %v12482_v15, %v12826_v34 }
 0x210   :  { %v2900_v19 = vmax.f32 %v2868_v39, 0.0  ;;  %v1420_v55 = vpop.f32.mrf.mxu2  ;;  %v1469_v13 = vpop.f32.mrf.mxu3  ;;  %v18947_v36 = vsel %vm13448_vm5, 4294967295, %v18946_v36  ;;  %vm13454_vm10 = vcmp.eq.s32.totalorder %v18949_v26, 7  ;;  %v18956_v39 = vld [vmem:[#allocation44_spill] sm:$0xff] }
 0x211   :  { %v2901_v14 = vmax.f32 %v2869_v16, 0.0  ;;  %v2704_v24 = vmax.f32 %v1225_v27, %v1420_v55  ;;  %v2705_v62 = vmax.f32 %v1274_v1, %v1469_v13  ;;  %v1277_v47 = vpop.f32.mrf.mxu1  ;;  %v18952_v27 = vmax.f32 %v12470_v35, %v12814_v23 }
 0x212   :  { %v3140_v49 = vrot.slane %v2900_v19, 1  ;;  %v3201_v35 = vsel %vm13448_vm5, 0.0, %v3157_v0 }
 0x213   :  { %v1228_v41 = vpop.f32.mrf.mxu0  ;;  %v3141_v56 = vrot.slane %v2901_v14, 1  ;;  %v2736_v25 = vmax.f32 %v18952_v27, %v2704_v24  ;;  %v2737_v12 = vmax.f32 %v18955_v31, %v2705_v62  ;;  %1617 = vmatmul.bf16.gmra.mxu0 %v18956_v39 }
 0x214   :  { %v3154_v1 = vsel %vm18953_vm3, %v3138_v42, %v3140_v49  ;;  %1666 = vmatmul.bf16.gmra.mxu1 %v18956_v39  ;;  %vm18965_vm3 = vmmov %vm18958_vm2 }
 0x215   :  { %v13467_v16 = vpack.c.bf16 %v3154_v1, %v3156_v58  ;;  %v3155_v55 = vsel %vm18958_vm2, %v3139_v9, %v3141_v56  ;;  %v2870_v13 = vadd.f32 %v12857_v48, %v2736_v25  ;;  %1812 = vmatmul.bf16.gmra.mxu2 %v18956_v39  ;;  %v2871_v23 = vadd.f32 %v12855_v37, %v2737_v12 }
 0x216   :  { %v3203_v46 = vsel %vm13454_vm10, 0.0, %v3155_v55  ;;  %1861 = vmatmul.bf16.gmra.mxu3 %v18956_v39  ;;  %v18963_v55 = vld [vmem:[#allocation64_spill] sm:$0xff] }
 0x217   :  { %18957 = vst [vmem:[#allocation18_spill] sm:$0xff] %v13467_v16  ;;  %v13480_v42 = vpack.c.bf16 %v3203_v46, %v3201_v35  ;;  %v2902_v58 = vmax.f32 %v2870_v13, 0.0  ;;  %v2903_v9 = vmax.f32 %v2871_v23, 0.0  ;;  %v11263_v16 = vld [vmem:[%s18162_s0 + $0x40] sm:$0xff] }
 0x218   :  { %v1423_v24 = vpop.f32.mrf.mxu2  ;;  %v1472_v7 = vpop.f32.mrf.mxu3  ;;  %v228_v21 = vrot.slane %v11263_v16, 1 }
 0x219   :  { %18959 = vst [vmem:[#allocation60_spill] sm:$0xff] %v13480_v42  ;;  %v13482_v62 = vpack.c.bf16 %v2902_v58, %v2900_v19  ;;  %v3142_v2 = vrot.slane %v2902_v58, 1  ;;  %v2706_v59 = vmax.f32 %v1228_v41, %v1423_v24  ;;  %v13484_v27 = vpack.c.bf16 %v2903_v9, %v2901_v14  ;;  %v1279_v1 = vpop.f32.mrf.mxu1 }
 0x21a   :  { %v3143_v0 = vrot.slane %v2903_v9, 1  ;;  %v2707_v25 = vmax.f32 %v1277_v47, %v1472_v7  ;;  %v18964_v19 = vmax.f32 %v12484_v8, %v18963_v55  ;;  %v18970_v24 = vand.u32 7, %v18969_v28  ;;  %v18973_v7 = vld [vmem:[#allocation33_spill] sm:$0xff] }
 0x21b   :  { %18960 = vst [vmem:[#allocation17_spill] sm:$0xff] %v13482_v62  ;;  %v1230_v26 = vpop.f32.mrf.mxu0  ;;  %v2738_v31 = vmax.f32 %v18962_v43, %v2706_v59  ;;  %v3152_v12 = vsel %vm18958_vm2, %v3140_v49, %v3142_v2  ;;  %vm13504_vm2 = vmpackc.low %vm8830_vm6, %vm8831_vm7  ;;  %v18971_v59 = vmov 0  ;;  %v18977_v43 = vld [vmem:[#allocation52_spill] sm:$0xff]  ;;  %v19015_v42 = vmov 0 }
 0x21c   :  { %18961 = vst [vmem:[#allocation50_spill] sm:$0xff] %v13484_v27  ;;  %v2739_v13 = vmax.f32 %v18964_v19, %v2707_v25  ;;  %v3153_v41 = vsel %vm18965_vm3, %v3141_v56, %v3143_v0  ;;  %v18966_v56 = vmov 0  ;;  %vm13512_vm14 = vcmp.eq.s32.totalorder %v18970_v24, 7  ;;  %vm18980_vm6 = vmmov %vm18965_vm3 }
 0x21d   :  { %v2872_v14 = vadd.f32 %v12857_v48, %v2738_v31  ;;  %v18967_v56 = vsel %vm13504_vm2, 4294967295, %v18966_v56  ;;  %v18972_v59 = vsel %vm13512_vm14, 4294967295, %v18971_v59  ;;  %v18974_v25 = vand.u32 7, %v18973_v7  ;;  %v18978_v31 = vld [vmem:[#allocation65_spill] sm:$0xff]  ;;  %vm18985_vm7 = vmmov %vm18965_vm3 }
 0x21e   :  { %v2873_v15 = vadd.f32 %v12855_v37, %v2739_v13  ;;  %18968 = vst [vmem:[#allocation61_spill] sm:$0xff] %v18967_v56  ;;  %v18979_v55 = vmax.f32 %v18977_v43, %v18978_v31  ;;  %v18981_v13 = vld [vmem:[#allocation53_spill] sm:$0xff] }
 0x21f   :  { %v2904_v34 = vmax.f32 %v2872_v14, 0.0  ;;  %vm13518_vm8 = vcmp.eq.s32.totalorder %v18974_v25, 7  ;;  %v18982_v14 = vld [vmem:[#allocation66_spill] sm:$0xff]  ;;  %v11258_v31 = vld [vmem:[%s18162_s0 + $0x18] sm:$0xff] }
 0x220   :  { %v2905_v47 = vmax.f32 %v2873_v15, 0.0  ;;  %v1425_v49 = vpop.f32.mrf.mxu2  ;;  %v1474_v8 = vpop.f32.mrf.mxu3  ;;  %v18983_v15 = vmax.f32 %v18981_v13, %v18982_v14 }
 0x221   :  { %v3144_v35 = vrot.slane %v2904_v34, 1  ;;  %v2708_v46 = vmax.f32 %v1230_v26, %v1425_v49  ;;  %v2709_v58 = vmax.f32 %v1279_v1, %v1474_v8  ;;  %v13508_v9 = vpop.f32.mrf.mxu1  ;;  %v18975_v26 = vmov 0 }
 0x222   :  { %v3145_v45 = vrot.slane %v2905_v47, 1  ;;  %v18976_v26 = vsel %vm13518_vm8, 4294967295, %v18975_v26 }
 0x223   :  { %v13502_v23 = vpop.f32.mrf.mxu0  ;;  %v2740_v19 = vmax.f32 %v18979_v55, %v2708_v46  ;;  %v3150_v1 = vsel %vm18980_vm6, %v3142_v2, %v3144_v35  ;;  %v2741_v49 = vmax.f32 %v18983_v15, %v2709_v58  ;;  %8834 = vmatmul.msk.bf16.vlgmr.msra.gmra.mxu0 %vm13504_vm2, %v13410_v53  ;;  %v18986_v2 = vld [vmem:[#allocation4_spill] sm:$0xff]  ;;  %v3205_v46 = vsel %vm13512_vm14, 0.0, %v3153_v41 }
 0x224   :  { %v13533_v8 = vpack.c.bf16 %v3150_v1, %v3152_v12  ;;  %v3151_v28 = vsel %vm18985_vm7, %v3143_v0, %v3145_v45  ;;  %8874 = vmatmul.msk.bf16.vlgmr.msra.gmra.mxu1 %vm13504_vm2, %v13410_v53  ;;  %v223_v55 = vrot.slane %v11258_v31, 1  ;;  %vm18998_vm2 = vmmov %vm18985_vm7 }
 0x225   :  { %v2874_v24 = vadd.f32 %v12857_v48, %v2740_v19  ;;  %2166 = vmatmul.bf16.vlgmr.msra.gmra.mxu2 %v18986_v2  ;;  %v3207_v58 = vsel %vm13518_vm8, 0.0, %v3151_v28  ;;  %v2875_v12 = vadd.f32 %v12855_v37, %v2741_v49  ;;  %v18988_v19 = vld [vmem:[#allocation40_spill] sm:$0xff]  ;;  %vm19000_vm14 = vmmov %vm18998_vm2 }
 0x226   :  { %18984 = vst [vmem:[#allocation35_spill] sm:$0xff] %v13533_v8  ;;  %2215 = vmatmul.bf16.vlgmr.msra.gmra.mxu3 %v18986_v2  ;;  %v13548_v7 = vpack.c.bf16 %v3207_v58, %v3205_v46  ;;  %v18989_v41 = vand.u32 7, %v18988_v19  ;;  %vm19001_vm8 = vmmov %vm18998_vm2 }
 0x227   :  { %v2906_v0 = vmax.f32 %v2874_v24, 0.0  ;;  %v2907_v25 = vmax.f32 %v2875_v12, 0.0  ;;  %v11259_v24 = vld [vmem:[%s18162_s0 + $0x20] sm:$0xff]  ;;  %vm19002_vm5 = vmmov %vm18998_vm2 }
 0x228   :  { %18987 = vst [vmem:[#allocation51_spill] sm:$0xff] %v13548_v7  ;;  %v13550_v43 = vpop.f32.mrf.mxu2  ;;  %vm13557_vm3 = vcmp.eq.s32.totalorder %v18989_v41, 7  ;;  %v13565_v49 = vpop.f32.mrf.mxu3  ;;  %v224_v46 = vrot.slane %v11259_v24, 1 }
 0x229   :  { %v13561_v13 = vpack.c.bf16 %v2906_v0, %v2904_v34  ;;  %v3146_v14 = vrot.slane %v2906_v0, 1  ;;  %v13572_v58 = vpack.c.bf16 %v2907_v25, %v2905_v47  ;;  %v3147_v12 = vrot.slane %v2907_v25, 1  ;;  %v13576_v31 = vpop.f32.mrf.mxu1  ;;  %v18994_v0 = vld [vmem:[#allocation41_spill] sm:$0xff] }
 0x22a   :  { %v18995_v19 = vand.u32 7, %v18994_v0  ;;  %v19003_v34 = vrot.slane %v13343_v29, 1 }
 0x22b   :  { %18992 = vst [vmem:[#allocation62_spill] sm:$0xff] %v13561_v13  ;;  %v13567_v28 = vpop.f32.mrf.mxu0  ;;  %v3148_v15 = vsel %vm18985_vm7, %v3144_v35, %v3146_v14  ;;  %v3178_v47 = vsel %vm18998_vm2, %v3146_v14, %v12899_v60  ;;  %v3149_v25 = vsel %vm19000_vm14, %v3145_v45, %v3147_v12  ;;  %v3179_v0 = vsel %vm19001_vm8, %v3147_v12, %v12882_v33  ;;  %vm19004_vm7 = vmmov %vm18998_vm2 }
 0x22c   :  { %18993 = vst [vmem:[#allocation24_spill] sm:$0xff] %v13572_v58  ;;  %vm13580_vm6 = vcmp.eq.s32.totalorder %v18995_v19, 7  ;;  %v13589_v24 = vpack.c.bf16 %v3178_v47, %v3148_v15  ;;  %v248_v19 = vsel %vm19002_vm5, %v223_v55, %v224_v46  ;;  %v249_v35 = vsel %vm19004_vm7, %v19003_v34, %v223_v55  ;;  %vm8835_vm2 = vmneg %vm12956_vm11 }
 0x22d   :  { %v3209_v60 = vsel %vm13557_vm3, 0.0, %v3149_v25  ;;  %v3211_v45 = vsel %vm13580_vm6, 0.0, %v3179_v0  ;;  %vm8836_vm14 = vmneg %vm12950_vm1  ;;  %v13614_v29 = vpack.c.bf16 %v248_v19, %v249_v35  ;;  %v19006_v12 = vmov 0  ;;  %v11260_v35 = vld [vmem:[%s18162_s0 + $0x28] sm:$0xff] }
 0x22e   :  { %18999 = vst [vmem:[#allocation23_spill] sm:$0xff] %v13589_v24  ;;  %v13610_v33 = vpack.c.bf16 %v3211_v45, %v3209_v60  ;;  %vm13622_vm11 = vmpackc.low %vm8835_vm2, %vm8836_vm14  ;;  %v225_v60 = vrot.slane %v11260_v35, 1  ;;  %v11261_v45 = vld [vmem:[%s18162_s0 + $0x30] sm:$0xff]  ;;  %v227_v55 = vrot.slane %v11262_v11, 1 }
 0x22f   :  { %v19007_v12 = vsel %vm13622_vm11, 4294967295, %v19006_v12  ;;  %v226_v6 = vrot.slane %v11261_v45, 1  ;;  %vm19010_vm1 = vmmov %vm19002_vm5 }
 0x230   :  { %19005 = vst [vmem:[#allocation27_spill] sm:$0xff] %v13610_v33  ;;  %v13612_v14 = vpop.f32.mrf.mxu2  ;;  %v13618_v17 = vpop.f32.mrf.mxu3  ;;  %vm19011_vm5 = vmmov %vm19010_vm1 }
 0x231   :  { %19008 = vst [vmem:[#allocation28_spill] sm:$0xff] %v19007_v12  ;;  %v13628_v34 = vpop.f32.mrf.mxu1  ;;  %v246_v25 = vsel %vm19010_vm1, %v225_v60, %v226_v6  ;;  %v247_v24 = vsel %vm19011_vm5, %v224_v46, %v225_v60  ;;  %vm8840_vm8 = vmneg %vm13015_vm4 }
 0x232   :  { %vm8841_vm7 = vmneg %vm13009_vm12  ;;  %v13666_v45 = vpack.c.bf16 %v246_v25, %v247_v24 }
 0x233   :  { %v13620_v15 = vpop.f32.mrf.mxu0  ;;  %8839 = vmatmul.msk.bf16.gmra.mxu0 %vm13622_vm11, %v13614_v29  ;;  %vm13674_vm2 = vmpackc.low %vm8840_vm8, %vm8841_vm7 }
 0x234   :  { %8879 = vmatmul.msk.bf16.gmra.mxu1 %vm13622_vm11, %v13614_v29  ;;  %v19016_v42 = vsel %vm13674_vm2, 4294967295, %v19015_v42  ;;  %vm19023_vm12 = vmmov %vm19010_vm1 }
 0x235   :  { %2171 = vmatmul.bf16.gmra.mxu2 %v11626_v63  ;;  %19017 = vst [vmem:[#allocation33_spill] sm:$0xff] %v19016_v42  ;;  %v244_v24 = vsel %vm19023_vm12, %v227_v55, %v228_v21  ;;  %vm19024_vm4 = vmmov %vm19010_vm1 }
 0x236   :  { %2220 = vmatmul.bf16.gmra.mxu3 %v11626_v63  ;;  %v245_v27 = vsel %vm19024_vm4, %v226_v6, %v227_v55  ;;  %vm8845_vm14 = vmneg %vm13193_vm0 }
 0x237   :  { %vm8846_vm1 = vmneg %vm13178_vm9  ;;  %v13718_v16 = vpack.c.bf16 %v244_v24, %v245_v27 }
 0x238   :  { %v13638_v47 = vpop.f32.mrf.mxu2  ;;  %v13642_v0 = vpop.f32.mrf.mxu3  ;;  %vm13726_vm5 = vmpackc.low %vm8845_vm14, %vm8846_vm1 }
 0x239   :  { %v13654_v33 = vpop.f32.mrf.mxu1  ;;  %v19029_v5 = vsel %vm13726_vm5, 4294967295, %v19028_v5  ;;  %vm19036_vm0 = vmmov %vm19024_vm4 }
 0x23a   :  { %19009 = vst [vmem:[#allocation63_spill] sm:$0xff] %v13654_v33  ;;  %vm19037_vm9 = vmmov %vm19036_vm0 }
 0x23b   :  { %v13644_v19 = vpop.f32.mrf.mxu0  ;;  %19030 = vst [vmem:[#allocation73_spill] sm:$0xff] %v19029_v5  ;;  %v243_v52 = vsel %vm19037_vm9, %v228_v21, %v229_v4  ;;  %vm8850_vm8 = vmneg %vm13403_vm13  ;;  %v11022_v21 = vld [vmem:[%s18164_s3 + $0xf4] sm:$0xf0]  ;;  %vm19045_vm13 = vnez %v18947_v36  ;;  %v11016_v36 = vld [vmem:[%s18164_s3 + $0xc4] sm:$0xf0] }
 0x23c   :  { %vm8851_vm7 = vmneg %vm13389_vm15 }
 0x23d   :  { %vm13783_vm12 = vmpackc.low %vm8850_vm8, %vm8851_vm7  ;;  %vm19061_vm8 = vnez %v18972_v59  ;;  %v9008_v59 = vld [vmem:[%s18164_s3 + $0x80] sm:$0xf] }
 0x23e   :  { %vm8855_vm15 = vmneg %vm13454_vm10  ;;  %vm19060_vm10 = vnez %v18976_v26  ;;  %v11008_v26 = vld [vmem:[%s18164_s3 + $0x84] sm:$0xf0] }
 0x23f   :  { %vm8856_vm4 = vmneg %vm19045_vm13 }
 0x240   :  { %v13664_v35 = vpop.f32.mrf.mxu2  ;;  %v13670_v7 = vpop.f32.mrf.mxu3  ;;  %vm19051_vm14 = vmmov %vm19036_vm0 }
 0x241   :  { %19012 = vst [vmem:[#allocation44_spill] sm:$0xff] %v13664_v35  ;;  %v13680_v50 = vpop.f32.mrf.mxu1  ;;  %vm19053_vm1 = vmmov %vm19036_vm0  ;;  %v9016_v35 = vld [vmem:[%s18164_s3 + $0x90] sm:$0xf] }
 0x242   :  { %19013 = vst [vmem:[#allocation64_spill] sm:$0xff] %v13670_v7  ;;  %v11004_v7 = vld [vmem:[%s18161_s1 + $0x3e4] sm:$0xf0]  ;;  %vm8860_vm9 = vmneg %vm19060_vm10 }
 0x243   :  { %v13672_v8 = vpop.f32.mrf.mxu0  ;;  %19018 = vst [vmem:[#allocation52_spill] sm:$0xff] %v13680_v50  ;;  %8844 = vmatmul.msk.bf16.gmra.mxu0 %vm13674_vm2, %v13666_v45  ;;  %vm8861_vm7 = vmneg %vm19061_vm8 }
 0x244   :  { %19014 = vst [vmem:[#allocation34_spill] sm:$0xff] %v13672_v8  ;;  %8884 = vmatmul.msk.bf16.gmra.mxu1 %vm13674_vm2, %v13666_v45  ;;  %v11020_v8 = vld [vmem:[%s18164_s3 + $0xe4] sm:$0xf0]  ;;  %vm19067_vm13 = vmmov %vm19053_vm1 }
 0x245   :  { %2176 = vmatmul.bf16.gmra.mxu2 %v18843_v40  ;;  %vm8865_vm10 = vmneg %vm13580_vm6  ;;  %vm18520_vm6 = vcmask 261120  }
 0x246   :  { %2225 = vmatmul.bf16.gmra.mxu3 %v18843_v40 }
 0x248   :  { %v13690_v46 = vpop.f32.mrf.mxu2  ;;  %v13694_v25 = vpop.f32.mrf.mxu3 }
 0x249   :  { %19019 = vst [vmem:[#allocation65_spill] sm:$0xff] %v13690_v46  ;;  %v13706_v58 = vpop.f32.mrf.mxu1 }
 0x24a   :  { %19020 = vst [vmem:[#allocation53_spill] sm:$0xff] %v13694_v25 }
 0x24b   :  { %v13696_v60 = vpop.f32.mrf.mxu0  ;;  %19022 = vst [vmem:[#allocation4_spill] sm:$0xff] %v13706_v58 }
 0x24c   :  { %19021 = vst [vmem:[#allocation66_spill] sm:$0xff] %v13696_v60 }
 0x250   :  { %v13716_v11 = vpop.f32.mrf.mxu2  ;;  %v13722_v62 = vpop.f32.mrf.mxu3 }
 0x251   :  { %19025 = vst [vmem:[#allocation40_spill] sm:$0xff] %v13716_v11  ;;  %v13732_v44 = vpop.f32.mrf.mxu1  ;;  %v9208_v11 = vld [vmem:[%s18161_s1 + $0x3f0] sm:$0xf] }
 0x252   :  { %19026 = vst [vmem:[#allocation41_spill] sm:$0xff] %v13722_v62  ;;  %v13756_v62 = vld [vmem:[%s18162_s0 + $0x50] sm:$0xff] }
 0x253   :  { %v13724_v3 = vpop.f32.mrf.mxu0  ;;  %19031 = vst [vmem:[#allocation74_spill] sm:$0xff] %v13732_v44  ;;  %8849 = vmatmul.msk.bf16.gmra.mxu0 %vm13726_vm5, %v13718_v16  ;;  %v18351_v58 = vrot.slane %v13756_v62, 1 }
 0x254   :  { %19027 = vst [vmem:[#allocation72_spill] sm:$0xff] %v13724_v3  ;;  %8889 = vmatmul.msk.bf16.gmra.mxu1 %vm13726_vm5, %v13718_v16 }
 0x255   :  { %2181 = vmatmul.bf16.gmra.mxu2 %v18863_v10 }
 0x256   :  { %2230 = vmatmul.bf16.gmra.mxu3 %v18863_v10 }
 0x258   :  { %v13742_v27 = vpop.f32.mrf.mxu2  ;;  %v13746_v6 = vpop.f32.mrf.mxu3 }
 0x259   :  { %19032 = vst [vmem:[#allocation75_spill] sm:$0xff] %v13742_v27  ;;  %v13761_v55 = vpop.f32.mrf.mxu1  ;;  %v242_v27 = vsel %vm19036_vm0, %v229_v4, %v18351_v58  ;;  %v19041_v58 = vmov 0  ;;  %v9064_v4 = vld [vmem:[%s18164_s3 + $0xf0] sm:$0xf]  ;;  %vm13910_vm0 = vmpackc.low %vm8855_vm15, %vm8856_vm4 }
 0x25a   :  { %19033 = vst [vmem:[#allocation76_spill] sm:$0xff] %v13746_v6  ;;  %v13775_v60 = vpack.c.bf16 %v242_v27, %v243_v52  ;;  %v19042_v58 = vsel %vm13783_vm12, 4294967295, %v19041_v58  ;;  %v9065_v27 = vor.u32 %v11022_v21, %v9064_v4  ;;  %v11021_v52 = vld [vmem:[%s18164_s3 + $0xf4] sm:$0xf]  ;;  %v9210_v21 = vld [vmem:[%s18161_s1 + $0x3f8] sm:$0xf0]  ;;  %vm19065_vm15 = vmmov %vm19053_vm1 }
 0x25b   :  { %v13748_v24 = vpop.f32.mrf.mxu0  ;;  %19035 = vst [vmem:[#allocation78_spill] sm:$0xff] %v13761_v55  ;;  %v11006_v55 = vld [vmem:[%s18161_s1 + $0x3f4] sm:$0xf0]  ;;  %v11005_v4 = vld [vmem:[%s18161_s1 + $0x3f4] sm:$0xf]  ;;  %vm14071_vm4 = vmpackc.low %vm8860_vm9, %vm8861_vm7  ;;  %vm19131_vm7 = vcmp.lt.s32.totalorder %v11509_v18, 1 }
 0x25c   :  { %19034 = vst [vmem:[#allocation77_spill] sm:$0xff] %v13748_v24  ;;  %2370 = vmatpush.bf16.msrb.mxu0 %v9065_v27  ;;  %v9209_v25 = vor.u32 %v11006_v55, %v9208_v11  ;;  %v9213_v50 = vor.u32 %v11005_v4, %v9210_v21  ;;  %v9058_v4 = vld [vmem:[%s18164_s3 + $0xe8] sm:$0xf0]  ;;  %v9200_v21 = vld [vmem:[%s18161_s1 + $0x3e0] sm:$0xf]  ;;  %vm8866_vm9 = vmneg %vm13557_vm3  ;;  %vm19095_vm3 = vnez %v18967_v56 }
 0x25d   :  { %19043 = vst [vmem:[#allocation82_spill] sm:$0xff] %v19042_v58  ;;  %v11018_v27 = vld [vmem:[%s18164_s3 + $0xd4] sm:$0xf0]  ;;  %vm14158_vm8 = vmpackc.low %vm8865_vm10, %vm8866_vm9 }
 0x25e   :  { %2548 = vmatpush.bf16.msrb.mxu2 %v9209_v25  ;;  %2597 = vmatpush.bf16.msrb.mxu3 %v9213_v50  ;;  %v9201_v50 = vor.u32 %v11004_v7, %v9200_v21  ;;  %v11017_v7 = vld [vmem:[%s18164_s3 + $0xd4] sm:$0xf] }
 0x260   :  { %v13773_v3 = vpop.f32.mrf.mxu2  ;;  %v13779_v6 = vpop.f32.mrf.mxu3 }
 0x261   :  { %19038 = vst [vmem:[#allocation79_spill] sm:$0xff] %v13773_v3  ;;  %v13789_v32 = vpop.f32.mrf.mxu1  ;;  %v11266_v3 = vld [vmem:[%s18162_s0 + $0x58] sm:$0xff] }
 0x262   :  { %19039 = vst [vmem:[#allocation80_spill] sm:$0xff] %v13779_v6  ;;  %v9069_v6 = vor.u32 %v11021_v52, %v9066_v51  ;;  %v231_v24 = vrot.slane %v11266_v3, 1  ;;  %v13831_v51 = vld [vmem:[%s18162_s0 + $0x60] sm:$0xff]  ;;  %2549 = vmatpush.bf16.msrb.mxu2 %v9201_v50 }
 0x263   :  { %v13781_v44 = vpop.f32.mrf.mxu0  ;;  %19044 = vst [vmem:[#allocation83_spill] sm:$0xff] %v13789_v32  ;;  %8854 = vmatmul.msk.bf16.gmra.mxu0 %vm13783_vm12, %v13775_v60  ;;  %v9056_v3 = vld [vmem:[%s18164_s3 + $0xe0] sm:$0xf]  ;;  %v11019_v52 = vld [vmem:[%s18164_s3 + $0xe4] sm:$0xf] }
 0x264   :  { %19040 = vst [vmem:[#allocation81_spill] sm:$0xff] %v13781_v44  ;;  %8894 = vmatmul.msk.bf16.gmra.mxu1 %vm13783_vm12, %v13775_v60  ;;  %v9061_v25 = vor.u32 %v11019_v52, %v9058_v4  ;;  %v9048_v44 = vld [vmem:[%s18164_s3 + $0xd0] sm:$0xf]  ;;  %v9050_v52 = vld [vmem:[%s18164_s3 + $0xd8] sm:$0xf0] }
 0x265   :  { %2186 = vmatmul.bf16.gmra.mxu2 %v18888_v57  ;;  %2419 = vmatpush.bf16.msrb.mxu1 %v9069_v6  ;;  %v9057_v6 = vor.u32 %v11020_v8, %v9056_v3  ;;  %v11003_v8 = vld [vmem:[%s18161_s1 + $0x3e4] sm:$0xf]  ;;  %v9202_v3 = vld [vmem:[%s18161_s1 + $0x3e8] sm:$0xf0]  ;;  %v9049_v4 = vor.u32 %v11018_v27, %v9048_v44  ;;  %v9053_v21 = vor.u32 %v11017_v7, %v9050_v52  ;;  %v19052_v44 = vrot.slane %v13756_v62, 1 }
 0x266   :  { %2235 = vmatmul.bf16.gmra.mxu3 %v18888_v57  ;;  %v9205_v33 = vor.u32 %v11003_v8, %v9202_v3  ;;  %v11002_v8 = vld [vmem:[%s18161_s1 + $0x3d4] sm:$0xf0]  ;;  %v11001_v3 = vld [vmem:[%s18161_s1 + $0x3d4] sm:$0xf]  ;;  %v9194_v7 = vld [vmem:[%s18161_s1 + $0x3d8] sm:$0xf0] }
 0x267   :  { %2371 = vmatpush.bf16.msrb.mxu0 %v9057_v6  ;;  %v9192_v6 = vld [vmem:[%s18161_s1 + $0x3d0] sm:$0xf]  ;;  %v241_v27 = vsel %vm19053_vm1, %v19052_v44, %v231_v24  ;;  %v9197_v52 = vor.u32 %v11001_v3, %v9194_v7  ;;  %v11000_v3 = vld [vmem:[%s18161_s1 + $0x3c4] sm:$0xf0] }
 0x268   :  { %v13836_v46 = vpop.f32.mrf.mxu2  ;;  %v13849_v11 = vpop.f32.mrf.mxu3  ;;  %2598 = vmatpush.bf16.msrb.mxu3 %v9205_v33  ;;  %v11268_v44 = vld [vmem:[%s18162_s0 + $0x68] sm:$0xff] }
 0x269   :  { %19046 = vst [vmem:[#allocation84_spill] sm:$0xff] %v13836_v46  ;;  %v13864_v46 = vpop.f32.mrf.mxu1  ;;  %2420 = vmatpush.bf16.msrb.mxu1 %v9061_v25  ;;  %v9193_v25 = vor.u32 %v11002_v8, %v9192_v6  ;;  %v9042_v6 = vld [vmem:[%s18164_s3 + $0xc8] sm:$0xf0]  ;;  %v9184_v8 = vld [vmem:[%s18161_s1 + $0x3c0] sm:$0xf]  ;;  %v233_v50 = vrot.slane %v11268_v44, 1 }
 0x26a   :  { %19047 = vst [vmem:[#allocation85_spill] sm:$0xff] %v13849_v11  ;;  %v19050_v11 = vrot.slane %v13831_v51, 1  ;;  %v9185_v7 = vor.u32 %v11000_v3, %v9184_v8  ;;  %v11013_v8 = vld [vmem:[%s18164_s3 + $0xb4] sm:$0xf]  ;;  %v9034_v3 = vld [vmem:[%s18164_s3 + $0xb8] sm:$0xf0] }
 0x26b   :  { %v13851_v55 = vpop.f32.mrf.mxu0  ;;  %19049 = vst [vmem:[#allocation87_spill] sm:$0xff] %v13864_v46  ;;  %2372 = vmatpush.bf16.msrb.mxu0 %v9049_v4  ;;  %2550 = vmatpush.bf16.msrb.mxu2 %v9193_v25  ;;  %v9045_v25 = vor.u32 %v11015_v22, %v9042_v6  ;;  %v9032_v22 = vld [vmem:[%s18164_s3 + $0xb0] sm:$0xf]  ;;  %v11014_v6 = vld [vmem:[%s18164_s3 + $0xb4] sm:$0xf0] }
 0x26c   :  { %19048 = vst [vmem:[#allocation86_spill] sm:$0xff] %v13851_v55  ;;  %v240_v32 = vsel %vm19051_vm14, %v231_v24, %v19050_v11  ;;  %v19054_v11 = vmov 0  ;;  %v9040_v24 = vld [vmem:[%s18164_s3 + $0xc0] sm:$0xf]  ;;  %2599 = vmatpush.bf16.msrb.mxu3 %v9197_v52  ;;  %v10999_v52 = vld [vmem:[%s18161_s1 + $0x3c4] sm:$0xf]  ;;  %vm19080_vm14 = vmmov %vm19053_vm1 }
 0x26d   :  { %v19055_v11 = vsel %vm13910_vm0, 4294967295, %v19054_v11  ;;  %v13916_v33 = vpack.c.bf16 %v240_v32, %v241_v27  ;;  %2421 = vmatpush.bf16.msrb.mxu1 %v9053_v21  ;;  %v9041_v21 = vor.u32 %v11016_v36, %v9040_v24  ;;  %v9186_v24 = vld [vmem:[%s18161_s1 + $0x3c8] sm:$0xf0]  ;;  %v9024_v44 = vld [vmem:[%s18164_s3 + $0xa0] sm:$0xf] }
 0x26e   :  { %19056 = vst [vmem:[#allocation88_spill] sm:$0xff] %v19055_v11  ;;  %v9189_v36 = vor.u32 %v10999_v52, %v9186_v24  ;;  %v9037_v52 = vor.u32 %v11013_v8, %v9034_v3  ;;  %v10998_v24 = vld [vmem:[%s18161_s1 + $0x3b4] sm:$0xf0]  ;;  %v11011_v8 = vld [vmem:[%s18164_s3 + $0xa4] sm:$0xf] }
 0x26f   :  { %2373 = vmatpush.bf16.msrb.mxu0 %v9041_v21  ;;  %v9033_v21 = vor.u32 %v11014_v6, %v9032_v22  ;;  %2551 = vmatpush.bf16.msrb.mxu2 %v9185_v7  ;;  %v10997_v22 = vld [vmem:[%s18161_s1 + $0x3b4] sm:$0xf]  ;;  %v9178_v6 = vld [vmem:[%s18161_s1 + $0x3b8] sm:$0xf0]  ;;  %v9170_v55 = vld [vmem:[%s18161_s1 + $0x3a8] sm:$0xf0] }
 0x270   :  { %v13914_v62 = vpop.f32.mrf.mxu2  ;;  %v13929_v4 = vpop.f32.mrf.mxu3  ;;  %v13992_v7 = vld [vmem:[%s18162_s0 + $0x70] sm:$0xff]  ;;  %2600 = vmatpush.bf16.msrb.mxu3 %v9189_v36  ;;  %v9254_v11 = vld [vmem:[%s18165_s5 + $0x168] sm:$0xf0] }
 0x271   :  { %19057 = vst [vmem:[#allocation89_spill] sm:$0xff] %v13914_v62  ;;  %v13944_v27 = vpop.f32.mrf.mxu1  ;;  %2422 = vmatpush.bf16.msrb.mxu1 %v9045_v25  ;;  %v9176_v25 = vld [vmem:[%s18161_s1 + $0x3b0] sm:$0xf]  ;;  %v11012_v62 = vld [vmem:[%s18164_s3 + $0xa4] sm:$0xf0] }
 0x272   :  { %19058 = vst [vmem:[#allocation90_spill] sm:$0xff] %v13929_v4  ;;  %v9177_v3 = vor.u32 %v10998_v24, %v9176_v25  ;;  %v9181_v4 = vor.u32 %v10997_v22, %v9178_v6  ;;  %v9026_v24 = vld [vmem:[%s18164_s3 + $0xa8] sm:$0xf0]  ;;  %v9168_v22 = vld [vmem:[%s18161_s1 + $0x3a0] sm:$0xf] }
 0x273   :  { %v13931_v32 = vpop.f32.mrf.mxu0  ;;  %8859 = vmatmul.msk.bf16.gmra.mxu0 %vm13910_vm0, %v13916_v33  ;;  %v10996_v6 = vld [vmem:[%s18161_s1 + $0x3a4] sm:$0xf0] }
 0x274   :  { %19059 = vst [vmem:[#allocation91_spill] sm:$0xff] %v13931_v32  ;;  %8899 = vmatmul.msk.bf16.gmra.mxu1 %vm13910_vm0, %v13916_v33  ;;  %2374 = vmatpush.bf16.msrb.mxu0 %v9033_v21  ;;  %v9029_v32 = vor.u32 %v11011_v8, %v9026_v24  ;;  %v11010_v8 = vld [vmem:[%s18164_s3 + $0x94] sm:$0xf0]  ;;  %v9018_v24 = vld [vmem:[%s18164_s3 + $0x98] sm:$0xf0] }
 0x275   :  { %2191 = vmatmul.bf16.gmra.mxu2 %v18911_v20  ;;  %2423 = vmatpush.bf16.msrb.mxu1 %v9037_v52  ;;  %v9025_v52 = vor.u32 %v11012_v62, %v9024_v44  ;;  %v9169_v62 = vor.u32 %v10996_v6, %v9168_v22  ;;  %v10995_v44 = vld [vmem:[%s18161_s1 + $0x3a4] sm:$0xf]  ;;  %v9017_v22 = vor.u32 %v11010_v8, %v9016_v35  ;;  %v19066_v35 = vrot.slane %v13831_v51, 1  ;;  %v9162_v8 = vld [vmem:[%s18161_s1 + $0x398] sm:$0xf0] }
 0x276   :  { %2240 = vmatmul.bf16.gmra.mxu3 %v18911_v20  ;;  %2552 = vmatpush.bf16.msrb.mxu2 %v9177_v3  ;;  %v9173_v36 = vor.u32 %v10995_v44, %v9170_v55  ;;  %v11009_v3 = vld [vmem:[%s18164_s3 + $0x94] sm:$0xf]  ;;  %v10994_v55 = vld [vmem:[%s18161_s1 + $0x394] sm:$0xf0]  ;;  %v19064_v44 = vrot.slane %v13992_v7, 1 }
 0x277   :  { %2601 = vmatpush.bf16.msrb.mxu3 %v9181_v4  ;;  %v9021_v6 = vor.u32 %v11009_v3, %v9018_v24  ;;  %v9160_v4 = vld [vmem:[%s18161_s1 + $0x390] sm:$0xf]  ;;  %v19068_v24 = vmov 0 }
 0x278   :  { %v13997_v46 = vpop.f32.mrf.mxu2  ;;  %v14010_v21 = vpop.f32.mrf.mxu3  ;;  %2375 = vmatpush.bf16.msrb.mxu0 %v9025_v52  ;;  %v10993_v52 = vld [vmem:[%s18161_s1 + $0x394] sm:$0xf]  ;;  %v9161_v3 = vor.u32 %v10994_v55, %v9160_v4  ;;  %v19069_v24 = vsel %vm14071_vm4, 4294967295, %v19068_v24  ;;  %v9010_v4 = vld [vmem:[%s18164_s3 + $0x88] sm:$0xf0] }
 0x279   :  { %19062 = vst [vmem:[#allocation92_spill] sm:$0xff] %v13997_v46  ;;  %v14025_v46 = vpop.f32.mrf.mxu1  ;;  %2424 = vmatpush.bf16.msrb.mxu1 %v9029_v32  ;;  %v239_v32 = vsel %vm19067_vm13, %v19066_v35, %v233_v50  ;;  %v9165_v51 = vor.u32 %v10993_v52, %v9162_v8  ;;  %v9152_v55 = vld [vmem:[%s18161_s1 + $0x380] sm:$0xf]  ;;  %v10992_v52 = vld [vmem:[%s18161_s1 + $0x384] sm:$0xf0]  ;;  %vm19138_vm13 = vmmov %vm19131_vm7 }
 0x27a   :  { %19063 = vst [vmem:[#allocation93_spill] sm:$0xff] %v14010_v21  ;;  %v238_v21 = vsel %vm19065_vm15, %v233_v50, %v19064_v44  ;;  %2553 = vmatpush.bf16.msrb.mxu2 %v9169_v62  ;;  %v11007_v62 = vld [vmem:[%s18164_s3 + $0x84] sm:$0xf]  ;;  %vm19133_vm15 = vmmov %vm19131_vm7 }
 0x27b   :  { %v14012_v25 = vpop.f32.mrf.mxu0  ;;  %19070 = vst [vmem:[#allocation94_spill] sm:$0xff] %v19069_v24  ;;  %2602 = vmatpush.bf16.msrb.mxu3 %v9173_v36  ;;  %v14077_v44 = vpack.c.bf16 %v238_v21, %v239_v32  ;;  %v9013_v8 = vor.u32 %v11007_v62, %v9010_v4  ;;  %v9154_v36 = vld [vmem:[%s18161_s1 + $0x388] sm:$0xf0] }
 0x27c   :  { %2376 = vmatpush.bf16.msrb.mxu0 %v9017_v22 }
 0x27d   :  { %2425 = vmatpush.bf16.msrb.mxu1 %v9021_v6  ;;  %v9009_v6 = vor.u32 %v11008_v26, %v9008_v59  ;;  %v9153_v59 = vor.u32 %v10992_v52, %v9152_v55  ;;  %v10991_v26 = vld [vmem:[%s18161_s1 + $0x384] sm:$0xf] }
 0x27e   :  { %2554 = vmatpush.bf16.msrb.mxu2 %v9161_v3 }
 0x27f   :  { %2603 = vmatpush.bf16.msrb.mxu3 %v9165_v51 }
 0x280   :  { %v14075_v50 = vpop.f32.mrf.mxu2  ;;  %v14090_v22 = vpop.f32.mrf.mxu3  ;;  %2377 = vmatpush.bf16.msrb.mxu0 %v9009_v6  ;;  %v11270_v6 = vld [vmem:[%s18162_s0 + $0x78] sm:$0xff] }
 0x281   :  { %19071 = vst [vmem:[#allocation95_spill] sm:$0xff] %v14075_v50  ;;  %v14105_v32 = vpop.f32.mrf.mxu1  ;;  %v9157_v50 = vor.u32 %v10991_v26, %v9154_v36  ;;  %2426 = vmatpush.bf16.msrb.mxu1 %v9013_v8  ;;  %v235_v4 = vrot.slane %v11270_v6, 1 }
 0x282   :  { %19072 = vst [vmem:[#allocation96_spill] sm:$0xff] %v14090_v22  ;;  %2555 = vmatpush.bf16.msrb.mxu2 %v9153_v59  ;;  %v19081_v59 = vrot.slane %v13350_v61, 1  ;;  %v19085_v61 = vmov 0  ;;  %v11061_v22 = vld [vmem:[%s18165_s5 + $0x1d4] sm:$0xf] }
 0x283   :  { %v14092_v21 = vpop.f32.mrf.mxu0  ;;  %19074 = vst [vmem:[#allocation98_spill] sm:$0xff] %v14105_v32  ;;  %8864 = vmatmul.msk.bf16.gmra.mxu0 %vm14071_vm4, %v14077_v44  ;;  %2604 = vmatpush.bf16.msrb.mxu3 %v9157_v50  ;;  %v19079_v50 = vrot.slane %v13992_v7, 1  ;;  %v19086_v61 = vsel %vm14158_vm8, 4294967295, %v19085_v61 }
 0x284   :  { %19073 = vst [vmem:[#allocation97_spill] sm:$0xff] %v14092_v21  ;;  %8904 = vmatmul.msk.bf16.gmra.mxu1 %vm14071_vm4, %v14077_v44  ;;  %v252_v26 = vsel %vm19053_vm1, %v235_v4, %v19081_v59  ;;  %vm19149_vm1 = vmmov %vm19131_vm7 }
 0x285   :  { %2196 = vmatmul.bf16.gmra.mxu2 %v12093_v54  ;;  %v237_v8 = vsel %vm19080_vm14, %v19079_v50, %v235_v4  ;;  %19087 = vst [vmem:[#allocation106_spill] sm:$0xff] %v19086_v61  ;;  %v19124_v61 = vmax.f32 %v13502_v23, %v13550_v43  ;;  %v19126_v23 = vmax.f32 %v13567_v28, %v13612_v14  ;;  %vm19143_vm14 = vmmov %vm19131_vm7 }
 0x286   :  { %2245 = vmatmul.bf16.gmra.mxu3 %v12093_v54  ;;  %v14150_v55 = vpack.c.bf16 %v252_v26, %v237_v8  ;;  %vm19154_vm10 = vmmov %vm19149_vm1 }
 0x288   :  { %v14121_v3 = vpop.f32.mrf.mxu2 }
 0x289   :  { %19075 = vst [vmem:[#allocation99_spill] sm:$0xff] %v14121_v3  ;;  %v14125_v62 = vpop.f32.mrf.mxu3  ;;  %v14134_v52 = vpop.f32.mrf.mxu1 }
 0x28a   :  { %19076 = vst [vmem:[#allocation100_spill] sm:$0xff] %v14125_v62 }
 0x28b   :  { %v14127_v36 = vpop.f32.mrf.mxu0  ;;  %19078 = vst [vmem:[#allocation102_spill] sm:$0xff] %v14134_v52 }
 0x28c   :  { %19077 = vst [vmem:[#allocation101_spill] sm:$0xff] %v14127_v36 }
 0x290   :  { %v14148_v6 = vpop.f32.mrf.mxu2 }
 0x291   :  { %19082 = vst [vmem:[#allocation103_spill] sm:$0xff] %v14148_v6  ;;  %v14154_v51 = vpop.f32.mrf.mxu3  ;;  %v14164_v1 = vpop.f32.mrf.mxu1 }
 0x292   :  { %19083 = vst [vmem:[#allocation104_spill] sm:$0xff] %v14154_v51 }
 0x293   :  { %v14156_v50 = vpop.f32.mrf.mxu0  ;;  %19088 = vst [vmem:[#allocation107_spill] sm:$0xff] %v14164_v1  ;;  %8869 = vmatmul.msk.bf16.gmra.mxu0 %vm14158_vm8, %v14150_v55 }
 0x294   :  { %19084 = vst [vmem:[#allocation105_spill] sm:$0xff] %v14156_v50  ;;  %8909 = vmatmul.msk.bf16.gmra.mxu1 %vm14158_vm8, %v14150_v55 }
 0x295   :  { %2201 = vmatmul.bf16.gmra.mxu2 %v18956_v39 }
 0x296   :  { %2250 = vmatmul.bf16.gmra.mxu3 %v18956_v39 }
 0x298   :  { %v14174_v4 = vpop.f32.mrf.mxu2 }
 0x299   :  { %19089 = vst [vmem:[#allocation108_spill] sm:$0xff] %v14174_v4  ;;  %v14178_v59 = vpop.f32.mrf.mxu3  ;;  %v14184_v7 = vpop.f32.mrf.mxu1 }
 0x29a   :  { %19090 = vst [vmem:[#allocation109_spill] sm:$0xff] %v14178_v59 }
 0x29b   :  { %v14180_v26 = vpop.f32.mrf.mxu0  ;;  %19092 = vst [vmem:[#allocation111_spill] sm:$0xff] %v14184_v7 }
 0x29c   :  { %19091 = vst [vmem:[#allocation110_spill] sm:$0xff] %v14180_v26 }
 0x2a0   :  { %v14186_v35 = vpop.f32.mrf.mxu2 }
 0x2a1   :  { %19093 = vst [vmem:[#allocation112_spill] sm:$0xff] %v14186_v35  ;;  %v14190_v52 = vpop.f32.mrf.mxu3  ;;  %v2038_v4 = vpop.f32.mrf.mxu1 }
 0x2a2   :  { %19094 = vst [vmem:[#allocation113_spill] sm:$0xff] %v14190_v52 }
 0x2a3   :  { %v1989_v6 = vpop.f32.mrf.mxu0  ;;  %9074 = vmatmul.msk.bf16.vlgmr.msrb.gmra.mxu0 %vm19095_vm3, %v13410_v53 }
 0x2a4   :  { %9114 = vmatmul.msk.bf16.vlgmr.msrb.gmra.mxu1 %vm19095_vm3, %v13410_v53 }
 0x2a5   :  { %2556 = vmatmul.bf16.vlgmr.msrb.gmra.mxu2 %v18986_v2 }
 0x2a6   :  { %2605 = vmatmul.bf16.vlgmr.msrb.gmra.mxu3 %v18986_v2 }
 0x2a8   :  { %v2167_v51 = vpop.f32.mrf.mxu2 }
 0x2a9   :  { %v14202_v41 = vadd.f32 %v2167_v51, %v1989_v6  ;;  %v2216_v35 = vpop.f32.mrf.mxu3  ;;  %v2040_v8 = vpop.f32.mrf.mxu1 }
 0x2aa   :  { %v14204_v59 = vadd.f32 %v2216_v35, %v2038_v4 }
 0x2ab   :  { %v1991_v26 = vpop.f32.mrf.mxu0 }
 0x2b0   :  { %v2169_v52 = vpop.f32.mrf.mxu2 }
 0x2b1   :  { %v14206_v7 = vadd.f32 %v2169_v52, %v1991_v26  ;;  %v2218_v1 = vpop.f32.mrf.mxu3  ;;  %v2043_v53 = vpop.f32.mrf.mxu1 }
 0x2b2   :  { %v14208_v36 = vadd.f32 %v2218_v1, %v2040_v8 }
 0x2b3   :  { %v1994_v50 = vpop.f32.mrf.mxu0  ;;  %9079 = vmatmul.msk.bf16.gmra.mxu0 %vm13622_vm11, %v13614_v29 }
 0x2b4   :  { %9119 = vmatmul.msk.bf16.gmra.mxu1 %vm13622_vm11, %v13614_v29 }
 0x2b5   :  { %2561 = vmatmul.bf16.gmra.mxu2 %v11626_v63 }
 0x2b6   :  { %2610 = vmatmul.bf16.gmra.mxu3 %v11626_v63 }
 0x2b8   :  { %v2172_v2 = vpop.f32.mrf.mxu2 }
 0x2b9   :  { %v14218_v35 = vadd.f32 %v2172_v2, %v1994_v50  ;;  %v2221_v51 = vpop.f32.mrf.mxu3  ;;  %v2045_v1 = vpop.f32.mrf.mxu1 }
 0x2ba   :  { %v14220_v6 = vadd.f32 %v2221_v51, %v2043_v53 }
 0x2bb   :  { %v1996_v52 = vpop.f32.mrf.mxu0 }
 0x2c0   :  { %v2174_v4 = vpop.f32.mrf.mxu2 }
 0x2c1   :  { %v14222_v8 = vadd.f32 %v2174_v4, %v1996_v52  ;;  %v2223_v26 = vpop.f32.mrf.mxu3  ;;  %v2048_v29 = vpop.f32.mrf.mxu1 }
 0x2c2   :  { %v14224_v62 = vadd.f32 %v2223_v26, %v2045_v1 }
 0x2c3   :  { %v1999_v56 = vpop.f32.mrf.mxu0  ;;  %9084 = vmatmul.msk.bf16.gmra.mxu0 %vm13674_vm2, %v13666_v45 }
 0x2c4   :  { %9124 = vmatmul.msk.bf16.gmra.mxu1 %vm13674_vm2, %v13666_v45 }
 0x2c5   :  { %2566 = vmatmul.bf16.gmra.mxu2 %v18843_v40 }
 0x2c6   :  { %2615 = vmatmul.bf16.gmra.mxu3 %v18843_v40 }
 0x2c8   :  { %v2177_v63 = vpop.f32.mrf.mxu2 }
 0x2c9   :  { %v14234_v50 = vadd.f32 %v2177_v63, %v1999_v56  ;;  %v2226_v53 = vpop.f32.mrf.mxu3  ;;  %v2050_v52 = vpop.f32.mrf.mxu1 }
 0x2ca   :  { %v14236_v51 = vadd.f32 %v2226_v53, %v2048_v29 }
 0x2cb   :  { %v2001_v2 = vpop.f32.mrf.mxu0 }
 0x2d0   :  { %v2179_v1 = vpop.f32.mrf.mxu2 }
 0x2d1   :  { %v14238_v4 = vadd.f32 %v2179_v1, %v2001_v2  ;;  %v2228_v26 = vpop.f32.mrf.mxu3  ;;  %v2053_v45 = vpop.f32.mrf.mxu1 }
 0x2d2   :  { %v14240_v32 = vadd.f32 %v2228_v26, %v2050_v52 }
 0x2d3   :  { %v2004_v12 = vpop.f32.mrf.mxu0  ;;  %9089 = vmatmul.msk.bf16.gmra.mxu0 %vm13726_vm5, %v13718_v16 }
 0x2d4   :  { %9129 = vmatmul.msk.bf16.gmra.mxu1 %vm13726_vm5, %v13718_v16 }
 0x2d5   :  { %2571 = vmatmul.bf16.gmra.mxu2 %v18863_v10 }
 0x2d6   :  { %2620 = vmatmul.bf16.gmra.mxu3 %v18863_v10  ;;  %v9292_v10 = vld [vmem:[%s18165_s5 + $0x1b0] sm:$0xf] }
 0x2d8   :  { %v2182_v40 = vpop.f32.mrf.mxu2 }
 0x2d9   :  { %v14250_v56 = vadd.f32 %v2182_v40, %v2004_v12  ;;  %v2231_v29 = vpop.f32.mrf.mxu3  ;;  %v2055_v2 = vpop.f32.mrf.mxu1  ;;  %v11058_v12 = vld [vmem:[%s18165_s5 + $0x1b4] sm:$0xf0] }
 0x2da   :  { %v14252_v53 = vadd.f32 %v2231_v29, %v2053_v45  ;;  %v11057_v45 = vld [vmem:[%s18165_s5 + $0x1b4] sm:$0xf]  ;;  %v14274_v40 = vor.u32 %v11058_v12, %v9292_v10  ;;  %v9294_v29 = vld [vmem:[%s18165_s5 + $0x1b8] sm:$0xf0] }
 0x2db   :  { %v2006_v63 = vpop.f32.mrf.mxu0 }
 0x2dc   :  { %19096 = vst [vmem:[#allocation114_spill] sm:$0xff] %v14274_v40  ;;  %3394 = vmatpush.bf16.msra.mxu0 %v14274_v40  ;;  %11237 = vmatpush.bf16.msra.mxu1 %v14274_v40  ;;  %v9276_v40 = vld [vmem:[%s18165_s5 + $0x190] sm:$0xf] }
 0x2e0   :  { %v2184_v52 = vpop.f32.mrf.mxu2 }
 0x2e1   :  { %v14254_v1 = vadd.f32 %v2184_v52, %v2006_v63  ;;  %v2233_v26 = vpop.f32.mrf.mxu3  ;;  %v2058_v16 = vpop.f32.mrf.mxu1  ;;  %v14280_v63 = vor.u32 %v11057_v45, %v9294_v29  ;;  %v11056_v52 = vld [vmem:[%s18165_s5 + $0x1a4] sm:$0xf0]  ;;  %v9286_v29 = vld [vmem:[%s18165_s5 + $0x1a8] sm:$0xf0] }
 0x2e2   :  { %v14256_v3 = vadd.f32 %v2233_v26, %v2055_v2 }
 0x2e3   :  { %v2009_v42 = vpop.f32.mrf.mxu0  ;;  %9094 = vmatmul.msk.bf16.gmra.mxu0 %vm13783_vm12, %v13775_v60  ;;  %19097 = vst [vmem:[#allocation115_spill] sm:$0xff] %v14280_v63  ;;  %3492 = vmatpush.bf16.msra.mxu2 %v14280_v63 }
 0x2e4   :  { %9134 = vmatmul.msk.bf16.gmra.mxu1 %vm13783_vm12, %v13775_v60  ;;  %v9284_v60 = vld [vmem:[%s18165_s5 + $0x1a0] sm:$0xf] }
 0x2e5   :  { %2576 = vmatmul.bf16.gmra.mxu2 %v18888_v57  ;;  %v14296_v45 = vor.u32 %v11056_v52, %v9284_v60  ;;  %v9278_v60 = vld [vmem:[%s18165_s5 + $0x198] sm:$0xf0] }
 0x2e6   :  { %2625 = vmatmul.bf16.gmra.mxu3 %v18888_v57  ;;  %v11055_v57 = vld [vmem:[%s18165_s5 + $0x1a4] sm:$0xf] }
 0x2e7   :  { %19098 = vst [vmem:[#allocation116_spill] sm:$0xff] %v14296_v45  ;;  %v14303_v63 = vor.u32 %v11055_v57, %v9286_v29  ;;  %3395 = vmatpush.bf16.msra.mxu0 %v14296_v45  ;;  %11238 = vmatpush.bf16.msra.mxu1 %v14296_v45  ;;  %v11051_v29 = vld [vmem:[%s18165_s5 + $0x184] sm:$0xf] }
 0x2e8   :  { %v2187_v2 = vpop.f32.mrf.mxu2 }
 0x2e9   :  { %v14294_v26 = vadd.f32 %v2187_v2, %v2009_v42  ;;  %v2236_v10 = vpop.f32.mrf.mxu3  ;;  %v2060_v5 = vpop.f32.mrf.mxu1  ;;  %19099 = vst [vmem:[#allocation117_spill] sm:$0xff] %v14303_v63  ;;  %v11054_v42 = vld [vmem:[%s18165_s5 + $0x194] sm:$0xf0]  ;;  %v11053_v2 = vld [vmem:[%s18165_s5 + $0x194] sm:$0xf]  ;;  %3493 = vmatpush.bf16.msra.mxu2 %v14303_v63 }
 0x2ea   :  { %v14301_v58 = vadd.f32 %v2236_v10, %v2058_v16  ;;  %v14316_v16 = vor.u32 %v11054_v42, %v9276_v40  ;;  %v14322_v52 = vor.u32 %v11053_v2, %v9278_v60  ;;  %v9268_v40 = vld [vmem:[%s18165_s5 + $0x180] sm:$0xf]  ;;  %v11052_v10 = vld [vmem:[%s18165_s5 + $0x184] sm:$0xf0] }
 0x2eb   :  { %v2011_v12 = vpop.f32.mrf.mxu0 }
 0x2ec   :  { %19100 = vst [vmem:[#allocation118_spill] sm:$0xff] %v14316_v16  ;;  %3396 = vmatpush.bf16.msra.mxu0 %v14316_v16  ;;  %11239 = vmatpush.bf16.msra.mxu1 %v14316_v16  ;;  %v14338_v16 = vor.u32 %v11052_v10, %v9268_v40  ;;  %v11049_v40 = vld [vmem:[%s18165_s5 + $0x174] sm:$0xf]  ;;  %v9262_v10 = vld [vmem:[%s18165_s5 + $0x178] sm:$0xf0] }
 0x2ed   :  { %19101 = vst [vmem:[#allocation119_spill] sm:$0xff] %v14322_v52  ;;  %3494 = vmatpush.bf16.msra.mxu2 %v14322_v52  ;;  %v9270_v52 = vld [vmem:[%s18165_s5 + $0x188] sm:$0xf0] }
 0x2ee   :  { %19102 = vst [vmem:[#allocation120_spill] sm:$0xff] %v14338_v16  ;;  %v14345_v21 = vor.u32 %v11051_v29, %v9270_v52  ;;  %v11050_v52 = vld [vmem:[%s18165_s5 + $0x174] sm:$0xf0]  ;;  %v14380_v29 = vor.u32 %v11049_v40, %v9262_v10 }
 0x2f0   :  { %v2189_v57 = vpop.f32.mrf.mxu2  ;;  %19103 = vst [vmem:[#allocation121_spill] sm:$0xff] %v14345_v21  ;;  %3397 = vmatpush.bf16.msra.mxu0 %v14338_v16  ;;  %11240 = vmatpush.bf16.msra.mxu1 %v14338_v16  ;;  %v9244_v16 = vld [vmem:[%s18165_s5 + $0x150] sm:$0xf] }
 0x2f1   :  { %v14336_v42 = vadd.f32 %v2189_v57, %v2011_v12  ;;  %v2238_v2 = vpop.f32.mrf.mxu3  ;;  %v2063_v45 = vpop.f32.mrf.mxu1  ;;  %v9310_v12 = vld [vmem:[%s18165_s5 + $0x1d8] sm:$0xf0]  ;;  %3495 = vmatpush.bf16.msra.mxu2 %v14345_v21  ;;  %19106 = vst [vmem:[#allocation124_spill] sm:$0xff] %v14380_v29 }
 0x2f2   :  { %v14343_v63 = vadd.f32 %v2238_v2, %v2060_v5  ;;  %v14355_v57 = vor.u32 %v11061_v22, %v9310_v12  ;;  %v9260_v5 = vld [vmem:[%s18165_s5 + $0x170] sm:$0xf]  ;;  %v11048_v12 = vld [vmem:[%s18165_s5 + $0x164] sm:$0xf0] }
 0x2f3   :  { %v2014_v60 = vpop.f32.mrf.mxu0  ;;  %9099 = vmatmul.msk.bf16.gmra.mxu0 %vm13910_vm0, %v13916_v33  ;;  %v14374_v22 = vor.u32 %v11050_v52, %v9260_v5 }
 0x2f4   :  { %19104 = vst [vmem:[#allocation122_spill] sm:$0xff] %v14355_v57  ;;  %9139 = vmatmul.msk.bf16.gmra.mxu1 %vm13910_vm0, %v13916_v33  ;;  %3547 = vmatpush.bf16.msra.mxu3 %v14355_v57  ;;  %v9252_v33 = vld [vmem:[%s18165_s5 + $0x160] sm:$0xf] }
 0x2f5   :  { %2581 = vmatmul.bf16.gmra.mxu2 %v18911_v20  ;;  %19105 = vst [vmem:[#allocation123_spill] sm:$0xff] %v14374_v22  ;;  %3398 = vmatpush.bf16.msra.mxu0 %v14374_v22  ;;  %v14397_v10 = vor.u32 %v11048_v12, %v9252_v33 }
 0x2f6   :  { %2630 = vmatmul.bf16.gmra.mxu3 %v18911_v20  ;;  %11241 = vmatpush.bf16.msra.mxu1 %v14374_v22  ;;  %v11047_v20 = vld [vmem:[%s18165_s5 + $0x164] sm:$0xf] }
 0x2f7   :  { %3496 = vmatpush.bf16.msra.mxu2 %v14380_v29  ;;  %19107 = vst [vmem:[#allocation125_spill] sm:$0xff] %v14397_v10  ;;  %v14404_v21 = vor.u32 %v11047_v20, %v9254_v11  ;;  %v9246_v11 = vld [vmem:[%s18165_s5 + $0x158] sm:$0xf0]  ;;  %v11044_v20 = vld [vmem:[%s18165_s5 + $0x144] sm:$0xf0] }
 0x2f8   :  { %v2192_v2 = vpop.f32.mrf.mxu2 }
 0x2f9   :  { %v14395_v5 = vadd.f32 %v2192_v2, %v2014_v60  ;;  %v2241_v52 = vpop.f32.mrf.mxu3  ;;  %v2065_v22 = vpop.f32.mrf.mxu1  ;;  %19108 = vst [vmem:[#allocation126_spill] sm:$0xff] %v14404_v21  ;;  %v11046_v60 = vld [vmem:[%s18165_s5 + $0x154] sm:$0xf0]  ;;  %v11045_v2 = vld [vmem:[%s18165_s5 + $0x154] sm:$0xf]  ;;  %3399 = vmatpush.bf16.msra.mxu0 %v14397_v10 }
 0x2fa   :  { %v14402_v29 = vadd.f32 %v2241_v52, %v2063_v45  ;;  %v14416_v33 = vor.u32 %v11046_v60, %v9244_v16  ;;  %11242 = vmatpush.bf16.msra.mxu1 %v14397_v10  ;;  %v14423_v45 = vor.u32 %v11045_v2, %v9246_v11  ;;  %v9236_v16 = vld [vmem:[%s18165_s5 + $0x140] sm:$0xf]  ;;  %v11043_v52 = vld [vmem:[%s18165_s5 + $0x144] sm:$0xf]  ;;  %v9302_v10 = vld [vmem:[%s18165_s5 + $0x1c8] sm:$0xf0] }
 0x2fb   :  { %v2016_v40 = vpop.f32.mrf.mxu0  ;;  %3497 = vmatpush.bf16.msra.mxu2 %v14404_v21  ;;  %v14439_v21 = vor.u32 %v11044_v20, %v9236_v16 }
 0x2fc   :  { %19109 = vst [vmem:[#allocation127_spill] sm:$0xff] %v14416_v33 }
 0x2fd   :  { %19110 = vst [vmem:[#allocation128_spill] sm:$0xff] %v14423_v45  ;;  %3400 = vmatpush.bf16.msra.mxu0 %v14416_v33 }
 0x2fe   :  { %11243 = vmatpush.bf16.msra.mxu1 %v14416_v33  ;;  %19111 = vst [vmem:[#allocation129_spill] sm:$0xff] %v14439_v21  ;;  %v11059_v33 = vld [vmem:[%s18165_s5 + $0x1c4] sm:$0xf] }
 0x2ff   :  { %3498 = vmatpush.bf16.msra.mxu2 %v14423_v45  ;;  %v9238_v45 = vld [vmem:[%s18165_s5 + $0x148] sm:$0xf0]  ;;  %v14455_v16 = vor.u32 %v11059_v33, %v9302_v10 }
 0x300   :  { %v2194_v12 = vpop.f32.mrf.mxu2 }
 0x301   :  { %v14437_v60 = vadd.f32 %v2194_v12, %v2016_v40  ;;  %v2243_v2 = vpop.f32.mrf.mxu3  ;;  %v2068_v40 = vpop.f32.mrf.mxu1  ;;  %v14452_v12 = vor.u32 %v11043_v52, %v9238_v45  ;;  %3401 = vmatpush.bf16.msra.mxu0 %v14439_v21  ;;  %19113 = vst [vmem:[#allocation131_spill] sm:$0xff] %v14455_v16  ;;  %3548 = vmatpush.bf16.msra.mxu3 %v14455_v16 }
 0x302   :  { %v14450_v57 = vadd.f32 %v2243_v2, %v2065_v22  ;;  %11244 = vmatpush.bf16.msra.mxu1 %v14439_v21 }
 0x303   :  { %v2019_v11 = vpop.f32.mrf.mxu0  ;;  %19112 = vst [vmem:[#allocation130_spill] sm:$0xff] %v14452_v12  ;;  %9104 = vmatmul.msk.bf16.gmra.mxu0 %vm14071_vm4, %v14077_v44  ;;  %3499 = vmatpush.bf16.msra.mxu2 %v14452_v12 }
 0x304   :  { %9144 = vmatmul.msk.bf16.gmra.mxu1 %vm14071_vm4, %v14077_v44  ;;  %v9308_v44 = vld [vmem:[%s18165_s5 + $0x1d0] sm:$0xf] }
 0x305   :  { %2586 = vmatmul.bf16.gmra.mxu2 %v12093_v54 }
 0x306   :  { %2635 = vmatmul.bf16.gmra.mxu3 %v12093_v54  ;;  %v11062_v54 = vld [vmem:[%s18165_s5 + $0x1d4] sm:$0xf0] }
 0x307   :  { %v14478_v2 = vor.u32 %v11062_v54, %v9308_v44 }
 0x308   :  { %v2197_v22 = vpop.f32.mrf.mxu2 }
 0x309   :  { %v14468_v10 = vadd.f32 %v2197_v22, %v2019_v11  ;;  %v2246_v33 = vpop.f32.mrf.mxu3  ;;  %v2070_v52 = vpop.f32.mrf.mxu1  ;;  %19115 = vst [vmem:[#allocation133_spill] sm:$0xff] %v14478_v2  ;;  %3449 = vmatpush.bf16.msrb.mxu1 %v14478_v2  ;;  %v9300_v11 = vld [vmem:[%s18165_s5 + $0x1c0] sm:$0xf] }
 0x30a   :  { %v14470_v20 = vadd.f32 %v2246_v33, %v2068_v40  ;;  %v11060_v40 = vld [vmem:[%s18165_s5 + $0x1c4] sm:$0xf0] }
 0x30b   :  { %v2021_v45 = vpop.f32.mrf.mxu0  ;;  %v14489_v21 = vor.u32 %v11060_v40, %v9300_v11 }
 0x30c   :  { %19114 = vst [vmem:[#allocation132_spill] sm:$0xff] %v14470_v20 }
 0x30d   :  { %19117 = vst [vmem:[#allocation135_spill] sm:$0xff] %v14489_v21  ;;  %3450 = vmatpush.bf16.msrb.mxu1 %v14489_v21 }
 0x310   :  { %v2199_v24 = vpop.f32.mrf.mxu2 }
 0x311   :  { %v14487_v22 = vadd.f32 %v2199_v24, %v2021_v45  ;;  %v2248_v33 = vpop.f32.mrf.mxu3  ;;  %v2073_v44 = vpop.f32.mrf.mxu1 }
 0x312   :  { %v14491_v16 = vadd.f32 %v2248_v33, %v2070_v52 }
 0x313   :  { %19116 = vst [vmem:[#allocation134_spill] sm:$0xff] %v14487_v22  ;;  %v2024_v12 = vpop.f32.mrf.mxu0  ;;  %9109 = vmatmul.msk.bf16.gmra.mxu0 %vm14158_vm8, %v14150_v55 }
 0x314   :  { %19118 = vst [vmem:[#allocation136_spill] sm:$0xff] %v14491_v16  ;;  %9149 = vmatmul.msk.bf16.gmra.mxu1 %vm14158_vm8, %v14150_v55 }
 0x315   :  { %2591 = vmatmul.bf16.gmra.mxu2 %v18956_v39 }
 0x316   :  { %2640 = vmatmul.bf16.gmra.mxu3 %v18956_v39  ;;  %v19123_v39 = vld [vmem:[#allocation68_spill] sm:$0xff] }
 0x318   :  { %v2202_v24 = vpop.f32.mrf.mxu2 }
 0x319   :  { %v14502_v45 = vadd.f32 %v2202_v24, %v2024_v12  ;;  %v2251_v52 = vpop.f32.mrf.mxu3  ;;  %v2075_v40 = vpop.f32.mrf.mxu1 }
 0x31a   :  { %v14504_v11 = vadd.f32 %v2251_v52, %v2073_v44 }
 0x31b   :  { %19119 = vst [vmem:[#allocation137_spill] sm:$0xff] %v14502_v45  ;;  %v2026_v54 = vpop.f32.mrf.mxu0 }
 0x31c   :  { %19120 = vst [vmem:[#allocation138_spill] sm:$0xff] %v14504_v11 }
 0x320   :  { %v2204_v33 = vpop.f32.mrf.mxu2 }
 0x321   :  { %v14506_v21 = vadd.f32 %v2204_v33, %v2026_v54  ;;  %v2253_v2 = vpop.f32.mrf.mxu3  ;;  %v2428_v55 = vpop.f32.mrf.mxu1 }
 0x322   :  { %v14508_v22 = vadd.f32 %v2253_v2, %v2075_v40 }
 0x323   :  { %19121 = vst [vmem:[#allocation139_spill] sm:$0xff] %v14506_v21  ;;  %v2379_v16 = vpop.f32.mrf.mxu0  ;;  %3402 = vmatmul.bf16.vlgmr.msra.gmra.mxu0 %v12874_v38 }
 0x324   :  { %19122 = vst [vmem:[#allocation140_spill] sm:$0xff] %v14508_v22  ;;  %3437 = vmatmul.bf16.vlgmr.msra.gmra.mxu1 %v13561_v13 }
 0x325   :  { %3500 = vmatmul.bf16.vlgmr.msra.gmra.mxu2 %v12874_v38  ;;  %v19125_v38 = vmax.f32 %v13508_v9, %v13565_v49  ;;  %v19127_v9 = vmax.f32 %v13576_v31, %v13618_v17 }
 0x326   :  { %9322 = vmatmul.msk.bf16.vlgmr.msra.gmra.mxu3 %vm18520_vm6, %v19123_v39 }
 0x328   :  { %v2557_v12 = vpop.f32.mrf.mxu2 }
 0x329   :  { %v2558_v44 = vadd.f32 %v2557_v12, %v2379_v16  ;;  %v2606_v24 = vpop.f32.mrf.mxu3  ;;  %v2430_v33 = vpop.f32.mrf.mxu1 }
 0x32a   :  { %v2607_v54 = vadd.f32 %v2606_v24, %v2428_v55 }
 0x32b   :  { %v2381_v52 = vpop.f32.mrf.mxu0  ;;  %v2774_v2 = vmax.f32 %v14202_v41, %v2558_v44 }
 0x32c   :  { %v2775_v40 = vmax.f32 %v14204_v59, %v2607_v54 }
 0x32d   :  { %v2806_v22 = vmax.f32 %v19124_v61, %v2774_v2 }
 0x32e   :  { %v2807_v21 = vmax.f32 %v19125_v38, %v2775_v40 }
 0x32f   :  { %v2908_v55 = vadd.f32 %v12857_v48, %v2806_v22 }
 0x330   :  { %v2559_v11 = vpop.f32.mrf.mxu2  ;;  %v2909_v59 = vadd.f32 %v12855_v37, %v2807_v21 }
 0x331   :  { %v2560_v45 = vadd.f32 %v2559_v11, %v2381_v52  ;;  %v2608_v13 = vpop.f32.mrf.mxu3  ;;  %v2433_v20 = vpop.f32.mrf.mxu1  ;;  %v2940_v49 = vmax.f32 %v2908_v55, 0.0 }
 0x332   :  { %v2609_v12 = vadd.f32 %v2608_v13, %v2430_v33  ;;  %v19128_v13 = vld [vmem:[#allocation71_spill] sm:$0xff] }
 0x333   :  { %v2384_v16 = vpop.f32.mrf.mxu0  ;;  %v2776_v41 = vmax.f32 %v14206_v7, %v2560_v45  ;;  %3407 = vmatmul.bf16.gmra.mxu0 %v12932_v30  ;;  %v14541_v54 = vrot.slane %v2940_v49, 7 }
 0x334   :  { %v2777_v44 = vmax.f32 %v14208_v36, %v2609_v12  ;;  %9314 = vmatmul.msk.bf16.vlgmr.msrb.gmra.mxu1 %vm18520_vm6, %v19123_v39  ;;  %v2941_v36 = vmax.f32 %v2909_v59, 0.0  ;;  %v19134_v59 = vmax.f32 %v13628_v34, %v13642_v0  ;;  %v19135_v34 = vld [vmem:[#allocation54_spill] sm:$0xff]  ;;  %v19136_v0 = vld [vmem:[#allocation44_spill] sm:$0xff] }
 0x335   :  { %v2808_v38 = vmax.f32 %v19126_v23, %v2776_v41  ;;  %3505 = vmatmul.bf16.gmra.mxu2 %v12932_v30 }
 0x336   :  { %v2809_v43 = vmax.f32 %v19127_v9, %v2777_v44  ;;  %9323 = vmatmul.msk.bf16.gmra.mxu3 %vm18520_vm6, %v19128_v13  ;;  %v14546_v2 = vrot.slane %v2941_v36, 7 }
 0x337   :  { %v2910_v21 = vadd.f32 %v12857_v48, %v2808_v38 }
 0x338   :  { %v2911_v7 = vadd.f32 %v12855_v37, %v2809_v43  ;;  %v2562_v28 = vpop.f32.mrf.mxu2 }
 0x339   :  { %v2942_v14 = vmax.f32 %v2910_v21, 0.0  ;;  %v2563_v61 = vadd.f32 %v2562_v28, %v2384_v16  ;;  %v2611_v22 = vpop.f32.mrf.mxu3  ;;  %v2435_v52 = vpop.f32.mrf.mxu1 }
 0x33a   :  { %v2943_v11 = vmax.f32 %v2911_v7, 0.0  ;;  %v2612_v24 = vadd.f32 %v2611_v22, %v2433_v20  ;;  %v19132_v20 = vmax.f32 %v13620_v15, %v13638_v47  ;;  %v19137_v22 = vmax.f32 %v13644_v19, %v19136_v0 }
 0x33b   :  { %v2386_v45 = vpop.f32.mrf.mxu0  ;;  %v14543_v31 = vpack.c.bf16 %v2942_v14, %v2940_v49  ;;  %v3006_v17 = vrot.slane %v2942_v14, 7  ;;  %v2778_v33 = vmax.f32 %v14218_v35, %v2563_v61 }
 0x33c   :  { %v14548_v40 = vpack.c.bf16 %v2943_v11, %v2941_v36  ;;  %v3007_v12 = vrot.slane %v2943_v11, 7  ;;  %v2779_v55 = vmax.f32 %v14220_v6, %v2612_v24  ;;  %v19139_v24 = vld [vmem:[#allocation63_spill] sm:$0xff] }
 0x33d   :  { %19129 = vst [vmem:[#allocation141_spill] sm:$0xff] %v14543_v31  ;;  %v14554_v16 = vsel %vm19131_vm7, %v14541_v54, %v3006_v17  ;;  %v2810_v41 = vmax.f32 %v19132_v20, %v2778_v33 }
 0x33e   :  { %19130 = vst [vmem:[#allocation142_spill] sm:$0xff] %v14548_v40  ;;  %v14562_v35 = vsel %vm19133_vm15, %v14546_v2, %v3007_v12  ;;  %v2811_v44 = vmax.f32 %v19134_v59, %v2779_v55  ;;  %v19142_v55 = vld [vmem:[#allocation46_spill] sm:$0xff]  ;;  %vm19164_vm15 = vmmov %vm19149_vm1 }
 0x33f   :  { %v2912_v6 = vadd.f32 %v12857_v48, %v2810_v41 }
 0x340   :  { %v2913_v23 = vadd.f32 %v12855_v37, %v2811_v44  ;;  %v2564_v38 = vpop.f32.mrf.mxu2 }
 0x341   :  { %v2944_v9 = vmax.f32 %v2912_v6, 0.0  ;;  %v2565_v43 = vadd.f32 %v2564_v38, %v2386_v45  ;;  %v2613_v49 = vpop.f32.mrf.mxu3  ;;  %v2438_v36 = vpop.f32.mrf.mxu1 }
 0x342   :  { %v2945_v15 = vmax.f32 %v2913_v23, 0.0  ;;  %v2614_v47 = vadd.f32 %v2613_v49, %v2435_v52  ;;  %v19140_v52 = vld [vmem:[#allocation64_spill] sm:$0xff] }
 0x343   :  { %v2389_v21 = vpop.f32.mrf.mxu0  ;;  %v3008_v7 = vrot.slane %v2944_v9, 7  ;;  %v2780_v28 = vmax.f32 %v14222_v8, %v2565_v43  ;;  %3412 = vmatmul.bf16.gmra.mxu0 %v19135_v34  ;;  %v19141_v8 = vmax.f32 %v19139_v24, %v19140_v52 }
 0x344   :  { %v3009_v14 = vrot.slane %v2945_v15, 7  ;;  %v2781_v61 = vmax.f32 %v14224_v62, %v2614_v47  ;;  %9315 = vmatmul.msk.bf16.gmra.mxu1 %vm18520_vm6, %v19128_v13 }
 0x345   :  { %v2812_v11 = vmax.f32 %v19137_v22, %v2780_v28  ;;  %3510 = vmatmul.bf16.gmra.mxu2 %v19135_v34  ;;  %v3062_v45 = vsel %vm19138_vm13, %v3006_v17, %v3008_v7  ;;  %v19146_v22 = vld [vmem:[#allocation34_spill] sm:$0xff]  ;;  %vm19169_vm13 = vmmov %vm19149_vm1 }
 0x346   :  { %v2813_v33 = vmax.f32 %v19141_v8, %v2781_v61  ;;  %9324 = vmatmul.msk.bf16.gmra.mxu3 %vm18520_vm6, %v19142_v55  ;;  %v3063_v62 = vsel %vm19143_vm14, %v3007_v12, %v3009_v14  ;;  %v19150_v8 = vld [vmem:[#allocation52_spill] sm:$0xff]  ;;  %vm19175_vm14 = vmmov %vm19149_vm1 }
 0x347   :  { %v2914_v19 = vadd.f32 %v12857_v48, %v2812_v11  ;;  %v19147_v11 = vld [vmem:[#allocation65_spill] sm:$0xff] }
 0x348   :  { %v2915_v20 = vadd.f32 %v12855_v37, %v2813_v33  ;;  %v2567_v41 = vpop.f32.mrf.mxu2  ;;  %v19148_v24 = vmax.f32 %v19146_v22, %v19147_v11 }
 0x349   :  { %v2946_v59 = vmax.f32 %v2914_v19, 0.0  ;;  %v2568_v44 = vadd.f32 %v2567_v41, %v2389_v21  ;;  %v2616_v6 = vpop.f32.mrf.mxu3  ;;  %v2440_v43 = vpop.f32.mrf.mxu1  ;;  %v19157_v41 = vld [vmem:[#allocation9_spill] sm:$0xff] }
 0x34a   :  { %v2947_v17 = vmax.f32 %v2915_v20, 0.0  ;;  %v2617_v38 = vadd.f32 %v2616_v6, %v2438_v36  ;;  %v19151_v36 = vld [vmem:[#allocation53_spill] sm:$0xff]  ;;  %v19155_v20 = vld [vmem:[#allocation8_spill] sm:$0xff]  ;;  %vm19158_vm7 = vnez %v19157_v41 }
 0x34b   :  { %v2391_v23 = vpop.f32.mrf.mxu0  ;;  %v14589_v49 = vpack.c.bf16 %v2946_v59, %v2944_v9  ;;  %v3010_v47 = vrot.slane %v2946_v59, 7  ;;  %v2782_v28 = vmax.f32 %v14234_v50, %v2568_v44  ;;  %v19152_v33 = vmax.f32 %v19150_v8, %v19151_v36  ;;  %v19161_v8 = vld [vmem:[#allocation66_spill] sm:$0xff]  ;;  %v19162_v36 = vld [vmem:[#allocation40_spill] sm:$0xff] }
 0x34c   :  { %v14592_v61 = vpack.c.bf16 %v2947_v17, %v2945_v15  ;;  %v3011_v12 = vrot.slane %v2947_v17, 7  ;;  %v2783_v0 = vmax.f32 %v14236_v51, %v2617_v38  ;;  %vm19156_vm9 = vnez %v19155_v20  ;;  %v19168_v20 = vld [vmem:[#allocation47_spill] sm:$0xff] }
 0x34d   :  { %19144 = vst [vmem:[#allocation44_spill] sm:$0xff] %v14589_v49  ;;  %v2814_v52 = vmax.f32 %v19148_v24, %v2782_v28  ;;  %v3060_v21 = vsel %vm19149_vm1, %v3008_v7, %v3010_v47  ;;  %v3073_v51 = vsel %vm19156_vm9, 0.0, %v3063_v62 }
 0x34e   :  { %19145 = vst [vmem:[#allocation63_spill] sm:$0xff] %v14592_v61  ;;  %v2815_v9 = vmax.f32 %v19152_v33, %v2783_v0  ;;  %v14603_v19 = vpack.c.bf16 %v3060_v21, %v3062_v45  ;;  %v3061_v50 = vsel %vm19154_vm10, %v3009_v14, %v3011_v12  ;;  %v19160_v21 = vld [vmem:[#allocation56_spill] sm:$0xff]  ;;  %v19163_v33 = vmax.f32 %v19161_v8, %v19162_v36 }
 0x34f   :  { %v2916_v15 = vadd.f32 %v12857_v48, %v2814_v52  ;;  %v3075_v59 = vsel %vm19158_vm7, 0.0, %v3061_v50  ;;  %v19166_v50 = vld [vmem:[#allocation41_spill] sm:$0xff]  ;;  %vm19189_vm7 = vmmov %vm19149_vm1 }
 0x350   :  { %19153 = vst [vmem:[#allocation64_spill] sm:$0xff] %v14603_v19  ;;  %v2917_v44 = vadd.f32 %v12855_v37, %v2815_v9  ;;  %v2569_v7 = vpop.f32.mrf.mxu2  ;;  %v14613_v6 = vpack.c.bf16 %v3075_v59, %v3073_v51 }
 0x351   :  { %v2948_v17 = vmax.f32 %v2916_v15, 0.0  ;;  %v2570_v38 = vadd.f32 %v2569_v7, %v2391_v23  ;;  %v2618_v45 = vpop.f32.mrf.mxu3  ;;  %v2443_v14 = vpop.f32.mrf.mxu1 }
 0x352   :  { %19159 = vst [vmem:[#allocation34_spill] sm:$0xff] %v14613_v6  ;;  %v2949_v0 = vmax.f32 %v2917_v44, 0.0  ;;  %v2619_v22 = vadd.f32 %v2618_v45, %v2440_v43  ;;  %v19165_v43 = vld [vmem:[#allocation4_spill] sm:$0xff] }
 0x353   :  { %v2394_v28 = vpop.f32.mrf.mxu0  ;;  %v3012_v11 = vrot.slane %v2948_v17, 7  ;;  %v2784_v24 = vmax.f32 %v14238_v4, %v2570_v38  ;;  %3417 = vmatmul.bf16.gmra.mxu0 %v19160_v21  ;;  %v19167_v4 = vmax.f32 %v19165_v43, %v19166_v50  ;;  %v19172_v43 = vld [vmem:[#allocation72_spill] sm:$0xff]  ;;  %v19173_v50 = vld [vmem:[#allocation75_spill] sm:$0xff] }
 0x354   :  { %v3013_v52 = vrot.slane %v2949_v0, 7  ;;  %v2785_v62 = vmax.f32 %v14240_v32, %v2619_v22  ;;  %9316 = vmatmul.msk.bf16.gmra.mxu1 %vm18520_vm6, %v19142_v55 }
 0x355   :  { %v2816_v9 = vmax.f32 %v19163_v33, %v2784_v24  ;;  %3515 = vmatmul.bf16.gmra.mxu2 %v19160_v21  ;;  %v3058_v23 = vsel %vm19164_vm15, %v3010_v47, %v3012_v11  ;;  %vm19194_vm15 = vmmov %vm19149_vm1 }
 0x356   :  { %v2817_v15 = vmax.f32 %v19167_v4, %v2785_v62  ;;  %9325 = vmatmul.msk.bf16.gmra.mxu3 %vm18520_vm6, %v19168_v20  ;;  %v3059_v32 = vsel %vm19169_vm13, %v3011_v12, %v3013_v52  ;;  %v19174_v4 = vmax.f32 %v19172_v43, %v19173_v50  ;;  %vm19200_vm13 = vmmov %vm19149_vm1 }
 0x357   :  { %v2918_v51 = vadd.f32 %v12857_v48, %v2816_v9 }
 0x358   :  { %v2919_v41 = vadd.f32 %v12855_v37, %v2817_v15  ;;  %v2572_v59 = vpop.f32.mrf.mxu2 }
 0x359   :  { %v2950_v44 = vmax.f32 %v2918_v51, 0.0  ;;  %v2573_v7 = vadd.f32 %v2572_v59, %v2394_v28  ;;  %v2621_v38 = vpop.f32.mrf.mxu3  ;;  %v2445_v24 = vpop.f32.mrf.mxu1  ;;  %v19176_v51 = vld [vmem:[#allocation74_spill] sm:$0xff] }
 0x35a   :  { %v2951_v47 = vmax.f32 %v2919_v41, 0.0  ;;  %v2622_v22 = vadd.f32 %v2621_v38, %v2443_v14  ;;  %v19177_v14 = vld [vmem:[#allocation76_spill] sm:$0xff] }
 0x35b   :  { %v2396_v45 = vpop.f32.mrf.mxu0  ;;  %v14635_v8 = vpack.c.bf16 %v2950_v44, %v2948_v17  ;;  %v3014_v62 = vrot.slane %v2950_v44, 7  ;;  %v2786_v36 = vmax.f32 %v14250_v56, %v2573_v7  ;;  %v19178_v41 = vmax.f32 %v19176_v51, %v19177_v14  ;;  %v19180_v44 = vld [vmem:[#allocation14_spill] sm:$0xff]  ;;  %v19182_v7 = vld [vmem:[#allocation13_spill] sm:$0xff]  ;;  %v19185_v14 = vld [vmem:[#allocation11_spill] sm:$0xff] }
 0x35c   :  { %v14638_v33 = vpack.c.bf16 %v2951_v47, %v2949_v0  ;;  %v3015_v12 = vrot.slane %v2951_v47, 7  ;;  %v2787_v9 = vmax.f32 %v14252_v53, %v2622_v22  ;;  %vm19181_vm10 = vnez %v19180_v44 }
 0x35d   :  { %19170 = vst [vmem:[#allocation65_spill] sm:$0xff] %v14635_v8  ;;  %v2818_v15 = vmax.f32 %v19174_v4, %v2786_v36  ;;  %v3056_v28 = vsel %vm19175_vm14, %v3012_v11, %v3014_v62  ;;  %v3077_v53 = vsel %vm19181_vm10, 0.0, %v3059_v32  ;;  %vm19183_vm9 = vnez %v19182_v7  ;;  %v19193_v7 = vld [vmem:[#allocation48_spill] sm:$0xff]  ;;  %vm19205_vm14 = vmmov %vm19149_vm1 }
 0x35e   :  { %19171 = vst [vmem:[#allocation52_spill] sm:$0xff] %v14638_v33  ;;  %v2819_v17 = vmax.f32 %v19178_v41, %v2787_v9  ;;  %v14649_v59 = vpack.c.bf16 %v3056_v28, %v3058_v23  ;;  %v3057_v56 = vsel %vm19149_vm1, %v3013_v52, %v3015_v12  ;;  %v19186_v41 = vld [vmem:[#allocation77_spill] sm:$0xff] }
 0x35f   :  { %v2920_v0 = vadd.f32 %v12857_v48, %v2818_v15  ;;  %v3079_v38 = vsel %vm19183_vm9, 0.0, %v3057_v56  ;;  %vm19215_vm9 = vmmov %vm19189_vm7 }
 0x360   :  { %19179 = vst [vmem:[#allocation53_spill] sm:$0xff] %v14649_v59  ;;  %v2921_v47 = vadd.f32 %v12855_v37, %v2819_v17  ;;  %v2574_v11 = vpop.f32.mrf.mxu2  ;;  %v14659_v22 = vpack.c.bf16 %v3079_v38, %v3077_v53  ;;  %v19187_v17 = vld [vmem:[#allocation79_spill] sm:$0xff] }
 0x361   :  { %v2952_v36 = vmax.f32 %v2920_v0, 0.0  ;;  %v2575_v9 = vadd.f32 %v2574_v11, %v2396_v45  ;;  %v2623_v23 = vpop.f32.mrf.mxu3  ;;  %v2448_v52 = vpop.f32.mrf.mxu1  ;;  %v19188_v56 = vmax.f32 %v19186_v41, %v19187_v17  ;;  %v19191_v0 = vld [vmem:[#allocation80_spill] sm:$0xff] }
 0x362   :  { %19184 = vst [vmem:[#allocation8_spill] sm:$0xff] %v14659_v22  ;;  %v2953_v50 = vmax.f32 %v2921_v47, 0.0  ;;  %v2624_v4 = vadd.f32 %v2623_v23, %v2445_v24  ;;  %v19190_v24 = vld [vmem:[#allocation78_spill] sm:$0xff] }
 0x363   :  { %v2399_v43 = vpop.f32.mrf.mxu0  ;;  %v3016_v28 = vrot.slane %v2952_v36, 7  ;;  %v2788_v15 = vmax.f32 %v14254_v1, %v2575_v9  ;;  %3422 = vmatmul.bf16.gmra.mxu0 %v19185_v14  ;;  %v19192_v1 = vmax.f32 %v19190_v24, %v19191_v0 }
 0x364   :  { %v3017_v51 = vrot.slane %v2953_v50, 7  ;;  %v2789_v32 = vmax.f32 %v14256_v3, %v2624_v4  ;;  %9317 = vmatmul.msk.bf16.gmra.mxu1 %vm18520_vm6, %v19168_v20 }
 0x365   :  { %v2820_v44 = vmax.f32 %v19188_v56, %v2788_v15  ;;  %3520 = vmatmul.bf16.gmra.mxu2 %v19185_v14  ;;  %v3054_v45 = vsel %vm19189_vm7, %v3014_v62, %v3016_v28 }
 0x366   :  { %v2821_v53 = vmax.f32 %v19192_v1, %v2789_v32  ;;  %9326 = vmatmul.msk.bf16.gmra.mxu3 %vm18520_vm6, %v19193_v7  ;;  %v3055_v3 = vsel %vm19194_vm15, %v3015_v12, %v3017_v51  ;;  %v19197_v1 = vld [vmem:[#allocation81_spill] sm:$0xff]  ;;  %vm19225_vm15 = vmmov %vm19189_vm7 }
 0x367   :  { %v2922_v38 = vadd.f32 %v12857_v48, %v2820_v44 }
 0x368   :  { %v2923_v47 = vadd.f32 %v12855_v37, %v2821_v53  ;;  %v2577_v11 = vpop.f32.mrf.mxu2  ;;  %v19198_v53 = vld [vmem:[#allocation84_spill] sm:$0xff] }
 0x369   :  { %v2954_v9 = vmax.f32 %v2922_v38, 0.0  ;;  %v2578_v23 = vadd.f32 %v2577_v11, %v2399_v43  ;;  %v2626_v4 = vpop.f32.mrf.mxu3  ;;  %v2450_v17 = vpop.f32.mrf.mxu1  ;;  %v19199_v14 = vmax.f32 %v19197_v1, %v19198_v53 }
 0x36a   :  { %v2955_v62 = vmax.f32 %v2923_v47, 0.0  ;;  %v2627_v41 = vadd.f32 %v2626_v4, %v2448_v52  ;;  %v19201_v47 = vld [vmem:[#allocation83_spill] sm:$0xff]  ;;  %v19202_v52 = vld [vmem:[#allocation85_spill] sm:$0xff] }
 0x36b   :  { %v2401_v15 = vpop.f32.mrf.mxu0  ;;  %v14681_v56 = vpack.c.bf16 %v2954_v9, %v2952_v36  ;;  %v3018_v32 = vrot.slane %v2954_v9, 7  ;;  %v2790_v24 = vmax.f32 %v14294_v26, %v2578_v23  ;;  %v19203_v11 = vmax.f32 %v19201_v47, %v19202_v52 }
 0x36c   :  { %v14684_v0 = vpack.c.bf16 %v2955_v62, %v2953_v50  ;;  %v3019_v12 = vrot.slane %v2955_v62, 7  ;;  %v2791_v44 = vmax.f32 %v14301_v58, %v2627_v41  ;;  %v9388_v58 = vld [vmem:[%s18165_s5 + $0x70] sm:$0xf] }
 0x36d   :  { %19195 = vst [vmem:[#allocation9_spill] sm:$0xff] %v14681_v56  ;;  %v2822_v38 = vmax.f32 %v19199_v14, %v2790_v24  ;;  %v3052_v43 = vsel %vm19200_vm13, %v3016_v28, %v3018_v32  ;;  %v11038_v14 = vld [vmem:[%s18165_s5 + $0x74] sm:$0xf0]  ;;  %v11037_v28 = vld [vmem:[%s18165_s5 + $0x74] sm:$0xf]  ;;  %v19208_v24 = vld [vmem:[#allocation19_spill] sm:$0xff] }
 0x36e   :  { %19196 = vst [vmem:[#allocation66_spill] sm:$0xff] %v14684_v0  ;;  %v2823_v36 = vmax.f32 %v19203_v11, %v2791_v44  ;;  %v14695_v4 = vpack.c.bf16 %v3052_v43, %v3054_v45  ;;  %v3053_v26 = vsel %vm19205_vm14, %v3017_v51, %v3019_v12  ;;  %v14710_v23 = vor.u32 %v11038_v14, %v9388_v58  ;;  %v9390_v51 = vld [vmem:[%s18165_s5 + $0x78] sm:$0xf0]  ;;  %v19206_v62 = vld [vmem:[#allocation20_spill] sm:$0xff]  ;;  %vm19229_vm13 = vmmov %vm19189_vm7 }
 0x36f   :  { %v2924_v50 = vadd.f32 %v12857_v48, %v2822_v38  ;;  %vm19207_vm1 = vnez %v19206_v62  ;;  %vm19209_vm10 = vnez %v19208_v24  ;;  %v14719_v47 = vor.u32 %v11037_v28, %v9390_v51  ;;  %v19213_v51 = vld [vmem:[#allocation89_spill] sm:$0xff]  ;;  %v19263_v56 = vld [vmem:[#allocation32_spill] sm:$0xff] }
 0x370   :  { %19204 = vst [vmem:[#allocation40_spill] sm:$0xff] %v14695_v4  ;;  %v2925_v45 = vadd.f32 %v12855_v37, %v2823_v36  ;;  %v2579_v9 = vpop.f32.mrf.mxu2  ;;  %v3081_v41 = vsel %vm19207_vm1, 0.0, %v3055_v3  ;;  %v3083_v44 = vsel %vm19209_vm10, 0.0, %v3053_v26  ;;  %3714 = vmatpush.bf16.msrb.mxu0 %v14710_v23  ;;  %v9380_v3 = vld [vmem:[%s18165_s5 + $0x60] sm:$0xf]  ;;  %vm19240_vm10 = vmmov %vm19189_vm7 }
 0x371   :  { %v2956_v1 = vmax.f32 %v2924_v50, 0.0  ;;  %v2580_v53 = vadd.f32 %v2579_v9, %v2401_v15  ;;  %v2628_v38 = vpop.f32.mrf.mxu3  ;;  %v14721_v52 = vpack.c.bf16 %v3083_v44, %v3081_v41  ;;  %v2453_v58 = vpop.f32.mrf.mxu1  ;;  %3812 = vmatpush.bf16.msrb.mxu2 %v14719_v47  ;;  %v11036_v15 = vld [vmem:[%s18165_s5 + $0x64] sm:$0xf0]  ;;  %v19212_v9 = vld [vmem:[#allocation86_spill] sm:$0xff] }
 0x372   :  { %v2957_v11 = vmax.f32 %v2925_v45, 0.0  ;;  %v2629_v36 = vadd.f32 %v2628_v38, %v2450_v17  ;;  %v19211_v17 = vld [vmem:[#allocation49_spill] sm:$0xff]  ;;  %v14734_v28 = vor.u32 %v11036_v15, %v9380_v3  ;;  %v9382_v45 = vld [vmem:[%s18165_s5 + $0x68] sm:$0xf0]  ;;  %v19214_v41 = vmax.f32 %v19212_v9, %v19213_v51  ;;  %v19217_v38 = vld [vmem:[#allocation90_spill] sm:$0xff] }
 0x373   :  { %v2404_v43 = vpop.f32.mrf.mxu0  ;;  %19210 = vst [vmem:[#allocation4_spill] sm:$0xff] %v14721_v52  ;;  %v3020_v14 = vrot.slane %v2956_v1, 7  ;;  %v2792_v62 = vmax.f32 %v14336_v42, %v2580_v53  ;;  %3427 = vmatmul.bf16.gmra.mxu0 %v19211_v17  ;;  %v11035_v42 = vld [vmem:[%s18165_s5 + $0x64] sm:$0xf]  ;;  %v19216_v53 = vld [vmem:[#allocation87_spill] sm:$0xff] }
 0x374   :  { %v3021_v26 = vrot.slane %v2957_v11, 7  ;;  %v2793_v50 = vmax.f32 %v14343_v63, %v2629_v36  ;;  %9318 = vmatmul.msk.bf16.gmra.mxu1 %vm18520_vm6, %v19193_v7  ;;  %v14748_v63 = vor.u32 %v11035_v42, %v9382_v45  ;;  %v19218_v36 = vmax.f32 %v19216_v53, %v19217_v38  ;;  %v19219_v15 = vld [vmem:[#allocation59_spill] sm:$0xff]  ;;  %3715 = vmatpush.bf16.msrb.mxu0 %v14734_v28  ;;  %v11033_v42 = vld [vmem:[%s18165_s5 + $0x54] sm:$0xf] }
 0x375   :  { %v2824_v24 = vmax.f32 %v19214_v41, %v2792_v62  ;;  %3525 = vmatmul.bf16.gmra.mxu2 %v19211_v17  ;;  %v3050_v44 = vsel %vm19215_vm9, %v3018_v32, %v3020_v14  ;;  %v9372_v32 = vld [vmem:[%s18165_s5 + $0x50] sm:$0xf]  ;;  %v9374_v41 = vld [vmem:[%s18165_s5 + $0x58] sm:$0xf0]  ;;  %vm19245_vm9 = vmmov %vm19189_vm7 }
 0x376   :  { %v2825_v3 = vmax.f32 %v19218_v36, %v2793_v50  ;;  %9327 = vmatmul.msk.bf16.gmra.mxu3 %vm18520_vm6, %v19219_v15  ;;  %v3051_v62 = vsel %vm19189_vm7, %v3019_v12, %v3021_v26  ;;  %3813 = vmatpush.bf16.msrb.mxu2 %v14748_v63  ;;  %v11034_v50 = vld [vmem:[%s18165_s5 + $0x54] sm:$0xf0]  ;;  %v14777_v17 = vor.u32 %v11033_v42, %v9374_v41  ;;  %v19223_v41 = vld [vmem:[#allocation92_spill] sm:$0xff] }
 0x377   :  { %v2926_v9 = vadd.f32 %v12857_v48, %v2824_v24  ;;  %v14772_v12 = vor.u32 %v11034_v50, %v9372_v32 }
 0x378   :  { %v2927_v45 = vadd.f32 %v12855_v37, %v2825_v3  ;;  %v2582_v51 = vpop.f32.mrf.mxu2 }
 0x379   :  { %v2958_v24 = vmax.f32 %v2926_v9, 0.0  ;;  %v2583_v53 = vadd.f32 %v2582_v51, %v2404_v43  ;;  %v2631_v38 = vpop.f32.mrf.mxu3  ;;  %v2455_v21 = vpop.f32.mrf.mxu1  ;;  %3716 = vmatpush.bf16.msrb.mxu0 %v14772_v12  ;;  %v9364_v43 = vld [vmem:[%s18165_s5 + $0x40] sm:$0xf]  ;;  %v11032_v9 = vld [vmem:[%s18165_s5 + $0x44] sm:$0xf0] }
 0x37a   :  { %v2959_v7 = vmax.f32 %v2927_v45, 0.0  ;;  %v2632_v20 = vadd.f32 %v2631_v38, %v2453_v58  ;;  %3814 = vmatpush.bf16.msrb.mxu2 %v14777_v17  ;;  %v14799_v45 = vor.u32 %v11032_v9, %v9364_v43  ;;  %v19222_v51 = vld [vmem:[#allocation91_spill] sm:$0xff] }
 0x37b   :  { %v2406_v36 = vpop.f32.mrf.mxu0  ;;  %v14780_v55 = vpack.c.bf16 %v2958_v24, %v2956_v1  ;;  %v3022_v3 = vrot.slane %v2958_v24, 7  ;;  %v2794_v32 = vmax.f32 %v14395_v5, %v2583_v53  ;;  %v11041_v1 = vld [vmem:[%s18165_s5 + $0x94] sm:$0xf]  ;;  %v9406_v5 = vld [vmem:[%s18165_s5 + $0x98] sm:$0xf0]  ;;  %v19224_v24 = vmax.f32 %v19222_v51, %v19223_v41 }
 0x37c   :  { %v14790_v50 = vpack.c.bf16 %v2959_v7, %v2957_v11  ;;  %v3023_v58 = vrot.slane %v2959_v7, 7  ;;  %v2795_v42 = vmax.f32 %v14402_v29, %v2632_v20  ;;  %v14804_v38 = vor.u32 %v11041_v1, %v9406_v5  ;;  %v11031_v29 = vld [vmem:[%s18165_s5 + $0x44] sm:$0xf]  ;;  %v9366_v20 = vld [vmem:[%s18165_s5 + $0x48] sm:$0xf0]  ;;  %v19226_v11 = vld [vmem:[#allocation93_spill] sm:$0xff] }
 0x37d   :  { %19220 = vst [vmem:[#allocation41_spill] sm:$0xff] %v14780_v55  ;;  %v2826_v53 = vmax.f32 %v19224_v24, %v2794_v32  ;;  %v3048_v7 = vsel %vm19225_vm15, %v3020_v14, %v3022_v3  ;;  %v19227_v43 = vmax.f32 %v13944_v27, %v19226_v11  ;;  %3717 = vmatpush.bf16.msrb.mxu0 %v14799_v45  ;;  %v9356_v14 = vld [vmem:[%s18165_s5 + $0x30] sm:$0xf]  ;;  %v11030_v27 = vld [vmem:[%s18165_s5 + $0x34] sm:$0xf0]  ;;  %vm19260_vm15 = vmmov %vm19189_vm7 }
 0x37e   :  { %19221 = vst [vmem:[#allocation72_spill] sm:$0xff] %v14790_v50  ;;  %v14818_v32 = vor.u32 %v11031_v29, %v9366_v20  ;;  %v14820_v1 = vpack.c.bf16 %v3048_v7, %v3050_v44  ;;  %v3049_v5 = vsel %vm19229_vm13, %v3021_v26, %v3023_v58  ;;  %3867 = vmatpush.bf16.msrb.mxu3 %v14804_v38  ;;  %v11029_v44 = vld [vmem:[%s18165_s5 + $0x34] sm:$0xf]  ;;  %v9358_v24 = vld [vmem:[%s18165_s5 + $0x38] sm:$0xf0] }
 0x37f   :  { %v2827_v9 = vmax.f32 %v19227_v43, %v2795_v42  ;;  %v14825_v51 = vadd.f32 %v12857_v48, %v2826_v53  ;;  %v14841_v41 = vor.u32 %v11030_v27, %v9356_v14  ;;  %v19230_v53 = vld [vmem:[#allocation26_spill] sm:$0xff]  ;;  %v19232_v20 = vld [vmem:[#allocation25_spill] sm:$0xff]  ;;  %v14851_v13 = vor.u32 %v11029_v44, %v9358_v24  ;;  %v19238_v24 = vld [vmem:[#allocation95_spill] sm:$0xff] }
 0x380   :  { %19228 = vst [vmem:[#allocation75_spill] sm:$0xff] %v14820_v1  ;;  %v2584_v26 = vpop.f32.mrf.mxu2  ;;  %3815 = vmatpush.bf16.msrb.mxu2 %v14818_v32  ;;  %vm19231_vm14 = vnez %v19230_v53  ;;  %vm19233_vm1 = vnez %v19232_v20 }
 0x381   :  { %v14838_v42 = vadd.f32 %v12855_v37, %v2827_v9  ;;  %v3085_v29 = vsel %vm19231_vm14, 0.0, %v3051_v62  ;;  %v3087_v7 = vsel %vm19233_vm1, 0.0, %v3049_v5  ;;  %v2960_v11 = vmax.f32 %v14825_v51, 0.0  ;;  %v2633_v9 = vpop.f32.mrf.mxu3  ;;  %19234 = vst [vmem:[#allocation74_spill] sm:$0xff] %v14851_v13  ;;  %v2458_v39 = vpop.f32.mrf.mxu1  ;;  %3718 = vmatpush.bf16.msrb.mxu0 %v14841_v41  ;;  %v9348_v5 = vld [vmem:[%s18165_s5 + $0x20] sm:$0xf]  ;;  %vm19272_vm1 = vmmov %vm19189_vm7 }
 0x382   :  { %v2585_v43 = vadd.f32 %v2584_v26, %v2406_v36  ;;  %v14853_v30 = vpack.c.bf16 %v3087_v7, %v3085_v29  ;;  %v2634_v27 = vadd.f32 %v2633_v9, %v2455_v21  ;;  %v11028_v36 = vld [vmem:[%s18165_s5 + $0x24] sm:$0xf0]  ;;  %v19236_v26 = vld [vmem:[#allocation17_spill] sm:$0xff]  ;;  %v9404_v21 = vld [vmem:[%s18165_s5 + $0x90] sm:$0xf]  ;;  %v19239_v29 = vmax.f32 %v14012_v25, %v19238_v24 }
 0x383   :  { %v2409_v34 = vpop.f32.mrf.mxu0  ;;  %v2961_v14 = vmax.f32 %v14838_v42, 0.0  ;;  %v3024_v53 = vrot.slane %v2960_v11, 7  ;;  %3432 = vmatmul.bf16.gmra.mxu0 %v19236_v26  ;;  %v14873_v42 = vor.u32 %v11028_v36, %v9348_v5  ;;  %v11027_v7 = vld [vmem:[%s18165_s5 + $0x24] sm:$0xf]  ;;  %v19241_v25 = vld [vmem:[#allocation96_spill] sm:$0xff]  ;;  %vm19264_vm14 = vnez %v19263_v56 }
 0x384   :  { %19235 = vst [vmem:[#allocation76_spill] sm:$0xff] %v14853_v30  ;;  %v2796_v62 = vmax.f32 %v14437_v60, %v2585_v43  ;;  %v2797_v44 = vmax.f32 %v14450_v57, %v2634_v27  ;;  %v11042_v60 = vld [vmem:[%s18165_s5 + $0x94] sm:$0xf0]  ;;  %3816 = vmatpush.bf16.msrb.mxu2 %v14851_v13  ;;  %9319 = vmatmul.msk.bf16.gmra.mxu1 %vm18520_vm6, %v19219_v15  ;;  %v9350_v43 = vld [vmem:[%s18165_s5 + $0x28] sm:$0xf0]  ;;  %v19243_v5 = vld [vmem:[#allocation50_spill] sm:$0xff] }
 0x385   :  { %v3025_v51 = vrot.slane %v2961_v14, 7  ;;  %19237 = vst [vmem:[#allocation14_spill] sm:$0xff] %v14873_v42  ;;  %3530 = vmatmul.bf16.gmra.mxu2 %v19236_v26  ;;  %v14881_v57 = vor.u32 %v11042_v60, %v9404_v21  ;;  %v3046_v9 = vsel %vm19240_vm10, %v3022_v3, %v3024_v53  ;;  %v19242_v27 = vmax.f32 %v14025_v46, %v19241_v25  ;;  %v9340_v3 = vld [vmem:[%s18165_s5 + $0x10] sm:$0xf]  ;;  %v11026_v46 = vld [vmem:[%s18165_s5 + $0x14] sm:$0xf0]  ;;  %vm19277_vm10 = vmmov %vm19272_vm1 }
 0x386   :  { %v2828_v20 = vmax.f32 %v19239_v29, %v2796_v62  ;;  %9328 = vmatmul.msk.bf16.gmra.mxu3 %vm18520_vm6, %v19243_v5  ;;  %3719 = vmatpush.bf16.msrb.mxu0 %v14873_v42  ;;  %v14897_v36 = vor.u32 %v11027_v7, %v9350_v43  ;;  %v19282_v42 = vld [vmem:[#allocation105_spill] sm:$0xff] }
 0x387   :  { %v2829_v62 = vmax.f32 %v19242_v27, %v2797_v44  ;;  %v3047_v21 = vsel %vm19245_vm9, %v3023_v58, %v3025_v51  ;;  %3769 = vmatpush.bf16.msra.mxu1 %v14881_v57  ;;  %v11025_v44 = vld [vmem:[%s18165_s5 + $0x14] sm:$0xf]  ;;  %v14914_v58 = vor.u32 %v11026_v46, %v9340_v3  ;;  %v9332_v46 = vld [vmem:[%s18165_s5] sm:$0xf]  ;;  %vm19285_vm9 = vmmov %vm19272_vm1 }
 0x388   :  { %19244 = vst [vmem:[#allocation13_spill] sm:$0xff] %v14897_v36  ;;  %v2930_v60 = vadd.f32 %v12857_v48, %v2828_v20  ;;  %v2587_v29 = vpop.f32.mrf.mxu2  ;;  %3817 = vmatpush.bf16.msrb.mxu2 %v14897_v36  ;;  %v9342_v20 = vld [vmem:[%s18165_s5 + $0x18] sm:$0xf0]  ;;  %v19281_v36 = vld [vmem:[#allocation138_spill] sm:$0xff] }
 0x389   :  { %v2931_v24 = vadd.f32 %v12855_v37, %v2829_v62  ;;  %19246 = vst [vmem:[#allocation77_spill] sm:$0xff] %v14914_v58  ;;  %v2588_v43 = vadd.f32 %v2587_v29, %v2409_v34  ;;  %v2636_v25 = vpop.f32.mrf.mxu3  ;;  %v14919_v26 = vor.u32 %v11025_v44, %v9342_v20  ;;  %v2460_v55 = vpop.f32.mrf.mxu1  ;;  %v11024_v34 = vld [vmem:[%s18165_s5 + $0x4] sm:$0xf0]  ;;  %v9334_v29 = vld [vmem:[%s18165_s5 + $0x8] sm:$0xf0]  ;;  %v19252_v20 = vld [vmem:[#allocation97_spill] sm:$0xff] }
 0x38a   :  { %v2962_v7 = vmax.f32 %v2930_v60, 0.0  ;;  %v2637_v50 = vadd.f32 %v2636_v25, %v2458_v39  ;;  %3720 = vmatpush.bf16.msrb.mxu0 %v14914_v58  ;;  %v19250_v39 = vld [vmem:[#allocation132_spill] sm:$0xff] }
 0x38b   :  { %v2411_v27 = vpop.f32.mrf.mxu0  ;;  %19247 = vst [vmem:[#allocation79_spill] sm:$0xff] %v14919_v26  ;;  %v2963_v15 = vmax.f32 %v2931_v24, 0.0  ;;  %v2798_v3 = vmax.f32 %v14468_v10, %v2588_v43  ;;  %v11023_v10 = vld [vmem:[%s18165_s5 + $0x4] sm:$0xf] }
 0x38c   :  { %v14922_v62 = vpack.c.bf16 %v2962_v7, %v2960_v11  ;;  %v3026_v0 = vrot.slane %v2962_v7, 7  ;;  %v2799_v24 = vmax.f32 %v19250_v39, %v2637_v50  ;;  %3818 = vmatpush.bf16.msrb.mxu2 %v14919_v26  ;;  %v14935_v11 = vor.u32 %v11024_v34, %v9332_v46  ;;  %v19253_v7 = vld [vmem:[#allocation99_spill] sm:$0xff]  ;;  %v19256_v34 = vld [vmem:[#allocation98_spill] sm:$0xff]  ;;  %v19257_v39 = vld [vmem:[#allocation100_spill] sm:$0xff] }
 0x38d   :  { %v14931_v60 = vpack.c.bf16 %v2963_v15, %v2961_v14  ;;  %v3027_v44 = vrot.slane %v2963_v15, 7  ;;  %v19254_v43 = vmax.f32 %v19252_v20, %v19253_v7  ;;  %v14946_v25 = vor.u32 %v11023_v10, %v9334_v29  ;;  %v11039_v15 = vld [vmem:[%s18165_s5 + $0x84] sm:$0xf]  ;;  %v9398_v50 = vld [vmem:[%s18165_s5 + $0x88] sm:$0xf0]  ;;  %v19268_v26 = vld [vmem:[#allocation101_spill] sm:$0xff] }
 0x38e   :  { %19248 = vst [vmem:[#allocation78_spill] sm:$0xff] %v14922_v62  ;;  %v3044_v46 = vsel %vm19189_vm7, %v3024_v53, %v3026_v0  ;;  %3721 = vmatpush.bf16.msrb.mxu0 %v14935_v11  ;;  %v19261_v7 = vld [vmem:[#allocation31_spill] sm:$0xff]  ;;  %vm19290_vm7 = vmmov %vm19272_vm1 }
 0x38f   :  { %19249 = vst [vmem:[#allocation80_spill] sm:$0xff] %v14931_v60  ;;  %v2830_v14 = vmax.f32 %v19254_v43, %v2798_v3  ;;  %v19258_v60 = vmax.f32 %v19256_v34, %v19257_v39  ;;  %v14960_v3 = vor.u32 %v11039_v15, %v9398_v50  ;;  %v14962_v10 = vpack.c.bf16 %v3044_v46, %v3046_v9  ;;  %v9396_v9 = vld [vmem:[%s18165_s5 + $0x80] sm:$0xf] }
 0x390   :  { %19251 = vst [vmem:[#allocation81_spill] sm:$0xff] %v14935_v11  ;;  %v3045_v29 = vsel %vm19260_vm15, %v3025_v51, %v3027_v44  ;;  %vm19262_vm13 = vnez %v19261_v7  ;;  %3819 = vmatpush.bf16.msrb.mxu2 %v14946_v25  ;;  %v11040_v51 = vld [vmem:[%s18165_s5 + $0x84] sm:$0xf0]  ;;  %v19266_v7 = vld [vmem:[#allocation134_spill] sm:$0xff] }
 0x391   :  { %19255 = vst [vmem:[#allocation84_spill] sm:$0xff] %v14946_v25  ;;  %v2831_v62 = vmax.f32 %v19258_v60, %v2799_v24  ;;  %v2932_v20 = vadd.f32 %v12857_v48, %v2830_v14  ;;  %v3089_v43 = vsel %vm19262_vm13, 0.0, %v3047_v21  ;;  %v3091_v53 = vsel %vm19264_vm14, 0.0, %v3045_v29  ;;  %v2589_v60 = vpop.f32.mrf.mxu2  ;;  %3868 = vmatpush.bf16.msrb.mxu3 %v14960_v3  ;;  %v2638_v14 = vpop.f32.mrf.mxu3  ;;  %v19267_v25 = vld [vmem:[#allocation136_spill] sm:$0xff]  ;;  %vm19302_vm14 = vmmov %vm19272_vm1 }
 0x392   :  { %19259 = vst [vmem:[#allocation83_spill] sm:$0xff] %v14962_v10  ;;  %v14980_v24 = vpack.c.bf16 %v3091_v53, %v3089_v43  ;;  %v2590_v56 = vadd.f32 %v2589_v60, %v2411_v27  ;;  %v2639_v46 = vadd.f32 %v2638_v14, %v2460_v55  ;;  %v2463_v39 = vpop.f32.mrf.mxu1  ;;  %v19269_v43 = vld [vmem:[#allocation103_spill] sm:$0xff]  ;;  %v19271_v27 = vld [vmem:[#allocation62_spill] sm:$0xff]  ;;  %v19274_v60 = vld [vmem:[#allocation104_spill] sm:$0xff] }
 0x393   :  { %v2933_v34 = vadd.f32 %v12855_v37, %v2831_v62  ;;  %v2964_v21 = vmax.f32 %v2932_v20, 0.0  ;;  %v2414_v15 = vpop.f32.mrf.mxu0  ;;  %v14982_v62 = vor.u32 %v11040_v51, %v9396_v9  ;;  %v19270_v53 = vmax.f32 %v19268_v26, %v19269_v43 }
 0x394   :  { %19265 = vst [vmem:[#allocation85_spill] sm:$0xff] %v14980_v24  ;;  %v2800_v33 = vmax.f32 %v19266_v7, %v2590_v56  ;;  %v2801_v11 = vmax.f32 %v19267_v25, %v2639_v46  ;;  %9320 = vmatmul.msk.bf16.gmra.mxu1 %vm18520_vm6, %v19243_v5  ;;  %v19276_v56 = vld [vmem:[#allocation24_spill] sm:$0xff] }
 0x395   :  { %v2965_v50 = vmax.f32 %v2933_v34, 0.0  ;;  %v3028_v29 = vrot.slane %v2964_v21, 7  ;;  %3770 = vmatpush.bf16.msra.mxu1 %v14982_v62  ;;  %3535 = vmatmul.bf16.gmra.mxu2 %v19271_v27  ;;  %v19273_v34 = vld [vmem:[#allocation102_spill] sm:$0xff] }
 0x396   :  { %v2832_v20 = vmax.f32 %v19270_v53, %v2800_v33  ;;  %v19275_v9 = vmax.f32 %v19273_v34, %v19274_v60  ;;  %9329 = vmatmul.msk.bf16.gmra.mxu3 %vm18520_vm6, %v19276_v56  ;;  %v19279_v60 = vld [vmem:[#allocation137_spill] sm:$0xff] }
 0x397   :  { %v3029_v8 = vrot.slane %v2965_v50, 7  ;;  %v3042_v55 = vsel %vm19272_vm1, %v3026_v0, %v3028_v29 }
 0x398   :  { %v2833_v51 = vmax.f32 %v19275_v9, %v2801_v11  ;;  %v2934_v33 = vadd.f32 %v12857_v48, %v2832_v20 }
 0x399   :  { %v3043_v25 = vsel %vm19277_vm10, %v3027_v44, %v3029_v8  ;;  %v2592_v14 = vpop.f32.mrf.mxu2  ;;  %v2641_v43 = vpop.f32.mrf.mxu3  ;;  %vm19309_vm10 = vmmov %vm19272_vm1 }
 0x39a   :  { %v2935_v26 = vadd.f32 %v12855_v37, %v2833_v51  ;;  %v2966_v46 = vmax.f32 %v2934_v33, 0.0  ;;  %v2593_v7 = vadd.f32 %v2592_v14, %v2414_v15  ;;  %v2642_v27 = vadd.f32 %v2641_v43, %v2463_v39  ;;  %v2465_v5 = vpop.f32.mrf.mxu1  ;;  %v19283_v51 = vld [vmem:[#allocation108_spill] sm:$0xff]  ;;  %v19287_v39 = vld [vmem:[#allocation109_spill] sm:$0xff] }
 0x39b   :  { %v2416_v53 = vpop.f32.mrf.mxu0  ;;  %v19284_v13 = vmax.f32 %v19282_v42, %v19283_v51 }
 0x39c   :  { %v2967_v0 = vmax.f32 %v2935_v26, 0.0  ;;  %v15004_v34 = vpack.c.bf16 %v2966_v46, %v2964_v21  ;;  %v3030_v11 = vrot.slane %v2966_v46, 7  ;;  %v2802_v9 = vmax.f32 %v19279_v60, %v2593_v7  ;;  %v19286_v26 = vld [vmem:[#allocation107_spill] sm:$0xff]  ;;  %v19291_v7 = vld [vmem:[#allocation38_spill] sm:$0xff] }
 0x39d   :  { %v2803_v20 = vmax.f32 %v19281_v36, %v2642_v27  ;;  %v19288_v14 = vmax.f32 %v19286_v26, %v19287_v39  ;;  %vm19292_vm15 = vnez %v19291_v7  ;;  %v19293_v27 = vld [vmem:[#allocation37_spill] sm:$0xff]  ;;  %v19297_v26 = vld [vmem:[#allocation139_spill] sm:$0xff] }
 0x39e   :  { %19278 = vst [vmem:[#allocation20_spill] sm:$0xff] %v15004_v34  ;;  %v15007_v58 = vpack.c.bf16 %v2967_v0, %v2965_v50  ;;  %v3031_v44 = vrot.slane %v2967_v0, 7  ;;  %v2834_v33 = vmax.f32 %v19284_v13, %v2802_v9  ;;  %v3040_v15 = vsel %vm19285_vm9, %v3028_v29, %v3030_v11  ;;  %vm19310_vm9 = vmmov %vm19272_vm1 }
 0x39f   :  { %v2835_v21 = vmax.f32 %v19288_v14, %v2803_v20  ;;  %v15018_v43 = vpack.c.bf16 %v3040_v15, %v3042_v55  ;;  %v3093_v36 = vsel %vm19292_vm15, 0.0, %v3043_v25  ;;  %vm19294_vm13 = vnez %v19293_v27  ;;  %v19298_v14 = vld [vmem:[#allocation140_spill] sm:$0xff]  ;;  %vm19314_vm15 = vmmov %vm19272_vm1 }
 0x3a0   :  { %19280 = vst [vmem:[#allocation19_spill] sm:$0xff] %v15007_v58  ;;  %v3041_v50 = vsel %vm19290_vm7, %v3029_v8, %v3031_v44  ;;  %v2936_v46 = vadd.f32 %v12857_v48, %v2834_v33  ;;  %v19300_v27 = vld [vmem:[#allocation112_spill] sm:$0xff]  ;;  %vm19312_vm7 = vmmov %vm19272_vm1 }
 0x3a1   :  { %19289 = vst [vmem:[#allocation86_spill] sm:$0xff] %v15018_v43  ;;  %v3095_v13 = vsel %vm19294_vm13, 0.0, %v3041_v50  ;;  %v2937_v42 = vadd.f32 %v12855_v37, %v2835_v21  ;;  %v2594_v29 = vpop.f32.mrf.mxu2  ;;  %v2643_v55 = vpop.f32.mrf.mxu3  ;;  %v19299_v50 = vld [vmem:[#allocation110_spill] sm:$0xff] }
 0x3a2   :  { %v15028_v0 = vpack.c.bf16 %v3095_v13, %v3093_v36  ;;  %v2968_v60 = vmax.f32 %v2936_v46, 0.0  ;;  %v2595_v9 = vadd.f32 %v2594_v29, %v2416_v53  ;;  %v2644_v15 = vadd.f32 %v2643_v55, %v2465_v5  ;;  %v15030_v8 = vpop.f32.mrf.mxu1  ;;  %v19303_v46 = vld [vmem:[#allocation111_spill] sm:$0xff]  ;;  %v19304_v5 = vld [vmem:[#allocation113_spill] sm:$0xff] }
 0x3a3   :  { %v3403_v20 = vpop.f32.mrf.mxu0  ;;  %v2969_v51 = vmax.f32 %v2937_v42, 0.0  ;;  %19296 = vst [vmem:[#allocation87_spill] sm:$0xff] %v15030_v8  ;;  %v19301_v21 = vmax.f32 %v19299_v50, %v19300_v27  ;;  %v19305_v36 = vmax.f32 %v19303_v46, %v19304_v5  ;;  %v19315_v5 = vld [vmem:[#allocation3_spill] sm:$0xff]  ;;  %v19362_v8 = vld [vmem:[#allocation122_spill] sm:$0xff] }
 0x3a4   :  { %19295 = vst [vmem:[#allocation89_spill] sm:$0xff] %v15028_v0  ;;  %v3032_v33 = vrot.slane %v2968_v60, 7  ;;  %v2804_v39 = vmax.f32 %v19297_v26, %v2595_v9  ;;  %v2805_v7 = vmax.f32 %v19298_v14, %v2644_v15  ;;  %9321 = vmatmul.msk.bf16.gmra.mxu1 %vm18520_vm6, %v19276_v56  ;;  %vm19316_vm13 = vnez %v19315_v5  ;;  %v9568_v56 = vld [vmem:[%s18165_s5 + $0x2d0] sm:$0xf] }
 0x3a5   :  { %v3033_v25 = vrot.slane %v2969_v51, 7 }
 0x3a6   :  { %v2836_v58 = vmax.f32 %v19301_v21, %v2804_v39  ;;  %v3038_v53 = vsel %vm19302_vm14, %v3030_v11, %v3032_v33  ;;  %v2837_v13 = vmax.f32 %v19305_v36, %v2805_v7  ;;  %v3071_v36 = vsel %vm19316_vm13, 0.0, %v14562_v35 }
 0x3a7   :  { %v3039_v42 = vsel %vm19272_vm1, %v3031_v44, %v3033_v25 }
 0x3a8   :  { %v2938_v29 = vadd.f32 %v12857_v48, %v2836_v58  ;;  %v2939_v9 = vadd.f32 %v12855_v37, %v2837_v13 }
 0x3a9   :  { %v3501_v55 = vpop.f32.mrf.mxu2  ;;  %v3550_v26 = vpop.f32.mrf.mxu3 }
 0x3aa   :  { %v2970_v15 = vmax.f32 %v2938_v29, 0.0  ;;  %v2971_v14 = vmax.f32 %v2939_v9, 0.0  ;;  %v15050_v50 = vadd.f32 %v3550_v26, %v3501_v55  ;;  %v15052_v11 = vpop.f32.mrf.mxu1  ;;  %v19321_v29 = vld [vmem:[#allocation43_spill] sm:$0xff] }
 0x3ab   :  { %v15048_v39 = vpop.f32.mrf.mxu0  ;;  %19306 = vst [vmem:[#allocation90_spill] sm:$0xff] %v15052_v11  ;;  %v19345_v11 = vld [vmem:[#allocation36_spill] sm:$0xff] }
 0x3ac   :  { %v15054_v27 = vpack.c.bf16 %v2970_v15, %v2968_v60  ;;  %v3034_v7 = vrot.slane %v2970_v15, 7  ;;  %v15056_v21 = vpack.c.bf16 %v2971_v14, %v2969_v51  ;;  %v3035_v44 = vrot.slane %v2971_v14, 7 }
 0x3ae   :  { %19307 = vst [vmem:[#allocation91_spill] sm:$0xff] %v15054_v27  ;;  %v3066_v48 = vsel %vm19309_vm10, %v3034_v7, %v14541_v54  ;;  %v3036_v37 = vsel %vm19310_vm9, %v3032_v33, %v3034_v7  ;;  %v3067_v46 = vsel %vm19312_vm7, %v3035_v44, %v14546_v2  ;;  %v3037_v51 = vsel %vm19314_vm15, %v3033_v25, %v3035_v44  ;;  %v19317_v54 = vld [vmem:[#allocation2_spill] sm:$0xff] }
 0x3af   :  { %19308 = vst [vmem:[#allocation92_spill] sm:$0xff] %v15056_v21  ;;  %v15064_v58 = vpack.c.bf16 %v14554_v16, %v3066_v48  ;;  %v15069_v60 = vpack.c.bf16 %v3036_v37, %v3038_v53  ;;  %vm19318_vm14 = vnez %v19317_v54  ;;  %v19319_v33 = vld [vmem:[#allocation42_spill] sm:$0xff]  ;;  %vm19322_vm10 = vnez %v19321_v29  ;;  %v19324_v53 = vld [vmem:[#allocation5_spill] sm:$0xff] }
 0x3b0   :  { %v3069_v13 = vsel %vm19318_vm14, 0.0, %v3067_v46  ;;  %vm19320_vm1 = vnez %v19319_v33  ;;  %v3099_v9 = vsel %vm19322_vm10, 0.0, %v3037_v51  ;;  %vm19325_vm9 = vnez %v19324_v53  ;;  %v19327_v51 = vld [vmem:[#allocation10_spill] sm:$0xff] }
 0x3b1   :  { %19311 = vst [vmem:[#allocation93_spill] sm:$0xff] %v15064_v58  ;;  %v3097_v16 = vsel %vm19320_vm1, 0.0, %v3039_v42  ;;  %v15082_v55 = vpack.c.bf16 %v3071_v36, %v3069_v13  ;;  %v3503_v2 = vpop.f32.mrf.mxu2  ;;  %9414 = vmatmul.msk.bf16.vlgmr.msrb.gmra.mxu0 %vm19325_vm9, %v15064_v58  ;;  %9462 = vmatmul.msk.bf16.vlgmr.msrb.gmra.mxu2 %vm19325_vm9, %v15064_v58  ;;  %v3552_v35 = vpop.f32.mrf.mxu3  ;;  %vm19328_vm7 = vnez %v19327_v51  ;;  %vm19346_vm1 = vnez %v19345_v11  ;;  %v9554_v11 = vld [vmem:[%s18165_s5 + $0x2b8] sm:$0xf0] }
 0x3b2   :  { %19313 = vst [vmem:[#allocation26_spill] sm:$0xff] %v15069_v60  ;;  %v15090_v18 = vpack.c.bf16 %v3099_v9, %v3097_v16  ;;  %v15092_v15 = vadd.f32 %v3552_v35, %v3503_v2  ;;  %v3452_v42 = vpop.f32.mrf.mxu1 }
 0x3b3   :  { %19323 = vst [vmem:[#allocation25_spill] sm:$0xff] %v15082_v55  ;;  %v3408_v25 = vpop.f32.mrf.mxu0  ;;  %9498 = vmatmul.msk.bf16.vlgmr.msrb.gmra.mxu3 %vm18520_vm6, %v15082_v55  ;;  %v15096_v26 = vadd.f32 %v3452_v42, %v3403_v20  ;;  %v19329_v42 = vld [vmem:[#allocation16_spill] sm:$0xff] }
 0x3b4   :  { %19326 = vst [vmem:[#allocation95_spill] sm:$0xff] %v15090_v18  ;;  %9450 = vmatmul.msk.bf16.vlgmr.msra.gmra.mxu1 %vm18520_vm6, %v15082_v55  ;;  %vm19330_vm15 = vnez %v19329_v42 }
 0x3b9   :  { %v3506_v14 = vpop.f32.mrf.mxu2  ;;  %v3555_v7 = vpop.f32.mrf.mxu3 }
 0x3ba   :  { %v15102_v48 = vadd.f32 %v3555_v7, %v3506_v14  ;;  %v15104_v37 = vpop.f32.mrf.mxu1 }
 0x3bb   :  { %v15100_v44 = vpop.f32.mrf.mxu0 }
 0x3c1   :  { %v3508_v46 = vpop.f32.mrf.mxu2  ;;  %9419 = vmatmul.msk.bf16.gmra.mxu0 %vm19328_vm7, %v14603_v19  ;;  %9467 = vmatmul.msk.bf16.gmra.mxu2 %vm19328_vm7, %v14603_v19  ;;  %v3557_v20 = vpop.f32.mrf.mxu3 }
 0x3c2   :  { %v15112_v5 = vadd.f32 %v3557_v20, %v3508_v46  ;;  %v3457_v54 = vpop.f32.mrf.mxu1 }
 0x3c3   :  { %9499 = vmatmul.msk.bf16.gmra.mxu3 %vm18520_vm6, %v14613_v6  ;;  %v3413_v36 = vpop.f32.mrf.mxu0  ;;  %v15116_v13 = vadd.f32 %v3457_v54, %v3408_v25 }
 0x3c4   :  { %9451 = vmatmul.msk.bf16.gmra.mxu1 %vm18520_vm6, %v14613_v6 }
 0x3c9   :  { %v3511_v33 = vpop.f32.mrf.mxu2  ;;  %v3560_v16 = vpop.f32.mrf.mxu3 }
 0x3ca   :  { %v15120_v29 = vadd.f32 %v3560_v16, %v3511_v33  ;;  %v15122_v9 = vpop.f32.mrf.mxu1 }
 0x3cb   :  { %v15124_v2 = vpop.f32.mrf.mxu0 }
 0x3d1   :  { %v3513_v35 = vpop.f32.mrf.mxu2  ;;  %9424 = vmatmul.msk.bf16.gmra.mxu0 %vm19330_vm15, %v14649_v59  ;;  %9472 = vmatmul.msk.bf16.gmra.mxu2 %vm19330_vm15, %v14649_v59  ;;  %v3562_v25 = vpop.f32.mrf.mxu3 }
 0x3d2   :  { %v15132_v14 = vadd.f32 %v3562_v25, %v3513_v35  ;;  %v3462_v7 = vpop.f32.mrf.mxu1  ;;  %v19331_v25 = vld [vmem:[#allocation22_spill] sm:$0xff] }
 0x3d3   :  { %9500 = vmatmul.msk.bf16.gmra.mxu3 %vm18520_vm6, %v14659_v22  ;;  %v15136_v46 = vadd.f32 %v3462_v7, %v3413_v36  ;;  %v3418_v20 = vpop.f32.mrf.mxu0  ;;  %vm19332_vm13 = vnez %v19331_v25 }
 0x3d4   :  { %9452 = vmatmul.msk.bf16.gmra.mxu1 %vm18520_vm6, %v14659_v22 }
 0x3d9   :  { %v3516_v54 = vpop.f32.mrf.mxu2  ;;  %v3565_v33 = vpop.f32.mrf.mxu3 }
 0x3da   :  { %v15140_v16 = vadd.f32 %v3565_v33, %v3516_v54  ;;  %v15142_v6 = vpop.f32.mrf.mxu1 }
 0x3db   :  { %v15144_v42 = vpop.f32.mrf.mxu0 }
 0x3e1   :  { %v3518_v35 = vpop.f32.mrf.mxu2  ;;  %9429 = vmatmul.msk.bf16.gmra.mxu0 %vm19332_vm13, %v14695_v4  ;;  %9477 = vmatmul.msk.bf16.gmra.mxu2 %vm19332_vm13, %v14695_v4  ;;  %v3567_v36 = vpop.f32.mrf.mxu3 }
 0x3e2   :  { %v15152_v7 = vadd.f32 %v3567_v36, %v3518_v35  ;;  %v3467_v54 = vpop.f32.mrf.mxu1  ;;  %v19333_v35 = vld [vmem:[#allocation30_spill] sm:$0xff] }
 0x3e3   :  { %9501 = vmatmul.msk.bf16.gmra.mxu3 %vm18520_vm6, %v14721_v52  ;;  %v15156_v33 = vadd.f32 %v3467_v54, %v3418_v20  ;;  %v3423_v51 = vpop.f32.mrf.mxu0  ;;  %vm19334_vm14 = vnez %v19333_v35  ;;  %v9584_v20 = vld [vmem:[%s18165_s5 + $0x2f0] sm:$0xf]  ;;  %v9586_v35 = vld [vmem:[%s18165_s5 + $0x2f8] sm:$0xf0] }
 0x3e4   :  { %9453 = vmatmul.msk.bf16.gmra.mxu1 %vm18520_vm6, %v14721_v52 }
 0x3e9   :  { %v3521_v22 = vpop.f32.mrf.mxu2  ;;  %v3570_v59 = vpop.f32.mrf.mxu3 }
 0x3ea   :  { %v15160_v19 = vadd.f32 %v3570_v59, %v3521_v22  ;;  %v15162_v55 = vpop.f32.mrf.mxu1  ;;  %v11078_v59 = vld [vmem:[%s18165_s5 + $0x2f4] sm:$0xf0]  ;;  %v11077_v22 = vld [vmem:[%s18165_s5 + $0x2f4] sm:$0xf] }
 0x3eb   :  { %v15179_v54 = vor.u32 %v11078_v59, %v9584_v20  ;;  %v15188_v4 = vor.u32 %v11077_v22, %v9586_v35  ;;  %v11081_v20 = vld [vmem:[%s18165_s5 + $0x314] sm:$0xf]  ;;  %v9602_v59 = vld [vmem:[%s18165_s5 + $0x318] sm:$0xf0]  ;;  %v11075_v35 = vld [vmem:[%s18165_s5 + $0x2e4] sm:$0xf] }
 0x3ed   :  { %19335 = vst [vmem:[#allocation96_spill] sm:$0xff] %v15179_v54  ;;  %4055 = vmatpush.bf16.msra.mxu0 %v15179_v54  ;;  %4153 = vmatpush.bf16.msra.mxu2 %v15188_v4 }
 0x3ee   :  { %19336 = vst [vmem:[#allocation132_spill] sm:$0xff] %v15188_v4  ;;  %v11082_v4 = vld [vmem:[%s18165_s5 + $0x314] sm:$0xf0] }
 0x3f1   :  { %v3523_v25 = vpop.f32.mrf.mxu2  ;;  %9434 = vmatmul.msk.bf16.gmra.mxu0 %vm19334_vm14, %v14820_v1  ;;  %9482 = vmatmul.msk.bf16.gmra.mxu2 %vm19334_vm14, %v14820_v1  ;;  %v3572_v36 = vpop.f32.mrf.mxu3 }
 0x3f2   :  { %v15184_v1 = vadd.f32 %v3572_v36, %v3523_v25  ;;  %v3472_v52 = vpop.f32.mrf.mxu1  ;;  %v15199_v25 = vpop.f32.mrf.mxu0  ;;  %v15202_v36 = vor.u32 %v11081_v20, %v9602_v59  ;;  %v9578_v20 = vld [vmem:[%s18165_s5 + $0x2e8] sm:$0xf0] }
 0x3f3   :  { %9502 = vmatmul.msk.bf16.gmra.mxu3 %vm18520_vm6, %v14853_v30  ;;  %v15190_v53 = vadd.f32 %v3472_v52, %v3423_v51  ;;  %v9576_v52 = vld [vmem:[%s18165_s5 + $0x2e0] sm:$0xf]  ;;  %v11076_v51 = vld [vmem:[%s18165_s5 + $0x2e4] sm:$0xf0]  ;;  %v15221_v59 = vor.u32 %v11075_v35, %v9578_v20  ;;  %v9570_v20 = vld [vmem:[%s18165_s5 + $0x2d8] sm:$0xf0] }
 0x3f4   :  { %19337 = vst [vmem:[#allocation97_spill] sm:$0xff] %v15202_v36  ;;  %9454 = vmatmul.msk.bf16.gmra.mxu1 %vm18520_vm6, %v14853_v30  ;;  %v15215_v22 = vor.u32 %v11076_v51, %v9576_v52  ;;  %4208 = vmatpush.bf16.msra.mxu3 %v15202_v36  ;;  %v11074_v52 = vld [vmem:[%s18165_s5 + $0x2d4] sm:$0xf0]  ;;  %v11073_v51 = vld [vmem:[%s18165_s5 + $0x2d4] sm:$0xf] }
 0x3f5   :  { %19339 = vst [vmem:[#allocation98_spill] sm:$0xff] %v15221_v59  ;;  %4154 = vmatpush.bf16.msra.mxu2 %v15221_v59  ;;  %v15234_v35 = vor.u32 %v11074_v52, %v9568_v56  ;;  %v9600_v36 = vld [vmem:[%s18165_s5 + $0x310] sm:$0xf]  ;;  %v15249_v54 = vor.u32 %v11073_v51, %v9570_v20  ;;  %v11071_v52 = vld [vmem:[%s18165_s5 + $0x2c4] sm:$0xf] }
 0x3f6   :  { %19338 = vst [vmem:[#allocation99_spill] sm:$0xff] %v15215_v22  ;;  %4056 = vmatpush.bf16.msra.mxu0 %v15215_v22  ;;  %v15251_v56 = vor.u32 %v11082_v4, %v9600_v36  ;;  %v9562_v4 = vld [vmem:[%s18165_s5 + $0x2c8] sm:$0xf0] }
 0x3f7   :  { %19340 = vst [vmem:[#allocation100_spill] sm:$0xff] %v15234_v35  ;;  %v15270_v36 = vor.u32 %v11071_v52, %v9562_v4  ;;  %v11069_v52 = vld [vmem:[%s18165_s5 + $0x2b4] sm:$0xf] }
 0x3f8   :  { %19341 = vst [vmem:[#allocation31_spill] sm:$0xff] %v15249_v54  ;;  %4110 = vmatpush.bf16.msrb.mxu1 %v15251_v56 }
 0x3f9   :  { %v3526_v58 = vpop.f32.mrf.mxu2  ;;  %v3575_v30 = vpop.f32.mrf.mxu3  ;;  %19342 = vst [vmem:[#allocation32_spill] sm:$0xff] %v15251_v56  ;;  %4155 = vmatpush.bf16.msra.mxu2 %v15249_v54  ;;  %v15298_v56 = vor.u32 %v11069_v52, %v9554_v11  ;;  %v11066_v52 = vld [vmem:[%s18165_s5 + $0x294] sm:$0xf0] }
 0x3fa   :  { %v15239_v59 = vadd.f32 %v3575_v30, %v3526_v58  ;;  %v15241_v22 = vpop.f32.mrf.mxu1  ;;  %4057 = vmatpush.bf16.msra.mxu0 %v15234_v35  ;;  %v9560_v30 = vld [vmem:[%s18165_s5 + $0x2c0] sm:$0xf]  ;;  %v11072_v58 = vld [vmem:[%s18165_s5 + $0x2c4] sm:$0xf0]  ;;  %19344 = vst [vmem:[#allocation136_spill] sm:$0xff] %v15270_v36  ;;  %v3428_v20 = vpop.f32.mrf.mxu0 }
 0x3fb   :  { %v15264_v51 = vor.u32 %v11072_v58, %v9560_v30  ;;  %v9552_v30 = vld [vmem:[%s18165_s5 + $0x2b0] sm:$0xf]  ;;  %v11070_v58 = vld [vmem:[%s18165_s5 + $0x2b4] sm:$0xf0]  ;;  %19348 = vst [vmem:[#allocation103_spill] sm:$0xff] %v15298_v56 }
 0x3fd   :  { %19343 = vst [vmem:[#allocation134_spill] sm:$0xff] %v15264_v51  ;;  %4156 = vmatpush.bf16.msra.mxu2 %v15270_v36 }
 0x3fe   :  { %4058 = vmatpush.bf16.msra.mxu0 %v15264_v51  ;;  %v15289_v51 = vor.u32 %v11070_v58, %v9552_v30  ;;  %v9544_v30 = vld [vmem:[%s18165_s5 + $0x2a0] sm:$0xf]  ;;  %v11068_v58 = vld [vmem:[%s18165_s5 + $0x2a4] sm:$0xf0] }
 0x3ff   :  { %v15315_v11 = vor.u32 %v11068_v58, %v9544_v30  ;;  %v9538_v30 = vld [vmem:[%s18165_s5 + $0x298] sm:$0xf0] }
 0x400   :  { %19347 = vst [vmem:[#allocation101_spill] sm:$0xff] %v15289_v51 }
 0x401   :  { %v3528_v35 = vpop.f32.mrf.mxu2  ;;  %9439 = vmatmul.msk.bf16.gmra.mxu0 %vm19346_vm1, %v14962_v10  ;;  %9487 = vmatmul.msk.bf16.gmra.mxu2 %vm19346_vm1, %v14962_v10  ;;  %v3577_v4 = vpop.f32.mrf.mxu3  ;;  %19349 = vst [vmem:[#allocation102_spill] sm:$0xff] %v15315_v11 }
 0x402   :  { %v15294_v10 = vadd.f32 %v3577_v4, %v3528_v35  ;;  %v3477_v54 = vpop.f32.mrf.mxu1  ;;  %4059 = vmatpush.bf16.msra.mxu0 %v15289_v51  ;;  %v11067_v35 = vld [vmem:[%s18165_s5 + $0x2a4] sm:$0xf]  ;;  %4157 = vmatpush.bf16.msra.mxu2 %v15298_v56  ;;  %v15337_v56 = vpop.f32.mrf.mxu0 }
 0x403   :  { %9503 = vmatmul.msk.bf16.gmra.mxu3 %vm18520_vm6, %v14980_v24  ;;  %v15300_v21 = vadd.f32 %v3477_v54, %v3428_v20  ;;  %v9546_v54 = vld [vmem:[%s18165_s5 + $0x2a8] sm:$0xf0]  ;;  %v9536_v20 = vld [vmem:[%s18165_s5 + $0x290] sm:$0xf] }
 0x404   :  { %9455 = vmatmul.msk.bf16.gmra.mxu1 %vm18520_vm6, %v14980_v24  ;;  %v15326_v4 = vor.u32 %v11067_v35, %v9546_v54  ;;  %v11065_v24 = vld [vmem:[%s18165_s5 + $0x294] sm:$0xf]  ;;  %v15335_v58 = vor.u32 %v11066_v52, %v9536_v20  ;;  %v11064_v20 = vld [vmem:[%s18165_s5 + $0x284] sm:$0xf0]  ;;  %v11063_v52 = vld [vmem:[%s18165_s5 + $0x284] sm:$0xf] }
 0x405   :  { %v15340_v35 = vor.u32 %v11065_v24, %v9538_v30  ;;  %v9594_v30 = vld [vmem:[%s18165_s5 + $0x308] sm:$0xf0] }
 0x406   :  { %19350 = vst [vmem:[#allocation104_spill] sm:$0xff] %v15326_v4  ;;  %4060 = vmatpush.bf16.msra.mxu0 %v15315_v11  ;;  %4158 = vmatpush.bf16.msra.mxu2 %v15326_v4  ;;  %v9528_v11 = vld [vmem:[%s18165_s5 + $0x280] sm:$0xf] }
 0x407   :  { %19351 = vst [vmem:[#allocation137_spill] sm:$0xff] %v15335_v58  ;;  %v15357_v24 = vor.u32 %v11064_v20, %v9528_v11  ;;  %v19356_v20 = vld [vmem:[#allocation39_spill] sm:$0xff] }
 0x408   :  { %19352 = vst [vmem:[#allocation138_spill] sm:$0xff] %v15340_v35  ;;  %vm19357_vm10 = vnez %v19356_v20 }
 0x409   :  { %v3531_v51 = vpop.f32.mrf.mxu2  ;;  %v3580_v36 = vpop.f32.mrf.mxu3  ;;  %19353 = vst [vmem:[#allocation105_spill] sm:$0xff] %v15357_v24 }
 0x40a   :  { %v15342_v54 = vadd.f32 %v3580_v36, %v3531_v51  ;;  %v15344_v27 = vpop.f32.mrf.mxu1  ;;  %4061 = vmatpush.bf16.msra.mxu0 %v15335_v58  ;;  %4159 = vmatpush.bf16.msra.mxu2 %v15340_v35  ;;  %v9530_v51 = vld [vmem:[%s18165_s5 + $0x288] sm:$0xf0]  ;;  %v11079_v36 = vld [vmem:[%s18165_s5 + $0x304] sm:$0xf] }
 0x40b   :  { %v15368_v58 = vor.u32 %v11063_v52, %v9530_v51  ;;  %v15370_v4 = vor.u32 %v11079_v36, %v9594_v30  ;;  %v9592_v52 = vld [vmem:[%s18165_s5 + $0x300] sm:$0xf]  ;;  %v11080_v51 = vld [vmem:[%s18165_s5 + $0x304] sm:$0xf0]  ;;  %v3433_v36 = vpop.f32.mrf.mxu0 }
 0x40d   :  { %19354 = vst [vmem:[#allocation108_spill] sm:$0xff] %v15368_v58  ;;  %4209 = vmatpush.bf16.msra.mxu3 %v15370_v4 }
 0x40e   :  { %19355 = vst [vmem:[#allocation107_spill] sm:$0xff] %v15370_v4  ;;  %4062 = vmatpush.bf16.msra.mxu0 %v15357_v24  ;;  %4160 = vmatpush.bf16.msra.mxu2 %v15368_v58  ;;  %v19360_v58 = vld [vmem:[#allocation114_spill] sm:$0xff]  ;;  %v19361_v4 = vld [vmem:[#allocation115_spill] sm:$0xff] }
 0x411   :  { %v3533_v11 = vpop.f32.mrf.mxu2  ;;  %9444 = vmatmul.msk.bf16.gmra.mxu0 %vm19357_vm10, %v15018_v43  ;;  %9492 = vmatmul.msk.bf16.gmra.mxu2 %vm19357_vm10, %v15018_v43  ;;  %v3582_v35 = vpop.f32.mrf.mxu3  ;;  %v15391_v43 = vor.u32 %v11080_v51, %v9592_v52  ;;  %v19366_v52 = vld [vmem:[#allocation131_spill] sm:$0xff]  ;;  %vm19375_vm10 = vcmask 261120  }
 0x412   :  { %v15387_v30 = vadd.f32 %v3582_v35, %v3533_v11  ;;  %v3482_v20 = vpop.f32.mrf.mxu1  ;;  %4283 = vmatpush.bf16.msrb.mxu0 %v19360_v58  ;;  %4381 = vmatpush.bf16.msrb.mxu2 %v19361_v4  ;;  %v19363_v35 = vld [vmem:[#allocation116_spill] sm:$0xff]  ;;  %v19364_v11 = vld [vmem:[#allocation133_spill] sm:$0xff]  ;;  %vm19378_vm1 = vmmov %vm19375_vm10 }
 0x413   :  { %9504 = vmatmul.msk.bf16.gmra.mxu3 %vm18520_vm6, %v15028_v0  ;;  %19359 = vst [vmem:[#allocation38_spill] sm:$0xff] %v15391_v43  ;;  %v15394_v24 = vadd.f32 %v3482_v20, %v3433_v36  ;;  %4111 = vmatpush.bf16.msrb.mxu1 %v15391_v43  ;;  %v19368_v36 = vld [vmem:[#allocation135_spill] sm:$0xff] }
 0x414   :  { %19358 = vst [vmem:[#allocation109_spill] sm:$0xff] %v15387_v30  ;;  %4436 = vmatpush.bf16.msrb.mxu3 %v19362_v8  ;;  %9456 = vmatmul.msk.bf16.gmra.mxu1 %vm18520_vm6, %v15028_v0  ;;  %v19365_v30 = vld [vmem:[#allocation117_spill] sm:$0xff]  ;;  %v19367_v8 = vld [vmem:[#allocation118_spill] sm:$0xff]  ;;  %v19369_v43 = vld [vmem:[#allocation119_spill] sm:$0xff] }
 0x415   :  { %v19370_v0 = vld [vmem:[#allocation120_spill] sm:$0xff] }
 0x416   :  { %4284 = vmatpush.bf16.msrb.mxu0 %v19363_v35  ;;  %4382 = vmatpush.bf16.msrb.mxu2 %v19365_v30  ;;  %v19371_v35 = vld [vmem:[#allocation121_spill] sm:$0xff] }
 0x417   :  { %4338 = vmatpush.bf16.msra.mxu1 %v19364_v11  ;;  %v19372_v30 = vld [vmem:[#allocation45_spill] sm:$0xff] }
 0x418   :  { %4437 = vmatpush.bf16.msrb.mxu3 %v19366_v52  ;;  %vm19373_vm6 = vnez %v19372_v30  ;;  %v19382_v30 = vld [vmem:[#allocation128_spill] sm:$0xff] }
 0x419   :  { %v3536_v58 = vpop.f32.mrf.mxu2  ;;  %v3585_v20 = vpop.f32.mrf.mxu3 }
 0x41a   :  { %v15405_v51 = vadd.f32 %v3585_v20, %v3536_v58  ;;  %v15407_v4 = vpop.f32.mrf.mxu1  ;;  %4285 = vmatpush.bf16.msrb.mxu0 %v19367_v8  ;;  %4383 = vmatpush.bf16.msrb.mxu2 %v19369_v43  ;;  %v19377_v20 = vld [vmem:[#allocation124_spill] sm:$0xff]  ;;  %v15428_v8 = vpop.f32.mrf.mxu0 }
 0x41b   :  { %4339 = vmatpush.bf16.msra.mxu1 %v19368_v36  ;;  %v19379_v36 = vld [vmem:[#allocation125_spill] sm:$0xff] }
 0x41e   :  { %4286 = vmatpush.bf16.msrb.mxu0 %v19370_v0  ;;  %4384 = vmatpush.bf16.msrb.mxu2 %v19371_v35  ;;  %v19376_v0 = vld [vmem:[#allocation123_spill] sm:$0xff]  ;;  %v19380_v35 = vld [vmem:[#allocation126_spill] sm:$0xff] }
 0x421   :  { %v3538_v11 = vpop.f32.mrf.mxu2  ;;  %9449 = vmatmul.msk.bf16.gmra.mxu0 %vm19373_vm6, %v15069_v60  ;;  %9497 = vmatmul.msk.bf16.gmra.mxu2 %vm19373_vm6, %v15069_v60  ;;  %v3587_v52 = vpop.f32.mrf.mxu3 }
 0x422   :  { %v15420_v58 = vadd.f32 %v3587_v52, %v3538_v11  ;;  %v15424_v43 = vpop.f32.mrf.mxu1  ;;  %4287 = vmatpush.bf16.msrb.mxu0 %v19376_v0  ;;  %4385 = vmatpush.bf16.msrb.mxu2 %v19377_v20  ;;  %v19381_v52 = vld [vmem:[#allocation127_spill] sm:$0xff]  ;;  %v19384_v20 = vld [vmem:[#allocation130_spill] sm:$0xff] }
 0x423   :  { %9505 = vmatmul.msk.bf16.gmra.mxu3 %vm19375_vm10, %v15090_v18  ;;  %vm19385_vm10 = vmmov %vm19378_vm1 }
 0x424   :  { %19374 = vst [vmem:[#allocation37_spill] sm:$0xff] %v15420_v58  ;;  %9457 = vmatmul.msk.bf16.gmra.mxu1 %vm19378_vm1, %v15090_v18  ;;  %v19383_v58 = vld [vmem:[#allocation129_spill] sm:$0xff] }
 0x426   :  { %4288 = vmatpush.bf16.msrb.mxu0 %v19379_v36  ;;  %4386 = vmatpush.bf16.msrb.mxu2 %v19380_v35 }
 0x42a   :  { %v15434_v11 = vpop.f32.mrf.mxu1  ;;  %4289 = vmatpush.bf16.msrb.mxu0 %v19381_v52  ;;  %4387 = vmatpush.bf16.msrb.mxu2 %v19382_v30 }
 0x42e   :  { %v3723_v60 = vpop.f32.mrf.mxu0  ;;  %4290 = vmatpush.bf16.msrb.mxu0 %v19383_v58  ;;  %4388 = vmatpush.bf16.msrb.mxu2 %v19384_v20 }
 0x42f   :  { %v3724_v0 = vadd.f32 %v3723_v60, %v15096_v26  ;;  %v3455_v60 = vadd.f32 %v15104_v37, %v15048_v39 }
 0x431   :  { %4063 = vmatmul.bf16.vlgmr.msra.gmra.mxu0 %v14543_v31  ;;  %4161 = vmatmul.bf16.vlgmr.msra.gmra.mxu2 %v14543_v31 }
 0x432   :  { %4479 = vmatpush.bf16.msra.mxu0 %v14710_v23  ;;  %4577 = vmatpush.bf16.msra.mxu2 %v14719_v47  ;;  %v3772_v36 = vpop.f32.mrf.mxu1 }
 0x433   :  { %9614 = vmatmul.msk.bf16.vlgmr.msra.gmra.mxu3 %vm19378_vm1, %v14548_v40  ;;  %v15447_v30 = vadd.f32 %v3772_v36, %v3724_v0 }
 0x434   :  { %v3821_v35 = vpop.f32.mrf.mxu2  ;;  %4632 = vmatpush.bf16.msra.mxu3 %v14804_v38  ;;  %9606 = vmatmul.msk.bf16.vlgmr.msrb.gmra.mxu1 %vm19385_vm10, %v14548_v40  ;;  %vm19387_vm10 = vmmov %vm19378_vm1 }
 0x435   :  { %v3822_v26 = vadd.f32 %v3821_v35, %v15050_v50  ;;  %4534 = vmatpush.bf16.msrb.mxu1 %v14881_v57  ;;  %v19389_v35 = vld [vmem:[#allocation13_spill] sm:$0xff] }
 0x436   :  { %v3870_v58 = vpop.f32.mrf.mxu3  ;;  %v3725_v52 = vpop.f32.mrf.mxu0  ;;  %4480 = vmatpush.bf16.msra.mxu0 %v14734_v28  ;;  %4578 = vmatpush.bf16.msra.mxu2 %v14748_v63 }
 0x437   :  { %v15456_v23 = vadd.f32 %v3870_v58, %v3822_v26  ;;  %v3726_v47 = vadd.f32 %v3725_v52, %v3455_v60  ;;  %v19390_v60 = vld [vmem:[#allocation77_spill] sm:$0xff]  ;;  %v19391_v58 = vld [vmem:[#allocation79_spill] sm:$0xff] }
 0x438   :  { %4633 = vmatpush.bf16.msra.mxu3 %v14960_v3 }
 0x439   :  { %4535 = vmatpush.bf16.msrb.mxu1 %v14982_v62  ;;  %v3460_v62 = vadd.f32 %v15122_v9, %v15100_v44 }
 0x43a   :  { %4481 = vmatpush.bf16.msra.mxu0 %v14772_v12  ;;  %v3774_v38 = vpop.f32.mrf.mxu1  ;;  %4579 = vmatpush.bf16.msra.mxu2 %v14777_v17  ;;  %v19386_v12 = vld [vmem:[#allocation74_spill] sm:$0xff] }
 0x43b   :  { %v15464_v39 = vadd.f32 %v3774_v38, %v3726_v47  ;;  %v19392_v38 = vld [vmem:[#allocation81_spill] sm:$0xff] }
 0x43c   :  { %v3823_v50 = vpop.f32.mrf.mxu2 }
 0x43d   :  { %v3824_v28 = vadd.f32 %v3823_v50, %v15092_v15 }
 0x43e   :  { %v3872_v37 = vpop.f32.mrf.mxu3  ;;  %v3728_v0 = vpop.f32.mrf.mxu0  ;;  %4482 = vmatpush.bf16.msra.mxu0 %v14799_v45  ;;  %4580 = vmatpush.bf16.msra.mxu2 %v14818_v32 }
 0x43f   :  { %v15468_v63 = vadd.f32 %v3872_v37, %v3824_v28  ;;  %v3729_v57 = vadd.f32 %v3728_v0, %v15116_v13  ;;  %v19393_v37 = vld [vmem:[#allocation84_spill] sm:$0xff]  ;;  %v19394_v0 = vld [vmem:[#allocation65_spill] sm:$0xff] }
 0x441   :  { %4068 = vmatmul.bf16.gmra.mxu0 %v14589_v49  ;;  %4166 = vmatmul.bf16.gmra.mxu2 %v14589_v49 }
 0x442   :  { %4483 = vmatpush.bf16.msra.mxu0 %v14841_v41  ;;  %v3777_v17 = vpop.f32.mrf.mxu1  ;;  %4581 = vmatpush.bf16.msra.mxu2 %v19386_v12  ;;  %v19388_v41 = vld [vmem:[#allocation14_spill] sm:$0xff] }
 0x443   :  { %9615 = vmatmul.msk.bf16.gmra.mxu3 %vm19378_vm1, %v14592_v61  ;;  %v15478_v3 = vadd.f32 %v3777_v17, %v3729_v57  ;;  %v19395_v57 = vld [vmem:[#allocation52_spill] sm:$0xff] }
 0x444   :  { %v3826_v45 = vpop.f32.mrf.mxu2  ;;  %9607 = vmatmul.msk.bf16.gmra.mxu1 %vm19387_vm10, %v14592_v61  ;;  %vm19396_vm10 = vmmov %vm19378_vm1 }
 0x445   :  { %v3827_v32 = vadd.f32 %v3826_v45, %v15102_v48  ;;  %v3465_v45 = vadd.f32 %v15142_v6, %v15124_v2  ;;  %v19398_v2 = vld [vmem:[#allocation66_spill] sm:$0xff] }
 0x446   :  { %v3875_v15 = vpop.f32.mrf.mxu3  ;;  %v3730_v13 = vpop.f32.mrf.mxu0  ;;  %4484 = vmatpush.bf16.msra.mxu0 %v19388_v41  ;;  %4582 = vmatpush.bf16.msra.mxu2 %v19389_v35 }
 0x447   :  { %v15486_v20 = vadd.f32 %v3875_v15, %v3827_v32  ;;  %v3731_v36 = vadd.f32 %v3730_v13, %v3460_v62 }
 0x44a   :  { %4485 = vmatpush.bf16.msra.mxu0 %v19390_v60  ;;  %v3779_v26 = vpop.f32.mrf.mxu1  ;;  %4583 = vmatpush.bf16.msra.mxu2 %v19391_v58 }
 0x44b   :  { %v15491_v44 = vadd.f32 %v3779_v26, %v3731_v36 }
 0x44c   :  { %v3828_v48 = vpop.f32.mrf.mxu2 }
 0x44d   :  { %v3829_v9 = vadd.f32 %v3828_v48, %v15112_v5 }
 0x44e   :  { %v3877_v52 = vpop.f32.mrf.mxu3  ;;  %v3733_v47 = vpop.f32.mrf.mxu0  ;;  %4486 = vmatpush.bf16.msra.mxu0 %v19392_v38  ;;  %4584 = vmatpush.bf16.msra.mxu2 %v19393_v37 }
 0x44f   :  { %v15495_v50 = vadd.f32 %v3877_v52, %v3829_v9  ;;  %v3734_v28 = vadd.f32 %v3733_v47, %v15136_v46 }
 0x451   :  { %4073 = vmatmul.bf16.gmra.mxu0 %v19394_v0  ;;  %4171 = vmatmul.bf16.gmra.mxu2 %v19394_v0 }
 0x452   :  { %v3782_v17 = vpop.f32.mrf.mxu1 }
 0x453   :  { %9616 = vmatmul.msk.bf16.gmra.mxu3 %vm19378_vm1, %v19395_v57  ;;  %v15503_v12 = vadd.f32 %v3782_v17, %v3734_v28 }
 0x454   :  { %v3831_v5 = vpop.f32.mrf.mxu2  ;;  %9608 = vmatmul.msk.bf16.gmra.mxu1 %vm19396_vm10, %v19395_v57  ;;  %vm19399_vm10 = vmmov %vm19378_vm1 }
 0x455   :  { %v3832_v62 = vadd.f32 %v3831_v5, %v15120_v29  ;;  %v19397_v29 = vld [vmem:[#allocation9_spill] sm:$0xff] }
 0x456   :  { %v3880_v32 = vpop.f32.mrf.mxu3  ;;  %v3735_v46 = vpop.f32.mrf.mxu0 }
 0x457   :  { %v15510_v15 = vadd.f32 %v3880_v32, %v3832_v62  ;;  %v3736_v13 = vadd.f32 %v3735_v46, %v3465_v45 }
 0x45a   :  { %v3784_v41 = vpop.f32.mrf.mxu1 }
 0x45b   :  { %v15512_v36 = vadd.f32 %v3784_v41, %v3736_v13 }
 0x45c   :  { %v3833_v35 = vpop.f32.mrf.mxu2 }
 0x45d   :  { %v3834_v60 = vadd.f32 %v3833_v35, %v15132_v14  ;;  %v3470_v14 = vadd.f32 %v15162_v55, %v15144_v42  ;;  %v19400_v42 = vld [vmem:[#allocation41_spill] sm:$0xff] }
 0x45e   :  { %v3882_v26 = vpop.f32.mrf.mxu3  ;;  %v3738_v58 = vpop.f32.mrf.mxu0 }
 0x45f   :  { %v15515_v48 = vadd.f32 %v3882_v26, %v3834_v60  ;;  %v3739_v6 = vadd.f32 %v3738_v58, %v15156_v33 }
 0x461   :  { %4078 = vmatmul.bf16.gmra.mxu0 %v19397_v29  ;;  %4176 = vmatmul.bf16.gmra.mxu2 %v19397_v29 }
 0x462   :  { %v3787_v9 = vpop.f32.mrf.mxu1 }
 0x463   :  { %9617 = vmatmul.msk.bf16.gmra.mxu3 %vm19378_vm1, %v19398_v2  ;;  %v15522_v52 = vadd.f32 %v3787_v9, %v3739_v6 }
 0x464   :  { %v3836_v47 = vpop.f32.mrf.mxu2  ;;  %9609 = vmatmul.msk.bf16.gmra.mxu1 %vm19399_vm10, %v19398_v2  ;;  %vm19402_vm10 = vmmov %vm19378_vm1 }
 0x465   :  { %v3837_v38 = vadd.f32 %v3836_v47, %v15140_v16  ;;  %v19401_v16 = vld [vmem:[#allocation72_spill] sm:$0xff] }
 0x466   :  { %v3885_v28 = vpop.f32.mrf.mxu3  ;;  %v3740_v37 = vpop.f32.mrf.mxu0 }
 0x467   :  { %v15529_v33 = vadd.f32 %v3885_v28, %v3837_v38  ;;  %v3741_v17 = vadd.f32 %v3740_v37, %v3470_v14 }
 0x46a   :  { %v3789_v5 = vpop.f32.mrf.mxu1 }
 0x46b   :  { %v15531_v45 = vadd.f32 %v3789_v5, %v3741_v17 }
 0x46c   :  { %v3838_v62 = vpop.f32.mrf.mxu2 }
 0x46d   :  { %v3839_v32 = vadd.f32 %v3838_v62, %v15152_v7  ;;  %v3475_v7 = vadd.f32 %v15241_v22, %v15199_v25  ;;  %v19403_v25 = vld [vmem:[#allocation78_spill] sm:$0xff]  ;;  %v19404_v22 = vld [vmem:[#allocation80_spill] sm:$0xff] }
 0x46e   :  { %v3887_v46 = vpop.f32.mrf.mxu3  ;;  %v3743_v13 = vpop.f32.mrf.mxu0 }
 0x46f   :  { %v15534_v41 = vadd.f32 %v3887_v46, %v3839_v32  ;;  %v3744_v55 = vadd.f32 %v3743_v13, %v15190_v53 }
 0x471   :  { %4083 = vmatmul.bf16.gmra.mxu0 %v19400_v42  ;;  %4181 = vmatmul.bf16.gmra.mxu2 %v19400_v42 }
 0x472   :  { %v3792_v35 = vpop.f32.mrf.mxu1 }
 0x473   :  { %9618 = vmatmul.msk.bf16.gmra.mxu3 %vm19378_vm1, %v19401_v16  ;;  %v15541_v60 = vadd.f32 %v3792_v35, %v3744_v55 }
 0x474   :  { %v3841_v26 = vpop.f32.mrf.mxu2  ;;  %9610 = vmatmul.msk.bf16.gmra.mxu1 %vm19402_vm10, %v19401_v16  ;;  %vm19405_vm10 = vmmov %vm19378_vm1 }
 0x475   :  { %v3842_v58 = vadd.f32 %v3841_v26, %v15160_v19 }
 0x476   :  { %v3890_v6 = vpop.f32.mrf.mxu3  ;;  %v3745_v9 = vpop.f32.mrf.mxu0 }
 0x477   :  { %v15548_v53 = vadd.f32 %v3890_v6, %v3842_v58  ;;  %v3746_v47 = vadd.f32 %v3745_v9, %v3475_v7 }
 0x47a   :  { %v3794_v14 = vpop.f32.mrf.mxu1 }
 0x47b   :  { %v15550_v38 = vadd.f32 %v3794_v14, %v3746_v47 }
 0x47c   :  { %v3843_v28 = vpop.f32.mrf.mxu2 }
 0x47d   :  { %v3844_v37 = vadd.f32 %v3843_v28, %v15184_v1  ;;  %v3480_v1 = vadd.f32 %v15344_v27, %v15337_v56 }
 0x47e   :  { %v3892_v17 = vpop.f32.mrf.mxu3  ;;  %v3748_v5 = vpop.f32.mrf.mxu0 }
 0x47f   :  { %v15553_v62 = vadd.f32 %v3892_v17, %v3844_v37  ;;  %v3749_v19 = vadd.f32 %v3748_v5, %v15300_v21 }
 0x481   :  { %4088 = vmatmul.bf16.gmra.mxu0 %v19403_v25  ;;  %4186 = vmatmul.bf16.gmra.mxu2 %v19403_v25 }
 0x482   :  { %v3797_v32 = vpop.f32.mrf.mxu1 }
 0x483   :  { %9619 = vmatmul.msk.bf16.gmra.mxu3 %vm19378_vm1, %v19404_v22  ;;  %v15560_v46 = vadd.f32 %v3797_v32, %v3749_v19 }
 0x484   :  { %v3846_v13 = vpop.f32.mrf.mxu2  ;;  %9611 = vmatmul.msk.bf16.gmra.mxu1 %vm19405_vm10, %v19404_v22  ;;  %vm19407_vm10 = vmmov %vm19378_vm1 }
 0x485   :  { %v3847_v55 = vadd.f32 %v3846_v13, %v15239_v59  ;;  %v19406_v59 = vld [vmem:[#allocation19_spill] sm:$0xff] }
 0x486   :  { %v3895_v35 = vpop.f32.mrf.mxu3  ;;  %v3750_v26 = vpop.f32.mrf.mxu0 }
 0x487   :  { %v15567_v21 = vadd.f32 %v3895_v35, %v3847_v55  ;;  %v3751_v7 = vadd.f32 %v3750_v26, %v3480_v1 }
 0x48a   :  { %v3799_v58 = vpop.f32.mrf.mxu1 }
 0x48b   :  { %v15569_v6 = vadd.f32 %v3799_v58, %v3751_v7  ;;  %v19408_v7 = vld [vmem:[#allocation87_spill] sm:$0xff] }
 0x48c   :  { %v3848_v9 = vpop.f32.mrf.mxu2  ;;  %v3488_v58 = vadd.f32 %v15424_v43, %v19408_v7 }
 0x48d   :  { %v3849_v47 = vadd.f32 %v3848_v9, %v15294_v10  ;;  %v3485_v10 = vadd.f32 %v15407_v4, %v15428_v8  ;;  %v19409_v9 = vld [vmem:[#allocation109_spill] sm:$0xff] }
 0x48e   :  { %v3897_v14 = vpop.f32.mrf.mxu3  ;;  %v3753_v28 = vpop.f32.mrf.mxu0 }
 0x48f   :  { %v15572_v37 = vadd.f32 %v3897_v14, %v3849_v47  ;;  %v3754_v27 = vadd.f32 %v3753_v28, %v15394_v24  ;;  %v19410_v28 = vld [vmem:[#allocation91_spill] sm:$0xff] }
 0x491   :  { %4093 = vmatmul.bf16.gmra.mxu0 %v15004_v34  ;;  %4191 = vmatmul.bf16.gmra.mxu2 %v15004_v34 }
 0x492   :  { %v3802_v56 = vpop.f32.mrf.mxu1 }
 0x493   :  { %9620 = vmatmul.msk.bf16.gmra.mxu3 %vm19378_vm1, %v19406_v59  ;;  %v15579_v17 = vadd.f32 %v3802_v56, %v3754_v27  ;;  %v19411_v27 = vld [vmem:[#allocation92_spill] sm:$0xff] }
 0x494   :  { %v3851_v5 = vpop.f32.mrf.mxu2  ;;  %9612 = vmatmul.msk.bf16.gmra.mxu1 %vm19407_vm10, %v19406_v59  ;;  %vm19413_vm10 = vmmov %vm19378_vm1 }
 0x495   :  { %v3852_v19 = vadd.f32 %v3851_v5, %v15342_v54 }
 0x496   :  { %v3900_v32 = vpop.f32.mrf.mxu3  ;;  %v3755_v13 = vpop.f32.mrf.mxu0 }
 0x497   :  { %v15586_v24 = vadd.f32 %v3900_v32, %v3852_v19  ;;  %v3756_v1 = vadd.f32 %v3755_v13, %v3485_v10  ;;  %v19412_v19 = vld [vmem:[#allocation90_spill] sm:$0xff] }
 0x498   :  { %v3490_v43 = vadd.f32 %v15434_v11, %v19412_v19  ;;  %v19416_v11 = vld [vmem:[#allocation132_spill] sm:$0xff] }
 0x49a   :  { %v3804_v55 = vpop.f32.mrf.mxu1 }
 0x49b   :  { %v15588_v35 = vadd.f32 %v3804_v55, %v3756_v1 }
 0x49c   :  { %v3853_v26 = vpop.f32.mrf.mxu2 }
 0x49d   :  { %v3854_v47 = vadd.f32 %v3853_v26, %v19409_v9 }
 0x49e   :  { %v3902_v4 = vpop.f32.mrf.mxu3  ;;  %v3758_v8 = vpop.f32.mrf.mxu0 }
 0x49f   :  { %v15593_v54 = vadd.f32 %v3902_v4, %v3854_v47  ;;  %v3759_v14 = vadd.f32 %v3758_v8, %v3488_v58  ;;  %v19414_v47 = vld [vmem:[#allocation37_spill] sm:$0xff] }
 0x4a1   :  { %4098 = vmatmul.bf16.gmra.mxu0 %v19410_v28  ;;  %4196 = vmatmul.bf16.gmra.mxu2 %v19410_v28 }
 0x4a2   :  { %v3807_v56 = vpop.f32.mrf.mxu1 }
 0x4a3   :  { %9621 = vmatmul.msk.bf16.gmra.mxu3 %vm19378_vm1, %v19411_v27  ;;  %v15599_v5 = vadd.f32 %v3807_v56, %v3759_v14 }
 0x4a4   :  { %v3856_v10 = vpop.f32.mrf.mxu2  ;;  %9613 = vmatmul.msk.bf16.gmra.mxu1 %vm19413_vm10, %v19411_v27  ;;  %vm19419_vm10 = vmmov %vm19378_vm1 }
 0x4a5   :  { %v3857_v32 = vadd.f32 %v3856_v10, %v15405_v51  ;;  %v19415_v51 = vld [vmem:[#allocation96_spill] sm:$0xff] }
 0x4a6   :  { %v3905_v13 = vpop.f32.mrf.mxu3  ;;  %v3760_v1 = vpop.f32.mrf.mxu0 }
 0x4a7   :  { %v15606_v55 = vadd.f32 %v3905_v13, %v3857_v32  ;;  %v3761_v26 = vadd.f32 %v3760_v1, %v3490_v43  ;;  %v19417_v32 = vld [vmem:[#allocation97_spill] sm:$0xff] }
 0x4aa   :  { %v3809_v7 = vpop.f32.mrf.mxu1 }
 0x4ab   :  { %v15608_v58 = vadd.f32 %v3809_v7, %v3761_v26  ;;  %v19420_v7 = vld [vmem:[#allocation99_spill] sm:$0xff] }
 0x4ac   :  { %v3858_v9 = vpop.f32.mrf.mxu2 }
 0x4ad   :  { %v3859_v4 = vadd.f32 %v3858_v9, %v19414_v47  ;;  %v19421_v47 = vld [vmem:[#allocation98_spill] sm:$0xff] }
 0x4ae   :  { %v3907_v8 = vpop.f32.mrf.mxu3  ;;  %v4064_v14 = vpop.f32.mrf.mxu0 }
 0x4af   :  { %v15611_v56 = vadd.f32 %v3907_v8, %v3859_v4  ;;  %v19422_v4 = vld [vmem:[#allocation32_spill] sm:$0xff]  ;;  %v19423_v8 = vld [vmem:[#allocation107_spill] sm:$0xff] }
 0x4b1   :  { %4291 = vmatmul.bf16.vlgmr.msrb.gmra.mxu0 %v14543_v31  ;;  %4389 = vmatmul.bf16.vlgmr.msrb.gmra.mxu2 %v14543_v31 }
 0x4b2   :  { %4699 = vmatpush.bf16.msrb.mxu0 %v19415_v51  ;;  %4797 = vmatpush.bf16.msrb.mxu2 %v19416_v11  ;;  %v4113_v10 = vpop.f32.mrf.mxu1  ;;  %v19425_v51 = vld [vmem:[#allocation100_spill] sm:$0xff]  ;;  %v19426_v11 = vld [vmem:[#allocation31_spill] sm:$0xff] }
 0x4b3   :  { %9630 = vmatmul.msk.bf16.vlgmr.msrb.gmra.mxu3 %vm19378_vm1, %v14548_v40  ;;  %v4114_v19 = vadd.f32 %v4113_v10, %v4064_v14  ;;  %v19427_v10 = vld [vmem:[#allocation38_spill] sm:$0xff] }
 0x4b4   :  { %v4162_v43 = vpop.f32.mrf.mxu2  ;;  %4852 = vmatpush.bf16.msrb.mxu3 %v19417_v32  ;;  %9622 = vmatmul.msk.bf16.vlgmr.msra.gmra.mxu1 %vm19419_vm10, %v14548_v40  ;;  %vm19435_vm10 = vmmov %vm19378_vm1 }
 0x4b5   :  { %v15621_v13 = vadd.f32 %v4114_v19, %v15447_v30  ;;  %4754 = vmatpush.bf16.msra.mxu1 %v19422_v4 }
 0x4b6   :  { %v4211_v1 = vpop.f32.mrf.mxu3  ;;  %v4066_v26 = vpop.f32.mrf.mxu0  ;;  %4700 = vmatpush.bf16.msrb.mxu0 %v19420_v7  ;;  %4798 = vmatpush.bf16.msrb.mxu2 %v19421_v47  ;;  %v19429_v47 = vld [vmem:[#allocation134_spill] sm:$0xff] }
 0x4b7   :  { %19418 = vst [vmem:[#allocation139_spill] sm:$0xff] %v15621_v13  ;;  %v4212_v9 = vadd.f32 %v4211_v1, %v4162_v43  ;;  %v19639_v13 = vld [vmem:[#allocation75_spill] sm:$0xff] }
 0x4b8   :  { %4853 = vmatpush.bf16.msrb.mxu3 %v19423_v8  ;;  %v19430_v8 = vld [vmem:[#allocation136_spill] sm:$0xff] }
 0x4b9   :  { %v15630_v14 = vadd.f32 %v4212_v9, %v15456_v23  ;;  %4755 = vmatpush.bf16.msra.mxu1 %v19427_v10  ;;  %v19432_v9 = vld [vmem:[#allocation101_spill] sm:$0xff] }
 0x4ba   :  { %4701 = vmatpush.bf16.msrb.mxu0 %v19425_v51  ;;  %v4115_v30 = vpop.f32.mrf.mxu1  ;;  %4799 = vmatpush.bf16.msrb.mxu2 %v19426_v11 }
 0x4bb   :  { %19424 = vst [vmem:[#allocation140_spill] sm:$0xff] %v15630_v14  ;;  %v4116_v19 = vadd.f32 %v4115_v30, %v4066_v26  ;;  %v19433_v26 = vld [vmem:[#allocation103_spill] sm:$0xff] }
 0x4bc   :  { %v4164_v32 = vpop.f32.mrf.mxu2 }
 0x4bd   :  { %v15636_v43 = vadd.f32 %v4116_v19, %v15464_v39  ;;  %v19436_v19 = vld [vmem:[#allocation102_spill] sm:$0xff] }
 0x4be   :  { %v4213_v1 = vpop.f32.mrf.mxu3  ;;  %v4069_v7 = vpop.f32.mrf.mxu0  ;;  %4702 = vmatpush.bf16.msrb.mxu0 %v19429_v47  ;;  %4800 = vmatpush.bf16.msrb.mxu2 %v19430_v8  ;;  %v19440_v8 = vld [vmem:[#allocation138_spill] sm:$0xff] }
 0x4bf   :  { %19428 = vst [vmem:[#allocation110_spill] sm:$0xff] %v15636_v43  ;;  %v4214_v4 = vadd.f32 %v4213_v1, %v4164_v32  ;;  %v19437_v1 = vld [vmem:[#allocation104_spill] sm:$0xff] }
 0x4c0   :  { %v19634_v43 = vld [vmem:[#allocation40_spill] sm:$0xff] }
 0x4c1   :  { %v15641_v23 = vadd.f32 %v4214_v4, %v15468_v63  ;;  %4296 = vmatmul.bf16.gmra.mxu0 %v14589_v49  ;;  %4394 = vmatmul.bf16.gmra.mxu2 %v14589_v49  ;;  %v19439_v4 = vld [vmem:[#allocation137_spill] sm:$0xff] }
 0x4c2   :  { %4703 = vmatpush.bf16.msrb.mxu0 %v19432_v9  ;;  %v4118_v39 = vpop.f32.mrf.mxu1  ;;  %4801 = vmatpush.bf16.msrb.mxu2 %v19433_v26 }
 0x4c3   :  { %19431 = vst [vmem:[#allocation112_spill] sm:$0xff] %v15641_v23  ;;  %9631 = vmatmul.msk.bf16.gmra.mxu3 %vm19378_vm1, %v14592_v61  ;;  %v4119_v51 = vadd.f32 %v4118_v39, %v4069_v7 }
 0x4c4   :  { %v4167_v30 = vpop.f32.mrf.mxu2  ;;  %9623 = vmatmul.msk.bf16.gmra.mxu1 %vm19435_vm10, %v14592_v61  ;;  %v19442_v61 = vld [vmem:[#allocation105_spill] sm:$0xff]  ;;  %vm19446_vm10 = vmmov %vm19378_vm1 }
 0x4c5   :  { %v15650_v11 = vadd.f32 %v4119_v51, %v15478_v3 }
 0x4c6   :  { %v4216_v10 = vpop.f32.mrf.mxu3  ;;  %v4071_v63 = vpop.f32.mrf.mxu0  ;;  %4704 = vmatpush.bf16.msrb.mxu0 %v19436_v19  ;;  %4802 = vmatpush.bf16.msrb.mxu2 %v19437_v1 }
 0x4c7   :  { %19434 = vst [vmem:[#allocation111_spill] sm:$0xff] %v15650_v11  ;;  %v4217_v32 = vadd.f32 %v4216_v10, %v4167_v30  ;;  %v19443_v10 = vld [vmem:[#allocation108_spill] sm:$0xff] }
 0x4c9   :  { %v15657_v47 = vadd.f32 %v4217_v32, %v15486_v20 }
 0x4ca   :  { %4705 = vmatpush.bf16.msrb.mxu0 %v19439_v4  ;;  %v4120_v7 = vpop.f32.mrf.mxu1  ;;  %4803 = vmatpush.bf16.msrb.mxu2 %v19440_v8 }
 0x4cb   :  { %19438 = vst [vmem:[#allocation113_spill] sm:$0xff] %v15657_v47  ;;  %v4121_v3 = vadd.f32 %v4120_v7, %v4071_v63 }
 0x4cc   :  { %v4169_v9 = vpop.f32.mrf.mxu2 }
 0x4cd   :  { %v15662_v39 = vadd.f32 %v4121_v3, %v15491_v44 }
 0x4ce   :  { %v4218_v26 = vpop.f32.mrf.mxu3  ;;  %v4074_v51 = vpop.f32.mrf.mxu0  ;;  %4706 = vmatpush.bf16.msrb.mxu0 %v19442_v61  ;;  %4804 = vmatpush.bf16.msrb.mxu2 %v19443_v10 }
 0x4cf   :  { %19441 = vst [vmem:[#allocation3_spill] sm:$0xff] %v15662_v39  ;;  %v4219_v30 = vadd.f32 %v4218_v26, %v4169_v9 }
 0x4d1   :  { %v15667_v20 = vadd.f32 %v4219_v30, %v15495_v50  ;;  %4301 = vmatmul.bf16.gmra.mxu0 %v19394_v0  ;;  %4399 = vmatmul.bf16.gmra.mxu2 %v19394_v0  ;;  %v19484_v0 = vld [vmem:[#allocation56_spill] sm:$0xff] }
 0x4d2   :  { %v4123_v63 = vpop.f32.mrf.mxu1 }
 0x4d3   :  { %19444 = vst [vmem:[#allocation2_spill] sm:$0xff] %v15667_v20  ;;  %9632 = vmatmul.msk.bf16.gmra.mxu3 %vm19378_vm1, %v19395_v57  ;;  %v4124_v44 = vadd.f32 %v4123_v63, %v4074_v51 }
 0x4d4   :  { %v4172_v19 = vpop.f32.mrf.mxu2  ;;  %9624 = vmatmul.msk.bf16.gmra.mxu1 %vm19446_vm10, %v19395_v57  ;;  %vm19451_vm10 = vmmov %vm19378_vm1 }
 0x4d5   :  { %v15674_v32 = vadd.f32 %v4124_v44, %v15503_v12 }
 0x4d6   :  { %v4221_v61 = vpop.f32.mrf.mxu3  ;;  %v4076_v1 = vpop.f32.mrf.mxu0 }
 0x4d7   :  { %19445 = vst [vmem:[#allocation42_spill] sm:$0xff] %v15674_v32  ;;  %v4222_v50 = vadd.f32 %v4221_v61, %v4172_v19 }
 0x4d9   :  { %v15679_v4 = vadd.f32 %v4222_v50, %v15510_v15 }
 0x4da   :  { %v4125_v7 = vpop.f32.mrf.mxu1 }
 0x4db   :  { %19447 = vst [vmem:[#allocation43_spill] sm:$0xff] %v15679_v4  ;;  %v4126_v8 = vadd.f32 %v4125_v7, %v4076_v1 }
 0x4dc   :  { %v4174_v3 = vpop.f32.mrf.mxu2 }
 0x4dd   :  { %v15682_v9 = vadd.f32 %v4126_v8, %v15512_v36 }
 0x4de   :  { %v4223_v26 = vpop.f32.mrf.mxu3  ;;  %v4079_v51 = vpop.f32.mrf.mxu0 }
 0x4df   :  { %19448 = vst [vmem:[#allocation114_spill] sm:$0xff] %v15682_v9  ;;  %v4224_v30 = vadd.f32 %v4223_v26, %v4174_v3 }
 0x4e1   :  { %v15685_v12 = vadd.f32 %v4224_v30, %v15515_v48  ;;  %4306 = vmatmul.bf16.gmra.mxu0 %v19397_v29  ;;  %4404 = vmatmul.bf16.gmra.mxu2 %v19397_v29 }
 0x4e2   :  { %v4128_v15 = vpop.f32.mrf.mxu1 }
 0x4e3   :  { %19449 = vst [vmem:[#allocation115_spill] sm:$0xff] %v15685_v12  ;;  %9633 = vmatmul.msk.bf16.gmra.mxu3 %vm19378_vm1, %v19398_v2  ;;  %v4129_v10 = vadd.f32 %v4128_v15, %v4079_v51 }
 0x4e4   :  { %v4177_v63 = vpop.f32.mrf.mxu2  ;;  %9625 = vmatmul.msk.bf16.gmra.mxu1 %vm19451_vm10, %v19398_v2  ;;  %vm19456_vm10 = vmmov %vm19378_vm1 }
 0x4e5   :  { %v15692_v44 = vadd.f32 %v4129_v10, %v15522_v52 }
 0x4e6   :  { %v4226_v36 = vpop.f32.mrf.mxu3  ;;  %v4081_v19 = vpop.f32.mrf.mxu0 }
 0x4e7   :  { %19450 = vst [vmem:[#allocation122_spill] sm:$0xff] %v15692_v44  ;;  %v4227_v48 = vadd.f32 %v4226_v36, %v4177_v63 }
 0x4e9   :  { %v15697_v61 = vadd.f32 %v4227_v48, %v15529_v33 }
 0x4ea   :  { %v4130_v1 = vpop.f32.mrf.mxu1 }
 0x4eb   :  { %19452 = vst [vmem:[#allocation116_spill] sm:$0xff] %v15697_v61  ;;  %v4131_v50 = vadd.f32 %v4130_v1, %v4081_v19 }
 0x4ec   :  { %v4179_v7 = vpop.f32.mrf.mxu2 }
 0x4ed   :  { %v15700_v8 = vadd.f32 %v4131_v50, %v15531_v45 }
 0x4ee   :  { %v4228_v3 = vpop.f32.mrf.mxu3  ;;  %v4084_v26 = vpop.f32.mrf.mxu0 }
 0x4ef   :  { %19453 = vst [vmem:[#allocation133_spill] sm:$0xff] %v15700_v8  ;;  %v4229_v51 = vadd.f32 %v4228_v3, %v4179_v7 }
 0x4f1   :  { %v15703_v52 = vadd.f32 %v4229_v51, %v15534_v41  ;;  %4311 = vmatmul.bf16.gmra.mxu0 %v19400_v42  ;;  %4409 = vmatmul.bf16.gmra.mxu2 %v19400_v42 }
 0x4f2   :  { %v4133_v33 = vpop.f32.mrf.mxu1 }
 0x4f3   :  { %19454 = vst [vmem:[#allocation117_spill] sm:$0xff] %v15703_v52  ;;  %9634 = vmatmul.msk.bf16.gmra.mxu3 %vm19378_vm1, %v19401_v16  ;;  %v4134_v30 = vadd.f32 %v4133_v33, %v4084_v26 }
 0x4f4   :  { %v4182_v15 = vpop.f32.mrf.mxu2  ;;  %9626 = vmatmul.msk.bf16.gmra.mxu1 %vm19456_vm10, %v19401_v16  ;;  %vm19461_vm10 = vmmov %vm19378_vm1 }
 0x4f5   :  { %v15710_v10 = vadd.f32 %v4134_v30, %v15541_v60 }
 0x4f6   :  { %v4231_v45 = vpop.f32.mrf.mxu3  ;;  %v4086_v63 = vpop.f32.mrf.mxu0 }
 0x4f7   :  { %19455 = vst [vmem:[#allocation131_spill] sm:$0xff] %v15710_v10  ;;  %v4232_v41 = vadd.f32 %v4231_v45, %v4182_v15 }
 0x4f9   :  { %v15715_v36 = vadd.f32 %v4232_v41, %v15548_v53 }
 0x4fa   :  { %v4135_v19 = vpop.f32.mrf.mxu1 }
 0x4fb   :  { %19457 = vst [vmem:[#allocation118_spill] sm:$0xff] %v15715_v36  ;;  %v4136_v48 = vadd.f32 %v4135_v19, %v4086_v63 }
 0x4fc   :  { %v4184_v1 = vpop.f32.mrf.mxu2 }
 0x4fd   :  { %v15718_v50 = vadd.f32 %v4136_v48, %v15550_v38 }
 0x4fe   :  { %v4233_v7 = vpop.f32.mrf.mxu3  ;;  %v4089_v3 = vpop.f32.mrf.mxu0 }
 0x4ff   :  { %19458 = vst [vmem:[#allocation135_spill] sm:$0xff] %v15718_v50  ;;  %v4234_v26 = vadd.f32 %v4233_v7, %v4184_v1 }
 0x501   :  { %v15721_v60 = vadd.f32 %v4234_v26, %v15553_v62  ;;  %4316 = vmatmul.bf16.gmra.mxu0 %v19403_v25  ;;  %4414 = vmatmul.bf16.gmra.mxu2 %v19403_v25  ;;  %v19481_v25 = vld [vmem:[#allocation54_spill] sm:$0xff] }
 0x502   :  { %v4138_v53 = vpop.f32.mrf.mxu1 }
 0x503   :  { %19459 = vst [vmem:[#allocation119_spill] sm:$0xff] %v15721_v60  ;;  %9635 = vmatmul.msk.bf16.gmra.mxu3 %vm19378_vm1, %v19404_v22  ;;  %v4139_v51 = vadd.f32 %v4138_v53, %v4089_v3 }
 0x504   :  { %v4187_v33 = vpop.f32.mrf.mxu2  ;;  %9627 = vmatmul.msk.bf16.gmra.mxu1 %vm19461_vm10, %v19404_v22  ;;  %vm19466_vm10 = vmmov %vm19378_vm1 }
 0x505   :  { %v15728_v30 = vadd.f32 %v4139_v51, %v15560_v46 }
 0x506   :  { %v4236_v38 = vpop.f32.mrf.mxu3  ;;  %v4091_v15 = vpop.f32.mrf.mxu0 }
 0x507   :  { %19460 = vst [vmem:[#allocation120_spill] sm:$0xff] %v15728_v30  ;;  %v4237_v62 = vadd.f32 %v4236_v38, %v4187_v33 }
 0x509   :  { %v15733_v45 = vadd.f32 %v4237_v62, %v15567_v21 }
 0x50a   :  { %v4140_v63 = vpop.f32.mrf.mxu1 }
 0x50b   :  { %19462 = vst [vmem:[#allocation121_spill] sm:$0xff] %v15733_v45  ;;  %v4141_v41 = vadd.f32 %v4140_v63, %v4091_v15 }
 0x50c   :  { %v4189_v19 = vpop.f32.mrf.mxu2 }
 0x50d   :  { %v15736_v48 = vadd.f32 %v4141_v41, %v15569_v6 }
 0x50e   :  { %v4238_v1 = vpop.f32.mrf.mxu3  ;;  %v4094_v7 = vpop.f32.mrf.mxu0 }
 0x50f   :  { %19463 = vst [vmem:[#allocation123_spill] sm:$0xff] %v15736_v48  ;;  %v4239_v3 = vadd.f32 %v4238_v1, %v4189_v19 }
 0x511   :  { %v15739_v46 = vadd.f32 %v4239_v3, %v15572_v37  ;;  %4321 = vmatmul.bf16.gmra.mxu0 %v15004_v34  ;;  %4419 = vmatmul.bf16.gmra.mxu2 %v15004_v34 }
 0x512   :  { %v4143_v21 = vpop.f32.mrf.mxu1 }
 0x513   :  { %19464 = vst [vmem:[#allocation124_spill] sm:$0xff] %v15739_v46  ;;  %9636 = vmatmul.msk.bf16.gmra.mxu3 %vm19378_vm1, %v19406_v59  ;;  %v4144_v26 = vadd.f32 %v4143_v21, %v4094_v7 }
 0x514   :  { %v4192_v53 = vpop.f32.mrf.mxu2  ;;  %9628 = vmatmul.msk.bf16.gmra.mxu1 %vm19466_vm10, %v19406_v59  ;;  %vm19471_vm10 = vmmov %vm19378_vm1 }
 0x515   :  { %v15746_v51 = vadd.f32 %v4144_v26, %v15579_v17 }
 0x516   :  { %v4241_v6 = vpop.f32.mrf.mxu3  ;;  %v4096_v33 = vpop.f32.mrf.mxu0 }
 0x517   :  { %19465 = vst [vmem:[#allocation125_spill] sm:$0xff] %v15746_v51  ;;  %v4242_v37 = vadd.f32 %v4241_v6, %v4192_v53  ;;  %v19490_v51 = vld [vmem:[#allocation49_spill] sm:$0xff] }
 0x519   :  { %v15751_v38 = vadd.f32 %v4242_v37, %v15586_v24 }
 0x51a   :  { %v4145_v15 = vpop.f32.mrf.mxu1 }
 0x51b   :  { %19467 = vst [vmem:[#allocation126_spill] sm:$0xff] %v15751_v38  ;;  %v4146_v62 = vadd.f32 %v4145_v15, %v4096_v33 }
 0x51c   :  { %v4194_v63 = vpop.f32.mrf.mxu2 }
 0x51d   :  { %v15754_v41 = vadd.f32 %v4146_v62, %v15588_v35 }
 0x51e   :  { %v4243_v19 = vpop.f32.mrf.mxu3  ;;  %v4099_v1 = vpop.f32.mrf.mxu0 }
 0x51f   :  { %19468 = vst [vmem:[#allocation127_spill] sm:$0xff] %v15754_v41  ;;  %v4244_v7 = vadd.f32 %v4243_v19, %v4194_v63 }
 0x521   :  { %v15757_v17 = vadd.f32 %v4244_v7, %v15593_v54  ;;  %4326 = vmatmul.bf16.gmra.mxu0 %v19410_v28  ;;  %4424 = vmatmul.bf16.gmra.mxu2 %v19410_v28  ;;  %v19475_v7 = vld [vmem:[#allocation67_spill] sm:$0xff] }
 0x522   :  { %v4148_v24 = vpop.f32.mrf.mxu1 }
 0x523   :  { %19469 = vst [vmem:[#allocation128_spill] sm:$0xff] %v15757_v17  ;;  %9637 = vmatmul.msk.bf16.gmra.mxu3 %vm19378_vm1, %v19411_v27  ;;  %v4149_v3 = vadd.f32 %v4148_v24, %v4099_v1  ;;  %v19476_v24 = vld [vmem:[#allocation68_spill] sm:$0xff] }
 0x524   :  { %v4197_v21 = vpop.f32.mrf.mxu2  ;;  %9629 = vmatmul.msk.bf16.gmra.mxu1 %vm19471_vm10, %v19411_v27  ;;  %vm19477_vm10 = vmmov %vm19378_vm1 }
 0x525   :  { %v15764_v26 = vadd.f32 %v4149_v3, %v15599_v5 }
 0x526   :  { %v4246_v35 = vpop.f32.mrf.mxu3  ;;  %v4101_v53 = vpop.f32.mrf.mxu0 }
 0x527   :  { %19470 = vst [vmem:[#allocation129_spill] sm:$0xff] %v15764_v26  ;;  %v4247_v54 = vadd.f32 %v4246_v35, %v4197_v21 }
 0x529   :  { %v15769_v6 = vadd.f32 %v4247_v54, %v15606_v55 }
 0x52a   :  { %v4150_v33 = vpop.f32.mrf.mxu1 }
 0x52b   :  { %19472 = vst [vmem:[#allocation130_spill] sm:$0xff] %v15769_v6  ;;  %v4151_v37 = vadd.f32 %v4150_v33, %v4101_v53 }
 0x52c   :  { %v4199_v15 = vpop.f32.mrf.mxu2 }
 0x52d   :  { %v15772_v62 = vadd.f32 %v4151_v37, %v15608_v58 }
 0x52e   :  { %v4248_v63 = vpop.f32.mrf.mxu3  ;;  %v4292_v19 = vpop.f32.mrf.mxu0 }
 0x52f   :  { %19473 = vst [vmem:[#allocation74_spill] sm:$0xff] %v15772_v62  ;;  %v4249_v1 = vadd.f32 %v4248_v63, %v4199_v15  ;;  %v19487_v62 = vld [vmem:[#allocation11_spill] sm:$0xff] }
 0x531   :  { %v15775_v5 = vadd.f32 %v4249_v1, %v15611_v56  ;;  %4487 = vmatmul.bf16.vlgmr.msra.gmra.mxu0 %v19475_v7  ;;  %4585 = vmatmul.bf16.vlgmr.msra.gmra.mxu2 %v19475_v7  ;;  %v19478_v1 = vld [vmem:[#allocation70_spill] sm:$0xff] }
 0x532   :  { %v4341_v55 = vpop.f32.mrf.mxu1 }
 0x533   :  { %19474 = vst [vmem:[#allocation14_spill] sm:$0xff] %v15775_v5  ;;  %9646 = vmatmul.msk.bf16.vlgmr.msra.gmra.mxu3 %vm19378_vm1, %v19476_v24  ;;  %v15781_v3 = vadd.f32 %v4341_v55, %v4292_v19  ;;  %v19479_v19 = vld [vmem:[#allocation71_spill] sm:$0xff] }
 0x534   :  { %v4390_v21 = vpop.f32.mrf.mxu2  ;;  %9638 = vmatmul.msk.bf16.vlgmr.msrb.gmra.mxu1 %vm19477_vm10, %v19476_v24  ;;  %vm19480_vm10 = vmmov %vm19378_vm1 }
 0x536   :  { %v4439_v35 = vpop.f32.mrf.mxu3  ;;  %v4294_v58 = vpop.f32.mrf.mxu0 }
 0x537   :  { %v15785_v53 = vadd.f32 %v4439_v35, %v4390_v21 }
 0x53a   :  { %v4343_v56 = vpop.f32.mrf.mxu1 }
 0x53b   :  { %v15787_v54 = vadd.f32 %v4343_v56, %v4294_v58 }
 0x53c   :  { %v4392_v33 = vpop.f32.mrf.mxu2 }
 0x53e   :  { %v4441_v37 = vpop.f32.mrf.mxu3  ;;  %v4297_v15 = vpop.f32.mrf.mxu0 }
 0x53f   :  { %v15789_v63 = vadd.f32 %v4441_v37, %v4392_v33 }
 0x541   :  { %4492 = vmatmul.bf16.gmra.mxu0 %v19478_v1  ;;  %4590 = vmatmul.bf16.gmra.mxu2 %v19478_v1 }
 0x542   :  { %v4346_v55 = vpop.f32.mrf.mxu1 }
 0x543   :  { %9647 = vmatmul.msk.bf16.gmra.mxu3 %vm19378_vm1, %v19479_v19  ;;  %v15795_v27 = vadd.f32 %v4346_v55, %v4297_v15  ;;  %v19482_v15 = vld [vmem:[#allocation46_spill] sm:$0xff] }
 0x544   :  { %v4395_v21 = vpop.f32.mrf.mxu2  ;;  %9639 = vmatmul.msk.bf16.gmra.mxu1 %vm19480_vm10, %v19479_v19  ;;  %vm19483_vm10 = vmmov %vm19378_vm1 }
 0x546   :  { %v4444_v35 = vpop.f32.mrf.mxu3  ;;  %v4299_v28 = vpop.f32.mrf.mxu0 }
 0x547   :  { %v15799_v58 = vadd.f32 %v4444_v35, %v4395_v21 }
 0x54a   :  { %v4348_v56 = vpop.f32.mrf.mxu1 }
 0x54b   :  { %v15801_v33 = vadd.f32 %v4348_v56, %v4299_v28 }
 0x54c   :  { %v4397_v37 = vpop.f32.mrf.mxu2 }
 0x54e   :  { %v4446_v59 = vpop.f32.mrf.mxu3  ;;  %v4302_v34 = vpop.f32.mrf.mxu0 }
 0x54f   :  { %v15803_v22 = vadd.f32 %v4446_v59, %v4397_v37 }
 0x551   :  { %4497 = vmatmul.bf16.gmra.mxu0 %v19481_v25  ;;  %4595 = vmatmul.bf16.gmra.mxu2 %v19481_v25 }
 0x552   :  { %v4351_v55 = vpop.f32.mrf.mxu1 }
 0x553   :  { %9648 = vmatmul.msk.bf16.gmra.mxu3 %vm19378_vm1, %v19482_v15  ;;  %v15809_v16 = vadd.f32 %v4351_v55, %v4302_v34  ;;  %v19485_v34 = vld [vmem:[#allocation47_spill] sm:$0xff] }
 0x554   :  { %v4400_v21 = vpop.f32.mrf.mxu2  ;;  %9640 = vmatmul.msk.bf16.gmra.mxu1 %vm19483_vm10, %v19482_v15  ;;  %vm19486_vm10 = vmmov %vm19378_vm1 }
 0x556   :  { %v4449_v35 = vpop.f32.mrf.mxu3  ;;  %v4304_v42 = vpop.f32.mrf.mxu0 }
 0x557   :  { %v15813_v28 = vadd.f32 %v4449_v35, %v4400_v21 }
 0x55a   :  { %v4353_v59 = vpop.f32.mrf.mxu1 }
 0x55b   :  { %v15815_v56 = vadd.f32 %v4353_v59, %v4304_v42 }
 0x55c   :  { %v4402_v37 = vpop.f32.mrf.mxu2 }
 0x55e   :  { %v4451_v2 = vpop.f32.mrf.mxu3  ;;  %v4307_v29 = vpop.f32.mrf.mxu0 }
 0x55f   :  { %v15817_v57 = vadd.f32 %v4451_v2, %v4402_v37 }
 0x561   :  { %4502 = vmatmul.bf16.gmra.mxu0 %v19484_v0  ;;  %4600 = vmatmul.bf16.gmra.mxu2 %v19484_v0 }
 0x562   :  { %v4356_v55 = vpop.f32.mrf.mxu1 }
 0x563   :  { %9649 = vmatmul.msk.bf16.gmra.mxu3 %vm19378_vm1, %v19485_v34  ;;  %v15823_v49 = vadd.f32 %v4356_v55, %v4307_v29  ;;  %v19488_v29 = vld [vmem:[#allocation48_spill] sm:$0xff] }
 0x564   :  { %v4405_v21 = vpop.f32.mrf.mxu2  ;;  %9641 = vmatmul.msk.bf16.gmra.mxu1 %vm19486_vm10, %v19485_v34  ;;  %vm19489_vm10 = vmmov %vm19378_vm1 }
 0x566   :  { %v4454_v35 = vpop.f32.mrf.mxu3  ;;  %v4309_v40 = vpop.f32.mrf.mxu0 }
 0x567   :  { %v15827_v42 = vadd.f32 %v4454_v35, %v4405_v21 }
 0x56a   :  { %v4358_v2 = vpop.f32.mrf.mxu1 }
 0x56b   :  { %v15829_v59 = vadd.f32 %v4358_v2, %v4309_v40 }
 0x56c   :  { %v4407_v37 = vpop.f32.mrf.mxu2 }
 0x56e   :  { %v4456_v31 = vpop.f32.mrf.mxu3  ;;  %v4312_v18 = vpop.f32.mrf.mxu0 }
 0x56f   :  { %v15831_v5 = vadd.f32 %v4456_v31, %v4407_v37 }
 0x571   :  { %4507 = vmatmul.bf16.gmra.mxu0 %v19487_v62  ;;  %4605 = vmatmul.bf16.gmra.mxu2 %v19487_v62 }
 0x572   :  { %v4361_v55 = vpop.f32.mrf.mxu1 }
 0x573   :  { %9650 = vmatmul.msk.bf16.gmra.mxu3 %vm19378_vm1, %v19488_v29  ;;  %v15837_v6 = vadd.f32 %v4361_v55, %v4312_v18  ;;  %v19491_v18 = vld [vmem:[#allocation59_spill] sm:$0xff] }
 0x574   :  { %v4410_v21 = vpop.f32.mrf.mxu2  ;;  %9642 = vmatmul.msk.bf16.gmra.mxu1 %vm19489_vm10, %v19488_v29  ;;  %vm19492_vm10 = vmmov %vm19378_vm1  ;;  %v19496_v29 = vld [vmem:[#allocation62_spill] sm:$0xff] }
 0x576   :  { %v4459_v35 = vpop.f32.mrf.mxu3  ;;  %v4314_v26 = vpop.f32.mrf.mxu0 }
 0x577   :  { %v15841_v40 = vadd.f32 %v4459_v35, %v4410_v21 }
 0x57a   :  { %v4363_v31 = vpop.f32.mrf.mxu1 }
 0x57b   :  { %v15843_v2 = vadd.f32 %v4363_v31, %v4314_v26 }
 0x57c   :  { %v4412_v37 = vpop.f32.mrf.mxu2 }
 0x57e   :  { %v4461_v17 = vpop.f32.mrf.mxu3  ;;  %v4317_v41 = vpop.f32.mrf.mxu0 }
 0x57f   :  { %v15845_v38 = vadd.f32 %v4461_v17, %v4412_v37 }
 0x581   :  { %4512 = vmatmul.bf16.gmra.mxu0 %v19490_v51  ;;  %4610 = vmatmul.bf16.gmra.mxu2 %v19490_v51  ;;  %v19493_v51 = vld [vmem:[#allocation17_spill] sm:$0xff] }
 0x582   :  { %v4366_v55 = vpop.f32.mrf.mxu1 }
 0x583   :  { %9651 = vmatmul.msk.bf16.gmra.mxu3 %vm19378_vm1, %v19491_v18  ;;  %v15851_v46 = vadd.f32 %v4366_v55, %v4317_v41  ;;  %v19494_v41 = vld [vmem:[#allocation50_spill] sm:$0xff] }
 0x584   :  { %v4415_v21 = vpop.f32.mrf.mxu2  ;;  %9643 = vmatmul.msk.bf16.gmra.mxu1 %vm19492_vm10, %v19491_v18  ;;  %vm19495_vm10 = vmmov %vm19378_vm1 }
 0x586   :  { %v4464_v35 = vpop.f32.mrf.mxu3  ;;  %v4319_v48 = vpop.f32.mrf.mxu0 }
 0x587   :  { %v15855_v26 = vadd.f32 %v4464_v35, %v4415_v21 }
 0x58a   :  { %v4368_v17 = vpop.f32.mrf.mxu1 }
 0x58b   :  { %v15857_v31 = vadd.f32 %v4368_v17, %v4319_v48 }
 0x58c   :  { %v4417_v37 = vpop.f32.mrf.mxu2 }
 0x58e   :  { %v4466_v45 = vpop.f32.mrf.mxu3  ;;  %v4322_v30 = vpop.f32.mrf.mxu0 }
 0x58f   :  { %v15859_v60 = vadd.f32 %v4466_v45, %v4417_v37 }
 0x591   :  { %4517 = vmatmul.bf16.gmra.mxu0 %v19493_v51  ;;  %4615 = vmatmul.bf16.gmra.mxu2 %v19493_v51 }
 0x592   :  { %v4371_v55 = vpop.f32.mrf.mxu1 }
 0x593   :  { %9652 = vmatmul.msk.bf16.gmra.mxu3 %vm19378_vm1, %v19494_v41  ;;  %v15865_v50 = vadd.f32 %v4371_v55, %v4322_v30  ;;  %v19497_v30 = vld [vmem:[#allocation24_spill] sm:$0xff] }
 0x594   :  { %v4420_v21 = vpop.f32.mrf.mxu2  ;;  %9644 = vmatmul.msk.bf16.gmra.mxu1 %vm19495_vm10, %v19494_v41  ;;  %vm19498_vm10 = vmmov %vm19378_vm1 }
 0x596   :  { %v4469_v35 = vpop.f32.mrf.mxu3  ;;  %v4324_v18 = vpop.f32.mrf.mxu0 }
 0x597   :  { %v15869_v48 = vadd.f32 %v4469_v35, %v4420_v21 }
 0x59a   :  { %v4373_v45 = vpop.f32.mrf.mxu1 }
 0x59b   :  { %v15871_v17 = vadd.f32 %v4373_v45, %v4324_v18 }
 0x59c   :  { %v4422_v37 = vpop.f32.mrf.mxu2 }
 0x59e   :  { %v4471_v36 = vpop.f32.mrf.mxu3  ;;  %v4327_v51 = vpop.f32.mrf.mxu0 }
 0x59f   :  { %v15873_v10 = vadd.f32 %v4471_v36, %v4422_v37 }
 0x5a1   :  { %4522 = vmatmul.bf16.gmra.mxu0 %v19496_v29  ;;  %4620 = vmatmul.bf16.gmra.mxu2 %v19496_v29 }
 0x5a2   :  { %v4376_v55 = vpop.f32.mrf.mxu1 }
 0x5a3   :  { %9653 = vmatmul.msk.bf16.gmra.mxu3 %vm19378_vm1, %v19497_v30  ;;  %v15879_v52 = vadd.f32 %v4376_v55, %v4327_v51  ;;  %v19499_v51 = vld [vmem:[#allocation69_spill] sm:$0xff] }
 0x5a4   :  { %v4425_v21 = vpop.f32.mrf.mxu2  ;;  %9645 = vmatmul.msk.bf16.gmra.mxu1 %vm19498_vm10, %v19497_v30  ;;  %vm19502_vm10 = vmmov %vm19378_vm1 }
 0x5a6   :  { %v4474_v35 = vpop.f32.mrf.mxu3  ;;  %v4329_v41 = vpop.f32.mrf.mxu0 }
 0x5a7   :  { %v15883_v18 = vadd.f32 %v4474_v35, %v4425_v21  ;;  %v19501_v21 = vld [vmem:[#allocation15_spill] sm:$0xff] }
 0x5aa   :  { %v4378_v36 = vpop.f32.mrf.mxu1 }
 0x5ab   :  { %v15885_v45 = vadd.f32 %v4378_v36, %v4329_v41 }
 0x5ac   :  { %v4427_v37 = vpop.f32.mrf.mxu2 }
 0x5ae   :  { %v4476_v62 = vpop.f32.mrf.mxu3  ;;  %v4488_v29 = vpop.f32.mrf.mxu0 }
 0x5af   :  { %v15887_v8 = vadd.f32 %v4476_v62, %v4427_v37  ;;  %v4489_v61 = vadd.f32 %v4488_v29, %v15781_v3 }
 0x5b1   :  { %9658 = vmatmul.msk.bf16.vlgmr.msrb.gmra.mxu0 %vm19095_vm3, %v19499_v51  ;;  %9706 = vmatmul.msk.bf16.vlgmr.msrb.gmra.mxu2 %vm19095_vm3, %v19499_v51 }
 0x5b2   :  { %v4537_v41 = vpop.f32.mrf.mxu1 }
 0x5b3   :  { %9742 = vmatmul.msk.bf16.vlgmr.msrb.gmra.mxu3 %vm19378_vm1, %v19501_v21  ;;  %v15898_v35 = vadd.f32 %v4537_v41, %v4489_v61 }
 0x5b4   :  { %v4586_v36 = vpop.f32.mrf.mxu2  ;;  %9694 = vmatmul.msk.bf16.vlgmr.msra.gmra.mxu1 %vm19502_vm10, %v19501_v21  ;;  %vm19506_vm10 = vmmov %vm19378_vm1 }
 0x5b5   :  { %v4587_v62 = vadd.f32 %v4586_v36, %v15785_v53  ;;  %v19503_v36 = vld [vmem:[#allocation6_spill] sm:$0xff] }
 0x5b6   :  { %v4635_v37 = vpop.f32.mrf.mxu3  ;;  %v4490_v30 = vpop.f32.mrf.mxu0 }
 0x5b7   :  { %v15903_v3 = vadd.f32 %v4635_v37, %v4587_v62  ;;  %v4491_v29 = vadd.f32 %v4490_v30, %v15787_v54  ;;  %v19505_v54 = vld [vmem:[#allocation7_spill] sm:$0xff] }
 0x5ba   :  { %v4539_v55 = vpop.f32.mrf.mxu1 }
 0x5bb   :  { %v15906_v51 = vadd.f32 %v4539_v55, %v4491_v29 }
 0x5bc   :  { %v4588_v44 = vpop.f32.mrf.mxu2 }
 0x5bd   :  { %v4589_v34 = vadd.f32 %v4588_v44, %v15789_v63 }
 0x5be   :  { %v4637_v61 = vpop.f32.mrf.mxu3  ;;  %v4493_v41 = vpop.f32.mrf.mxu0 }
 0x5bf   :  { %v15909_v12 = vadd.f32 %v4637_v61, %v4589_v34  ;;  %v4494_v53 = vadd.f32 %v4493_v41, %v15795_v27 }
 0x5c1   :  { %9663 = vmatmul.msk.bf16.gmra.mxu0 %vm13622_vm11, %v19503_v36  ;;  %9711 = vmatmul.msk.bf16.gmra.mxu2 %vm13622_vm11, %v19503_v36 }
 0x5c2   :  { %v4542_v30 = vpop.f32.mrf.mxu1 }
 0x5c3   :  { %9743 = vmatmul.msk.bf16.gmra.mxu3 %vm19378_vm1, %v19505_v54  ;;  %v15920_v55 = vadd.f32 %v4542_v30, %v4494_v53 }
 0x5c4   :  { %v4591_v44 = vpop.f32.mrf.mxu2  ;;  %9695 = vmatmul.msk.bf16.gmra.mxu1 %vm19506_vm10, %v19505_v54  ;;  %vm19510_vm10 = vmmov %vm19378_vm1 }
 0x5c5   :  { %v4592_v63 = vadd.f32 %v4591_v44, %v15799_v58  ;;  %v19507_v44 = vld [vmem:[#allocation55_spill] sm:$0xff] }
 0x5c6   :  { %v4640_v34 = vpop.f32.mrf.mxu3  ;;  %v4495_v62 = vpop.f32.mrf.mxu0 }
 0x5c7   :  { %v15925_v27 = vadd.f32 %v4640_v34, %v4592_v63  ;;  %v4496_v37 = vadd.f32 %v4495_v62, %v15801_v33  ;;  %v19509_v33 = vld [vmem:[#allocation21_spill] sm:$0xff] }
 0x5ca   :  { %v4544_v29 = vpop.f32.mrf.mxu1 }
 0x5cb   :  { %v15928_v61 = vadd.f32 %v4544_v29, %v4496_v37 }
 0x5cc   :  { %v4593_v41 = vpop.f32.mrf.mxu2 }
 0x5cd   :  { %v4594_v0 = vadd.f32 %v4593_v41, %v15803_v22 }
 0x5ce   :  { %v4642_v53 = vpop.f32.mrf.mxu3  ;;  %v4498_v30 = vpop.f32.mrf.mxu0 }
 0x5cf   :  { %v15931_v36 = vadd.f32 %v4642_v53, %v4594_v0  ;;  %v4499_v58 = vadd.f32 %v4498_v30, %v15809_v16 }
 0x5d1   :  { %9668 = vmatmul.msk.bf16.gmra.mxu0 %vm13674_vm2, %v19507_v44  ;;  %9716 = vmatmul.msk.bf16.gmra.mxu2 %vm13674_vm2, %v19507_v44 }
 0x5d2   :  { %v4547_v63 = vpop.f32.mrf.mxu1 }
 0x5d3   :  { %9744 = vmatmul.msk.bf16.gmra.mxu3 %vm19378_vm1, %v19509_v33  ;;  %v15942_v34 = vadd.f32 %v4547_v63, %v4499_v58 }
 0x5d4   :  { %v4596_v22 = vpop.f32.mrf.mxu2  ;;  %9696 = vmatmul.msk.bf16.gmra.mxu1 %vm19510_vm10, %v19509_v33  ;;  %vm19514_vm10 = vmmov %vm19378_vm1 }
 0x5d5   :  { %v4597_v0 = vadd.f32 %v4596_v22, %v15813_v28  ;;  %v19511_v22 = vld [vmem:[#allocation57_spill] sm:$0xff] }
 0x5d6   :  { %v4645_v62 = vpop.f32.mrf.mxu3  ;;  %v4500_v37 = vpop.f32.mrf.mxu0 }
 0x5d7   :  { %v15947_v16 = vadd.f32 %v4645_v62, %v4597_v0  ;;  %v4501_v29 = vadd.f32 %v4500_v37, %v15815_v56  ;;  %v19513_v56 = vld [vmem:[#allocation12_spill] sm:$0xff] }
 0x5da   :  { %v4549_v41 = vpop.f32.mrf.mxu1 }
 0x5db   :  { %v15950_v53 = vadd.f32 %v4549_v41, %v4501_v29 }
 0x5dc   :  { %v4598_v30 = vpop.f32.mrf.mxu2 }
 0x5dd   :  { %v4599_v21 = vadd.f32 %v4598_v30, %v15817_v57 }
 0x5de   :  { %v4647_v58 = vpop.f32.mrf.mxu3  ;;  %v4503_v63 = vpop.f32.mrf.mxu0 }
 0x5df   :  { %v15953_v44 = vadd.f32 %v4647_v58, %v4599_v21  ;;  %v4504_v28 = vadd.f32 %v4503_v63, %v15823_v49 }
 0x5e1   :  { %9673 = vmatmul.msk.bf16.gmra.mxu0 %vm13726_vm5, %v19511_v22  ;;  %9721 = vmatmul.msk.bf16.gmra.mxu2 %vm13726_vm5, %v19511_v22 }
 0x5e2   :  { %v4552_v0 = vpop.f32.mrf.mxu1 }
 0x5e3   :  { %9745 = vmatmul.msk.bf16.gmra.mxu3 %vm19378_vm1, %v19513_v56  ;;  %v15964_v62 = vadd.f32 %v4552_v0, %v4504_v28 }
 0x5e4   :  { %v4601_v57 = vpop.f32.mrf.mxu2  ;;  %9697 = vmatmul.msk.bf16.gmra.mxu1 %vm19514_vm10, %v19513_v56  ;;  %vm19521_vm10 = vmmov %vm19378_vm1 }
 0x5e5   :  { %v4602_v21 = vadd.f32 %v4601_v57, %v15827_v42  ;;  %v19515_v57 = vld [vmem:[#allocation58_spill] sm:$0xff] }
 0x5e6   :  { %v4650_v37 = vpop.f32.mrf.mxu3  ;;  %v4505_v29 = vpop.f32.mrf.mxu0 }
 0x5e7   :  { %v15969_v49 = vadd.f32 %v4650_v37, %v4602_v21  ;;  %v4506_v41 = vadd.f32 %v4505_v29, %v15829_v59  ;;  %v9848_v59 = vld [vmem:[%s18165_s5 + $0x250] sm:$0xf]  ;;  %v9850_v29 = vld [vmem:[%s18165_s5 + $0x258] sm:$0xf0] }
 0x5ea   :  { %v4554_v30 = vpop.f32.mrf.mxu1 }
 0x5eb   :  { %v15972_v58 = vadd.f32 %v4554_v30, %v4506_v41 }
 0x5ec   :  { %v4603_v63 = vpop.f32.mrf.mxu2 }
 0x5ed   :  { %v4604_v54 = vadd.f32 %v4603_v63, %v15831_v5  ;;  %v11118_v5 = vld [vmem:[%s18165_s5 + $0x254] sm:$0xf0] }
 0x5ee   :  { %v4652_v28 = vpop.f32.mrf.mxu3  ;;  %v4508_v0 = vpop.f32.mrf.mxu0  ;;  %v15995_v37 = vor.u32 %v11118_v5, %v9848_v59 }
 0x5ef   :  { %v15975_v22 = vadd.f32 %v4652_v28, %v4604_v54  ;;  %v4509_v42 = vadd.f32 %v4508_v0, %v15837_v6  ;;  %v11117_v6 = vld [vmem:[%s18165_s5 + $0x254] sm:$0xf]  ;;  %v19517_v54 = vld [vmem:[#allocation29_spill] sm:$0xff] }
 0x5f0   :  { %19518 = vst [vmem:[#allocation13_spill] sm:$0xff] %v15995_v37  ;;  %v16002_v63 = vor.u32 %v11117_v6, %v9850_v29  ;;  %v11121_v28 = vld [vmem:[%s18165_s5 + $0x274] sm:$0xf]  ;;  %v9866_v0 = vld [vmem:[%s18165_s5 + $0x278] sm:$0xf0]  ;;  %5101 = vmatpush.bf16.msra.mxu0 %v15995_v37  ;;  %v19546_v37 = vld [vmem:[#allocation23_spill] sm:$0xff] }
 0x5f1   :  { %9678 = vmatmul.msk.bf16.gmra.mxu0 %vm13783_vm12, %v19515_v57  ;;  %9726 = vmatmul.msk.bf16.gmra.mxu2 %vm13783_vm12, %v19515_v57  ;;  %v16012_v5 = vor.u32 %v11121_v28, %v9866_v0  ;;  %v9840_v6 = vld [vmem:[%s18165_s5 + $0x240] sm:$0xf]  ;;  %v9842_v0 = vld [vmem:[%s18165_s5 + $0x248] sm:$0xf0]  ;;  %v11122_v57 = vld [vmem:[%s18165_s5 + $0x274] sm:$0xf0] }
 0x5f2   :  { %v4557_v21 = vpop.f32.mrf.mxu1  ;;  %19519 = vst [vmem:[#allocation77_spill] sm:$0xff] %v16002_v63  ;;  %5199 = vmatpush.bf16.msra.mxu2 %v16002_v63 }
 0x5f3   :  { %9746 = vmatmul.msk.bf16.gmra.mxu3 %vm19378_vm1, %v19517_v54  ;;  %v16000_v41 = vadd.f32 %v4557_v21, %v4509_v42  ;;  %19520 = vst [vmem:[#allocation79_spill] sm:$0xff] %v16012_v5  ;;  %v11116_v21 = vld [vmem:[%s18165_s5 + $0x244] sm:$0xf0] }
 0x5f4   :  { %v4606_v30 = vpop.f32.mrf.mxu2  ;;  %9698 = vmatmul.msk.bf16.gmra.mxu1 %vm19521_vm10, %v19517_v54  ;;  %5254 = vmatpush.bf16.msra.mxu3 %v16012_v5  ;;  %v16030_v28 = vor.u32 %v11116_v21, %v9840_v6  ;;  %v9864_v54 = vld [vmem:[%s18165_s5 + $0x270] sm:$0xf]  ;;  %v11113_v6 = vld [vmem:[%s18165_s5 + $0x234] sm:$0xf]  ;;  %vm19534_vm10 = vmmov %vm19378_vm1 }
 0x5f5   :  { %v4607_v59 = vadd.f32 %v4606_v30, %v15841_v40  ;;  %v11115_v40 = vld [vmem:[%s18165_s5 + $0x244] sm:$0xf] }
 0x5f6   :  { %v4655_v33 = vpop.f32.mrf.mxu3  ;;  %v4510_v42 = vpop.f32.mrf.mxu0  ;;  %19522 = vst [vmem:[#allocation81_spill] sm:$0xff] %v16030_v28  ;;  %5102 = vmatpush.bf16.msra.mxu0 %v16030_v28 }
 0x5f7   :  { %v16026_v29 = vadd.f32 %v4655_v33, %v4607_v59  ;;  %v4511_v30 = vadd.f32 %v4510_v42, %v15843_v2  ;;  %v16041_v33 = vor.u32 %v11115_v40, %v9842_v0  ;;  %v16043_v59 = vor.u32 %v11122_v57, %v9864_v54  ;;  %v9832_v2 = vld [vmem:[%s18165_s5 + $0x230] sm:$0xf]  ;;  %v11114_v42 = vld [vmem:[%s18165_s5 + $0x234] sm:$0xf0]  ;;  %v9834_v57 = vld [vmem:[%s18165_s5 + $0x238] sm:$0xf0] }
 0x5f8   :  { %v16055_v21 = vor.u32 %v11114_v42, %v9832_v2  ;;  %v16062_v54 = vor.u32 %v11113_v6, %v9834_v57  ;;  %v11112_v6 = vld [vmem:[%s18165_s5 + $0x224] sm:$0xf0] }
 0x5f9   :  { %19523 = vst [vmem:[#allocation84_spill] sm:$0xff] %v16041_v33  ;;  %5200 = vmatpush.bf16.msra.mxu2 %v16041_v33  ;;  %5156 = vmatpush.bf16.msrb.mxu1 %v16043_v59  ;;  %v9824_v33 = vld [vmem:[%s18165_s5 + $0x220] sm:$0xf] }
 0x5fa   :  { %19524 = vst [vmem:[#allocation87_spill] sm:$0xff] %v16043_v59  ;;  %v4559_v40 = vpop.f32.mrf.mxu1  ;;  %5103 = vmatpush.bf16.msra.mxu0 %v16055_v21 }
 0x5fb   :  { %19525 = vst [vmem:[#allocation109_spill] sm:$0xff] %v16055_v21  ;;  %v16064_v0 = vadd.f32 %v4559_v40, %v4511_v30  ;;  %v11111_v30 = vld [vmem:[%s18165_s5 + $0x224] sm:$0xf]  ;;  %v9826_v40 = vld [vmem:[%s18165_s5 + $0x228] sm:$0xf0] }
 0x5fc   :  { %19526 = vst [vmem:[#allocation90_spill] sm:$0xff] %v16062_v54  ;;  %v4608_v56 = vpop.f32.mrf.mxu2  ;;  %v19529_v21 = vld [vmem:[#allocation18_spill] sm:$0xff] }
 0x5fd   :  { %v4609_v5 = vadd.f32 %v4608_v56, %v15845_v38  ;;  %5201 = vmatpush.bf16.msra.mxu2 %v16062_v54  ;;  %v16081_v56 = vor.u32 %v11112_v6, %v9824_v33  ;;  %v16086_v54 = vor.u32 %v11111_v30, %v9826_v40  ;;  %v11109_v33 = vld [vmem:[%s18165_s5 + $0x214] sm:$0xf]  ;;  %v9818_v30 = vld [vmem:[%s18165_s5 + $0x218] sm:$0xf0] }
 0x5fe   :  { %v4657_v2 = vpop.f32.mrf.mxu3  ;;  %v4513_v42 = vpop.f32.mrf.mxu0 }
 0x5ff   :  { %v16078_v57 = vadd.f32 %v4657_v2, %v4609_v5  ;;  %v4514_v38 = vadd.f32 %v4513_v42, %v15851_v46  ;;  %19527 = vst [vmem:[#allocation37_spill] sm:$0xff] %v16081_v56  ;;  %5104 = vmatpush.bf16.msra.mxu0 %v16081_v56  ;;  %v9816_v46 = vld [vmem:[%s18165_s5 + $0x210] sm:$0xf]  ;;  %v11110_v5 = vld [vmem:[%s18165_s5 + $0x214] sm:$0xf0] }
 0x600   :  { %19528 = vst [vmem:[#allocation96_spill] sm:$0xff] %v16086_v54  ;;  %v19531_v2 = vld [vmem:[#allocation60_spill] sm:$0xff]  ;;  %v16107_v6 = vor.u32 %v11110_v5, %v9816_v46  ;;  %v9808_v46 = vld [vmem:[%s18165_s5 + $0x200] sm:$0xf]  ;;  %v11107_v5 = vld [vmem:[%s18165_s5 + $0x204] sm:$0xf] }
 0x601   :  { %9683 = vmatmul.msk.bf16.gmra.mxu0 %vm13910_vm0, %v19529_v21  ;;  %9731 = vmatmul.msk.bf16.gmra.mxu2 %vm13910_vm0, %v19529_v21  ;;  %v16114_v21 = vor.u32 %v11109_v33, %v9818_v30  ;;  %v9800_v30 = vld [vmem:[%s18165_s5 + $0x1f0] sm:$0xf] }
 0x602   :  { %5202 = vmatpush.bf16.msra.mxu2 %v16086_v54  ;;  %v4562_v42 = vpop.f32.mrf.mxu1  ;;  %19532 = vst [vmem:[#allocation132_spill] sm:$0xff] %v16107_v6 }
 0x603   :  { %9747 = vmatmul.msk.bf16.gmra.mxu3 %vm19378_vm1, %v19531_v2  ;;  %v16112_v40 = vadd.f32 %v4562_v42, %v4514_v38  ;;  %19533 = vst [vmem:[#allocation97_spill] sm:$0xff] %v16114_v21  ;;  %5105 = vmatpush.bf16.msra.mxu0 %v16107_v6  ;;  %v11108_v38 = vld [vmem:[%s18165_s5 + $0x204] sm:$0xf0]  ;;  %v9810_v42 = vld [vmem:[%s18165_s5 + $0x208] sm:$0xf0] }
 0x604   :  { %v4611_v59 = vpop.f32.mrf.mxu2  ;;  %9699 = vmatmul.msk.bf16.gmra.mxu1 %vm19534_vm10, %v19531_v2  ;;  %v16133_v33 = vor.u32 %v11108_v38, %v9808_v46  ;;  %v11106_v2 = vld [vmem:[%s18165_s5 + $0x1f4] sm:$0xf0]  ;;  %vm19545_vm10 = vmmov %vm19378_vm1 }
 0x605   :  { %v4612_v54 = vadd.f32 %v4611_v59, %v15855_v26 }
 0x606   :  { %v4660_v56 = vpop.f32.mrf.mxu3  ;;  %v4515_v28 = vpop.f32.mrf.mxu0  ;;  %5203 = vmatpush.bf16.msra.mxu2 %v16114_v21  ;;  %19535 = vst [vmem:[#allocation99_spill] sm:$0xff] %v16133_v33 }
 0x607   :  { %v16129_v26 = vadd.f32 %v4660_v56, %v4612_v54  ;;  %v4516_v59 = vadd.f32 %v4515_v28, %v15857_v31  ;;  %v16144_v54 = vor.u32 %v11107_v5, %v9810_v42  ;;  %v11105_v31 = vld [vmem:[%s18165_s5 + $0x1f4] sm:$0xf]  ;;  %v9802_v28 = vld [vmem:[%s18165_s5 + $0x1f8] sm:$0xf0]  ;;  %5106 = vmatpush.bf16.msra.mxu0 %v16133_v33  ;;  %v16153_v56 = vor.u32 %v11106_v2, %v9800_v30  ;;  %v9792_v33 = vld [vmem:[%s18165_s5 + $0x1e0] sm:$0xf] }
 0x608   :  { %v16156_v38 = vor.u32 %v11105_v31, %v9802_v28  ;;  %v11104_v2 = vld [vmem:[%s18165_s5 + $0x1e4] sm:$0xf0]  ;;  %v9794_v28 = vld [vmem:[%s18165_s5 + $0x1e8] sm:$0xf0] }
 0x609   :  { %19536 = vst [vmem:[#allocation98_spill] sm:$0xff] %v16144_v54  ;;  %v16175_v31 = vor.u32 %v11104_v2, %v9792_v33  ;;  %v19544_v33 = vld [vmem:[#allocation51_spill] sm:$0xff] }
 0x60a   :  { %19537 = vst [vmem:[#allocation32_spill] sm:$0xff] %v16153_v56  ;;  %v4564_v46 = vpop.f32.mrf.mxu1  ;;  %5204 = vmatpush.bf16.msra.mxu2 %v16144_v54 }
 0x60b   :  { %19538 = vst [vmem:[#allocation107_spill] sm:$0xff] %v16156_v38  ;;  %v16158_v21 = vadd.f32 %v4564_v46, %v4516_v59  ;;  %5107 = vmatpush.bf16.msra.mxu0 %v16153_v56  ;;  %v11103_v59 = vld [vmem:[%s18165_s5 + $0x1e4] sm:$0xf] }
 0x60c   :  { %v4613_v5 = vpop.f32.mrf.mxu2  ;;  %19539 = vst [vmem:[#allocation100_spill] sm:$0xff] %v16175_v31  ;;  %v11119_v46 = vld [vmem:[%s18165_s5 + $0x264] sm:$0xf] }
 0x60d   :  { %v4614_v42 = vadd.f32 %v4613_v5, %v15859_v60  ;;  %v9858_v5 = vld [vmem:[%s18165_s5 + $0x268] sm:$0xf0] }
 0x60e   :  { %v4662_v6 = vpop.f32.mrf.mxu3  ;;  %v4518_v63 = vpop.f32.mrf.mxu0  ;;  %5205 = vmatpush.bf16.msra.mxu2 %v16156_v38 }
 0x60f   :  { %v16171_v30 = vadd.f32 %v4662_v6, %v4614_v42  ;;  %v4519_v60 = vadd.f32 %v4518_v63, %v15865_v50  ;;  %v16186_v6 = vor.u32 %v11103_v59, %v9794_v28  ;;  %v16188_v42 = vor.u32 %v11119_v46, %v9858_v5  ;;  %v19542_v50 = vld [vmem:[#allocation35_spill] sm:$0xff]  ;;  %5108 = vmatpush.bf16.msra.mxu0 %v16175_v31  ;;  %v9856_v59 = vld [vmem:[%s18165_s5 + $0x260] sm:$0xf] }
 0x610   :  { %v11120_v28 = vld [vmem:[%s18165_s5 + $0x264] sm:$0xf0] }
 0x611   :  { %19540 = vst [vmem:[#allocation31_spill] sm:$0xff] %v16186_v6  ;;  %9688 = vmatmul.msk.bf16.gmra.mxu0 %vm14071_vm4, %v19542_v50  ;;  %9736 = vmatmul.msk.bf16.gmra.mxu2 %vm14071_vm4, %v19542_v50  ;;  %v16209_v63 = vor.u32 %v11120_v28, %v9856_v59 }
 0x612   :  { %19541 = vst [vmem:[#allocation38_spill] sm:$0xff] %v16188_v42  ;;  %5255 = vmatpush.bf16.msra.mxu3 %v16188_v42  ;;  %v4567_v2 = vpop.f32.mrf.mxu1  ;;  %5206 = vmatpush.bf16.msra.mxu2 %v16186_v6 }
 0x613   :  { %9748 = vmatmul.msk.bf16.gmra.mxu3 %vm19378_vm1, %v19544_v33  ;;  %v16207_v46 = vadd.f32 %v4567_v2, %v4519_v60  ;;  %5157 = vmatpush.bf16.msrb.mxu1 %v16209_v63 }
 0x614   :  { %v4616_v5 = vpop.f32.mrf.mxu2  ;;  %9700 = vmatmul.msk.bf16.gmra.mxu1 %vm19545_vm10, %v19544_v33  ;;  %vm19549_vm10 = vmmov %vm19378_vm1 }
 0x615   :  { %v4617_v50 = vadd.f32 %v4616_v5, %v15869_v48 }
 0x616   :  { %v4665_v31 = vpop.f32.mrf.mxu3  ;;  %v4520_v38 = vpop.f32.mrf.mxu0 }
 0x617   :  { %v16214_v6 = vadd.f32 %v4665_v31, %v4617_v50  ;;  %v4521_v56 = vadd.f32 %v4520_v38, %v15871_v17  ;;  %v19548_v17 = vld [vmem:[#allocation27_spill] sm:$0xff] }
 0x61a   :  { %v4569_v54 = vpop.f32.mrf.mxu1 }
 0x61b   :  { %v16218_v42 = vadd.f32 %v4569_v54, %v4521_v56 }
 0x61c   :  { %v4618_v60 = vpop.f32.mrf.mxu2 }
 0x61d   :  { %v4619_v2 = vadd.f32 %v4618_v60, %v15873_v10 }
 0x61e   :  { %v4667_v59 = vpop.f32.mrf.mxu3  ;;  %v4523_v28 = vpop.f32.mrf.mxu0 }
 0x61f   :  { %v16221_v48 = vadd.f32 %v4667_v59, %v4619_v2  ;;  %v4524_v5 = vadd.f32 %v4523_v28, %v15879_v52 }
 0x621   :  { %9693 = vmatmul.msk.bf16.gmra.mxu0 %vm14158_vm8, %v19546_v37  ;;  %9741 = vmatmul.msk.bf16.gmra.mxu2 %vm14158_vm8, %v19546_v37 }
 0x622   :  { %v4572_v54 = vpop.f32.mrf.mxu1 }
 0x623   :  { %9749 = vmatmul.msk.bf16.gmra.mxu3 %vm19378_vm1, %v19548_v17  ;;  %v16232_v56 = vadd.f32 %v4572_v54, %v4524_v5 }
 0x624   :  { %v4621_v10 = vpop.f32.mrf.mxu2  ;;  %9701 = vmatmul.msk.bf16.gmra.mxu1 %vm19549_vm10, %v19548_v17  ;;  %vm19551_vm10 = vmmov %vm19378_vm1 }
 0x625   :  { %v4622_v38 = vadd.f32 %v4621_v10, %v15883_v18 }
 0x626   :  { %v4670_v31 = vpop.f32.mrf.mxu3  ;;  %v4525_v50 = vpop.f32.mrf.mxu0 }
 0x627   :  { %v16237_v52 = vadd.f32 %v4670_v31, %v4622_v38  ;;  %v4526_v60 = vadd.f32 %v4525_v50, %v15885_v45 }
 0x62a   :  { %v4574_v2 = vpop.f32.mrf.mxu1 }
 0x62b   :  { %v16240_v59 = vadd.f32 %v4574_v2, %v4526_v60 }
 0x62c   :  { %v4623_v28 = vpop.f32.mrf.mxu2 }
 0x62d   :  { %v4624_v33 = vadd.f32 %v4623_v28, %v15887_v8 }
 0x62e   :  { %v4672_v5 = vpop.f32.mrf.mxu3  ;;  %v4708_v54 = vpop.f32.mrf.mxu0 }
 0x62f   :  { %v16243_v37 = vadd.f32 %v4672_v5, %v4624_v33 }
 0x631   :  { %5109 = vmatmul.bf16.vlgmr.msra.gmra.mxu0 %v19475_v7  ;;  %5207 = vmatmul.bf16.vlgmr.msra.gmra.mxu2 %v19475_v7 }
 0x632   :  { %v4757_v18 = vpop.f32.mrf.mxu1 }
 0x633   :  { %9878 = vmatmul.msk.bf16.vlgmr.msra.gmra.mxu3 %vm19378_vm1, %v19476_v24  ;;  %v4758_v10 = vadd.f32 %v4757_v18, %v4708_v54 }
 0x634   :  { %v4806_v45 = vpop.f32.mrf.mxu2  ;;  %9870 = vmatmul.msk.bf16.vlgmr.msrb.gmra.mxu1 %vm19551_vm10, %v19476_v24  ;;  %vm19556_vm10 = vmmov %vm19378_vm1 }
 0x635   :  { %v16250_v38 = vadd.f32 %v4758_v10, %v15898_v35 }
 0x636   :  { %v4855_v31 = vpop.f32.mrf.mxu3  ;;  %v4710_v50 = vpop.f32.mrf.mxu0 }
 0x637   :  { %19550 = vst [vmem:[#allocation134_spill] sm:$0xff] %v16250_v38  ;;  %v4856_v8 = vadd.f32 %v4855_v31, %v4806_v45 }
 0x639   :  { %v16257_v60 = vadd.f32 %v4856_v8, %v15903_v3 }
 0x63a   :  { %v4759_v28 = vpop.f32.mrf.mxu1 }
 0x63b   :  { %19552 = vst [vmem:[#allocation136_spill] sm:$0xff] %v16257_v60  ;;  %v4760_v5 = vadd.f32 %v4759_v28, %v4710_v50 }
 0x63c   :  { %v4808_v54 = vpop.f32.mrf.mxu2 }
 0x63d   :  { %v16262_v35 = vadd.f32 %v4760_v5, %v15906_v51 }
 0x63e   :  { %v4857_v18 = vpop.f32.mrf.mxu3  ;;  %v4713_v10 = vpop.f32.mrf.mxu0 }
 0x63f   :  { %19553 = vst [vmem:[#allocation101_spill] sm:$0xff] %v16262_v35  ;;  %v4858_v17 = vadd.f32 %v4857_v18, %v4808_v54 }
 0x641   :  { %v16267_v31 = vadd.f32 %v4858_v17, %v15909_v12  ;;  %5114 = vmatmul.bf16.gmra.mxu0 %v19478_v1  ;;  %5212 = vmatmul.bf16.gmra.mxu2 %v19478_v1 }
 0x642   :  { %v4762_v51 = vpop.f32.mrf.mxu1 }
 0x643   :  { %19554 = vst [vmem:[#allocation103_spill] sm:$0xff] %v16267_v31  ;;  %9879 = vmatmul.msk.bf16.gmra.mxu3 %vm19378_vm1, %v19479_v19  ;;  %v4763_v50 = vadd.f32 %v4762_v51, %v4713_v10 }
 0x644   :  { %v4811_v8 = vpop.f32.mrf.mxu2  ;;  %9871 = vmatmul.msk.bf16.gmra.mxu1 %vm19556_vm10, %v19479_v19  ;;  %vm19561_vm10 = vmmov %vm19378_vm1 }
 0x645   :  { %v16276_v28 = vadd.f32 %v4763_v50, %v15920_v55 }
 0x646   :  { %v4860_v5 = vpop.f32.mrf.mxu3  ;;  %v4715_v54 = vpop.f32.mrf.mxu0 }
 0x647   :  { %19555 = vst [vmem:[#allocation102_spill] sm:$0xff] %v16276_v28  ;;  %v4861_v12 = vadd.f32 %v4860_v5, %v4811_v8  ;;  %v19600_v28 = vld [vmem:[#allocation50_spill] sm:$0xff] }
 0x649   :  { %v16283_v18 = vadd.f32 %v4861_v12, %v15925_v27 }
 0x64a   :  { %v4764_v10 = vpop.f32.mrf.mxu1 }
 0x64b   :  { %19557 = vst [vmem:[#allocation104_spill] sm:$0xff] %v16283_v18  ;;  %v4765_v51 = vadd.f32 %v4764_v10, %v4715_v54 }
 0x64c   :  { %v4813_v45 = vpop.f32.mrf.mxu2 }
 0x64d   :  { %v16288_v55 = vadd.f32 %v4765_v51, %v15928_v61 }
 0x64e   :  { %v4862_v50 = vpop.f32.mrf.mxu3  ;;  %v4718_v2 = vpop.f32.mrf.mxu0 }
 0x64f   :  { %19558 = vst [vmem:[#allocation137_spill] sm:$0xff] %v16288_v55  ;;  %v4863_v33 = vadd.f32 %v4862_v50, %v4813_v45 }
 0x651   :  { %v16293_v5 = vadd.f32 %v4863_v33, %v15931_v36  ;;  %5119 = vmatmul.bf16.gmra.mxu0 %v19481_v25  ;;  %5217 = vmatmul.bf16.gmra.mxu2 %v19481_v25  ;;  %v19655_v25 = vld [vmem:[#allocation36_spill] sm:$0xff] }
 0x652   :  { %v4767_v61 = vpop.f32.mrf.mxu1 }
 0x653   :  { %19559 = vst [vmem:[#allocation138_spill] sm:$0xff] %v16293_v5  ;;  %9880 = vmatmul.msk.bf16.gmra.mxu3 %vm19378_vm1, %v19482_v15  ;;  %v4768_v54 = vadd.f32 %v4767_v61, %v4718_v2 }
 0x654   :  { %v4816_v12 = vpop.f32.mrf.mxu2  ;;  %9872 = vmatmul.msk.bf16.gmra.mxu1 %vm19561_vm10, %v19482_v15  ;;  %vm19569_vm10 = vmmov %vm19378_vm1  ;;  %v19654_v15 = vld [vmem:[#allocation83_spill] sm:$0xff] }
 0x655   :  { %v16302_v45 = vadd.f32 %v4768_v54, %v15942_v34 }
 0x656   :  { %v4865_v10 = vpop.f32.mrf.mxu3  ;;  %v4720_v51 = vpop.f32.mrf.mxu0 }
 0x657   :  { %19560 = vst [vmem:[#allocation105_spill] sm:$0xff] %v16302_v45  ;;  %v4866_v36 = vadd.f32 %v4865_v10, %v4816_v12  ;;  %v19587_v45 = vld [vmem:[#allocation49_spill] sm:$0xff] }
 0x659   :  { %v16309_v50 = vadd.f32 %v4866_v36, %v15947_v16  ;;  %v19565_v16 = vld [vmem:[#allocation56_spill] sm:$0xff] }
 0x65a   :  { %v4769_v2 = vpop.f32.mrf.mxu1 }
 0x65b   :  { %19562 = vst [vmem:[#allocation108_spill] sm:$0xff] %v16309_v50  ;;  %v4770_v61 = vadd.f32 %v4769_v2, %v4720_v51  ;;  %v19567_v2 = vld [vmem:[#allocation47_spill] sm:$0xff] }
 0x65c   :  { %v4818_v8 = vpop.f32.mrf.mxu2 }
 0x65d   :  { %v16314_v34 = vadd.f32 %v4770_v61, %v15950_v53 }
 0x65e   :  { %v4867_v54 = vpop.f32.mrf.mxu3  ;;  %v4723_v3 = vpop.f32.mrf.mxu0 }
 0x65f   :  { %19563 = vst [vmem:[#allocation143_spill] sm:$0xff] %v16314_v34  ;;  %v4868_v17 = vadd.f32 %v4867_v54, %v4818_v8 }
 0x661   :  { %v16319_v10 = vadd.f32 %v4868_v17, %v15953_v44  ;;  %5124 = vmatmul.bf16.gmra.mxu0 %v19565_v16  ;;  %5222 = vmatmul.bf16.gmra.mxu2 %v19565_v16 }
 0x662   :  { %v4772_v53 = vpop.f32.mrf.mxu1 }
 0x663   :  { %19564 = vst [vmem:[#allocation144_spill] sm:$0xff] %v16319_v10  ;;  %9881 = vmatmul.msk.bf16.gmra.mxu3 %vm19378_vm1, %v19567_v2  ;;  %v4773_v61 = vadd.f32 %v4772_v53, %v4723_v3 }
 0x664   :  { %v4821_v27 = vpop.f32.mrf.mxu2  ;;  %9873 = vmatmul.msk.bf16.gmra.mxu1 %vm19569_vm10, %v19567_v2  ;;  %vm19580_vm10 = vmmov %vm19378_vm1 }
 0x665   :  { %v16328_v8 = vadd.f32 %v4773_v61, %v15964_v62 }
 0x666   :  { %v4870_v54 = vpop.f32.mrf.mxu3  ;;  %v4725_v12 = vpop.f32.mrf.mxu0 }
 0x667   :  { %19568 = vst [vmem:[#allocation145_spill] sm:$0xff] %v16328_v8  ;;  %v4871_v44 = vadd.f32 %v4870_v54, %v4821_v27 }
 0x669   :  { %v16335_v51 = vadd.f32 %v4871_v44, %v15969_v49  ;;  %v19576_v49 = vld [vmem:[#allocation11_spill] sm:$0xff]  ;;  %v11101_v44 = vld [vmem:[%s18165_s5 + $0x134] sm:$0xf] }
 0x66a   :  { %v4774_v3 = vpop.f32.mrf.mxu1 }
 0x66b   :  { %19571 = vst [vmem:[#allocation146_spill] sm:$0xff] %v16335_v51  ;;  %v4775_v53 = vadd.f32 %v4774_v3, %v4725_v12  ;;  %v9944_v12 = vld [vmem:[%s18165_s5 + $0x110] sm:$0xf]  ;;  %v9962_v51 = vld [vmem:[%s18165_s5 + $0x138] sm:$0xf0] }
 0x66c   :  { %v4823_v34 = vpop.f32.mrf.mxu2 }
 0x66d   :  { %v16340_v62 = vadd.f32 %v4775_v53, %v15972_v58  ;;  %v11098_v58 = vld [vmem:[%s18165_s5 + $0x114] sm:$0xf0] }
 0x66e   :  { %v4872_v61 = vpop.f32.mrf.mxu3  ;;  %v4728_v9 = vpop.f32.mrf.mxu0  ;;  %v16362_v53 = vor.u32 %v11098_v58, %v9944_v12  ;;  %v9936_v12 = vld [vmem:[%s18165_s5 + $0x100] sm:$0xf] }
 0x66f   :  { %19573 = vst [vmem:[#allocation147_spill] sm:$0xff] %v16340_v62  ;;  %v4873_v50 = vadd.f32 %v4872_v61, %v4823_v34  ;;  %v11097_v34 = vld [vmem:[%s18165_s5 + $0x114] sm:$0xf]  ;;  %v9946_v61 = vld [vmem:[%s18165_s5 + $0x118] sm:$0xf0] }
 0x670   :  { %v16367_v62 = vor.u32 %v11097_v34, %v9946_v61  ;;  %5397 = vmatpush.bf16.msrb.mxu0 %v16362_v53  ;;  %v9938_v34 = vld [vmem:[%s18165_s5 + $0x108] sm:$0xf0] }
 0x671   :  { %v16345_v33 = vadd.f32 %v4873_v50, %v15975_v22  ;;  %5129 = vmatmul.bf16.gmra.mxu0 %v19576_v49  ;;  %5227 = vmatmul.bf16.gmra.mxu2 %v19576_v49  ;;  %v19578_v50 = vld [vmem:[#allocation48_spill] sm:$0xff] }
 0x672   :  { %v4777_v3 = vpop.f32.mrf.mxu1  ;;  %5495 = vmatpush.bf16.msrb.mxu2 %v16367_v62 }
 0x673   :  { %19575 = vst [vmem:[#allocation148_spill] sm:$0xff] %v16345_v33  ;;  %9882 = vmatmul.msk.bf16.gmra.mxu3 %vm19378_vm1, %v19578_v50  ;;  %v4778_v54 = vadd.f32 %v4777_v3, %v4728_v9  ;;  %v11096_v9 = vld [vmem:[%s18165_s5 + $0x104] sm:$0xf0] }
 0x674   :  { %v4826_v36 = vpop.f32.mrf.mxu2  ;;  %9874 = vmatmul.msk.bf16.gmra.mxu1 %vm19580_vm10, %v19578_v50  ;;  %v16385_v58 = vor.u32 %v11096_v9, %v9936_v12  ;;  %v9928_v12 = vld [vmem:[%s18165_s5 + $0xf0] sm:$0xf]  ;;  %v11094_v9 = vld [vmem:[%s18165_s5 + $0xf4] sm:$0xf0]  ;;  %vm19591_vm10 = vmmov %vm19378_vm1 }
 0x675   :  { %v16371_v27 = vadd.f32 %v4778_v54, %v16000_v41  ;;  %v11095_v41 = vld [vmem:[%s18165_s5 + $0x104] sm:$0xf]  ;;  %v16425_v61 = vor.u32 %v11094_v9, %v9928_v12  ;;  %v9922_v9 = vld [vmem:[%s18165_s5 + $0xe8] sm:$0xf0] }
 0x676   :  { %v4875_v22 = vpop.f32.mrf.mxu3  ;;  %v4730_v33 = vpop.f32.mrf.mxu0  ;;  %v16398_v10 = vor.u32 %v11095_v41, %v9938_v34  ;;  %5398 = vmatpush.bf16.msrb.mxu0 %v16385_v58  ;;  %v11093_v41 = vld [vmem:[%s18165_s5 + $0xf4] sm:$0xf]  ;;  %v11102_v34 = vld [vmem:[%s18165_s5 + $0x134] sm:$0xf0]  ;;  %v11091_v12 = vld [vmem:[%s18165_s5 + $0xe4] sm:$0xf] }
 0x677   :  { %19579 = vst [vmem:[#allocation149_spill] sm:$0xff] %v16371_v27  ;;  %v4876_v54 = vadd.f32 %v4875_v22, %v4826_v36  ;;  %v16403_v22 = vor.u32 %v11101_v44, %v9962_v51  ;;  %v9930_v27 = vld [vmem:[%s18165_s5 + $0xf8] sm:$0xf0] }
 0x678   :  { %5496 = vmatpush.bf16.msrb.mxu2 %v16398_v10 }
 0x679   :  { %v16401_v36 = vadd.f32 %v4876_v54, %v16026_v29  ;;  %5550 = vmatpush.bf16.msrb.mxu3 %v16403_v22  ;;  %v9960_v54 = vld [vmem:[%s18165_s5 + $0x130] sm:$0xf] }
 0x67a   :  { %v4779_v44 = vpop.f32.mrf.mxu1  ;;  %v16430_v51 = vor.u32 %v11102_v34, %v9960_v54  ;;  %5399 = vmatpush.bf16.msrb.mxu0 %v16425_v61  ;;  %v16456_v54 = vor.u32 %v11091_v12, %v9922_v9  ;;  %v19589_v12 = vld [vmem:[#allocation59_spill] sm:$0xff] }
 0x67b   :  { %19582 = vst [vmem:[#allocation150_spill] sm:$0xff] %v16401_v36  ;;  %v4780_v3 = vadd.f32 %v4779_v44, %v4730_v33  ;;  %v16432_v36 = vor.u32 %v11093_v41, %v9930_v27  ;;  %v9920_v33 = vld [vmem:[%s18165_s5 + $0xe0] sm:$0xf]  ;;  %v11092_v27 = vld [vmem:[%s18165_s5 + $0xe4] sm:$0xf0] }
 0x67c   :  { %v4828_v8 = vpop.f32.mrf.mxu2  ;;  %5452 = vmatpush.bf16.msra.mxu1 %v16430_v51  ;;  %v9914_v44 = vld [vmem:[%s18165_s5 + $0xd8] sm:$0xf0] }
 0x67d   :  { %v16436_v29 = vadd.f32 %v4780_v3, %v16064_v0  ;;  %5497 = vmatpush.bf16.msrb.mxu2 %v16432_v36  ;;  %v16449_v3 = vor.u32 %v11092_v27, %v9920_v33 }
 0x67e   :  { %v4877_v17 = vpop.f32.mrf.mxu3  ;;  %v4733_v4 = vpop.f32.mrf.mxu0 }
 0x67f   :  { %19584 = vst [vmem:[#allocation151_spill] sm:$0xff] %v16436_v29  ;;  %v4878_v0 = vadd.f32 %v4877_v17, %v4828_v8  ;;  %5400 = vmatpush.bf16.msrb.mxu0 %v16449_v3  ;;  %v9912_v8 = vld [vmem:[%s18165_s5 + $0xd0] sm:$0xf]  ;;  %v11090_v17 = vld [vmem:[%s18165_s5 + $0xd4] sm:$0xf0] }
 0x680   :  { %v16478_v9 = vor.u32 %v11090_v17, %v9912_v8  ;;  %v9904_v8 = vld [vmem:[%s18165_s5 + $0xc0] sm:$0xf]  ;;  %v9906_v17 = vld [vmem:[%s18165_s5 + $0xc8] sm:$0xf0] }
 0x681   :  { %v16459_v34 = vadd.f32 %v4878_v0, %v16078_v57  ;;  %5134 = vmatmul.bf16.gmra.mxu0 %v19587_v45  ;;  %5232 = vmatmul.bf16.gmra.mxu2 %v19587_v45  ;;  %v11089_v57 = vld [vmem:[%s18165_s5 + $0xd4] sm:$0xf] }
 0x682   :  { %5498 = vmatpush.bf16.msrb.mxu2 %v16456_v54  ;;  %v4782_v0 = vpop.f32.mrf.mxu1  ;;  %v16483_v32 = vor.u32 %v11089_v57, %v9914_v44 }
 0x683   :  { %19586 = vst [vmem:[#allocation152_spill] sm:$0xff] %v16459_v34  ;;  %9883 = vmatmul.msk.bf16.gmra.mxu3 %vm19378_vm1, %v19589_v12  ;;  %v4783_v29 = vadd.f32 %v4782_v0, %v4733_v4  ;;  %5401 = vmatpush.bf16.msrb.mxu0 %v16478_v9  ;;  %v11088_v4 = vld [vmem:[%s18165_s5 + $0xc4] sm:$0xf0] }
 0x684   :  { %v4831_v41 = vpop.f32.mrf.mxu2  ;;  %9875 = vmatmul.msk.bf16.gmra.mxu1 %vm19591_vm10, %v19589_v12  ;;  %v16501_v44 = vor.u32 %v11088_v4, %v9904_v8  ;;  %v11085_v8 = vld [vmem:[%s18165_s5 + $0xb4] sm:$0xf]  ;;  %vm19602_vm10 = vmmov %vm19378_vm1 }
 0x685   :  { %v16486_v5 = vadd.f32 %v4783_v29, %v16112_v40  ;;  %v11087_v40 = vld [vmem:[%s18165_s5 + $0xc4] sm:$0xf] }
 0x686   :  { %v4880_v20 = vpop.f32.mrf.mxu3  ;;  %v4735_v55 = vpop.f32.mrf.mxu0  ;;  %5499 = vmatpush.bf16.msrb.mxu2 %v16483_v32  ;;  %v16508_v27 = vor.u32 %v11087_v40, %v9906_v17 }
 0x687   :  { %19590 = vst [vmem:[#allocation153_spill] sm:$0xff] %v16486_v5  ;;  %v4881_v29 = vadd.f32 %v4880_v20, %v4831_v41  ;;  %5402 = vmatpush.bf16.msrb.mxu0 %v16501_v44  ;;  %v9896_v20 = vld [vmem:[%s18165_s5 + $0xb0] sm:$0xf]  ;;  %v11086_v41 = vld [vmem:[%s18165_s5 + $0xb4] sm:$0xf0] }
 0x689   :  { %v16511_v34 = vadd.f32 %v4881_v29, %v16129_v26  ;;  %v16526_v26 = vor.u32 %v11086_v41, %v9896_v20  ;;  %v9898_v29 = vld [vmem:[%s18165_s5 + $0xb8] sm:$0xf0]  ;;  %v9888_v20 = vld [vmem:[%s18165_s5 + $0xa0] sm:$0xf]  ;;  %v11084_v41 = vld [vmem:[%s18165_s5 + $0xa4] sm:$0xf0] }
 0x68a   :  { %v4784_v17 = vpop.f32.mrf.mxu1  ;;  %5500 = vmatpush.bf16.msrb.mxu2 %v16508_v27  ;;  %v16531_v57 = vor.u32 %v11085_v8, %v9898_v29  ;;  %v9954_v29 = vld [vmem:[%s18165_s5 + $0x128] sm:$0xf0] }
 0x68b   :  { %19593 = vst [vmem:[#allocation154_spill] sm:$0xff] %v16511_v34  ;;  %v4785_v0 = vadd.f32 %v4784_v17, %v4735_v55  ;;  %5403 = vmatpush.bf16.msrb.mxu0 %v16526_v26  ;;  %v11083_v55 = vld [vmem:[%s18165_s5 + $0xa4] sm:$0xf] }
 0x68c   :  { %v4833_v5 = vpop.f32.mrf.mxu2  ;;  %v11099_v17 = vld [vmem:[%s18165_s5 + $0x124] sm:$0xf] }
 0x68d   :  { %v16534_v33 = vadd.f32 %v4785_v0, %v16158_v21  ;;  %v16547_v21 = vor.u32 %v11084_v41, %v9888_v20  ;;  %v9890_v0 = vld [vmem:[%s18165_s5 + $0xa8] sm:$0xf0]  ;;  %v19598_v41 = vld [vmem:[#allocation17_spill] sm:$0xff] }
 0x68e   :  { %v4882_v39 = vpop.f32.mrf.mxu3  ;;  %v4738_v18 = vpop.f32.mrf.mxu0  ;;  %5501 = vmatpush.bf16.msrb.mxu2 %v16531_v57 }
 0x68f   :  { %19595 = vst [vmem:[#allocation155_spill] sm:$0xff] %v16534_v33  ;;  %v4883_v8 = vadd.f32 %v4882_v39, %v4833_v5  ;;  %v16560_v39 = vor.u32 %v11083_v55, %v9890_v0  ;;  %v16562_v5 = vor.u32 %v11099_v17, %v9954_v29  ;;  %5404 = vmatpush.bf16.msrb.mxu0 %v16547_v21 }
 0x691   :  { %v16565_v20 = vadd.f32 %v4883_v8, %v16171_v30  ;;  %5139 = vmatmul.bf16.gmra.mxu0 %v19598_v41  ;;  %5237 = vmatmul.bf16.gmra.mxu2 %v19598_v41  ;;  %v9952_v30 = vld [vmem:[%s18165_s5 + $0x120] sm:$0xf]  ;;  %v11100_v8 = vld [vmem:[%s18165_s5 + $0x124] sm:$0xf0]  ;;  %v11142_v41 = vld [vmem:[%s18165_s5 + $0x3b4] sm:$0xf0] }
 0x692   :  { %5551 = vmatpush.bf16.msrb.mxu3 %v16562_v5  ;;  %v4787_v55 = vpop.f32.mrf.mxu1  ;;  %5502 = vmatpush.bf16.msrb.mxu2 %v16560_v39  ;;  %v16582_v29 = vor.u32 %v11100_v8, %v9952_v30 }
 0x693   :  { %19597 = vst [vmem:[#allocation156_spill] sm:$0xff] %v16565_v20  ;;  %9884 = vmatmul.msk.bf16.gmra.mxu3 %vm19378_vm1, %v19600_v28  ;;  %v4788_v0 = vadd.f32 %v4787_v55, %v4738_v18 }
 0x694   :  { %v4836_v17 = vpop.f32.mrf.mxu2  ;;  %9876 = vmatmul.msk.bf16.gmra.mxu1 %vm19602_vm10, %v19600_v28  ;;  %vm19613_vm10 = vmmov %vm19378_vm1 }
 0x695   :  { %v16585_v47 = vadd.f32 %v4788_v0, %v16207_v46  ;;  %5453 = vmatpush.bf16.msra.mxu1 %v16582_v29 }
 0x696   :  { %v4885_v34 = vpop.f32.mrf.mxu3  ;;  %v4740_v20 = vpop.f32.mrf.mxu0 }
 0x697   :  { %19601 = vst [vmem:[#allocation157_spill] sm:$0xff] %v16585_v47  ;;  %v4886_v4 = vadd.f32 %v4885_v34, %v4836_v17 }
 0x699   :  { %v16593_v11 = vadd.f32 %v4886_v4, %v16214_v6  ;;  %v19609_v6 = vld [vmem:[#allocation62_spill] sm:$0xff] }
 0x69a   :  { %v4789_v30 = vpop.f32.mrf.mxu1 }
 0x69b   :  { %19604 = vst [vmem:[#allocation158_spill] sm:$0xff] %v16593_v11  ;;  %v4790_v46 = vadd.f32 %v4789_v30, %v4740_v20  ;;  %v19611_v30 = vld [vmem:[#allocation24_spill] sm:$0xff] }
 0x69c   :  { %v4838_v8 = vpop.f32.mrf.mxu2 }
 0x69d   :  { %v16598_v0 = vadd.f32 %v4790_v46, %v16218_v42 }
 0x69e   :  { %v4887_v31 = vpop.f32.mrf.mxu3  ;;  %v4743_v23 = vpop.f32.mrf.mxu0 }
 0x69f   :  { %19606 = vst [vmem:[#allocation159_spill] sm:$0xff] %v16598_v0  ;;  %v4888_v34 = vadd.f32 %v4887_v31, %v4838_v8 }
 0x6a1   :  { %v16603_v40 = vadd.f32 %v4888_v34, %v16221_v48  ;;  %5144 = vmatmul.bf16.gmra.mxu0 %v19609_v6  ;;  %5242 = vmatmul.bf16.gmra.mxu2 %v19609_v6  ;;  %v10158_v6 = vld [vmem:[%s18165_s5 + $0x3b8] sm:$0xf0] }
 0x6a2   :  { %v4792_v42 = vpop.f32.mrf.mxu1 }
 0x6a3   :  { %19608 = vst [vmem:[#allocation160_spill] sm:$0xff] %v16603_v40  ;;  %9885 = vmatmul.msk.bf16.gmra.mxu3 %vm19378_vm1, %v19611_v30  ;;  %v4793_v46 = vadd.f32 %v4792_v42, %v4743_v23 }
 0x6a4   :  { %v4841_v55 = vpop.f32.mrf.mxu2  ;;  %9877 = vmatmul.msk.bf16.gmra.mxu1 %vm19613_vm10, %v19611_v30  ;;  %vm19624_vm10 = vmmov %vm19378_vm1 }
 0x6a5   :  { %v16612_v31 = vadd.f32 %v4793_v46, %v16232_v56 }
 0x6a6   :  { %v4890_v8 = vpop.f32.mrf.mxu3  ;;  %v4745_v35 = vpop.f32.mrf.mxu0 }
 0x6a7   :  { %19612 = vst [vmem:[#allocation161_spill] sm:$0xff] %v16612_v31  ;;  %v4891_v48 = vadd.f32 %v4890_v8, %v4841_v55  ;;  %v19629_v31 = vld [vmem:[#allocation53_spill] sm:$0xff] }
 0x6a9   :  { %v16619_v20 = vadd.f32 %v4891_v48, %v16237_v52  ;;  %v19620_v52 = vld [vmem:[#allocation93_spill] sm:$0xff] }
 0x6aa   :  { %v4794_v23 = vpop.f32.mrf.mxu1 }
 0x6ab   :  { %19615 = vst [vmem:[#allocation162_spill] sm:$0xff] %v16619_v20  ;;  %v4795_v42 = vadd.f32 %v4794_v23, %v4745_v35  ;;  %v19623_v23 = vld [vmem:[#allocation25_spill] sm:$0xff] }
 0x6ac   :  { %v4843_v17 = vpop.f32.mrf.mxu2 }
 0x6ad   :  { %v16624_v56 = vadd.f32 %v4795_v42, %v16240_v59  ;;  %v19625_v59 = vld [vmem:[#allocation64_spill] sm:$0xff] }
 0x6ae   :  { %v4892_v46 = vpop.f32.mrf.mxu3  ;;  %v5110_v11 = vpop.f32.mrf.mxu0 }
 0x6af   :  { %19617 = vst [vmem:[#allocation163_spill] sm:$0xff] %v16624_v56  ;;  %v4893_v18 = vadd.f32 %v4892_v46, %v4843_v17 }
 0x6b1   :  { %v16629_v0 = vadd.f32 %v4893_v18, %v16243_v37  ;;  %9970 = vmatmul.msk.bf16.vlgmr.msrb.gmra.mxu0 %vm19325_vm9, %v19620_v52  ;;  %10018 = vmatmul.msk.bf16.vlgmr.msrb.gmra.mxu2 %vm19325_vm9, %v19620_v52  ;;  %vm19628_vm9 = vmmov %vm19378_vm1 }
 0x6b2   :  { %v5159_v17 = vpop.f32.mrf.mxu1 }
 0x6b3   :  { %19619 = vst [vmem:[#allocation164_spill] sm:$0xff] %v16629_v0  ;;  %10054 = vmatmul.msk.bf16.vlgmr.msrb.gmra.mxu3 %vm19378_vm1, %v19623_v23  ;;  %v16641_v42 = vadd.f32 %v5159_v17, %v5110_v11  ;;  %v19627_v11 = vld [vmem:[#allocation34_spill] sm:$0xff] }
 0x6b4   :  { %v5208_v46 = vpop.f32.mrf.mxu2  ;;  %10006 = vmatmul.msk.bf16.vlgmr.msra.gmra.mxu1 %vm19624_vm10, %v19623_v23  ;;  %vm19633_vm10 = vmmov %vm19378_vm1 }
 0x6b6   :  { %v5257_v37 = vpop.f32.mrf.mxu3  ;;  %v5112_v18 = vpop.f32.mrf.mxu0 }
 0x6b7   :  { %v16645_v8 = vadd.f32 %v5257_v37, %v5208_v46 }
 0x6ba   :  { %v5161_v4 = vpop.f32.mrf.mxu1 }
 0x6bb   :  { %v16647_v48 = vadd.f32 %v5161_v4, %v5112_v18 }
 0x6bc   :  { %v5210_v52 = vpop.f32.mrf.mxu2 }
 0x6be   :  { %v5259_v56 = vpop.f32.mrf.mxu3  ;;  %v5115_v35 = vpop.f32.mrf.mxu0 }
 0x6bf   :  { %v16649_v0 = vadd.f32 %v5259_v56, %v5210_v52 }
 0x6c1   :  { %9975 = vmatmul.msk.bf16.gmra.mxu0 %vm19328_vm7, %v19625_v59  ;;  %10023 = vmatmul.msk.bf16.gmra.mxu2 %vm19328_vm7, %v19625_v59  ;;  %vm19632_vm7 = vmmov %vm19378_vm1 }
 0x6c2   :  { %v5164_v23 = vpop.f32.mrf.mxu1 }
 0x6c3   :  { %10055 = vmatmul.msk.bf16.gmra.mxu3 %vm19628_vm9, %v19627_v11  ;;  %v16659_v17 = vadd.f32 %v5164_v23, %v5115_v35  ;;  %v19631_v35 = vld [vmem:[#allocation8_spill] sm:$0xff]  ;;  %vm19638_vm9 = vmmov %vm19378_vm1 }
 0x6c4   :  { %v5213_v4 = vpop.f32.mrf.mxu2  ;;  %10007 = vmatmul.msk.bf16.gmra.mxu1 %vm19378_vm1, %v19627_v11 }
 0x6c6   :  { %v5262_v46 = vpop.f32.mrf.mxu3  ;;  %v5117_v37 = vpop.f32.mrf.mxu0 }
 0x6c7   :  { %v16663_v56 = vadd.f32 %v5262_v46, %v5213_v4 }
 0x6ca   :  { %v5166_v18 = vpop.f32.mrf.mxu1 }
 0x6cb   :  { %v16665_v52 = vadd.f32 %v5166_v18, %v5117_v37 }
 0x6cc   :  { %v5215_v20 = vpop.f32.mrf.mxu2 }
 0x6ce   :  { %v5264_v55 = vpop.f32.mrf.mxu3  ;;  %v5120_v59 = vpop.f32.mrf.mxu0 }
 0x6cf   :  { %v16667_v40 = vadd.f32 %v5264_v55, %v5215_v20 }
 0x6d1   :  { %9980 = vmatmul.msk.bf16.gmra.mxu0 %vm19330_vm15, %v19629_v31  ;;  %10028 = vmatmul.msk.bf16.gmra.mxu2 %vm19330_vm15, %v19629_v31  ;;  %vm19637_vm15 = vmmov %vm19378_vm1 }
 0x6d2   :  { %v5169_v11 = vpop.f32.mrf.mxu1 }
 0x6d3   :  { %10056 = vmatmul.msk.bf16.gmra.mxu3 %vm19632_vm7, %v19631_v35  ;;  %v16677_v23 = vadd.f32 %v5169_v11, %v5120_v59  ;;  %v19636_v59 = vld [vmem:[#allocation4_spill] sm:$0xff] }
 0x6d4   :  { %v5218_v4 = vpop.f32.mrf.mxu2  ;;  %10008 = vmatmul.msk.bf16.gmra.mxu1 %vm19633_vm10, %v19631_v35  ;;  %vm19660_vm10 = vmmov %vm19632_vm7 }
 0x6d6   :  { %v5267_v46 = vpop.f32.mrf.mxu3  ;;  %v5122_v37 = vpop.f32.mrf.mxu0 }
 0x6d7   :  { %v16681_v20 = vadd.f32 %v5267_v46, %v5218_v4 }
 0x6da   :  { %v5171_v18 = vpop.f32.mrf.mxu1 }
 0x6db   :  { %v16683_v55 = vadd.f32 %v5171_v18, %v5122_v37 }
 0x6dc   :  { %v5220_v47 = vpop.f32.mrf.mxu2 }
 0x6de   :  { %v5269_v34 = vpop.f32.mrf.mxu3  ;;  %v5125_v31 = vpop.f32.mrf.mxu0 }
 0x6df   :  { %v16685_v33 = vadd.f32 %v5269_v34, %v5220_v47 }
 0x6e1   :  { %9985 = vmatmul.msk.bf16.gmra.mxu0 %vm19332_vm13, %v19634_v43  ;;  %10033 = vmatmul.msk.bf16.gmra.mxu2 %vm19332_vm13, %v19634_v43  ;;  %vm19642_vm13 = vmmov %vm19378_vm1 }
 0x6e2   :  { %v5174_v35 = vpop.f32.mrf.mxu1 }
 0x6e3   :  { %10057 = vmatmul.msk.bf16.gmra.mxu3 %vm19637_vm15, %v19636_v59  ;;  %v16695_v11 = vadd.f32 %v5174_v35, %v5125_v31  ;;  %v10140_v31 = vld [vmem:[%s18165_s5 + $0x390] sm:$0xf] }
 0x6e4   :  { %v5223_v4 = vpop.f32.mrf.mxu2  ;;  %10009 = vmatmul.msk.bf16.gmra.mxu1 %vm19638_vm9, %v19636_v59  ;;  %v11138_v59 = vld [vmem:[%s18165_s5 + $0x394] sm:$0xf0]  ;;  %v19641_v35 = vld [vmem:[#allocation76_spill] sm:$0xff]  ;;  %vm19672_vm9 = vmmov %vm19632_vm7 }
 0x6e6   :  { %v5272_v46 = vpop.f32.mrf.mxu3  ;;  %v5127_v37 = vpop.f32.mrf.mxu0 }
 0x6e7   :  { %v16699_v47 = vadd.f32 %v5272_v46, %v5223_v4  ;;  %v16722_v46 = vor.u32 %v11138_v59, %v10140_v31 }
 0x6e9   :  { %19643 = vst [vmem:[#allocation93_spill] sm:$0xff] %v16722_v46  ;;  %5714 = vmatpush.bf16.msra.mxu0 %v16722_v46 }
 0x6ea   :  { %v5176_v18 = vpop.f32.mrf.mxu1 }
 0x6eb   :  { %v16701_v34 = vadd.f32 %v5176_v18, %v5127_v37 }
 0x6ec   :  { %v5225_v14 = vpop.f32.mrf.mxu2 }
 0x6ee   :  { %v5274_v60 = vpop.f32.mrf.mxu3  ;;  %v5130_v43 = vpop.f32.mrf.mxu0 }
 0x6ef   :  { %v16703_v38 = vadd.f32 %v5274_v60, %v5225_v14  ;;  %v11137_v14 = vld [vmem:[%s18165_s5 + $0x394] sm:$0xf] }
 0x6f0   :  { %v11141_v60 = vld [vmem:[%s18165_s5 + $0x3b4] sm:$0xf] }
 0x6f1   :  { %9990 = vmatmul.msk.bf16.gmra.mxu0 %vm19334_vm14, %v19639_v13  ;;  %10038 = vmatmul.msk.bf16.gmra.mxu2 %vm19334_vm14, %v19639_v13  ;;  %v10142_v13 = vld [vmem:[%s18165_s5 + $0x398] sm:$0xf0]  ;;  %v16738_v31 = vor.u32 %v11141_v60, %v10158_v6  ;;  %vm19646_vm14 = vmmov %vm19378_vm1  ;;  %v11135_v6 = vld [vmem:[%s18165_s5 + $0x384] sm:$0xf]  ;;  %vm19656_vm1 = vnez %v19655_v25 }
 0x6f2   :  { %v5179_v4 = vpop.f32.mrf.mxu1  ;;  %v16729_v18 = vor.u32 %v11137_v14, %v10142_v13  ;;  %v11136_v14 = vld [vmem:[%s18165_s5 + $0x384] sm:$0xf0]  ;;  %v10156_v60 = vld [vmem:[%s18165_s5 + $0x3b0] sm:$0xf] }
 0x6f3   :  { %10058 = vmatmul.msk.bf16.gmra.mxu3 %vm19642_vm13, %v19641_v35  ;;  %v16727_v30 = vadd.f32 %v5179_v4, %v5130_v43  ;;  %19645 = vst [vmem:[#allocation25_spill] sm:$0xff] %v16738_v31  ;;  %v10132_v43 = vld [vmem:[%s18165_s5 + $0x380] sm:$0xf]  ;;  %vm19677_vm13 = vmmov %vm19632_vm7 }
 0x6f4   :  { %v5228_v37 = vpop.f32.mrf.mxu2  ;;  %19644 = vst [vmem:[#allocation5_spill] sm:$0xff] %v16729_v18  ;;  %10010 = vmatmul.msk.bf16.gmra.mxu1 %vm19646_vm14, %v19641_v35  ;;  %5812 = vmatpush.bf16.msra.mxu2 %v16729_v18  ;;  %v16755_v13 = vor.u32 %v11136_v14, %v10132_v43  ;;  %v10134_v35 = vld [vmem:[%s18165_s5 + $0x388] sm:$0xf0]  ;;  %v11134_v43 = vld [vmem:[%s18165_s5 + $0x374] sm:$0xf0]  ;;  %vm19689_vm14 = vmmov %vm19632_vm7 }
 0x6f5   :  { %5867 = vmatpush.bf16.msra.mxu3 %v16738_v31  ;;  %v16766_v12 = vor.u32 %v11135_v6, %v10134_v35  ;;  %v11133_v14 = vld [vmem:[%s18165_s5 + $0x374] sm:$0xf] }
 0x6f6   :  { %v5277_v59 = vpop.f32.mrf.mxu3  ;;  %v5132_v28 = vpop.f32.mrf.mxu0  ;;  %19647 = vst [vmem:[#allocation64_spill] sm:$0xff] %v16755_v13  ;;  %5715 = vmatpush.bf16.msra.mxu0 %v16755_v13  ;;  %v19683_v13 = vld [vmem:[#allocation90_spill] sm:$0xff] }
 0x6f7   :  { %v16752_v4 = vadd.f32 %v5277_v59, %v5228_v37  ;;  %19648 = vst [vmem:[#allocation10_spill] sm:$0xff] %v16766_v12  ;;  %v16768_v37 = vor.u32 %v11142_v41, %v10156_v60  ;;  %v10124_v59 = vld [vmem:[%s18165_s5 + $0x370] sm:$0xf]  ;;  %v10126_v41 = vld [vmem:[%s18165_s5 + $0x378] sm:$0xf0] }
 0x6f8   :  { %v16780_v45 = vor.u32 %v11134_v43, %v10124_v59  ;;  %5813 = vmatpush.bf16.msra.mxu2 %v16766_v12  ;;  %v16787_v6 = vor.u32 %v11133_v14, %v10126_v41  ;;  %v10116_v59 = vld [vmem:[%s18165_s5 + $0x360] sm:$0xf]  ;;  %v11132_v43 = vld [vmem:[%s18165_s5 + $0x364] sm:$0xf0]  ;;  %v19682_v12 = vld [vmem:[#allocation109_spill] sm:$0xff] }
 0x6f9   :  { %19649 = vst [vmem:[#allocation34_spill] sm:$0xff] %v16768_v37  ;;  %5769 = vmatpush.bf16.msrb.mxu1 %v16768_v37  ;;  %v16804_v41 = vor.u32 %v11132_v43, %v10116_v59  ;;  %v11129_v59 = vld [vmem:[%s18165_s5 + $0x354] sm:$0xf]  ;;  %v19657_v43 = vld [vmem:[#allocation85_spill] sm:$0xff] }
 0x6fa   :  { %19650 = vst [vmem:[#allocation53_spill] sm:$0xff] %v16780_v45  ;;  %v5181_v35 = vpop.f32.mrf.mxu1  ;;  %5716 = vmatpush.bf16.msra.mxu0 %v16780_v45  ;;  %v10084_v45 = vld [vmem:[%s18165_s5 + $0x320] sm:$0xf] }
 0x6fb   :  { %19651 = vst [vmem:[#allocation16_spill] sm:$0xff] %v16787_v6  ;;  %v16789_v60 = vadd.f32 %v5181_v35, %v5132_v28  ;;  %v11131_v28 = vld [vmem:[%s18165_s5 + $0x364] sm:$0xf]  ;;  %v10118_v35 = vld [vmem:[%s18165_s5 + $0x368] sm:$0xf0] }
 0x6fc   :  { %v5230_v50 = vpop.f32.mrf.mxu2  ;;  %5814 = vmatpush.bf16.msra.mxu2 %v16787_v6  ;;  %19652 = vst [vmem:[#allocation8_spill] sm:$0xff] %v16804_v41  ;;  %v16809_v16 = vor.u32 %v11131_v28, %v10118_v35  ;;  %v10110_v28 = vld [vmem:[%s18165_s5 + $0x358] sm:$0xf0] }
 0x6fd   :  { %v16837_v1 = vor.u32 %v11129_v59, %v10110_v28  ;;  %v10092_v28 = vld [vmem:[%s18165_s5 + $0x330] sm:$0xf] }
 0x6fe   :  { %v5279_v49 = vpop.f32.mrf.mxu3  ;;  %v5135_v2 = vpop.f32.mrf.mxu0  ;;  %19653 = vst [vmem:[#allocation40_spill] sm:$0xff] %v16809_v16  ;;  %5717 = vmatpush.bf16.msra.mxu0 %v16804_v41 }
 0x6ff   :  { %v16802_v14 = vadd.f32 %v5279_v49, %v5230_v50  ;;  %v10108_v49 = vld [vmem:[%s18165_s5 + $0x350] sm:$0xf]  ;;  %v11130_v50 = vld [vmem:[%s18165_s5 + $0x354] sm:$0xf0]  ;;  %19659 = vst [vmem:[#allocation4_spill] sm:$0xff] %v16837_v1 }
 0x700   :  { %5815 = vmatpush.bf16.msra.mxu2 %v16809_v16 }
 0x701   :  { %9995 = vmatmul.msk.bf16.gmra.mxu0 %vm19656_vm1, %v19654_v15  ;;  %10043 = vmatmul.msk.bf16.gmra.mxu2 %vm19656_vm1, %v19654_v15  ;;  %v16830_v15 = vor.u32 %v11130_v50, %v10108_v49  ;;  %v10100_v49 = vld [vmem:[%s18165_s5 + $0x340] sm:$0xf]  ;;  %v11128_v50 = vld [vmem:[%s18165_s5 + $0x344] sm:$0xf0]  ;;  %vm19692_vm1 = vmmov %vm19632_vm7 }
 0x702   :  { %v5184_v25 = vpop.f32.mrf.mxu1 }
 0x703   :  { %10059 = vmatmul.msk.bf16.gmra.mxu3 %vm19632_vm7, %v19657_v43  ;;  %19658 = vst [vmem:[#allocation22_spill] sm:$0xff] %v16830_v15  ;;  %v16835_v35 = vadd.f32 %v5184_v25, %v5135_v2  ;;  %5718 = vmatpush.bf16.msra.mxu0 %v16830_v15  ;;  %v11127_v2 = vld [vmem:[%s18165_s5 + $0x344] sm:$0xf]  ;;  %v16854_v25 = vor.u32 %v11128_v50, %v10100_v49  ;;  %v11126_v15 = vld [vmem:[%s18165_s5 + $0x334] sm:$0xf0]  ;;  %vm19702_vm7 = vmmov %vm19692_vm1 }
 0x704   :  { %v5233_v19 = vpop.f32.mrf.mxu2  ;;  %10011 = vmatmul.msk.bf16.gmra.mxu1 %vm19660_vm10, %v19657_v43  ;;  %5816 = vmatpush.bf16.msra.mxu2 %v16837_v1  ;;  %v10102_v43 = vld [vmem:[%s18165_s5 + $0x348] sm:$0xf0]  ;;  %v16874_v49 = vor.u32 %v11126_v15, %v10092_v28  ;;  %v11124_v15 = vld [vmem:[%s18165_s5 + $0x324] sm:$0xf0]  ;;  %v11123_v28 = vld [vmem:[%s18165_s5 + $0x324] sm:$0xf] }
 0x705   :  { %19661 = vst [vmem:[#allocation75_spill] sm:$0xff] %v16854_v25  ;;  %v16865_v16 = vor.u32 %v11127_v2, %v10102_v43  ;;  %vm19705_vm10 = vmmov %vm19692_vm1 }
 0x706   :  { %v5282_v24 = vpop.f32.mrf.mxu3  ;;  %v5137_v7 = vpop.f32.mrf.mxu0  ;;  %19663 = vst [vmem:[#allocation76_spill] sm:$0xff] %v16874_v49 }
 0x707   :  { %v16851_v59 = vadd.f32 %v5282_v24, %v5233_v19  ;;  %19662 = vst [vmem:[#allocation30_spill] sm:$0xff] %v16865_v16  ;;  %v11125_v24 = vld [vmem:[%s18165_s5 + $0x334] sm:$0xf]  ;;  %v10094_v19 = vld [vmem:[%s18165_s5 + $0x338] sm:$0xf0]  ;;  %5719 = vmatpush.bf16.msra.mxu0 %v16854_v25  ;;  %v19676_v25 = vld [vmem:[#allocation79_spill] sm:$0xff] }
 0x708   :  { %5817 = vmatpush.bf16.msra.mxu2 %v16865_v16  ;;  %v16877_v1 = vor.u32 %v11125_v24, %v10094_v19  ;;  %v10086_v19 = vld [vmem:[%s18165_s5 + $0x328] sm:$0xf0] }
 0x709   :  { %v16905_v16 = vor.u32 %v11123_v28, %v10086_v19  ;;  %v11140_v28 = vld [vmem:[%s18165_s5 + $0x3a4] sm:$0xf0] }
 0x70a   :  { %v5186_v50 = vpop.f32.mrf.mxu1  ;;  %19664 = vst [vmem:[#allocation83_spill] sm:$0xff] %v16877_v1 }
 0x70b   :  { %v16879_v41 = vadd.f32 %v5186_v50, %v5137_v7  ;;  %5720 = vmatpush.bf16.msra.mxu0 %v16874_v49  ;;  %v16894_v7 = vor.u32 %v11124_v15, %v10084_v45  ;;  %v11139_v50 = vld [vmem:[%s18165_s5 + $0x3a4] sm:$0xf]  ;;  %v10150_v49 = vld [vmem:[%s18165_s5 + $0x3a8] sm:$0xf0]  ;;  %19666 = vst [vmem:[#allocation85_spill] sm:$0xff] %v16905_v16  ;;  %v19671_v45 = vld [vmem:[#allocation89_spill] sm:$0xff] }
 0x70c   :  { %v5235_v2 = vpop.f32.mrf.mxu2  ;;  %5818 = vmatpush.bf16.msra.mxu2 %v16877_v1  ;;  %v19669_v1 = vld [vmem:[#allocation39_spill] sm:$0xff] }
 0x70d   :  { %19665 = vst [vmem:[#allocation36_spill] sm:$0xff] %v16894_v7  ;;  %vm19670_vm15 = vnez %v19669_v1 }
 0x70e   :  { %v5284_v43 = vpop.f32.mrf.mxu3  ;;  %v5140_v6 = vpop.f32.mrf.mxu0 }
 0x70f   :  { %v16891_v24 = vadd.f32 %v5284_v43, %v5235_v2  ;;  %v16907_v2 = vor.u32 %v11139_v50, %v10150_v49  ;;  %v19668_v43 = vld [vmem:[#allocation86_spill] sm:$0xff]  ;;  %5721 = vmatpush.bf16.msra.mxu0 %v16894_v7  ;;  %v19675_v7 = vld [vmem:[#allocation77_spill] sm:$0xff] }
 0x710   :  { %5819 = vmatpush.bf16.msra.mxu2 %v16905_v16  ;;  %v10148_v49 = vld [vmem:[%s18165_s5 + $0x3a0] sm:$0xf] }
 0x711   :  { %19667 = vst [vmem:[#allocation165_spill] sm:$0xff] %v16907_v2  ;;  %10000 = vmatmul.msk.bf16.gmra.mxu0 %vm19670_vm15, %v19668_v43  ;;  %10048 = vmatmul.msk.bf16.gmra.mxu2 %vm19670_vm15, %v19668_v43  ;;  %v16928_v50 = vor.u32 %v11140_v28, %v10148_v49  ;;  %v19674_v43 = vld [vmem:[#allocation13_spill] sm:$0xff]  ;;  %v19680_v49 = vld [vmem:[#allocation87_spill] sm:$0xff]  ;;  %v19681_v28 = vld [vmem:[#allocation38_spill] sm:$0xff] }
 0x712   :  { %5868 = vmatpush.bf16.msra.mxu3 %v16907_v2  ;;  %v5189_v15 = vpop.f32.mrf.mxu1  ;;  %vm19706_vm15 = vmmov %vm19692_vm1 }
 0x713   :  { %10060 = vmatmul.msk.bf16.gmra.mxu3 %vm19672_vm9, %v19671_v45  ;;  %v16926_v1 = vadd.f32 %v5189_v15, %v5140_v6  ;;  %19673 = vst [vmem:[#allocation86_spill] sm:$0xff] %v16928_v50  ;;  %5942 = vmatpush.bf16.msrb.mxu0 %v19674_v43  ;;  %v19678_v6 = vld [vmem:[#allocation81_spill] sm:$0xff]  ;;  %v19679_v15 = vld [vmem:[#allocation84_spill] sm:$0xff]  ;;  %vm19709_vm9 = vmmov %vm19692_vm1 }
 0x714   :  { %v5238_v19 = vpop.f32.mrf.mxu2  ;;  %6040 = vmatpush.bf16.msrb.mxu2 %v19675_v7  ;;  %10012 = vmatmul.msk.bf16.gmra.mxu1 %vm19677_vm13, %v19671_v45  ;;  %vm19710_vm13 = vmmov %vm19692_vm1 }
 0x715   :  { %5770 = vmatpush.bf16.msrb.mxu1 %v16928_v50 }
 0x716   :  { %6095 = vmatpush.bf16.msrb.mxu3 %v19676_v25  ;;  %v5287_v16 = vpop.f32.mrf.mxu3  ;;  %v5142_v2 = vpop.f32.mrf.mxu0 }
 0x717   :  { %v16935_v37 = vadd.f32 %v5287_v16, %v5238_v19  ;;  %5943 = vmatpush.bf16.msrb.mxu0 %v19678_v6  ;;  %v19684_v6 = vld [vmem:[#allocation37_spill] sm:$0xff] }
 0x718   :  { %6041 = vmatpush.bf16.msrb.mxu2 %v19679_v15  ;;  %v19685_v15 = vld [vmem:[#allocation96_spill] sm:$0xff] }
 0x719   :  { %5997 = vmatpush.bf16.msra.mxu1 %v19680_v49  ;;  %v19686_v49 = vld [vmem:[#allocation26_spill] sm:$0xff] }
 0x71a   :  { %6096 = vmatpush.bf16.msrb.mxu3 %v19681_v28  ;;  %v5191_v7 = vpop.f32.mrf.mxu1  ;;  %v19693_v28 = vld [vmem:[#allocation99_spill] sm:$0xff] }
 0x71b   :  { %v16942_v43 = vadd.f32 %v5191_v7, %v5142_v2  ;;  %5944 = vmatpush.bf16.msrb.mxu0 %v19682_v12  ;;  %v19688_v12 = vld [vmem:[#allocation95_spill] sm:$0xff]  ;;  %v19690_v7 = vld [vmem:[#allocation132_spill] sm:$0xff] }
 0x71c   :  { %v5240_v25 = vpop.f32.mrf.mxu2  ;;  %6042 = vmatpush.bf16.msrb.mxu2 %v19683_v13 }
 0x71d   :  { %5998 = vmatpush.bf16.msra.mxu1 %v16209_v63 }
 0x71e   :  { %v5289_v16 = vpop.f32.mrf.mxu3  ;;  %v5145_v45 = vpop.f32.mrf.mxu0 }
 0x71f   :  { %v16947_v19 = vadd.f32 %v5289_v16, %v5240_v25  ;;  %5945 = vmatpush.bf16.msrb.mxu0 %v19684_v6  ;;  %v19691_v25 = vld [vmem:[#allocation97_spill] sm:$0xff] }
 0x720   :  { %6043 = vmatpush.bf16.msrb.mxu2 %v19685_v15 }
 0x721   :  { %10005 = vmatmul.msk.bf16.gmra.mxu0 %vm19373_vm6, %v19686_v49  ;;  %10053 = vmatmul.msk.bf16.gmra.mxu2 %vm19373_vm6, %v19686_v49  ;;  %v19694_v49 = vld [vmem:[#allocation98_spill] sm:$0xff]  ;;  %vm19701_vm6 = vmmov %vm19692_vm1 }
 0x722   :  { %v5194_v63 = vpop.f32.mrf.mxu1 }
 0x723   :  { %10061 = vmatmul.msk.bf16.gmra.mxu3 %vm19689_vm14, %v19688_v12  ;;  %v16959_v13 = vadd.f32 %v5194_v63, %v5145_v45  ;;  %5946 = vmatpush.bf16.msrb.mxu0 %v19690_v7  ;;  %v19695_v63 = vld [vmem:[#allocation32_spill] sm:$0xff]  ;;  %v19696_v7 = vld [vmem:[#allocation107_spill] sm:$0xff]  ;;  %vm19713_vm14 = vmmov %vm19692_vm1 }
 0x724   :  { %v5243_v2 = vpop.f32.mrf.mxu2  ;;  %6044 = vmatpush.bf16.msrb.mxu2 %v19691_v25  ;;  %10013 = vmatmul.msk.bf16.gmra.mxu1 %vm19692_vm1, %v19688_v12 }
 0x726   :  { %v5292_v16 = vpop.f32.mrf.mxu3  ;;  %v5147_v6 = vpop.f32.mrf.mxu0 }
 0x727   :  { %v16965_v15 = vadd.f32 %v5292_v16, %v5243_v2  ;;  %5947 = vmatpush.bf16.msrb.mxu0 %v19693_v28  ;;  %v19697_v2 = vld [vmem:[#allocation100_spill] sm:$0xff]  ;;  %v19698_v16 = vld [vmem:[#allocation31_spill] sm:$0xff]  ;;  %v19699_v28 = vld [vmem:[#allocation141_spill] sm:$0xff] }
 0x728   :  { %6045 = vmatpush.bf16.msrb.mxu2 %v19694_v49 }
 0x72a   :  { %v5196_v50 = vpop.f32.mrf.mxu1 }
 0x72b   :  { %v16969_v31 = vadd.f32 %v5196_v50, %v5147_v6  ;;  %5948 = vmatpush.bf16.msrb.mxu0 %v19695_v63  ;;  %v19700_v50 = vld [vmem:[#allocation142_spill] sm:$0xff] }
 0x72c   :  { %v5245_v45 = vpop.f32.mrf.mxu2  ;;  %6046 = vmatpush.bf16.msrb.mxu2 %v19696_v7 }
 0x72e   :  { %v5294_v25 = vpop.f32.mrf.mxu3  ;;  %v5406_v18 = vpop.f32.mrf.mxu0 }
 0x72f   :  { %v16973_v46 = vadd.f32 %v5294_v25, %v5245_v45  ;;  %v5407_v12 = vadd.f32 %v5406_v18, %v16641_v42  ;;  %5949 = vmatpush.bf16.msrb.mxu0 %v19697_v2 }
 0x730   :  { %6047 = vmatpush.bf16.msrb.mxu2 %v19698_v16 }
 0x731   :  { %5722 = vmatmul.bf16.vlgmr.msra.gmra.mxu0 %v19699_v28  ;;  %5820 = vmatmul.bf16.vlgmr.msra.gmra.mxu2 %v19699_v28 }
 0x732   :  { %v5455_v6 = vpop.f32.mrf.mxu1 }
 0x733   :  { %6138 = vmatpush.bf16.msra.mxu0 %v16362_v53  ;;  %10170 = vmatmul.msk.bf16.vlgmr.msra.gmra.mxu3 %vm19701_vm6, %v19700_v50  ;;  %v16984_v49 = vadd.f32 %v5455_v6, %v5407_v12  ;;  %vm19716_vm6 = vmmov %vm19692_vm1 }
 0x734   :  { %6236 = vmatpush.bf16.msra.mxu2 %v16367_v62  ;;  %v5504_v45 = vpop.f32.mrf.mxu2  ;;  %6291 = vmatpush.bf16.msra.mxu3 %v16403_v22 }
 0x735   :  { %v5505_v42 = vadd.f32 %v5504_v45, %v16645_v8  ;;  %10162 = vmatmul.msk.bf16.vlgmr.msrb.gmra.mxu1 %vm19702_vm7, %v19700_v50  ;;  %vm19717_vm7 = vmmov %vm19692_vm1 }
 0x736   :  { %v5553_v18 = vpop.f32.mrf.mxu3  ;;  %v5408_v63 = vpop.f32.mrf.mxu0  ;;  %6193 = vmatpush.bf16.msrb.mxu1 %v16430_v51 }
 0x737   :  { %6139 = vmatpush.bf16.msra.mxu0 %v16385_v58  ;;  %v16991_v53 = vadd.f32 %v5553_v18, %v5505_v42  ;;  %v5409_v62 = vadd.f32 %v5408_v63, %v16647_v48 }
 0x738   :  { %6237 = vmatpush.bf16.msra.mxu2 %v16398_v10  ;;  %6292 = vmatpush.bf16.msra.mxu3 %v16562_v5 }
 0x73a   :  { %v5457_v22 = vpop.f32.mrf.mxu1  ;;  %6194 = vmatpush.bf16.msrb.mxu1 %v16582_v29 }
 0x73b   :  { %6140 = vmatpush.bf16.msra.mxu0 %v16425_v61  ;;  %v17000_v8 = vadd.f32 %v5457_v22, %v5409_v62  ;;  %v19703_v61 = vld [vmem:[#allocation44_spill] sm:$0xff] }
 0x73c   :  { %6238 = vmatpush.bf16.msra.mxu2 %v16432_v36  ;;  %v5506_v58 = vpop.f32.mrf.mxu2  ;;  %v19704_v36 = vld [vmem:[#allocation63_spill] sm:$0xff] }
 0x73d   :  { %v5507_v7 = vadd.f32 %v5506_v58, %v16649_v0 }
 0x73e   :  { %v5555_v25 = vpop.f32.mrf.mxu3  ;;  %v5411_v48 = vpop.f32.mrf.mxu0 }
 0x73f   :  { %6141 = vmatpush.bf16.msra.mxu0 %v16449_v3  ;;  %v17004_v10 = vadd.f32 %v5555_v25, %v5507_v7  ;;  %v5412_v51 = vadd.f32 %v5411_v48, %v16659_v17 }
 0x740   :  { %6239 = vmatpush.bf16.msra.mxu2 %v16456_v54 }
 0x741   :  { %5727 = vmatmul.bf16.gmra.mxu0 %v19703_v61  ;;  %5825 = vmatmul.bf16.gmra.mxu2 %v19703_v61 }
 0x742   :  { %v5460_v5 = vpop.f32.mrf.mxu1 }
 0x743   :  { %6142 = vmatpush.bf16.msra.mxu0 %v16478_v9  ;;  %10171 = vmatmul.msk.bf16.gmra.mxu3 %vm19705_vm10, %v19704_v36  ;;  %v17014_v29 = vadd.f32 %v5460_v5, %v5412_v51  ;;  %v19711_v5 = vld [vmem:[#allocation9_spill] sm:$0xff]  ;;  %vm19720_vm10 = vmmov %vm19692_vm1 }
 0x744   :  { %6240 = vmatpush.bf16.msra.mxu2 %v16483_v32  ;;  %v5509_v3 = vpop.f32.mrf.mxu2 }
 0x745   :  { %v5510_v0 = vadd.f32 %v5509_v3, %v16663_v56  ;;  %10163 = vmatmul.msk.bf16.gmra.mxu1 %vm19706_vm15, %v19704_v36  ;;  %v19712_v3 = vld [vmem:[#allocation66_spill] sm:$0xff]  ;;  %vm19721_vm15 = vmmov %vm19692_vm1 }
 0x746   :  { %v5558_v17 = vpop.f32.mrf.mxu3  ;;  %v5413_v12 = vpop.f32.mrf.mxu0 }
 0x747   :  { %6143 = vmatpush.bf16.msra.mxu0 %v16501_v44  ;;  %v17020_v54 = vadd.f32 %v5558_v17, %v5510_v0  ;;  %v5414_v9 = vadd.f32 %v5413_v12, %v16665_v52 }
 0x748   :  { %6241 = vmatpush.bf16.msra.mxu2 %v16508_v27  ;;  %v19707_v27 = vld [vmem:[#allocation65_spill] sm:$0xff] }
 0x74a   :  { %v5462_v32 = vpop.f32.mrf.mxu1 }
 0x74b   :  { %6144 = vmatpush.bf16.msra.mxu0 %v16526_v26  ;;  %v17026_v2 = vadd.f32 %v5462_v32, %v5414_v9 }
 0x74c   :  { %6242 = vmatpush.bf16.msra.mxu2 %v16531_v57  ;;  %v5511_v56 = vpop.f32.mrf.mxu2  ;;  %v19708_v57 = vld [vmem:[#allocation52_spill] sm:$0xff] }
 0x74d   :  { %v5512_v16 = vadd.f32 %v5511_v56, %v16667_v40 }
 0x74e   :  { %v5560_v6 = vpop.f32.mrf.mxu3  ;;  %v5416_v45 = vpop.f32.mrf.mxu0 }
 0x74f   :  { %6145 = vmatpush.bf16.msra.mxu0 %v16547_v21  ;;  %v17030_v44 = vadd.f32 %v5560_v6, %v5512_v16  ;;  %v5417_v52 = vadd.f32 %v5416_v45, %v16677_v23 }
 0x750   :  { %6243 = vmatpush.bf16.msra.mxu2 %v16560_v39 }
 0x751   :  { %5732 = vmatmul.bf16.gmra.mxu0 %v19707_v27  ;;  %5830 = vmatmul.bf16.gmra.mxu2 %v19707_v27 }
 0x752   :  { %v5465_v26 = vpop.f32.mrf.mxu1 }
 0x753   :  { %10172 = vmatmul.msk.bf16.gmra.mxu3 %vm19709_vm9, %v19708_v57  ;;  %v17038_v42 = vadd.f32 %v5465_v26, %v5417_v52  ;;  %vm19724_vm9 = vmmov %vm19692_vm1 }
 0x754   :  { %v5514_v40 = vpop.f32.mrf.mxu2 }
 0x755   :  { %v5515_v18 = vadd.f32 %v5514_v40, %v16681_v20  ;;  %10164 = vmatmul.msk.bf16.gmra.mxu1 %vm19710_vm13, %v19708_v57  ;;  %vm19725_vm13 = vmmov %vm19692_vm1 }
 0x756   :  { %v5563_v21 = vpop.f32.mrf.mxu3  ;;  %v5418_v63 = vpop.f32.mrf.mxu0 }
 0x757   :  { %v17043_v23 = vadd.f32 %v5563_v21, %v5515_v18  ;;  %v5419_v39 = vadd.f32 %v5418_v63, %v16683_v55  ;;  %v19714_v18 = vld [vmem:[#allocation41_spill] sm:$0xff]  ;;  %v19715_v21 = vld [vmem:[#allocation72_spill] sm:$0xff] }
 0x75a   :  { %v5467_v62 = vpop.f32.mrf.mxu1 }
 0x75b   :  { %v17046_v22 = vadd.f32 %v5467_v62, %v5419_v39 }
 0x75c   :  { %v5516_v58 = vpop.f32.mrf.mxu2 }
 0x75d   :  { %v5517_v7 = vadd.f32 %v5516_v58, %v16685_v33 }
 0x75e   :  { %v5565_v25 = vpop.f32.mrf.mxu3  ;;  %v5421_v48 = vpop.f32.mrf.mxu0 }
 0x75f   :  { %v17049_v51 = vadd.f32 %v5565_v25, %v5517_v7  ;;  %v5422_v20 = vadd.f32 %v5421_v48, %v16695_v11 }
 0x761   :  { %5737 = vmatmul.bf16.gmra.mxu0 %v19711_v5  ;;  %5835 = vmatmul.bf16.gmra.mxu2 %v19711_v5 }
 0x762   :  { %v5470_v55 = vpop.f32.mrf.mxu1 }
 0x763   :  { %10173 = vmatmul.msk.bf16.gmra.mxu3 %vm19713_vm14, %v19712_v3  ;;  %v17056_v0 = vadd.f32 %v5470_v55, %v5422_v20  ;;  %vm19728_vm14 = vmmov %vm19692_vm1 }
 0x764   :  { %v5519_v17 = vpop.f32.mrf.mxu2 }
 0x765   :  { %v5520_v12 = vadd.f32 %v5519_v17, %v16699_v47  ;;  %10165 = vmatmul.msk.bf16.gmra.mxu1 %vm19692_vm1, %v19712_v3 }
 0x766   :  { %v5568_v33 = vpop.f32.mrf.mxu3  ;;  %v5423_v9 = vpop.f32.mrf.mxu0 }
 0x767   :  { %v17061_v32 = vadd.f32 %v5568_v33, %v5520_v12  ;;  %v5424_v11 = vadd.f32 %v5423_v9, %v16701_v34  ;;  %v19718_v9 = vld [vmem:[#allocation78_spill] sm:$0xff] }
 0x76a   :  { %v5472_v56 = vpop.f32.mrf.mxu1 }
 0x76b   :  { %v17064_v16 = vadd.f32 %v5472_v56, %v5424_v11  ;;  %v19719_v11 = vld [vmem:[#allocation80_spill] sm:$0xff] }
 0x76c   :  { %v5521_v6 = vpop.f32.mrf.mxu2 }
 0x76d   :  { %v5522_v45 = vadd.f32 %v5521_v6, %v16703_v38 }
 0x76e   :  { %v5570_v52 = vpop.f32.mrf.mxu3  ;;  %v5426_v26 = vpop.f32.mrf.mxu0 }
 0x76f   :  { %v17067_v40 = vadd.f32 %v5570_v52, %v5522_v45  ;;  %v5427_v47 = vadd.f32 %v5426_v26, %v16727_v30 }
 0x771   :  { %5742 = vmatmul.bf16.gmra.mxu0 %v19714_v18  ;;  %5840 = vmatmul.bf16.gmra.mxu2 %v19714_v18 }
 0x772   :  { %v5475_v34 = vpop.f32.mrf.mxu1 }
 0x773   :  { %10174 = vmatmul.msk.bf16.gmra.mxu3 %vm19716_vm6, %v19715_v21  ;;  %v17074_v63 = vadd.f32 %v5475_v34, %v5427_v47  ;;  %vm19731_vm6 = vmmov %vm19692_vm1 }
 0x774   :  { %v5524_v39 = vpop.f32.mrf.mxu2 }
 0x775   :  { %v5525_v62 = vadd.f32 %v5524_v39, %v16752_v4  ;;  %10166 = vmatmul.msk.bf16.gmra.mxu1 %vm19717_vm7, %v19715_v21  ;;  %vm19733_vm7 = vmmov %vm19692_vm1 }
 0x776   :  { %v5573_v38 = vpop.f32.mrf.mxu3  ;;  %v5428_v58 = vpop.f32.mrf.mxu0 }
 0x777   :  { %v17079_v7 = vadd.f32 %v5573_v38, %v5525_v62  ;;  %v5429_v30 = vadd.f32 %v5428_v58, %v16789_v60 }
 0x77a   :  { %v5477_v25 = vpop.f32.mrf.mxu1 }
 0x77b   :  { %v17082_v48 = vadd.f32 %v5477_v25, %v5429_v30  ;;  %v19722_v25 = vld [vmem:[#allocation20_spill] sm:$0xff] }
 0x77c   :  { %v5526_v20 = vpop.f32.mrf.mxu2 }
 0x77d   :  { %v5527_v55 = vadd.f32 %v5526_v20, %v16802_v14  ;;  %v19723_v20 = vld [vmem:[#allocation19_spill] sm:$0xff] }
 0x77e   :  { %v5575_v17 = vpop.f32.mrf.mxu3  ;;  %v5431_v12 = vpop.f32.mrf.mxu0 }
 0x77f   :  { %v17085_v33 = vadd.f32 %v5575_v17, %v5527_v55  ;;  %v5432_v4 = vadd.f32 %v5431_v12, %v16835_v35 }
 0x781   :  { %5747 = vmatmul.bf16.gmra.mxu0 %v19718_v9  ;;  %5845 = vmatmul.bf16.gmra.mxu2 %v19718_v9 }
 0x782   :  { %v5480_v60 = vpop.f32.mrf.mxu1 }
 0x783   :  { %10175 = vmatmul.msk.bf16.gmra.mxu3 %vm19720_vm10, %v19719_v11  ;;  %v17092_v56 = vadd.f32 %v5480_v60, %v5432_v4  ;;  %vm19744_vm10 = vmmov %vm19692_vm1 }
 0x784   :  { %v5529_v6 = vpop.f32.mrf.mxu2 }
 0x785   :  { %v5530_v45 = vadd.f32 %v5529_v6, %v16851_v59  ;;  %10167 = vmatmul.msk.bf16.gmra.mxu1 %vm19721_vm15, %v19719_v11  ;;  %vm19746_vm15 = vmmov %vm19692_vm1 }
 0x786   :  { %v5578_v14 = vpop.f32.mrf.mxu3  ;;  %v5433_v52 = vpop.f32.mrf.mxu0 }
 0x787   :  { %v17097_v26 = vadd.f32 %v5578_v14, %v5530_v45  ;;  %v5434_v35 = vadd.f32 %v5433_v52, %v16879_v41 }
 0x78a   :  { %v5482_v47 = vpop.f32.mrf.mxu1 }
 0x78b   :  { %v17100_v34 = vadd.f32 %v5482_v47, %v5434_v35 }
 0x78c   :  { %v5531_v39 = vpop.f32.mrf.mxu2 }
 0x78d   :  { %v5532_v62 = vadd.f32 %v5531_v39, %v16891_v24 }
 0x78e   :  { %v5580_v38 = vpop.f32.mrf.mxu3  ;;  %v5436_v58 = vpop.f32.mrf.mxu0 }
 0x78f   :  { %v17103_v30 = vadd.f32 %v5580_v38, %v5532_v62  ;;  %v5437_v59 = vadd.f32 %v5436_v58, %v16926_v1  ;;  %v19726_v62 = vld [vmem:[#allocation91_spill] sm:$0xff]  ;;  %v19727_v38 = vld [vmem:[#allocation92_spill] sm:$0xff] }
 0x791   :  { %5752 = vmatmul.bf16.gmra.mxu0 %v19722_v25  ;;  %5850 = vmatmul.bf16.gmra.mxu2 %v19722_v25 }
 0x792   :  { %v5485_v41 = vpop.f32.mrf.mxu1 }
 0x793   :  { %10176 = vmatmul.msk.bf16.gmra.mxu3 %vm19724_vm9, %v19723_v20  ;;  %v17110_v55 = vadd.f32 %v5485_v41, %v5437_v59  ;;  %vm19753_vm9 = vmmov %vm19692_vm1 }
 0x794   :  { %v5534_v17 = vpop.f32.mrf.mxu2 }
 0x795   :  { %v5535_v12 = vadd.f32 %v5534_v17, %v16935_v37  ;;  %10168 = vmatmul.msk.bf16.gmra.mxu1 %vm19725_vm13, %v19723_v20  ;;  %vm19754_vm13 = vmmov %vm19692_vm1 }
 0x796   :  { %v5583_v24 = vpop.f32.mrf.mxu3  ;;  %v5438_v4 = vpop.f32.mrf.mxu0 }
 0x797   :  { %v17115_v60 = vadd.f32 %v5583_v24, %v5535_v12  ;;  %v5439_v1 = vadd.f32 %v5438_v4, %v16942_v43 }
 0x79a   :  { %v5487_v6 = vpop.f32.mrf.mxu1 }
 0x79b   :  { %v17118_v45 = vadd.f32 %v5487_v6, %v5439_v1 }
 0x79c   :  { %v5536_v14 = vpop.f32.mrf.mxu2 }
 0x79d   :  { %v5537_v52 = vadd.f32 %v5536_v14, %v16947_v19 }
 0x79e   :  { %v5585_v35 = vpop.f32.mrf.mxu3  ;;  %v5441_v47 = vpop.f32.mrf.mxu0 }
 0x79f   :  { %v17121_v39 = vadd.f32 %v5585_v35, %v5537_v52  ;;  %v5442_v37 = vadd.f32 %v5441_v47, %v16959_v13  ;;  %v19730_v47 = vld [vmem:[#allocation5_spill] sm:$0xff] }
 0x7a1   :  { %5757 = vmatmul.bf16.gmra.mxu0 %v19726_v62  ;;  %5855 = vmatmul.bf16.gmra.mxu2 %v19726_v62 }
 0x7a2   :  { %v5490_v43 = vpop.f32.mrf.mxu1 }
 0x7a3   :  { %10177 = vmatmul.msk.bf16.gmra.mxu3 %vm19728_vm14, %v19727_v38  ;;  %v17128_v58 = vadd.f32 %v5490_v43, %v5442_v37  ;;  %vm19755_vm14 = vmmov %vm19692_vm1 }
 0x7a4   :  { %v5539_v59 = vpop.f32.mrf.mxu2 }
 0x7a5   :  { %v5540_v41 = vadd.f32 %v5539_v59, %v16965_v15  ;;  %10169 = vmatmul.msk.bf16.gmra.mxu1 %vm19692_vm1, %v19727_v38  ;;  %v19729_v15 = vld [vmem:[#allocation93_spill] sm:$0xff] }
 0x7a6   :  { %v5588_v19 = vpop.f32.mrf.mxu3  ;;  %v5443_v17 = vpop.f32.mrf.mxu0  ;;  %v19732_v59 = vld [vmem:[#allocation25_spill] sm:$0xff] }
 0x7a7   :  { %v17133_v12 = vadd.f32 %v5588_v19, %v5540_v41  ;;  %v5444_v13 = vadd.f32 %v5443_v17, %v16969_v31 }
 0x7aa   :  { %v5492_v24 = vpop.f32.mrf.mxu1 }
 0x7ab   :  { %v17136_v4 = vadd.f32 %v5492_v24, %v5444_v13  ;;  %v19735_v13 = vld [vmem:[#allocation10_spill] sm:$0xff] }
 0x7ac   :  { %v5541_v1 = vpop.f32.mrf.mxu2  ;;  %v19736_v24 = vld [vmem:[#allocation34_spill] sm:$0xff] }
 0x7ad   :  { %v5542_v6 = vadd.f32 %v5541_v1, %v16973_v46  ;;  %v19737_v1 = vld [vmem:[#allocation165_spill] sm:$0xff] }
 0x7ae   :  { %v5590_v14 = vpop.f32.mrf.mxu3  ;;  %v5723_v52 = vpop.f32.mrf.mxu0 }
 0x7af   :  { %v17139_v35 = vadd.f32 %v5590_v14, %v5542_v6  ;;  %v19738_v14 = vld [vmem:[#allocation53_spill] sm:$0xff] }
 0x7b1   :  { %5950 = vmatmul.bf16.vlgmr.msrb.gmra.mxu0 %v19699_v28  ;;  %6048 = vmatmul.bf16.vlgmr.msrb.gmra.mxu2 %v19699_v28  ;;  %v19734_v28 = vld [vmem:[#allocation64_spill] sm:$0xff] }
 0x7b2   :  { %6334 = vmatpush.bf16.msrb.mxu0 %v19729_v15  ;;  %6432 = vmatpush.bf16.msrb.mxu2 %v19730_v47  ;;  %v5772_v31 = vpop.f32.mrf.mxu1  ;;  %v19740_v15 = vld [vmem:[#allocation86_spill] sm:$0xff] }
 0x7b3   :  { %10186 = vmatmul.msk.bf16.vlgmr.msrb.gmra.mxu3 %vm19731_vm6, %v19700_v50  ;;  %v5773_v37 = vadd.f32 %v5772_v31, %v5723_v52  ;;  %v19739_v52 = vld [vmem:[#allocation16_spill] sm:$0xff]  ;;  %vm19756_vm6 = vmmov %vm19692_vm1 }
 0x7b4   :  { %v5821_v43 = vpop.f32.mrf.mxu2  ;;  %6487 = vmatpush.bf16.msrb.mxu3 %v19732_v59  ;;  %v19741_v59 = vld [vmem:[#allocation8_spill] sm:$0xff] }
 0x7b5   :  { %v17149_v46 = vadd.f32 %v5773_v37, %v16984_v49  ;;  %10178 = vmatmul.msk.bf16.vlgmr.msra.gmra.mxu1 %vm19733_vm7, %v19700_v50  ;;  %vm19757_vm7 = vmmov %vm19692_vm1 }
 0x7b6   :  { %v5870_v41 = vpop.f32.mrf.mxu3  ;;  %v5725_v19 = vpop.f32.mrf.mxu0  ;;  %6335 = vmatpush.bf16.msrb.mxu0 %v19734_v28  ;;  %6433 = vmatpush.bf16.msrb.mxu2 %v19735_v13  ;;  %v19742_v28 = vld [vmem:[#allocation40_spill] sm:$0xff] }
 0x7b7   :  { %v5871_v17 = vadd.f32 %v5870_v41, %v5821_v43  ;;  %6389 = vmatpush.bf16.msra.mxu1 %v19736_v24 }
 0x7b8   :  { %6488 = vmatpush.bf16.msrb.mxu3 %v19737_v1 }
 0x7b9   :  { %v17158_v6 = vadd.f32 %v5871_v17, %v16991_v53  ;;  %v19743_v17 = vld [vmem:[#allocation22_spill] sm:$0xff] }
 0x7ba   :  { %6336 = vmatpush.bf16.msrb.mxu0 %v19738_v14  ;;  %v5774_v49 = vpop.f32.mrf.mxu1  ;;  %6434 = vmatpush.bf16.msrb.mxu2 %v19739_v52  ;;  %v19748_v52 = vld [vmem:[#allocation30_spill] sm:$0xff] }
 0x7bb   :  { %6390 = vmatpush.bf16.msra.mxu1 %v19740_v15  ;;  %v5775_v50 = vadd.f32 %v5774_v49, %v5725_v19  ;;  %v19745_v19 = vld [vmem:[#allocation4_spill] sm:$0xff]  ;;  %v19747_v49 = vld [vmem:[#allocation75_spill] sm:$0xff] }
 0x7bc   :  { %v5823_v47 = vpop.f32.mrf.mxu2 }
 0x7bd   :  { %v17164_v31 = vadd.f32 %v5775_v50, %v17000_v8  ;;  %v19749_v50 = vld [vmem:[#allocation76_spill] sm:$0xff] }
 0x7be   :  { %v5872_v37 = vpop.f32.mrf.mxu3  ;;  %v5728_v43 = vpop.f32.mrf.mxu0  ;;  %6337 = vmatpush.bf16.msrb.mxu0 %v19741_v59  ;;  %6435 = vmatpush.bf16.msrb.mxu2 %v19742_v28  ;;  %v19751_v28 = vld [vmem:[#allocation36_spill] sm:$0xff] }
 0x7bf   :  { %v5873_v41 = vadd.f32 %v5872_v37, %v5823_v47  ;;  %v19750_v37 = vld [vmem:[#allocation83_spill] sm:$0xff] }
 0x7c1   :  { %v17169_v53 = vadd.f32 %v5873_v41, %v17004_v10  ;;  %5955 = vmatmul.bf16.gmra.mxu0 %v19703_v61  ;;  %6053 = vmatmul.bf16.gmra.mxu2 %v19703_v61 }
 0x7c2   :  { %6338 = vmatpush.bf16.msrb.mxu0 %v19743_v17  ;;  %v5777_v8 = vpop.f32.mrf.mxu1  ;;  %6436 = vmatpush.bf16.msrb.mxu2 %v19745_v19 }
 0x7c3   :  { %10187 = vmatmul.msk.bf16.gmra.mxu3 %vm19744_vm10, %v19704_v36  ;;  %v5778_v13 = vadd.f32 %v5777_v8, %v5728_v43  ;;  %v19752_v8 = vld [vmem:[#allocation85_spill] sm:$0xff]  ;;  %vm19758_vm10 = vmmov %vm19692_vm1 }
 0x7c4   :  { %v5826_v24 = vpop.f32.mrf.mxu2 }
 0x7c5   :  { %v17178_v1 = vadd.f32 %v5778_v13, %v17014_v29  ;;  %10179 = vmatmul.msk.bf16.gmra.mxu1 %vm19746_vm15, %v19704_v36  ;;  %vm19759_vm15 = vmmov %vm19692_vm1 }
 0x7c6   :  { %v5875_v14 = vpop.f32.mrf.mxu3  ;;  %v5730_v10 = vpop.f32.mrf.mxu0  ;;  %6339 = vmatpush.bf16.msrb.mxu0 %v19747_v49  ;;  %6437 = vmatpush.bf16.msrb.mxu2 %v19748_v52 }
 0x7c7   :  { %v5876_v61 = vadd.f32 %v5875_v14, %v5826_v24 }
 0x7c9   :  { %v17185_v15 = vadd.f32 %v5876_v61, %v17020_v54 }
 0x7ca   :  { %6340 = vmatpush.bf16.msrb.mxu0 %v19749_v50  ;;  %v5779_v47 = vpop.f32.mrf.mxu1  ;;  %6438 = vmatpush.bf16.msrb.mxu2 %v19750_v37 }
 0x7cb   :  { %v5780_v29 = vadd.f32 %v5779_v47, %v5730_v10 }
 0x7cc   :  { %v5828_v43 = vpop.f32.mrf.mxu2 }
 0x7cd   :  { %v17190_v59 = vadd.f32 %v5780_v29, %v17026_v2 }
 0x7ce   :  { %v5877_v41 = vpop.f32.mrf.mxu3  ;;  %v5733_v36 = vpop.f32.mrf.mxu0  ;;  %6341 = vmatpush.bf16.msrb.mxu0 %v19751_v28  ;;  %6439 = vmatpush.bf16.msrb.mxu2 %v19752_v8 }
 0x7cf   :  { %v5878_v17 = vadd.f32 %v5877_v41, %v5828_v43 }
 0x7d1   :  { %v17195_v54 = vadd.f32 %v5878_v17, %v17030_v44  ;;  %5960 = vmatmul.bf16.gmra.mxu0 %v19707_v27  ;;  %6058 = vmatmul.bf16.gmra.mxu2 %v19707_v27 }
 0x7d2   :  { %v5782_v19 = vpop.f32.mrf.mxu1 }
 0x7d3   :  { %10188 = vmatmul.msk.bf16.gmra.mxu3 %vm19753_vm9, %v19708_v57  ;;  %v5783_v2 = vadd.f32 %v5782_v19, %v5733_v36  ;;  %vm19763_vm9 = vmmov %vm19692_vm1 }
 0x7d4   :  { %v5831_v13 = vpop.f32.mrf.mxu2 }
 0x7d5   :  { %v17202_v24 = vadd.f32 %v5783_v2, %v17038_v42  ;;  %10180 = vmatmul.msk.bf16.gmra.mxu1 %vm19754_vm13, %v19708_v57  ;;  %vm19765_vm13 = vmmov %vm19692_vm1 }
 0x7d6   :  { %v5880_v14 = vpop.f32.mrf.mxu3  ;;  %v5735_v10 = vpop.f32.mrf.mxu0 }
 0x7d7   :  { %v5881_v44 = vadd.f32 %v5880_v14, %v5831_v13 }
 0x7d9   :  { %v17207_v49 = vadd.f32 %v5881_v44, %v17043_v23 }
 0x7da   :  { %v5784_v61 = vpop.f32.mrf.mxu1 }
 0x7db   :  { %v5785_v27 = vadd.f32 %v5784_v61, %v5735_v10 }
 0x7dc   :  { %v5833_v52 = vpop.f32.mrf.mxu2 }
 0x7dd   :  { %v17210_v50 = vadd.f32 %v5785_v27, %v17046_v22 }
 0x7de   :  { %v5882_v47 = vpop.f32.mrf.mxu3  ;;  %v5738_v37 = vpop.f32.mrf.mxu0 }
 0x7df   :  { %v5883_v29 = vadd.f32 %v5882_v47, %v5833_v52 }
 0x7e1   :  { %v17213_v42 = vadd.f32 %v5883_v29, %v17049_v51  ;;  %5965 = vmatmul.bf16.gmra.mxu0 %v19711_v5  ;;  %6063 = vmatmul.bf16.gmra.mxu2 %v19711_v5 }
 0x7e2   :  { %v5787_v57 = vpop.f32.mrf.mxu1 }
 0x7e3   :  { %10189 = vmatmul.msk.bf16.gmra.mxu3 %vm19755_vm14, %v19712_v3  ;;  %v5788_v23 = vadd.f32 %v5787_v57, %v5738_v37  ;;  %vm19769_vm14 = vmmov %vm19692_vm1 }
 0x7e4   :  { %v5836_v43 = vpop.f32.mrf.mxu2 }
 0x7e5   :  { %v17220_v41 = vadd.f32 %v5788_v23, %v17056_v0  ;;  %10181 = vmatmul.msk.bf16.gmra.mxu1 %vm19692_vm1, %v19712_v3 }
 0x7e6   :  { %v5885_v22 = vpop.f32.mrf.mxu3  ;;  %v5740_v36 = vpop.f32.mrf.mxu0 }
 0x7e7   :  { %v5886_v51 = vadd.f32 %v5885_v22, %v5836_v43 }
 0x7e9   :  { %v17225_v28 = vadd.f32 %v5886_v51, %v17061_v32 }
 0x7ea   :  { %v5789_v17 = vpop.f32.mrf.mxu1 }
 0x7eb   :  { %v5790_v5 = vadd.f32 %v5789_v17, %v5740_v36 }
 0x7ec   :  { %v5838_v8 = vpop.f32.mrf.mxu2 }
 0x7ed   :  { %v17228_v19 = vadd.f32 %v5790_v5, %v17064_v16 }
 0x7ee   :  { %v5887_v2 = vpop.f32.mrf.mxu3  ;;  %v5743_v13 = vpop.f32.mrf.mxu0 }
 0x7ef   :  { %v5888_v14 = vadd.f32 %v5887_v2, %v5838_v8 }
 0x7f1   :  { %v17231_v0 = vadd.f32 %v5888_v14, %v17067_v40  ;;  %5970 = vmatmul.bf16.gmra.mxu0 %v19714_v18  ;;  %6068 = vmatmul.bf16.gmra.mxu2 %v19714_v18 }
 0x7f2   :  { %v5792_v3 = vpop.f32.mrf.mxu1 }
 0x7f3   :  { %10190 = vmatmul.msk.bf16.gmra.mxu3 %vm19756_vm6, %v19715_v21  ;;  %v5793_v32 = vadd.f32 %v5792_v3, %v5743_v13  ;;  %vm19776_vm6 = vmmov %vm19692_vm1 }
 0x7f4   :  { %v5841_v10 = vpop.f32.mrf.mxu2 }
 0x7f5   :  { %v17238_v44 = vadd.f32 %v5793_v32, %v17074_v63  ;;  %10182 = vmatmul.msk.bf16.gmra.mxu1 %vm19757_vm7, %v19715_v21  ;;  %vm19777_vm7 = vmmov %vm19692_vm1 }
 0x7f6   :  { %v5890_v16 = vpop.f32.mrf.mxu3  ;;  %v5745_v61 = vpop.f32.mrf.mxu0 }
 0x7f7   :  { %v5891_v40 = vadd.f32 %v5890_v16, %v5841_v10 }
 0x7f9   :  { %v17243_v27 = vadd.f32 %v5891_v40, %v17079_v7 }
 0x7fa   :  { %v5794_v52 = vpop.f32.mrf.mxu1 }
 0x7fb   :  { %v5795_v18 = vadd.f32 %v5794_v52, %v5745_v61 }
 0x7fc   :  { %v5843_v47 = vpop.f32.mrf.mxu2 }
 0x7fd   :  { %v17246_v37 = vadd.f32 %v5795_v18, %v17082_v48 }
 0x7fe   :  { %v5892_v29 = vpop.f32.mrf.mxu3  ;;  %v5748_v57 = vpop.f32.mrf.mxu0 }
 0x7ff   :  { %v5893_v23 = vadd.f32 %v5892_v29, %v5843_v47 }
 0x801   :  { %v17249_v63 = vadd.f32 %v5893_v23, %v17085_v33  ;;  %5975 = vmatmul.bf16.gmra.mxu0 %v19718_v9  ;;  %6073 = vmatmul.bf16.gmra.mxu2 %v19718_v9 }
 0x802   :  { %v5797_v21 = vpop.f32.mrf.mxu1 }
 0x803   :  { %10191 = vmatmul.msk.bf16.gmra.mxu3 %vm19758_vm10, %v19719_v11  ;;  %v5798_v7 = vadd.f32 %v5797_v21, %v5748_v57  ;;  %vm19780_vm10 = vmmov %vm19692_vm1 }
 0x804   :  { %v5846_v43 = vpop.f32.mrf.mxu2 }
 0x805   :  { %v17256_v22 = vadd.f32 %v5798_v7, %v17092_v56  ;;  %10183 = vmatmul.msk.bf16.gmra.mxu1 %vm19759_vm15, %v19719_v11  ;;  %vm19781_vm15 = vmmov %vm19692_vm1 }
 0x806   :  { %v5895_v48 = vpop.f32.mrf.mxu3  ;;  %v5750_v36 = vpop.f32.mrf.mxu0 }
 0x807   :  { %v5896_v33 = vadd.f32 %v5895_v48, %v5846_v43 }
 0x809   :  { %v17261_v51 = vadd.f32 %v5896_v33, %v17097_v26 }
 0x80a   :  { %v5799_v17 = vpop.f32.mrf.mxu1 }
 0x80b   :  { %19760 = vst [vmem:[#allocation39_spill] sm:$0xff] %v17261_v51  ;;  %v5800_v9 = vadd.f32 %v5799_v17, %v5750_v36 }
 0x80c   :  { %v5848_v5 = vpop.f32.mrf.mxu2 }
 0x80d   :  { %v17264_v8 = vadd.f32 %v5800_v9, %v17100_v34 }
 0x80e   :  { %v5897_v2 = vpop.f32.mrf.mxu3  ;;  %v5753_v13 = vpop.f32.mrf.mxu0 }
 0x80f   :  { %19761 = vst [vmem:[#allocation89_spill] sm:$0xff] %v17264_v8  ;;  %v5898_v14 = vadd.f32 %v5897_v2, %v5848_v5  ;;  %v19774_v5 = vld [vmem:[#allocation67_spill] sm:$0xff] }
 0x811   :  { %v17267_v56 = vadd.f32 %v5898_v14, %v17103_v30  ;;  %5980 = vmatmul.bf16.gmra.mxu0 %v19722_v25  ;;  %6078 = vmatmul.bf16.gmra.mxu2 %v19722_v25 }
 0x812   :  { %v5802_v11 = vpop.f32.mrf.mxu1 }
 0x813   :  { %19762 = vst [vmem:[#allocation13_spill] sm:$0xff] %v17267_v56  ;;  %10192 = vmatmul.msk.bf16.gmra.mxu3 %vm19763_vm9, %v19723_v20  ;;  %v5803_v26 = vadd.f32 %v5802_v11, %v5753_v13  ;;  %vm19784_vm9 = vmmov %vm19692_vm1 }
 0x814   :  { %v5851_v3 = vpop.f32.mrf.mxu2 }
 0x815   :  { %v17274_v32 = vadd.f32 %v5803_v26, %v17110_v55  ;;  %10184 = vmatmul.msk.bf16.gmra.mxu1 %vm19765_vm13, %v19723_v20  ;;  %vm19785_vm13 = vmmov %vm19692_vm1 }
 0x816   :  { %v5900_v34 = vpop.f32.mrf.mxu3  ;;  %v5755_v10 = vpop.f32.mrf.mxu0 }
 0x817   :  { %19764 = vst [vmem:[#allocation77_spill] sm:$0xff] %v17274_v32  ;;  %v5901_v30 = vadd.f32 %v5900_v34, %v5851_v3 }
 0x819   :  { %v17279_v16 = vadd.f32 %v5901_v30, %v17115_v60 }
 0x81a   :  { %v5804_v61 = vpop.f32.mrf.mxu1 }
 0x81b   :  { %19766 = vst [vmem:[#allocation79_spill] sm:$0xff] %v17279_v16  ;;  %v5805_v25 = vadd.f32 %v5804_v61, %v5755_v10  ;;  %v19778_v61 = vld [vmem:[#allocation70_spill] sm:$0xff] }
 0x81c   :  { %v5853_v40 = vpop.f32.mrf.mxu2  ;;  %v19805_v16 = vld [vmem:[#allocation62_spill] sm:$0xff] }
 0x81d   :  { %v17282_v52 = vadd.f32 %v5805_v25, %v17118_v45  ;;  %v19779_v25 = vld [vmem:[#allocation71_spill] sm:$0xff] }
 0x81e   :  { %v5902_v18 = vpop.f32.mrf.mxu3  ;;  %v5758_v47 = vpop.f32.mrf.mxu0 }
 0x81f   :  { %19767 = vst [vmem:[#allocation81_spill] sm:$0xff] %v17282_v52  ;;  %v5903_v29 = vadd.f32 %v5902_v18, %v5853_v40 }
 0x821   :  { %v17285_v55 = vadd.f32 %v5903_v29, %v17121_v39  ;;  %5985 = vmatmul.bf16.gmra.mxu0 %v19726_v62  ;;  %6083 = vmatmul.bf16.gmra.mxu2 %v19726_v62 }
 0x822   :  { %v5807_v20 = vpop.f32.mrf.mxu1 }
 0x823   :  { %19768 = vst [vmem:[#allocation84_spill] sm:$0xff] %v17285_v55  ;;  %10193 = vmatmul.msk.bf16.gmra.mxu3 %vm19769_vm14, %v19727_v38  ;;  %v5808_v60 = vadd.f32 %v5807_v20, %v5758_v47  ;;  %vm19788_vm14 = vmmov %vm19692_vm1 }
 0x824   :  { %v5856_v57 = vpop.f32.mrf.mxu2 }
 0x825   :  { %v17292_v23 = vadd.f32 %v5808_v60, %v17128_v58  ;;  %10185 = vmatmul.msk.bf16.gmra.mxu1 %vm19692_vm1, %v19727_v38  ;;  %v19775_v38 = vld [vmem:[#allocation68_spill] sm:$0xff] }
 0x826   :  { %v5905_v45 = vpop.f32.mrf.mxu3  ;;  %v5760_v21 = vpop.f32.mrf.mxu0 }
 0x827   :  { %19770 = vst [vmem:[#allocation87_spill] sm:$0xff] %v17292_v23  ;;  %v5906_v39 = vadd.f32 %v5905_v45, %v5856_v57 }
 0x829   :  { %v17297_v7 = vadd.f32 %v5906_v39, %v17133_v12 }
 0x82a   :  { %v5809_v43 = vpop.f32.mrf.mxu1 }
 0x82b   :  { %19771 = vst [vmem:[#allocation38_spill] sm:$0xff] %v17297_v7  ;;  %v5810_v62 = vadd.f32 %v5809_v43, %v5760_v21  ;;  %v19799_v7 = vld [vmem:[#allocation17_spill] sm:$0xff] }
 0x82c   :  { %v5858_v48 = vpop.f32.mrf.mxu2 }
 0x82d   :  { %v17300_v36 = vadd.f32 %v5810_v62, %v17136_v4 }
 0x82e   :  { %v5907_v33 = vpop.f32.mrf.mxu3  ;;  %v5951_v17 = vpop.f32.mrf.mxu0 }
 0x82f   :  { %19772 = vst [vmem:[#allocation109_spill] sm:$0xff] %v17300_v36  ;;  %v5908_v9 = vadd.f32 %v5907_v33, %v5858_v48  ;;  %v19782_v48 = vld [vmem:[#allocation54_spill] sm:$0xff] }
 0x830   :  { %v19783_v33 = vld [vmem:[#allocation46_spill] sm:$0xff] }
 0x831   :  { %v17303_v58 = vadd.f32 %v5908_v9, %v17139_v35  ;;  %6146 = vmatmul.bf16.vlgmr.msra.gmra.mxu0 %v19774_v5  ;;  %6244 = vmatmul.bf16.vlgmr.msra.gmra.mxu2 %v19774_v5 }
 0x832   :  { %v6000_v12 = vpop.f32.mrf.mxu1 }
 0x833   :  { %19773 = vst [vmem:[#allocation90_spill] sm:$0xff] %v17303_v58  ;;  %10202 = vmatmul.msk.bf16.vlgmr.msra.gmra.mxu3 %vm19776_vm6, %v19775_v38  ;;  %v17309_v2 = vadd.f32 %v6000_v12, %v5951_v17  ;;  %vm19791_vm6 = vmmov %vm19692_vm1 }
 0x834   :  { %v6049_v13 = vpop.f32.mrf.mxu2 }
 0x835   :  { %10194 = vmatmul.msk.bf16.vlgmr.msrb.gmra.mxu1 %vm19777_vm7, %v19775_v38  ;;  %vm19792_vm7 = vmmov %vm19692_vm1 }
 0x836   :  { %v6098_v14 = vpop.f32.mrf.mxu3  ;;  %v5953_v4 = vpop.f32.mrf.mxu0 }
 0x837   :  { %v17313_v11 = vadd.f32 %v6098_v14, %v6049_v13 }
 0x83a   :  { %v6002_v35 = vpop.f32.mrf.mxu1 }
 0x83b   :  { %v17315_v26 = vadd.f32 %v6002_v35, %v5953_v4 }
 0x83c   :  { %v6051_v3 = vpop.f32.mrf.mxu2 }
 0x83e   :  { %v6100_v34 = vpop.f32.mrf.mxu3  ;;  %v5956_v10 = vpop.f32.mrf.mxu0 }
 0x83f   :  { %v17317_v30 = vadd.f32 %v6100_v34, %v6051_v3 }
 0x841   :  { %6151 = vmatmul.bf16.gmra.mxu0 %v19778_v61  ;;  %6249 = vmatmul.bf16.gmra.mxu2 %v19778_v61  ;;  %v19786_v61 = vld [vmem:[#allocation56_spill] sm:$0xff] }
 0x842   :  { %v6005_v40 = vpop.f32.mrf.mxu1 }
 0x843   :  { %10203 = vmatmul.msk.bf16.gmra.mxu3 %vm19780_vm10, %v19779_v25  ;;  %v17323_v18 = vadd.f32 %v6005_v40, %v5956_v10  ;;  %vm19795_vm10 = vmmov %vm19692_vm1 }
 0x844   :  { %v6054_v47 = vpop.f32.mrf.mxu2 }
 0x845   :  { %10195 = vmatmul.msk.bf16.gmra.mxu1 %vm19781_vm15, %v19779_v25  ;;  %v19787_v25 = vld [vmem:[#allocation47_spill] sm:$0xff]  ;;  %vm19796_vm15 = vmmov %vm19692_vm1 }
 0x846   :  { %v6103_v29 = vpop.f32.mrf.mxu3  ;;  %v5958_v20 = vpop.f32.mrf.mxu0 }
 0x847   :  { %v17327_v60 = vadd.f32 %v6103_v29, %v6054_v47 }
 0x84a   :  { %v6007_v57 = vpop.f32.mrf.mxu1 }
 0x84b   :  { %v17329_v45 = vadd.f32 %v6007_v57, %v5958_v20 }
 0x84c   :  { %v6056_v21 = vpop.f32.mrf.mxu2 }
 0x84e   :  { %v6105_v39 = vpop.f32.mrf.mxu3  ;;  %v5961_v43 = vpop.f32.mrf.mxu0 }
 0x84f   :  { %v17331_v62 = vadd.f32 %v6105_v39, %v6056_v21 }
 0x851   :  { %6156 = vmatmul.bf16.gmra.mxu0 %v19782_v48  ;;  %6254 = vmatmul.bf16.gmra.mxu2 %v19782_v48 }
 0x852   :  { %v6010_v17 = vpop.f32.mrf.mxu1 }
 0x853   :  { %10204 = vmatmul.msk.bf16.gmra.mxu3 %vm19784_vm9, %v19783_v33  ;;  %v17337_v9 = vadd.f32 %v6010_v17, %v5961_v43  ;;  %vm19801_vm9 = vmmov %vm19692_vm1 }
 0x854   :  { %v6059_v5 = vpop.f32.mrf.mxu2 }
 0x855   :  { %10196 = vmatmul.msk.bf16.gmra.mxu1 %vm19785_vm13, %v19783_v33  ;;  %vm19802_vm13 = vmmov %vm19692_vm1 }
 0x856   :  { %v6108_v38 = vpop.f32.mrf.mxu3  ;;  %v5963_v12 = vpop.f32.mrf.mxu0 }
 0x857   :  { %v17341_v13 = vadd.f32 %v6108_v38, %v6059_v5  ;;  %v19789_v38 = vld [vmem:[#allocation11_spill] sm:$0xff] }
 0x85a   :  { %v6012_v14 = vpop.f32.mrf.mxu1 }
 0x85b   :  { %v17343_v4 = vadd.f32 %v6012_v14, %v5963_v12  ;;  %v19790_v12 = vld [vmem:[#allocation48_spill] sm:$0xff] }
 0x85c   :  { %v6061_v35 = vpop.f32.mrf.mxu2 }
 0x85e   :  { %v6110_v3 = vpop.f32.mrf.mxu3  ;;  %v5966_v34 = vpop.f32.mrf.mxu0 }
 0x85f   :  { %v17345_v10 = vadd.f32 %v6110_v3, %v6061_v35 }
 0x861   :  { %6161 = vmatmul.bf16.gmra.mxu0 %v19786_v61  ;;  %6259 = vmatmul.bf16.gmra.mxu2 %v19786_v61 }
 0x862   :  { %v6015_v40 = vpop.f32.mrf.mxu1 }
 0x863   :  { %10205 = vmatmul.msk.bf16.gmra.mxu3 %vm19788_vm14, %v19787_v25  ;;  %v17351_v47 = vadd.f32 %v6015_v40, %v5966_v34  ;;  %vm19807_vm14 = vmmov %vm19692_vm1 }
 0x864   :  { %v6064_v29 = vpop.f32.mrf.mxu2 }
 0x865   :  { %10197 = vmatmul.msk.bf16.gmra.mxu1 %vm19692_vm1, %v19787_v25 }
 0x866   :  { %v6113_v20 = vpop.f32.mrf.mxu3  ;;  %v5968_v57 = vpop.f32.mrf.mxu0 }
 0x867   :  { %v17355_v21 = vadd.f32 %v6113_v20, %v6064_v29 }
 0x86a   :  { %v6017_v39 = vpop.f32.mrf.mxu1 }
 0x86b   :  { %v17357_v43 = vadd.f32 %v6017_v39, %v5968_v57 }
 0x86c   :  { %v6066_v48 = vpop.f32.mrf.mxu2 }
 0x86e   :  { %v6115_v33 = vpop.f32.mrf.mxu3  ;;  %v5971_v17 = vpop.f32.mrf.mxu0 }
 0x86f   :  { %v17359_v5 = vadd.f32 %v6115_v33, %v6066_v48  ;;  %v19793_v33 = vld [vmem:[#allocation49_spill] sm:$0xff] }
 0x871   :  { %6166 = vmatmul.bf16.gmra.mxu0 %v19789_v38  ;;  %6264 = vmatmul.bf16.gmra.mxu2 %v19789_v38 }
 0x872   :  { %v6020_v14 = vpop.f32.mrf.mxu1 }
 0x873   :  { %10206 = vmatmul.msk.bf16.gmra.mxu3 %vm19791_vm6, %v19790_v12  ;;  %v17365_v35 = vadd.f32 %v6020_v14, %v5971_v17  ;;  %v19794_v17 = vld [vmem:[#allocation59_spill] sm:$0xff]  ;;  %vm19813_vm6 = vmmov %vm19692_vm1 }
 0x874   :  { %v6069_v3 = vpop.f32.mrf.mxu2 }
 0x875   :  { %10198 = vmatmul.msk.bf16.gmra.mxu1 %vm19792_vm7, %v19790_v12  ;;  %vm19814_vm7 = vmmov %vm19692_vm1 }
 0x876   :  { %v6118_v34 = vpop.f32.mrf.mxu3  ;;  %v5973_v61 = vpop.f32.mrf.mxu0 }
 0x877   :  { %v17369_v25 = vadd.f32 %v6118_v34, %v6069_v3 }
 0x87a   :  { %v6022_v40 = vpop.f32.mrf.mxu1 }
 0x87b   :  { %v17371_v29 = vadd.f32 %v6022_v40, %v5973_v61 }
 0x87c   :  { %v6071_v20 = vpop.f32.mrf.mxu2 }
 0x87e   :  { %v6120_v57 = vpop.f32.mrf.mxu3  ;;  %v5976_v39 = vpop.f32.mrf.mxu0 }
 0x87f   :  { %v17373_v48 = vadd.f32 %v6120_v57, %v6071_v20 }
 0x881   :  { %6171 = vmatmul.bf16.gmra.mxu0 %v19793_v33  ;;  %6269 = vmatmul.bf16.gmra.mxu2 %v19793_v33 }
 0x882   :  { %v6025_v38 = vpop.f32.mrf.mxu1 }
 0x883   :  { %10207 = vmatmul.msk.bf16.gmra.mxu3 %vm19795_vm10, %v19794_v17  ;;  %v17379_v14 = vadd.f32 %v6025_v38, %v5976_v39  ;;  %v19800_v39 = vld [vmem:[#allocation50_spill] sm:$0xff]  ;;  %vm19819_vm10 = vmmov %vm19692_vm1 }
 0x884   :  { %v6074_v12 = vpop.f32.mrf.mxu2 }
 0x885   :  { %10199 = vmatmul.msk.bf16.gmra.mxu1 %vm19796_vm15, %v19794_v17  ;;  %vm19824_vm15 = vmmov %vm19692_vm1 }
 0x886   :  { %v6123_v3 = vpop.f32.mrf.mxu3  ;;  %v5978_v34 = vpop.f32.mrf.mxu0 }
 0x887   :  { %v17383_v61 = vadd.f32 %v6123_v3, %v6074_v12 }
 0x88a   :  { %v6027_v40 = vpop.f32.mrf.mxu1 }
 0x88b   :  { %v17385_v20 = vadd.f32 %v6027_v40, %v5978_v34 }
 0x88c   :  { %v6076_v57 = vpop.f32.mrf.mxu2 }
 0x88d   :  { %19797 = vst [vmem:[#allocation37_spill] sm:$0xff] %v17385_v20 }
 0x88e   :  { %v6125_v58 = vpop.f32.mrf.mxu3  ;;  %v5981_v33 = vpop.f32.mrf.mxu0 }
 0x88f   :  { %v17387_v36 = vadd.f32 %v6125_v58, %v6076_v57 }
 0x891   :  { %19798 = vst [vmem:[#allocation96_spill] sm:$0xff] %v17387_v36  ;;  %6176 = vmatmul.bf16.gmra.mxu0 %v19799_v7  ;;  %6274 = vmatmul.bf16.gmra.mxu2 %v19799_v7 }
 0x892   :  { %v6030_v38 = vpop.f32.mrf.mxu1 }
 0x893   :  { %10208 = vmatmul.msk.bf16.gmra.mxu3 %vm19801_vm9, %v19800_v39  ;;  %v17393_v23 = vadd.f32 %v6030_v38, %v5981_v33  ;;  %v19806_v33 = vld [vmem:[#allocation24_spill] sm:$0xff]  ;;  %vm19829_vm9 = vmmov %vm19692_vm1 }
 0x894   :  { %v6079_v17 = vpop.f32.mrf.mxu2 }
 0x895   :  { %10200 = vmatmul.msk.bf16.gmra.mxu1 %vm19802_vm13, %v19800_v39  ;;  %vm19834_vm13 = vmmov %vm19692_vm1 }
 0x896   :  { %v6128_v12 = vpop.f32.mrf.mxu3  ;;  %v5983_v3 = vpop.f32.mrf.mxu0 }
 0x897   :  { %v17397_v34 = vadd.f32 %v6128_v12, %v6079_v17 }
 0x89a   :  { %v6032_v58 = vpop.f32.mrf.mxu1 }
 0x89b   :  { %v17399_v40 = vadd.f32 %v6032_v58, %v5983_v3 }
 0x89c   :  { %v6081_v57 = vpop.f32.mrf.mxu2 }
 0x89d   :  { %19803 = vst [vmem:[#allocation26_spill] sm:$0xff] %v17399_v40 }
 0x89e   :  { %v6130_v55 = vpop.f32.mrf.mxu3  ;;  %v5986_v7 = vpop.f32.mrf.mxu0 }
 0x89f   :  { %v17401_v52 = vadd.f32 %v6130_v55, %v6081_v57 }
 0x8a1   :  { %19804 = vst [vmem:[#allocation45_spill] sm:$0xff] %v17401_v52  ;;  %6181 = vmatmul.bf16.gmra.mxu0 %v19805_v16  ;;  %6279 = vmatmul.bf16.gmra.mxu2 %v19805_v16 }
 0x8a2   :  { %v6035_v38 = vpop.f32.mrf.mxu1 }
 0x8a3   :  { %10209 = vmatmul.msk.bf16.gmra.mxu3 %vm19807_vm14, %v19806_v33  ;;  %v17407_v32 = vadd.f32 %v6035_v38, %v5986_v7  ;;  %v19810_v7 = vld [vmem:[#allocation69_spill] sm:$0xff]  ;;  %vm19840_vm14 = vmmov %vm19692_vm1 }
 0x8a4   :  { %v6084_v39 = vpop.f32.mrf.mxu2 }
 0x8a5   :  { %10201 = vmatmul.msk.bf16.gmra.mxu1 %vm19692_vm1, %v19806_v33  ;;  %v19812_v33 = vld [vmem:[#allocation15_spill] sm:$0xff] }
 0x8a6   :  { %v6133_v17 = vpop.f32.mrf.mxu3  ;;  %v5988_v12 = vpop.f32.mrf.mxu0 }
 0x8a7   :  { %v17411_v3 = vadd.f32 %v6133_v17, %v6084_v39 }
 0x8aa   :  { %v6037_v55 = vpop.f32.mrf.mxu1 }
 0x8ab   :  { %v17413_v58 = vadd.f32 %v6037_v55, %v5988_v12 }
 0x8ac   :  { %v6086_v57 = vpop.f32.mrf.mxu2 }
 0x8ad   :  { %19808 = vst [vmem:[#allocation95_spill] sm:$0xff] %v17413_v58 }
 0x8ae   :  { %v6135_v52 = vpop.f32.mrf.mxu3  ;;  %v6147_v16 = vpop.f32.mrf.mxu0 }
 0x8af   :  { %v17415_v40 = vadd.f32 %v6135_v52, %v6086_v57  ;;  %v6148_v56 = vadd.f32 %v6147_v16, %v17309_v2 }
 0x8b1   :  { %19809 = vst [vmem:[#allocation132_spill] sm:$0xff] %v17415_v40  ;;  %10214 = vmatmul.msk.bf16.vlgmr.msrb.gmra.mxu0 %vm19095_vm3, %v19810_v7  ;;  %10262 = vmatmul.msk.bf16.vlgmr.msrb.gmra.mxu2 %vm19095_vm3, %v19810_v7  ;;  %vm19818_vm3 = vmmov %vm19692_vm1 }
 0x8b2   :  { %v6196_v39 = vpop.f32.mrf.mxu1 }
 0x8b3   :  { %10298 = vmatmul.msk.bf16.vlgmr.msrb.gmra.mxu3 %vm19813_vm6, %v19812_v33  ;;  %v17426_v17 = vadd.f32 %v6196_v39, %v6148_v56 }
 0x8b4   :  { %v6245_v12 = vpop.f32.mrf.mxu2 }
 0x8b5   :  { %v6246_v52 = vadd.f32 %v6245_v12, %v17313_v11  ;;  %10250 = vmatmul.msk.bf16.vlgmr.msra.gmra.mxu1 %vm19814_vm7, %v19812_v33  ;;  %v19815_v12 = vld [vmem:[#allocation6_spill] sm:$0xff] }
 0x8b6   :  { %v6294_v55 = vpop.f32.mrf.mxu3  ;;  %v6149_v57 = vpop.f32.mrf.mxu0 }
 0x8b7   :  { %v17431_v2 = vadd.f32 %v6294_v55, %v6246_v52  ;;  %v6150_v16 = vadd.f32 %v6149_v57, %v17315_v26  ;;  %v19817_v26 = vld [vmem:[#allocation7_spill] sm:$0xff] }
 0x8ba   :  { %v6198_v38 = vpop.f32.mrf.mxu1 }
 0x8bb   :  { %v17434_v7 = vadd.f32 %v6198_v38, %v6150_v16 }
 0x8bc   :  { %v6247_v40 = vpop.f32.mrf.mxu2 }
 0x8bd   :  { %v6248_v58 = vadd.f32 %v6247_v40, %v17317_v30 }
 0x8be   :  { %v6296_v56 = vpop.f32.mrf.mxu3  ;;  %v6152_v39 = vpop.f32.mrf.mxu0 }
 0x8bf   :  { %v17437_v8 = vadd.f32 %v6296_v56, %v6248_v58  ;;  %v6153_v11 = vadd.f32 %v6152_v39, %v17323_v18 }
 0x8c1   :  { %10219 = vmatmul.msk.bf16.gmra.mxu0 %vm13622_vm11, %v19815_v12  ;;  %10267 = vmatmul.msk.bf16.gmra.mxu2 %vm13622_vm11, %v19815_v12  ;;  %vm19823_vm11 = vmmov %vm19692_vm1 }
 0x8c2   :  { %v6201_v33 = vpop.f32.mrf.mxu1 }
 0x8c3   :  { %10299 = vmatmul.msk.bf16.gmra.mxu3 %vm19818_vm3, %v19817_v26  ;;  %v17448_v52 = vadd.f32 %v6201_v33, %v6153_v11  ;;  %v19820_v33 = vld [vmem:[#allocation55_spill] sm:$0xff] }
 0x8c4   :  { %v6250_v30 = vpop.f32.mrf.mxu2 }
 0x8c5   :  { %v6251_v40 = vadd.f32 %v6250_v30, %v17327_v60  ;;  %10251 = vmatmul.msk.bf16.gmra.mxu1 %vm19819_vm10, %v19817_v26 }
 0x8c6   :  { %v6299_v58 = vpop.f32.mrf.mxu3  ;;  %v6154_v55 = vpop.f32.mrf.mxu0 }
 0x8c7   :  { %v17453_v18 = vadd.f32 %v6299_v58, %v6251_v40  ;;  %v6155_v57 = vadd.f32 %v6154_v55, %v17329_v45  ;;  %v19822_v45 = vld [vmem:[#allocation21_spill] sm:$0xff] }
 0x8ca   :  { %v6203_v51 = vpop.f32.mrf.mxu1 }
 0x8cb   :  { %v17456_v16 = vadd.f32 %v6203_v51, %v6155_v57 }
 0x8cc   :  { %v6252_v38 = vpop.f32.mrf.mxu2 }
 0x8cd   :  { %v6253_v56 = vadd.f32 %v6252_v38, %v17331_v62 }
 0x8ce   :  { %v6301_v39 = vpop.f32.mrf.mxu3  ;;  %v6157_v11 = vpop.f32.mrf.mxu0 }
 0x8cf   :  { %v17459_v12 = vadd.f32 %v6301_v39, %v6253_v56  ;;  %v6158_v60 = vadd.f32 %v6157_v11, %v17337_v9 }
 0x8d1   :  { %10224 = vmatmul.msk.bf16.gmra.mxu0 %vm13674_vm2, %v19820_v33  ;;  %10272 = vmatmul.msk.bf16.gmra.mxu2 %vm13674_vm2, %v19820_v33  ;;  %vm19828_vm2 = vmmov %vm19692_vm1 }
 0x8d2   :  { %v6206_v26 = vpop.f32.mrf.mxu1 }
 0x8d3   :  { %10300 = vmatmul.msk.bf16.gmra.mxu3 %vm19823_vm11, %v19822_v45  ;;  %v17470_v40 = vadd.f32 %v6206_v26, %v6158_v60  ;;  %v19825_v26 = vld [vmem:[#allocation57_spill] sm:$0xff] }
 0x8d4   :  { %v6255_v62 = vpop.f32.mrf.mxu2 }
 0x8d5   :  { %v6256_v58 = vadd.f32 %v6255_v62, %v17341_v13  ;;  %10252 = vmatmul.msk.bf16.gmra.mxu1 %vm19824_vm15, %v19822_v45 }
 0x8d6   :  { %v6304_v55 = vpop.f32.mrf.mxu3  ;;  %v6159_v57 = vpop.f32.mrf.mxu0 }
 0x8d7   :  { %v17475_v9 = vadd.f32 %v6304_v55, %v6256_v58  ;;  %v6160_v51 = vadd.f32 %v6159_v57, %v17343_v4  ;;  %v19827_v4 = vld [vmem:[#allocation12_spill] sm:$0xff] }
 0x8da   :  { %v6208_v38 = vpop.f32.mrf.mxu1 }
 0x8db   :  { %v17478_v56 = vadd.f32 %v6208_v38, %v6160_v51 }
 0x8dc   :  { %v6257_v39 = vpop.f32.mrf.mxu2 }
 0x8dd   :  { %v6258_v11 = vadd.f32 %v6257_v39, %v17345_v10 }
 0x8de   :  { %v6306_v60 = vpop.f32.mrf.mxu3  ;;  %v6162_v33 = vpop.f32.mrf.mxu0 }
 0x8df   :  { %v17481_v30 = vadd.f32 %v6306_v60, %v6258_v11  ;;  %v6163_v13 = vadd.f32 %v6162_v33, %v17351_v47 }
 0x8e1   :  { %10229 = vmatmul.msk.bf16.gmra.mxu0 %vm13726_vm5, %v19825_v26  ;;  %10277 = vmatmul.msk.bf16.gmra.mxu2 %vm13726_vm5, %v19825_v26  ;;  %vm19833_vm5 = vmmov %vm19692_vm1 }
 0x8e2   :  { %v6211_v45 = vpop.f32.mrf.mxu1 }
 0x8e3   :  { %10301 = vmatmul.msk.bf16.gmra.mxu3 %vm19828_vm2, %v19827_v4  ;;  %v17492_v58 = vadd.f32 %v6211_v45, %v6163_v13  ;;  %v19830_v45 = vld [vmem:[#allocation58_spill] sm:$0xff] }
 0x8e4   :  { %v6260_v10 = vpop.f32.mrf.mxu2 }
 0x8e5   :  { %v6261_v55 = vadd.f32 %v6260_v10, %v17355_v21  ;;  %10253 = vmatmul.msk.bf16.gmra.mxu1 %vm19829_vm9, %v19827_v4 }
 0x8e6   :  { %v6309_v57 = vpop.f32.mrf.mxu3  ;;  %v6164_v51 = vpop.f32.mrf.mxu0 }
 0x8e7   :  { %v17497_v47 = vadd.f32 %v6309_v57, %v6261_v55  ;;  %v6165_v38 = vadd.f32 %v6164_v51, %v17357_v43  ;;  %v19832_v43 = vld [vmem:[#allocation29_spill] sm:$0xff] }
 0x8ea   :  { %v6213_v39 = vpop.f32.mrf.mxu1 }
 0x8eb   :  { %v17500_v11 = vadd.f32 %v6213_v39, %v6165_v38 }
 0x8ec   :  { %v6262_v60 = vpop.f32.mrf.mxu2 }
 0x8ed   :  { %v6263_v33 = vadd.f32 %v6262_v60, %v17359_v5 }
 0x8ee   :  { %v6311_v13 = vpop.f32.mrf.mxu3  ;;  %v6167_v26 = vpop.f32.mrf.mxu0 }
 0x8ef   :  { %v17503_v62 = vadd.f32 %v6311_v13, %v6263_v33  ;;  %v6168_v21 = vadd.f32 %v6167_v26, %v17365_v35 }
 0x8f1   :  { %10234 = vmatmul.msk.bf16.gmra.mxu0 %vm13783_vm12, %v19830_v45  ;;  %10282 = vmatmul.msk.bf16.gmra.mxu2 %vm13783_vm12, %v19830_v45  ;;  %vm19838_vm12 = vmmov %vm19692_vm1 }
 0x8f2   :  { %v6216_v4 = vpop.f32.mrf.mxu1 }
 0x8f3   :  { %10302 = vmatmul.msk.bf16.gmra.mxu3 %vm19833_vm5, %v19832_v43  ;;  %v17514_v55 = vadd.f32 %v6216_v4, %v6168_v21  ;;  %v19835_v21 = vld [vmem:[#allocation18_spill] sm:$0xff]  ;;  %vm7938_vm5 = vcmask 1041408  }
 0x8f4   :  { %v6265_v5 = vpop.f32.mrf.mxu2 }
 0x8f5   :  { %v6266_v57 = vadd.f32 %v6265_v5, %v17369_v25  ;;  %10254 = vmatmul.msk.bf16.gmra.mxu1 %vm19834_vm13, %v19832_v43  ;;  %v19837_v25 = vld [vmem:[#allocation60_spill] sm:$0xff]  ;;  %vm7934_vm13 = vcmask 818176  }
 0x8f6   :  { %v6314_v51 = vpop.f32.mrf.mxu3  ;;  %v17517_v38 = vpop.f32.mrf.mxu0 }
 0x8f7   :  { %v17521_v35 = vadd.f32 %v6314_v51, %v6266_v57 }
 0x8fa   :  { %v17523_v39 = vpop.f32.mrf.mxu1 }
 0x8fc   :  { %v17525_v60 = vpop.f32.mrf.mxu2 }
 0x8fe   :  { %v17527_v33 = vpop.f32.mrf.mxu3  ;;  %v6172_v13 = vpop.f32.mrf.mxu0 }
 0x8ff   :  { %v6173_v26 = vadd.f32 %v6172_v13, %v17379_v14 }
 0x901   :  { %10239 = vmatmul.msk.bf16.gmra.mxu0 %vm13910_vm0, %v19835_v21  ;;  %10287 = vmatmul.msk.bf16.gmra.mxu2 %vm13910_vm0, %v19835_v21  ;;  %vm19847_vm0 = vmmov %vm19692_vm1 }
 0x902   :  { %v6221_v10 = vpop.f32.mrf.mxu1  ;;  %vm19850_vm1 = vmmov %vm19847_vm0 }
 0x903   :  { %10303 = vmatmul.msk.bf16.gmra.mxu3 %vm19838_vm12, %v19837_v25  ;;  %v17538_v43 = vadd.f32 %v6221_v10, %v6173_v26  ;;  %v19844_v10 = vld [vmem:[#allocation35_spill] sm:$0xff]  ;;  %vm19861_vm6 = vmmov %vm19847_vm0 }
 0x904   :  { %v6270_v4 = vpop.f32.mrf.mxu2  ;;  %vm19996_vm7 = vmmov %vm19847_vm0 }
 0x905   :  { %v6271_v5 = vadd.f32 %v6270_v4, %v17383_v61  ;;  %10255 = vmatmul.msk.bf16.gmra.mxu1 %vm19840_vm14, %v19837_v25  ;;  %v19846_v61 = vld [vmem:[#allocation51_spill] sm:$0xff]  ;;  %vm19997_vm3 = vmmov %vm19847_vm0 }
 0x906   :  { %v6319_v57 = vpop.f32.mrf.mxu3  ;;  %v17541_v51 = vpop.f32.mrf.mxu0  ;;  %vm19998_vm10 = vmmov %vm19847_vm0 }
 0x907   :  { %19839 = vst [vmem:[#allocation97_spill] sm:$0xff] %v17541_v51  ;;  %v17545_v14 = vadd.f32 %v6319_v57, %v6271_v5  ;;  %v19870_v51 = vld [vmem:[#allocation136_spill] sm:$0xff]  ;;  %vm19999_vm11 = vmmov %vm19847_vm0 }
 0x908   :  { %vm20000_vm15 = vmmov %vm19847_vm0 }
 0x909   :  { %vm20001_vm2 = vmmov %vm19847_vm0 }
 0x90a   :  { %v17547_v13 = vpop.f32.mrf.mxu1  ;;  %vm20002_vm9 = vmmov %vm19847_vm0 }
 0x90b   :  { %19841 = vst [vmem:[#allocation99_spill] sm:$0xff] %v17547_v13 }
 0x90c   :  { %v17549_v21 = vpop.f32.mrf.mxu2 }
 0x90d   :  { %19842 = vst [vmem:[#allocation98_spill] sm:$0xff] %v17549_v21 }
 0x90e   :  { %v17551_v45 = vpop.f32.mrf.mxu3  ;;  %v6177_v36 = vpop.f32.mrf.mxu0 }
 0x90f   :  { %19843 = vst [vmem:[#allocation32_spill] sm:$0xff] %v17551_v45  ;;  %v6178_v26 = vadd.f32 %v6177_v36, %v17393_v23 }
 0x911   :  { %10244 = vmatmul.msk.bf16.gmra.mxu0 %vm14071_vm4, %v19844_v10  ;;  %10292 = vmatmul.msk.bf16.gmra.mxu2 %vm14071_vm4, %v19844_v10  ;;  %vm19858_vm4 = vmmov %vm19847_vm0 }
 0x912   :  { %v6226_v25 = vpop.f32.mrf.mxu1 }
 0x913   :  { %10304 = vmatmul.msk.bf16.gmra.mxu3 %vm19847_vm0, %v19846_v61  ;;  %v17562_v4 = vadd.f32 %v6226_v25, %v6178_v26  ;;  %v19855_v25 = vld [vmem:[#allocation23_spill] sm:$0xff] }
 0x914   :  { %v6275_v5 = vpop.f32.mrf.mxu2 }
 0x915   :  { %19848 = vst [vmem:[#allocation107_spill] sm:$0xff] %v17562_v4  ;;  %v6276_v57 = vadd.f32 %v6275_v5, %v17397_v34  ;;  %10256 = vmatmul.msk.bf16.gmra.mxu1 %vm19850_vm1, %v19846_v61  ;;  %v19857_v34 = vld [vmem:[#allocation27_spill] sm:$0xff] }
 0x916   :  { %v6324_v45 = vpop.f32.mrf.mxu3  ;;  %v17565_v13 = vpop.f32.mrf.mxu0 }
 0x917   :  { %19849 = vst [vmem:[#allocation100_spill] sm:$0xff] %v17565_v13  ;;  %v17569_v23 = vadd.f32 %v6324_v45, %v6276_v57 }
 0x919   :  { %19851 = vst [vmem:[#allocation31_spill] sm:$0xff] %v17569_v23 }
 0x91a   :  { %v17571_v36 = vpop.f32.mrf.mxu1 }
 0x91b   :  { %19852 = vst [vmem:[#allocation141_spill] sm:$0xff] %v17571_v36 }
 0x91c   :  { %v17573_v20 = vpop.f32.mrf.mxu2 }
 0x91d   :  { %19853 = vst [vmem:[#allocation142_spill] sm:$0xff] %v17573_v20 }
 0x91e   :  { %v17575_v10 = vpop.f32.mrf.mxu3  ;;  %v6182_v21 = vpop.f32.mrf.mxu0 }
 0x91f   :  { %19854 = vst [vmem:[#allocation44_spill] sm:$0xff] %v17575_v10  ;;  %v6183_v26 = vadd.f32 %v6182_v21, %v17407_v32 }
 0x921   :  { %10249 = vmatmul.msk.bf16.gmra.mxu0 %vm14158_vm8, %v19855_v25  ;;  %10297 = vmatmul.msk.bf16.gmra.mxu2 %vm14158_vm8, %v19855_v25  ;;  %vm19995_vm8 = vmmov %vm19847_vm0 }
 0x922   :  { %v6231_v45 = vpop.f32.mrf.mxu1 }
 0x923   :  { %10305 = vmatmul.msk.bf16.gmra.mxu3 %vm19858_vm4, %v19857_v34  ;;  %v17586_v61 = vadd.f32 %v6231_v45, %v6183_v26 }
 0x924   :  { %v6280_v5 = vpop.f32.mrf.mxu2 }
 0x925   :  { %19859 = vst [vmem:[#allocation63_spill] sm:$0xff] %v17586_v61  ;;  %v6281_v57 = vadd.f32 %v6280_v5, %v17411_v3  ;;  %10257 = vmatmul.msk.bf16.gmra.mxu1 %vm19861_vm6, %v19857_v34  ;;  %v19866_v34 = vld [vmem:[#allocation139_spill] sm:$0xff] }
 0x926   :  { %v6329_v10 = vpop.f32.mrf.mxu3  ;;  %v17589_v36 = vpop.f32.mrf.mxu0 }
 0x927   :  { %19860 = vst [vmem:[#allocation65_spill] sm:$0xff] %v17589_v36  ;;  %v17593_v32 = vadd.f32 %v6329_v10, %v6281_v57  ;;  %v19867_v57 = vld [vmem:[#allocation134_spill] sm:$0xff] }
 0x929   :  { %19862 = vst [vmem:[#allocation52_spill] sm:$0xff] %v17593_v32 }
 0x92a   :  { %v17595_v21 = vpop.f32.mrf.mxu1 }
 0x92b   :  { %19863 = vst [vmem:[#allocation9_spill] sm:$0xff] %v17595_v21  ;;  %v19868_v21 = vmax.f32 %v19866_v34, %v19867_v57  ;;  %v19872_v34 = vld [vmem:[#allocation110_spill] sm:$0xff] }
 0x92c   :  { %v17597_v4 = vpop.f32.mrf.mxu2 }
 0x92d   :  { %19864 = vst [vmem:[#allocation66_spill] sm:$0xff] %v17597_v4 }
 0x92e   :  { %v17599_v25 = vpop.f32.mrf.mxu3  ;;  %v6343_v20 = vpop.f32.mrf.mxu0 }
 0x92f   :  { %19865 = vst [vmem:[#allocation41_spill] sm:$0xff] %v17599_v25 }
 0x932   :  { %v6392_v26 = vpop.f32.mrf.mxu1 }
 0x933   :  { %v6393_v45 = vadd.f32 %v6392_v26, %v6343_v20  ;;  %v6626_v20 = vld [vmem:[%s18166_s6] sm:$0x3] }
 0x934   :  { %v6441_v61 = vpop.f32.mrf.mxu2 }
 0x935   :  { %v6530_v3 = vadd.f32 %v6393_v45, %v17426_v17  ;;  %v19869_v45 = vld [vmem:[#allocation140_spill] sm:$0xff] }
 0x936   :  { %v6490_v5 = vpop.f32.mrf.mxu3  ;;  %v6345_v13 = vpop.f32.mrf.mxu0 }
 0x937   :  { %v6491_v36 = vadd.f32 %v6490_v5, %v6441_v61  ;;  %v6562_v23 = vmax.f32 %v17149_v46, %v6530_v3  ;;  %v19871_v61 = vmax.f32 %v19869_v45, %v19870_v51  ;;  %v17615_v3 = vperm.slane %v6626_v20, 0 }
 0x939   :  { %v6531_v10 = vadd.f32 %v6491_v36, %v17431_v2  ;;  %v6594_v32 = vmax.f32 %v19868_v21, %v6562_v23 }
 0x93a   :  { %v6394_v25 = vpop.f32.mrf.mxu1 }
 0x93b   :  { %v6563_v4 = vmax.f32 %v17158_v6, %v6531_v10  ;;  %v6395_v26 = vadd.f32 %v6394_v25, %v6345_v13  ;;  %v17619_v10 = vperm.slane %v6626_v20, 1  ;;  %v19873_v13 = vld [vmem:[#allocation101_spill] sm:$0xff]  ;;  %v6632_v51 = vadd.f32 %v17615_v3, %v6594_v32 }
 0x93c   :  { %v6443_v17 = vpop.f32.mrf.mxu2  ;;  %v19874_v25 = vmax.f32 %v19872_v34, %v19873_v13 }
 0x93d   :  { %v6595_v5 = vmax.f32 %v19871_v61, %v6563_v4  ;;  %v6532_v46 = vadd.f32 %v6395_v26, %v17434_v7 }
 0x93e   :  { %v6492_v2 = vpop.f32.mrf.mxu3  ;;  %v6348_v36 = vpop.f32.mrf.mxu0 }
 0x93f   :  { %v6493_v23 = vadd.f32 %v6492_v2, %v6443_v17  ;;  %v6564_v6 = vmax.f32 %v17164_v31, %v6532_v46  ;;  %v19875_v17 = vld [vmem:[#allocation112_spill] sm:$0xff]  ;;  %v19876_v2 = vld [vmem:[#allocation103_spill] sm:$0xff] }
 0x940   :  { %v19877_v31 = vmax.f32 %v19875_v17, %v19876_v2  ;;  %v19879_v17 = vld [vmem:[#allocation102_spill] sm:$0xff] }
 0x941   :  { %v6533_v21 = vadd.f32 %v6493_v23, %v17437_v8  ;;  %v6596_v57 = vmax.f32 %v19874_v25, %v6564_v6  ;;  %v6633_v8 = vadd.f32 %v17619_v10, %v6595_v5  ;;  %v6664_v6 = vmax.f32 %v6632_v51, 0.0 }
 0x942   :  { %v6397_v7 = vpop.f32.mrf.mxu1 }
 0x943   :  { %v6565_v4 = vmax.f32 %v17169_v53, %v6533_v21  ;;  %v6398_v26 = vadd.f32 %v6397_v7, %v6348_v36  ;;  %v6634_v61 = vadd.f32 %v17615_v3, %v6596_v57  ;;  %v6665_v57 = vmax.f32 %v6633_v8, 0.0 }
 0x944   :  { %v6446_v45 = vpop.f32.mrf.mxu2 }
 0x945   :  { %v6597_v46 = vmax.f32 %v19877_v31, %v6565_v4  ;;  %v6534_v20 = vadd.f32 %v6398_v26, %v17448_v52  ;;  %v6666_v13 = vmax.f32 %v6634_v61, 0.0  ;;  %v19878_v4 = vld [vmem:[#allocation111_spill] sm:$0xff]  ;;  %v19881_v31 = vld [vmem:[#allocation113_spill] sm:$0xff] }
 0x946   :  { %v6495_v23 = vpop.f32.mrf.mxu3  ;;  %v6350_v34 = vpop.f32.mrf.mxu0  ;;  %v19880_v5 = vmax.f32 %v19878_v4, %v19879_v17 }
 0x947   :  { %v6496_v32 = vadd.f32 %v6495_v23, %v6446_v45  ;;  %v6635_v53 = vadd.f32 %v17619_v10, %v6597_v46  ;;  %v6566_v36 = vmax.f32 %v17178_v1, %v6534_v20  ;;  %v17634_v21 = vpack.c.bf16 %v6666_v13, %v6664_v6  ;;  %v19882_v46 = vld [vmem:[#allocation104_spill] sm:$0xff] }
 0x948   :  { %v19883_v1 = vmax.f32 %v19881_v31, %v19882_v46 }
 0x949   :  { %v6535_v25 = vadd.f32 %v6496_v32, %v17453_v18  ;;  %v6667_v7 = vmax.f32 %v6635_v53, 0.0  ;;  %v6598_v2 = vmax.f32 %v19880_v5, %v6566_v36  ;;  %v19884_v53 = vld [vmem:[#allocation3_spill] sm:$0xff]  ;;  %v19887_v5 = vld [vmem:[#allocation2_spill] sm:$0xff] }
 0x94a   :  { %v6399_v26 = vpop.f32.mrf.mxu1 }
 0x94b   :  { %v6567_v52 = vmax.f32 %v17185_v15, %v6535_v25  ;;  %v17641_v51 = vpack.c.bf16 %v6667_v7, %v6665_v57  ;;  %v6400_v45 = vadd.f32 %v6399_v26, %v6350_v34  ;;  %v19885_v15 = vld [vmem:[#allocation137_spill] sm:$0xff]  ;;  %v6636_v34 = vadd.f32 %v17615_v3, %v6598_v2 }
 0x94c   :  { %v6448_v61 = vpop.f32.mrf.mxu2  ;;  %v19886_v36 = vmax.f32 %v19884_v53, %v19885_v15  ;;  %v19891_v53 = vld [vmem:[#allocation105_spill] sm:$0xff] }
 0x94d   :  { %v6599_v20 = vmax.f32 %v19883_v1, %v6567_v52  ;;  %v6536_v23 = vadd.f32 %v6400_v45, %v17456_v16  ;;  %v19888_v52 = vld [vmem:[#allocation138_spill] sm:$0xff]  ;;  %v6668_v46 = vmax.f32 %v6636_v34, 0.0 }
 0x94e   :  { %v6497_v18 = vpop.f32.mrf.mxu3  ;;  %v6353_v8 = vpop.f32.mrf.mxu0  ;;  %v19889_v26 = vmax.f32 %v19887_v5, %v19888_v52 }
 0x94f   :  { %v6498_v6 = vadd.f32 %v6497_v18, %v6448_v61  ;;  %v6568_v13 = vmax.f32 %v17190_v59, %v6536_v23  ;;  %v6637_v59 = vadd.f32 %v17619_v10, %v6599_v20 }
 0x951   :  { %v6537_v32 = vadd.f32 %v6498_v6, %v17459_v12  ;;  %v6600_v25 = vmax.f32 %v19886_v36, %v6568_v13  ;;  %v6669_v6 = vmax.f32 %v6637_v59, 0.0  ;;  %v19896_v59 = vld [vmem:[#allocation114_spill] sm:$0xff] }
 0x952   :  { %v6402_v7 = vpop.f32.mrf.mxu1 }
 0x953   :  { %v6569_v57 = vmax.f32 %v17195_v54, %v6537_v32  ;;  %v6403_v4 = vadd.f32 %v6402_v7, %v6353_v8  ;;  %v6638_v16 = vadd.f32 %v17615_v3, %v6600_v25  ;;  %v19890_v32 = vld [vmem:[#allocation42_spill] sm:$0xff]  ;;  %v19893_v7 = vld [vmem:[#allocation43_spill] sm:$0xff] }
 0x954   :  { %v6451_v17 = vpop.f32.mrf.mxu2  ;;  %v19892_v20 = vmax.f32 %v19890_v32, %v19891_v53 }
 0x955   :  { %v6601_v45 = vmax.f32 %v19889_v26, %v6569_v57  ;;  %v6538_v12 = vadd.f32 %v6403_v4, %v17470_v40  ;;  %v6670_v1 = vmax.f32 %v6638_v16, 0.0  ;;  %v19894_v4 = vld [vmem:[#allocation108_spill] sm:$0xff] }
 0x956   :  { %v6500_v61 = vpop.f32.mrf.mxu3  ;;  %v6355_v31 = vpop.f32.mrf.mxu0 }
 0x957   :  { %v6501_v2 = vadd.f32 %v6500_v61, %v6451_v17  ;;  %v6639_v54 = vadd.f32 %v17619_v10, %v6601_v45  ;;  %v6570_v23 = vmax.f32 %v17202_v24, %v6538_v12  ;;  %v17662_v18 = vpack.c.bf16 %v6670_v1, %v6668_v46 }
 0x958   :  { %v19895_v24 = vmax.f32 %v19893_v7, %v19894_v4 }
 0x959   :  { %v6539_v8 = vadd.f32 %v6501_v2, %v17475_v9  ;;  %v6671_v13 = vmax.f32 %v6639_v54, 0.0  ;;  %v6602_v15 = vmax.f32 %v19892_v20, %v6570_v23  ;;  %v19899_v23 = vld [vmem:[#allocation115_spill] sm:$0xff] }
 0x95a   :  { %v6404_v36 = vpop.f32.mrf.mxu1 }
 0x95b   :  { %v6571_v40 = vmax.f32 %v17207_v49, %v6539_v8  ;;  %v17669_v25 = vpack.c.bf16 %v6671_v13, %v6669_v6  ;;  %v6405_v34 = vadd.f32 %v6404_v36, %v6355_v31  ;;  %v19897_v49 = vld [vmem:[#allocation143_spill] sm:$0xff]  ;;  %v6640_v31 = vadd.f32 %v17615_v3, %v6602_v15  ;;  %v19900_v8 = vld [vmem:[#allocation144_spill] sm:$0xff] }
 0x95c   :  { %v6453_v57 = vpop.f32.mrf.mxu2  ;;  %v19898_v12 = vmax.f32 %v19896_v59, %v19897_v49  ;;  %v19901_v6 = vmax.f32 %v19899_v23, %v19900_v8  ;;  %v19905_v59 = vld [vmem:[#allocation116_spill] sm:$0xff]  ;;  %v19906_v49 = vld [vmem:[#allocation146_spill] sm:$0xff] }
 0x95d   :  { %v6603_v17 = vmax.f32 %v19895_v24, %v6571_v40  ;;  %v6540_v16 = vadd.f32 %v6405_v34, %v17478_v56  ;;  %v6672_v20 = vmax.f32 %v6640_v31, 0.0  ;;  %v19902_v24 = vld [vmem:[#allocation122_spill] sm:$0xff] }
 0x95e   :  { %v6502_v9 = vpop.f32.mrf.mxu3  ;;  %v6358_v5 = vpop.f32.mrf.mxu0 }
 0x95f   :  { %v6503_v52 = vadd.f32 %v6502_v9, %v6453_v57  ;;  %v6572_v26 = vmax.f32 %v17210_v50, %v6540_v16  ;;  %v6641_v50 = vadd.f32 %v17619_v10, %v6603_v17  ;;  %v19903_v16 = vld [vmem:[#allocation145_spill] sm:$0xff] }
 0x960   :  { %v19904_v17 = vmax.f32 %v19902_v24, %v19903_v16 }
 0x961   :  { %v6541_v45 = vadd.f32 %v6503_v52, %v17481_v30  ;;  %v6604_v61 = vmax.f32 %v19898_v12, %v6572_v26  ;;  %v6673_v7 = vmax.f32 %v6641_v50, 0.0 }
 0x962   :  { %v6407_v1 = vpop.f32.mrf.mxu1 }
 0x963   :  { %v6573_v46 = vmax.f32 %v17213_v42, %v6541_v45  ;;  %v6408_v2 = vadd.f32 %v6407_v1, %v6358_v5  ;;  %v6642_v56 = vadd.f32 %v17615_v3, %v6604_v61 }
 0x964   :  { %v6456_v54 = vpop.f32.mrf.mxu2 }
 0x965   :  { %v6605_v13 = vmax.f32 %v19901_v6, %v6573_v46  ;;  %v6542_v30 = vadd.f32 %v6408_v2, %v17492_v58  ;;  %v6674_v40 = vmax.f32 %v6642_v56, 0.0 }
 0x966   :  { %v6505_v32 = vpop.f32.mrf.mxu3  ;;  %v6360_v53 = vpop.f32.mrf.mxu0 }
 0x967   :  { %v6506_v15 = vadd.f32 %v6505_v32, %v6456_v54  ;;  %v6643_v42 = vadd.f32 %v17619_v10, %v6605_v13  ;;  %v6574_v36 = vmax.f32 %v17220_v41, %v6542_v30  ;;  %v17690_v34 = vpack.c.bf16 %v6674_v40, %v6672_v20  ;;  %v19908_v54 = vld [vmem:[#allocation133_spill] sm:$0xff] }
 0x968   :  { %v19907_v41 = vmax.f32 %v19905_v59, %v19906_v49  ;;  %v19911_v32 = vld [vmem:[#allocation117_spill] sm:$0xff]  ;;  %v6268_v59 = vadd.f32 %v17525_v60, %v17373_v48  ;;  %v19920_v60 = vld [vmem:[#allocation135_spill] sm:$0xff] }
 0x969   :  { %v6543_v57 = vadd.f32 %v6506_v15, %v17497_v47  ;;  %v6675_v4 = vmax.f32 %v6643_v42, 0.0  ;;  %v6606_v9 = vmax.f32 %v19904_v17, %v6574_v36 }
 0x96a   :  { %v6409_v5 = vpop.f32.mrf.mxu1 }
 0x96b   :  { %v6575_v58 = vmax.f32 %v17225_v28, %v6543_v57  ;;  %v17697_v52 = vpack.c.bf16 %v6675_v4, %v6673_v7  ;;  %v6410_v26 = vadd.f32 %v6409_v5, %v6360_v53  ;;  %v19909_v28 = vld [vmem:[#allocation147_spill] sm:$0xff]  ;;  %v6644_v8 = vadd.f32 %v17615_v3, %v6606_v9  ;;  %v19912_v53 = vld [vmem:[#allocation148_spill] sm:$0xff] }
 0x96c   :  { %v6458_v45 = vpop.f32.mrf.mxu2  ;;  %v19910_v56 = vmax.f32 %v19908_v54, %v19909_v28  ;;  %v19913_v20 = vmax.f32 %v19911_v32, %v19912_v53  ;;  %v19914_v5 = vld [vmem:[#allocation131_spill] sm:$0xff]  ;;  %v6317_v54 = vadd.f32 %v17527_v33, %v6268_v59  ;;  %v19924_v53 = vld [vmem:[#allocation152_spill] sm:$0xff]  ;;  %v19932_v59 = vld [vmem:[#allocation98_spill] sm:$0xff] }
 0x96d   :  { %v6607_v12 = vmax.f32 %v19907_v41, %v6575_v58  ;;  %v6544_v61 = vadd.f32 %v6410_v26, %v17500_v11  ;;  %v6676_v36 = vmax.f32 %v6644_v8, 0.0  ;;  %v6170_v58 = vadd.f32 %v17517_v38, %v17371_v29  ;;  %v19923_v32 = vld [vmem:[#allocation119_spill] sm:$0xff] }
 0x96e   :  { %v6507_v47 = vpop.f32.mrf.mxu3  ;;  %v6363_v31 = vpop.f32.mrf.mxu0  ;;  %v19925_v33 = vmax.f32 %v19923_v32, %v19924_v53 }
 0x96f   :  { %v6508_v46 = vadd.f32 %v6507_v47, %v6458_v45  ;;  %v6576_v1 = vmax.f32 %v17228_v19, %v6544_v61  ;;  %v6645_v19 = vadd.f32 %v17619_v10, %v6607_v12  ;;  %v6219_v12 = vadd.f32 %v17523_v39, %v6170_v58  ;;  %v19917_v47 = vld [vmem:[#allocation118_spill] sm:$0xff] }
 0x971   :  { %v6545_v2 = vadd.f32 %v6508_v46, %v17503_v62  ;;  %v6608_v23 = vmax.f32 %v19910_v56, %v6576_v1  ;;  %v6677_v17 = vmax.f32 %v6645_v19, 0.0  ;;  %v19921_v56 = vld [vmem:[#allocation151_spill] sm:$0xff] }
 0x972   :  { %v6412_v13 = vpop.f32.mrf.mxu1 }
 0x973   :  { %v6577_v6 = vmax.f32 %v17231_v0, %v6545_v2  ;;  %v6413_v50 = vadd.f32 %v6412_v13, %v6363_v31  ;;  %v6646_v11 = vadd.f32 %v17615_v3, %v6608_v23  ;;  %v19918_v31 = vld [vmem:[#allocation150_spill] sm:$0xff]  ;;  %v19922_v23 = vmax.f32 %v19920_v60, %v19921_v56  ;;  %v19939_v56 = vld [vmem:[#allocation89_spill] sm:$0xff] }
 0x974   :  { %v6461_v30 = vpop.f32.mrf.mxu2  ;;  %v19919_v46 = vmax.f32 %v19917_v47, %v19918_v31 }
 0x975   :  { %v6609_v40 = vmax.f32 %v19913_v20, %v6577_v6  ;;  %v6546_v62 = vadd.f32 %v6413_v50, %v17514_v55  ;;  %v6678_v57 = vmax.f32 %v6646_v11, 0.0  ;;  %v19915_v55 = vld [vmem:[#allocation149_spill] sm:$0xff] }
 0x976   :  { %v6510_v15 = vpop.f32.mrf.mxu3  ;;  %v6365_v42 = vpop.f32.mrf.mxu0  ;;  %v19916_v26 = vmax.f32 %v19914_v5, %v19915_v55  ;;  %v19928_v5 = vld [vmem:[#allocation120_spill] sm:$0xff] }
 0x977   :  { %v6511_v7 = vadd.f32 %v6510_v15, %v6461_v30  ;;  %v6647_v0 = vadd.f32 %v17619_v10, %v6609_v40  ;;  %v6578_v4 = vmax.f32 %v17238_v44, %v6546_v62  ;;  %v17718_v24 = vpack.c.bf16 %v6678_v57, %v6676_v36 }
 0x979   :  { %v6547_v16 = vadd.f32 %v6511_v7, %v17521_v35  ;;  %v6679_v9 = vmax.f32 %v6647_v0, 0.0  ;;  %v6610_v45 = vmax.f32 %v19916_v26, %v6578_v4 }
 0x97a   :  { %v6414_v41 = vpop.f32.mrf.mxu1 }
 0x97b   :  { %v6579_v49 = vmax.f32 %v17243_v27, %v6547_v16  ;;  %v17729_v44 = vpack.c.bf16 %v6679_v9, %v6677_v17  ;;  %v6415_v35 = vadd.f32 %v6414_v41, %v6365_v42  ;;  %v6648_v39 = vadd.f32 %v17615_v3, %v6610_v45  ;;  %v19926_v17 = vld [vmem:[#allocation37_spill] sm:$0xff]  ;;  %v19931_v45 = vld [vmem:[#allocation96_spill] sm:$0xff]  ;;  %v19933_v41 = vld [vmem:[#allocation39_spill] sm:$0xff] }
 0x97c   :  { %v6463_v61 = vpop.f32.mrf.mxu2  ;;  %v19927_v9 = vld [vmem:[#allocation97_spill] sm:$0xff] }
 0x97d   :  { %v6611_v29 = vmax.f32 %v19919_v46, %v6579_v49  ;;  %v6548_v38 = vadd.f32 %v6415_v35, %v6219_v12  ;;  %v6680_v15 = vmax.f32 %v6648_v39, 0.0  ;;  %v6175_v58 = vadd.f32 %v19927_v9, %v19926_v17  ;;  %v19935_v46 = vld [vmem:[#allocation121_spill] sm:$0xff]  ;;  %v19940_v39 = vld [vmem:[#allocation123_spill] sm:$0xff] }
 0x97e   :  { %v6512_v1 = vpop.f32.mrf.mxu3  ;;  %v6368_v2 = vpop.f32.mrf.mxu0  ;;  %v6273_v49 = vadd.f32 %v19932_v59, %v19931_v45 }
 0x97f   :  { %v6513_v28 = vadd.f32 %v6512_v1, %v6463_v61  ;;  %v6580_v48 = vmax.f32 %v17246_v37, %v6548_v38  ;;  %v6649_v37 = vadd.f32 %v17619_v10, %v6611_v29  ;;  %v19934_v61 = vld [vmem:[#allocation99_spill] sm:$0xff]  ;;  %v19936_v29 = vld [vmem:[#allocation154_spill] sm:$0xff] }
 0x980   :  { %v6224_v47 = vadd.f32 %v19934_v61, %v6175_v58  ;;  %v19937_v38 = vmax.f32 %v19935_v46, %v19936_v29  ;;  %v19948_v58 = vld [vmem:[#allocation77_spill] sm:$0xff]  ;;  %v19956_v46 = vld [vmem:[#allocation142_spill] sm:$0xff] }
 0x981   :  { %v6549_v27 = vadd.f32 %v6513_v28, %v6317_v54  ;;  %v6612_v8 = vmax.f32 %v19922_v23, %v6580_v48  ;;  %v6681_v4 = vmax.f32 %v6649_v37, 0.0  ;;  %v19938_v48 = vld [vmem:[#allocation32_spill] sm:$0xff]  ;;  %v19953_v61 = vld [vmem:[#allocation157_spill] sm:$0xff] }
 0x982   :  { %v6417_v13 = vpop.f32.mrf.mxu1 }
 0x983   :  { %v6581_v6 = vmax.f32 %v17249_v63, %v6549_v27  ;;  %v6418_v50 = vadd.f32 %v6417_v13, %v6368_v2  ;;  %v6650_v11 = vadd.f32 %v17615_v3, %v6612_v8  ;;  %v6322_v27 = vadd.f32 %v19938_v48, %v6273_v49  ;;  %v19950_v49 = vld [vmem:[#allocation26_spill] sm:$0xff] }
 0x984   :  { %v6466_v30 = vpop.f32.mrf.mxu2 }
 0x985   :  { %v6613_v20 = vmax.f32 %v19925_v33, %v6581_v6  ;;  %v6550_v40 = vadd.f32 %v6418_v50, %v17538_v43  ;;  %v6682_v42 = vmax.f32 %v6650_v11, 0.0  ;;  %v19929_v43 = vld [vmem:[#allocation153_spill] sm:$0xff]  ;;  %v19941_v6 = vld [vmem:[#allocation155_spill] sm:$0xff] }
 0x986   :  { %v6515_v19 = vpop.f32.mrf.mxu3  ;;  %v6370_v62 = vpop.f32.mrf.mxu0  ;;  %v19930_v55 = vmax.f32 %v19928_v5, %v19929_v43  ;;  %v19942_v13 = vmax.f32 %v19940_v39, %v19941_v6  ;;  %v19943_v11 = vld [vmem:[#allocation13_spill] sm:$0xff] }
 0x987   :  { %v6516_v36 = vadd.f32 %v6515_v19, %v6466_v30  ;;  %v6651_v63 = vadd.f32 %v17619_v10, %v6613_v20  ;;  %v6582_v57 = vmax.f32 %v17256_v22, %v6550_v40  ;;  %v17750_v7 = vpack.c.bf16 %v6682_v42, %v6680_v15  ;;  %v19944_v40 = vld [vmem:[#allocation124_spill] sm:$0xff] }
 0x988   :  { %v19945_v19 = vld [vmem:[#allocation156_spill] sm:$0xff] }
 0x989   :  { %v6551_v0 = vadd.f32 %v6516_v36, %v17545_v14  ;;  %v6683_v16 = vmax.f32 %v6651_v63, 0.0  ;;  %v6614_v26 = vmax.f32 %v19930_v55, %v6582_v57  ;;  %v19947_v36 = vld [vmem:[#allocation107_spill] sm:$0xff] }
 0x98a   :  { %v6419_v35 = vpop.f32.mrf.mxu1  ;;  %v19949_v55 = vld [vmem:[#allocation31_spill] sm:$0xff] }
 0x98b   :  { %v6583_v12 = vmax.f32 %v19933_v41, %v6551_v0  ;;  %v17761_v22 = vpack.c.bf16 %v6683_v16, %v6681_v4  ;;  %v6420_v14 = vadd.f32 %v6419_v35, %v6370_v62  ;;  %v6652_v30 = vadd.f32 %v17615_v3, %v6614_v26  ;;  %v19951_v41 = vld [vmem:[#allocation100_spill] sm:$0xff]  ;;  %v19952_v35 = vld [vmem:[#allocation125_spill] sm:$0xff] }
 0x98c   :  { %v6468_v31 = vpop.f32.mrf.mxu2  ;;  %v19946_v62 = vmax.f32 %v19944_v40, %v19945_v19  ;;  %v19965_v40 = vld [vmem:[#allocation159_spill] sm:$0xff] }
 0x98d   :  { %v6615_v1 = vmax.f32 %v19937_v38, %v6583_v12  ;;  %v6552_v2 = vadd.f32 %v6420_v14, %v6224_v47  ;;  %v6684_v0 = vmax.f32 %v6652_v30, 0.0  ;;  %v6180_v12 = vadd.f32 %v19951_v41, %v19950_v49  ;;  %v19957_v38 = vld [vmem:[#allocation79_spill] sm:$0xff] }
 0x98e   :  { %v6517_v54 = vpop.f32.mrf.mxu3  ;;  %v6373_v28 = vpop.f32.mrf.mxu0  ;;  %v19954_v47 = vmax.f32 %v19952_v35, %v19953_v61  ;;  %v19972_v35 = vld [vmem:[#allocation87_spill] sm:$0xff] }
 0x98f   :  { %v6518_v60 = vadd.f32 %v6517_v54, %v6468_v31  ;;  %v6584_v23 = vmax.f32 %v19939_v56, %v6552_v2  ;;  %v6653_v42 = vadd.f32 %v17619_v10, %v6615_v1  ;;  %v19955_v31 = vld [vmem:[#allocation45_spill] sm:$0xff]  ;;  %v19959_v56 = vld [vmem:[#allocation126_spill] sm:$0xff] }
 0x990   :  { %v6278_v29 = vadd.f32 %v19956_v46, %v19955_v31 }
 0x991   :  { %v6553_v8 = vadd.f32 %v6518_v60, %v6322_v27  ;;  %v6616_v50 = vmax.f32 %v19942_v13, %v6584_v23  ;;  %v6685_v45 = vmax.f32 %v6653_v42, 0.0  ;;  %v19960_v23 = vld [vmem:[#allocation158_spill] sm:$0xff]  ;;  %v19967_v42 = vld [vmem:[#allocation84_spill] sm:$0xff] }
 0x992   :  { %v6422_v53 = vpop.f32.mrf.mxu1 }
 0x993   :  { %v6585_v32 = vmax.f32 %v19943_v11, %v6553_v8  ;;  %v6423_v33 = vadd.f32 %v6422_v53, %v6373_v28  ;;  %v6654_v37 = vadd.f32 %v17615_v3, %v6616_v50  ;;  %v19958_v28 = vld [vmem:[#allocation141_spill] sm:$0xff]  ;;  %v19961_v8 = vmax.f32 %v19959_v56, %v19960_v23  ;;  %v19962_v50 = vld [vmem:[#allocation44_spill] sm:$0xff]  ;;  %v19980_v23 = vld [vmem:[#allocation66_spill] sm:$0xff] }
 0x994   :  { %v6471_v20 = vpop.f32.mrf.mxu2  ;;  %v6229_v48 = vadd.f32 %v19958_v28, %v6180_v12  ;;  %v6327_v30 = vadd.f32 %v19962_v50, %v6278_v29  ;;  %v19976_v28 = vld [vmem:[#allocation129_spill] sm:$0xff]  ;;  %v19979_v56 = vld [vmem:[#allocation132_spill] sm:$0xff] }
 0x995   :  { %v6617_v15 = vmax.f32 %v19946_v62, %v6585_v32  ;;  %v6554_v63 = vadd.f32 %v6423_v33, %v19947_v36  ;;  %v6686_v4 = vmax.f32 %v6654_v37, 0.0  ;;  %v19963_v32 = vld [vmem:[#allocation81_spill] sm:$0xff]  ;;  %v19964_v37 = vld [vmem:[#allocation127_spill] sm:$0xff] }
 0x996   :  { %v6520_v57 = vpop.f32.mrf.mxu3  ;;  %v6375_v17 = vpop.f32.mrf.mxu0  ;;  %v19966_v19 = vmax.f32 %v19964_v37, %v19965_v40  ;;  %v19984_v37 = vld [vmem:[#allocation162_spill] sm:$0xff] }
 0x997   :  { %v6521_v16 = vadd.f32 %v6520_v57, %v6471_v20  ;;  %v6655_v9 = vadd.f32 %v17619_v10, %v6617_v15  ;;  %v6586_v5 = vmax.f32 %v19948_v58, %v6554_v63  ;;  %v17782_v43 = vpack.c.bf16 %v6686_v4, %v6684_v0 }
 0x999   :  { %v6555_v26 = vadd.f32 %v6521_v16, %v19949_v55  ;;  %v6687_v59 = vmax.f32 %v6655_v9, 0.0  ;;  %v6618_v14 = vmax.f32 %v19954_v47, %v6586_v5  ;;  %v19968_v16 = vld [vmem:[#allocation128_spill] sm:$0xff]  ;;  %v19971_v55 = vld [vmem:[#allocation63_spill] sm:$0xff] }
 0x99a   :  { %v6424_v2 = vpop.f32.mrf.mxu1 }
 0x99b   :  { %v6587_v1 = vmax.f32 %v19957_v38, %v6555_v26  ;;  %v17793_v54 = vpack.c.bf16 %v6687_v59, %v6685_v45  ;;  %v6425_v27 = vadd.f32 %v6424_v2, %v6375_v17  ;;  %v6656_v15 = vadd.f32 %v17615_v3, %v6618_v14  ;;  %v19969_v17 = vld [vmem:[#allocation160_spill] sm:$0xff]  ;;  %v19974_v38 = vld [vmem:[#allocation95_spill] sm:$0xff] }
 0x99c   :  { %v6473_v60 = vpop.f32.mrf.mxu2  ;;  %v19970_v9 = vmax.f32 %v19968_v16, %v19969_v17  ;;  %v19973_v14 = vld [vmem:[#allocation52_spill] sm:$0xff]  ;;  %v19988_v17 = vld [vmem:[#allocation74_spill] sm:$0xff] }
 0x99d   :  { %v6619_v39 = vmax.f32 %v19961_v8, %v6587_v1  ;;  %v6556_v6 = vadd.f32 %v6425_v27, %v6229_v48  ;;  %v6688_v59 = vmax.f32 %v6656_v15, 0.0  ;;  %v19975_v1 = vld [vmem:[#allocation65_spill] sm:$0xff]  ;;  %v6283_v8 = vadd.f32 %v19980_v23, %v19979_v56  ;;  %v11169_v56 = vld [vmem:[%s18168_s8 + $0x90] sm:$0xff]  ;;  %v11155_v23 = vld [vmem:[%s18168_s8 + $0x20] sm:$0xff] }
 0x99e   :  { %v6522_v13 = vpop.f32.mrf.mxu3  ;;  %v6378_v20 = vpop.f32.mrf.mxu0  ;;  %v6185_v2 = vadd.f32 %v19975_v1, %v19974_v38  ;;  %v19977_v48 = vld [vmem:[#allocation161_spill] sm:$0xff] }
 0x99f   :  { %v6523_v11 = vadd.f32 %v6522_v13, %v6473_v60  ;;  %v6588_v53 = vmax.f32 %v19963_v32, %v6556_v6  ;;  %v6657_v5 = vadd.f32 %v17619_v10, %v6619_v39  ;;  %v19978_v27 = vmax.f32 %v19976_v28, %v19977_v48  ;;  %v19981_v39 = vld [vmem:[#allocation38_spill] sm:$0xff]  ;;  %v11161_v28 = vld [vmem:[%s18168_s8 + $0x50] sm:$0xff]  ;;  %v11158_v48 = vld [vmem:[%s18168_s8 + $0x38] sm:$0xff] }
 0x9a1   :  { %v6557_v33 = vadd.f32 %v6523_v11, %v6327_v30  ;;  %v6620_v62 = vmax.f32 %v19966_v19, %v6588_v53  ;;  %v6689_v46 = vmax.f32 %v6657_v5, 0.0  ;;  %v19982_v11 = vld [vmem:[#allocation9_spill] sm:$0xff] }
 0x9a2   :  { %v6427_v63 = vpop.f32.mrf.mxu1  ;;  %v6234_v32 = vadd.f32 %v19982_v11, %v6185_v2  ;;  %v11150_v2 = vld [vmem:[%s18167_s7 + $0x38] sm:$0xff]  ;;  %v11152_v11 = vld [vmem:[%s18168_s8 + $0x8] sm:$0xff] }
 0x9a3   :  { %v6589_v36 = vmax.f32 %v19967_v42, %v6557_v33  ;;  %v6428_v57 = vadd.f32 %v6427_v63, %v6378_v20  ;;  %v6658_v4 = vadd.f32 %v17615_v3, %v6620_v62  ;;  %v19983_v20 = vld [vmem:[#allocation130_spill] sm:$0xff]  ;;  %v19986_v42 = vld [vmem:[#allocation41_spill] sm:$0xff] }
 0x9a4   :  { %v6476_v0 = vpop.f32.mrf.mxu2  ;;  %v19985_v40 = vmax.f32 %v19983_v20, %v19984_v37 }
 0x9a5   :  { %v6621_v58 = vmax.f32 %v19970_v9, %v6589_v36  ;;  %v6558_v26 = vadd.f32 %v6428_v57, %v19971_v55  ;;  %v6690_v49 = vmax.f32 %v6658_v4, 0.0  ;;  %v6332_v36 = vadd.f32 %v19986_v42, %v6283_v8  ;;  %v19987_v57 = vld [vmem:[#allocation109_spill] sm:$0xff]  ;;  %v19989_v9 = vld [vmem:[#allocation163_spill] sm:$0xff]  ;;  %v19991_v55 = vld [vmem:[#allocation90_spill] sm:$0xff] }
 0x9a6   :  { %v6525_v45 = vpop.f32.mrf.mxu3  ;;  %v6380_v13 = vpop.f32.mrf.mxu0  ;;  %v11160_v8 = vld [vmem:[%s18168_s8 + $0x48] sm:$0xff] }
 0x9a7   :  { %v6526_v41 = vadd.f32 %v6525_v45, %v6476_v0  ;;  %v6659_v12 = vadd.f32 %v17619_v10, %v6621_v58  ;;  %v6590_v61 = vmax.f32 %v19972_v35, %v6558_v26  ;;  %v6724_v47 = vpack.c.bf16 %v6690_v49, %v6688_v59  ;;  %v19992_v49 = vld [vmem:[#allocation14_spill] sm:$0xff] }
 0x9a8   :  { %v19990_v58 = vmax.f32 %v19988_v17, %v19989_v9 }
 0x9a9   :  { %v6559_v31 = vadd.f32 %v6526_v41, %v19973_v14  ;;  %v6691_v29 = vmax.f32 %v6659_v12, 0.0  ;;  %v6622_v60 = vmax.f32 %v19978_v27, %v6590_v61  ;;  %v19993_v41 = vld [vmem:[#allocation164_spill] sm:$0xff] }
 0x9aa   :  { %v6429_v50 = vpop.f32.mrf.mxu1  ;;  %v19994_v12 = vmax.f32 %v19992_v49, %v19993_v41  ;;  %v11157_v27 = vld [vmem:[%s18168_s8 + $0x30] sm:$0xff] }
 0x9ab   :  { %v6591_v6 = vmax.f32 %v19981_v39, %v6559_v31  ;;  %v6725_v30 = vpack.c.bf16 %v6691_v29, %v6689_v46  ;;  %v6430_v53 = vadd.f32 %v6429_v50, %v6380_v13  ;;  %v6660_v16 = vadd.f32 %v17615_v3, %v6622_v60  ;;  %v11156_v60 = vld [vmem:[%s18168_s8 + $0x28] sm:$0xff]  ;;  %v11159_v13 = vld [vmem:[%s18168_s8 + $0x40] sm:$0xff] }
 0x9ac   :  { %v6478_v33 = vpop.f32.mrf.mxu2 }
 0x9ad   :  { %v6623_v19 = vmax.f32 %v19985_v40, %v6591_v6  ;;  %v6560_v62 = vadd.f32 %v6430_v53, %v6234_v32  ;;  %v6692_v61 = vmax.f32 %v6660_v16, 0.0  ;;  %v11154_v6 = vld [vmem:[%s18168_s8 + $0x18] sm:$0xff] }
 0x9ae   :  { %v6527_v15 = vpop.f32.mrf.mxu3 }
 0x9af   :  { %v6528_v63 = vadd.f32 %v6527_v15, %v6478_v33  ;;  %v6592_v0 = vmax.f32 %v19987_v57, %v6560_v62  ;;  %v6661_v59 = vadd.f32 %v17619_v10, %v6623_v19  ;;  %v11151_v33 = vld [vmem:[%s18168_s8] sm:$0xff] }
 0x9b1   :  { %v6561_v4 = vadd.f32 %v6528_v63, %v6332_v36  ;;  %v6624_v5 = vmax.f32 %v19990_v58, %v6592_v0  ;;  %v6693_v29 = vmax.f32 %v6661_v59, 0.0  ;;  %v11178_v0 = vld [vmem:[%s18168_s8 + $0xd8] sm:$0xff]  ;;  %v11207_v59 = vld [vmem:[%s18168_s8 + $0x1c0] sm:$0xff] }
 0x9b3   :  { %v6593_v26 = vmax.f32 %v19991_v55, %v6561_v4  ;;  %v6662_v45 = vadd.f32 %v17615_v3, %v6624_v5  ;;  %v11143_v3 = vld [vmem:[%s18167_s7] sm:$0xff]  ;;  %v11180_v4 = vld [vmem:[%s18168_s8 + $0xe8] sm:$0xff]  ;;  %v11177_v5 = vld [vmem:[%s18168_s8 + $0xd0] sm:$0xff] }
 0x9b4   :  { %v11179_v55 = vld [vmem:[%s18168_s8 + $0xe0] sm:$0xff] }
 0x9b5   :  { %v6625_v35 = vmax.f32 %v19994_v12, %v6593_v26  ;;  %v6694_v14 = vmax.f32 %v6662_v45, 0.0  ;;  %v11208_v26 = vld [vmem:[%s18168_s8 + $0x1c8] sm:$0xff] }
 0x9b6   :  { %v11176_v45 = vld [vmem:[%s18168_s8 + $0xc8] sm:$0xff] }
 0x9b7   :  { %v6663_v31 = vadd.f32 %v17619_v10, %v6625_v35  ;;  %v6726_v46 = vpack.c.bf16 %v6694_v14, %v6692_v61  ;;  %v11144_v10 = vld [vmem:[%s18167_s7 + $0x8] sm:$0xff]  ;;  %v11175_v61 = vld [vmem:[%s18168_s8 + $0xc0] sm:$0xff]  ;;  %v11206_v14 = vld [vmem:[%s18168_s8 + $0x1b8] sm:$0xff] }
 0x9b9   :  { %v6695_v38 = vmax.f32 %v6663_v31, 0.0  ;;  %6776 = vmatpush.bf16.msra.mxu0 %v6726_v46 }
 0x9bb   :  { %v6727_v1 = vpack.c.bf16 %v6695_v38, %v6693_v29 }
 0x9bd   :  { %6825 = vmatpush.bf16.msrb.mxu1 %v6727_v1  ;;  %6777 = vmatpush.bf16.msra.mxu0 %v6724_v47  ;;  %v11162_v47 = vld [vmem:[%s18168_s8 + $0x58] sm:$0xff] }
 0x9be   :  { %v11174_v1 = vld [vmem:[%s18168_s8 + $0xb8] sm:$0xff] }
 0x9c1   :  { %6826 = vmatpush.bf16.msrb.mxu1 %v6725_v30  ;;  %6778 = vmatpush.bf16.msra.mxu0 %v17782_v43  ;;  %v11170_v43 = vld [vmem:[%s18168_s8 + $0x98] sm:$0xff]  ;;  %v11153_v30 = vld [vmem:[%s18168_s8 + $0x10] sm:$0xff] }
 0x9c2   :  { %7023 = vmatpush.bf16.msra.mxu3 %v11170_v43  ;;  %v11217_v43 = vld [vmem:[%s18168_s8 + $0x210] sm:$0xff] }
 0x9c5   :  { %6827 = vmatpush.bf16.msrb.mxu1 %v17793_v54  ;;  %6779 = vmatpush.bf16.msra.mxu0 %v17750_v7  ;;  %v11149_v7 = vld [vmem:[%s18167_s7 + $0x30] sm:$0xff]  ;;  %v11163_v54 = vld [vmem:[%s18168_s8 + $0x60] sm:$0xff] }
 0x9c6   :  { %7024 = vmatpush.bf16.msra.mxu3 %v11169_v56  ;;  %v11216_v56 = vld [vmem:[%s18168_s8 + $0x208] sm:$0xff] }
 0x9c9   :  { %6828 = vmatpush.bf16.msrb.mxu1 %v17761_v22  ;;  %6780 = vmatpush.bf16.msra.mxu0 %v17718_v24  ;;  %v11166_v24 = vld [vmem:[%s18168_s8 + $0x78] sm:$0xff]  ;;  %v11164_v22 = vld [vmem:[%s18168_s8 + $0x68] sm:$0xff] }
 0x9ca   :  { %7123 = vmatpush.bf16.msrb.mxu3 %v11160_v8 }
 0x9cd   :  { %6829 = vmatpush.bf16.msrb.mxu1 %v17729_v44  ;;  %6781 = vmatpush.bf16.msra.mxu0 %v17690_v34  ;;  %v11148_v34 = vld [vmem:[%s18167_s7 + $0x28] sm:$0xff]  ;;  %v11165_v44 = vld [vmem:[%s18168_s8 + $0x70] sm:$0xff] }
 0x9ce   :  { %7124 = vmatpush.bf16.msrb.mxu3 %v11159_v13 }
 0x9d1   :  { %6830 = vmatpush.bf16.msrb.mxu1 %v17697_v52  ;;  %6782 = vmatpush.bf16.msra.mxu0 %v17662_v18  ;;  %v11145_v18 = vld [vmem:[%s18167_s7 + $0x10] sm:$0xff]  ;;  %v11167_v52 = vld [vmem:[%s18168_s8 + $0x80] sm:$0xff] }
 0x9d5   :  { %6831 = vmatpush.bf16.msrb.mxu1 %v17669_v25  ;;  %6783 = vmatpush.bf16.msra.mxu0 %v17634_v21  ;;  %v11146_v21 = vld [vmem:[%s18167_s7 + $0x18] sm:$0xff]  ;;  %v11168_v25 = vld [vmem:[%s18168_s8 + $0x88] sm:$0xff] }
 0x9d6   :  { %7003 = vmatpush.bf16.msra.mxu2 %v11168_v25  ;;  %v11173_v25 = vld [vmem:[%s18168_s8 + $0xb0] sm:$0xff] }
 0x9d8   :  { %6784 = vmatmul.bf16.vlgmr.msra.gmra.mxu0 %v11143_v3 }
 0x9d9   :  { %6832 = vmatpush.bf16.msrb.mxu1 %v17641_v51  ;;  %v11147_v51 = vld [vmem:[%s18167_s7 + $0x20] sm:$0xff]  ;;  %7593 = vmatpush.bf16.msrb.mxu0 %v11208_v26  ;;  %v11200_v26 = vld [vmem:[%s18168_s8 + $0x188] sm:$0xff] }
 0x9da   :  { %7004 = vmatpush.bf16.msra.mxu2 %v11167_v52  ;;  %v11187_v52 = vld [vmem:[%s18168_s8 + $0x120] sm:$0xff] }
 0x9dc   :  { %6833 = vmatmul.bf16.vlgmr.msrb.gmra.mxu1 %v11143_v3  ;;  %v11188_v3 = vld [vmem:[%s18168_s8 + $0x128] sm:$0xff] }
 0x9dd   :  { %7594 = vmatpush.bf16.msrb.mxu0 %v11207_v59 }
 0x9de   :  { %7005 = vmatpush.bf16.msra.mxu2 %v11166_v24  ;;  %v11218_v24 = vld [vmem:[%s18168_s8 + $0x218] sm:$0xff] }
 0x9df   :  { %7716 = vmatpush.bf16.msra.mxu1 %v11218_v24  ;;  %v11191_v24 = vld [vmem:[%s18168_s8 + $0x140] sm:$0xff] }
 0x9e1   :  { %7595 = vmatpush.bf16.msrb.mxu0 %v11206_v14  ;;  %v11199_v14 = vld [vmem:[%s18168_s8 + $0x180] sm:$0xff] }
 0x9e2   :  { %7006 = vmatpush.bf16.msra.mxu2 %v11165_v44  ;;  %v11204_v44 = vld [vmem:[%s18168_s8 + $0x1a8] sm:$0xff] }
 0x9e3   :  { %7717 = vmatpush.bf16.msra.mxu1 %v11217_v43 }
 0x9e6   :  { %7007 = vmatpush.bf16.msra.mxu2 %v11164_v22  ;;  %v11186_v22 = vld [vmem:[%s18168_s8 + $0x118] sm:$0xff] }
 0x9e7   :  { %7718 = vmatpush.bf16.msra.mxu1 %v11216_v56  ;;  %v11219_v56 = vld [vmem:[%s18168_s8 + $0x220] sm:$0xff] }
 0x9e8   :  { %6789 = vmatmul.bf16.gmra.mxu0 %v11144_v10 }
 0x9ea   :  { %7008 = vmatpush.bf16.msra.mxu2 %v11163_v54  ;;  %v11203_v54 = vld [vmem:[%s18168_s8 + $0x1a0] sm:$0xff] }
 0x9ec   :  { %6838 = vmatmul.bf16.gmra.mxu1 %v11144_v10  ;;  %v11205_v10 = vld [vmem:[%s18168_s8 + $0x1b0] sm:$0xff] }
 0x9ed   :  { %7596 = vmatpush.bf16.msrb.mxu0 %v11205_v10 }
 0x9ee   :  { %7009 = vmatpush.bf16.msra.mxu2 %v11162_v47 }
 0x9f1   :  { %7597 = vmatpush.bf16.msrb.mxu0 %v11204_v44 }
 0x9f2   :  { %7010 = vmatpush.bf16.msra.mxu2 %v11161_v28 }
 0x9f5   :  { %7598 = vmatpush.bf16.msrb.mxu0 %v11203_v54  ;;  %v11220_v54 = vld [vmem:[%s18168_s8 + $0x228] sm:$0xff] }
 0x9f6   :  { %7103 = vmatpush.bf16.msrb.mxu2 %v11158_v48  ;;  %v11171_v48 = vld [vmem:[%s18168_s8 + $0xa0] sm:$0xff] }
 0x9f8   :  { %6794 = vmatmul.bf16.gmra.mxu0 %v11145_v18 }
 0x9fa   :  { %7104 = vmatpush.bf16.msrb.mxu2 %v11157_v27 }
 0x9fc   :  { %6843 = vmatmul.bf16.gmra.mxu1 %v11145_v18 }
 0x9fe   :  { %7105 = vmatpush.bf16.msrb.mxu2 %v11156_v60  ;;  %v11185_v60 = vld [vmem:[%s18168_s8 + $0x110] sm:$0xff] }
 0xa02   :  { %7106 = vmatpush.bf16.msrb.mxu2 %v11155_v23  ;;  %v11202_v23 = vld [vmem:[%s18168_s8 + $0x198] sm:$0xff] }
 0xa03   :  { %7599 = vmatpush.bf16.msrb.mxu0 %v11202_v23 }
 0xa06   :  { %7107 = vmatpush.bf16.msrb.mxu2 %v11154_v6  ;;  %v11190_v6 = vld [vmem:[%s18168_s8 + $0x138] sm:$0xff] }
 0xa08   :  { %6799 = vmatmul.bf16.gmra.mxu0 %v11146_v21 }
 0xa0a   :  { %7108 = vmatpush.bf16.msrb.mxu2 %v11153_v30  ;;  %v11184_v30 = vld [vmem:[%s18168_s8 + $0x108] sm:$0xff] }
 0xa0c   :  { %6848 = vmatmul.bf16.gmra.mxu1 %v11146_v21 }
 0xa0e   :  { %7109 = vmatpush.bf16.msrb.mxu2 %v11152_v11  ;;  %v11215_v11 = vld [vmem:[%s18168_s8 + $0x200] sm:$0xff] }
 0xa0f   :  { %7719 = vmatpush.bf16.msra.mxu1 %v11215_v11 }
 0xa12   :  { %7110 = vmatpush.bf16.msrb.mxu2 %v11151_v33 }
 0xa18   :  { %6804 = vmatmul.bf16.gmra.mxu0 %v11147_v51 }
 0xa1c   :  { %6853 = vmatmul.bf16.gmra.mxu1 %v11147_v51 }
 0xa28   :  { %6809 = vmatmul.bf16.gmra.mxu0 %v11148_v34 }
 0xa2c   :  { %6858 = vmatmul.bf16.gmra.mxu1 %v11148_v34 }
 0xa38   :  { %6814 = vmatmul.bf16.gmra.mxu0 %v11149_v7 }
 0xa3c   :  { %6863 = vmatmul.bf16.gmra.mxu1 %v11149_v7  ;;  %v11172_v7 = vld [vmem:[%s18168_s8 + $0xa8] sm:$0xff] }
 0xa48   :  { %6819 = vmatmul.bf16.gmra.mxu0 %v11150_v2 }
 0xa4c   :  { %6868 = vmatmul.bf16.gmra.mxu1 %v11150_v2 }
 0xa55   :  { %v6785_v39 = vpop.f32.mrf.mxu0 }
 0xa59   :  { %v6834_v50 = vpop.f32.mrf.mxu1 }
 0xa5a   :  { %v6874_v12 = vpack.c.bf16 %v6834_v50, %v6785_v39 }
 0xa5c   :  { %v7033_v29 = vunpack.c.l.b16 %v6874_v12  ;;  %v7034_v38 = vunpack.c.h.b16 %v6874_v12 }
 0xa5d   :  { %v6787_v32 = vpop.f32.mrf.mxu0 }
 0xa61   :  { %v6836_v53 = vpop.f32.mrf.mxu1 }
 0xa62   :  { %v6875_v49 = vpack.c.bf16 %v6836_v53, %v6787_v32  ;;  %v11201_v32 = vld [vmem:[%s18168_s8 + $0x190] sm:$0xff] }
 0xa63   :  { %7600 = vmatpush.bf16.msrb.mxu0 %v11201_v32  ;;  %v11225_v32 = vld [vmem:[%s18168_s8 + $0x250] sm:$0xff] }
 0xa64   :  { %v7035_v31 = vunpack.c.l.b16 %v6875_v49  ;;  %v7036_v46 = vunpack.c.h.b16 %v6875_v49 }
 0xa65   :  { %v6790_v20 = vpop.f32.mrf.mxu0 }
 0xa66   :  { %v7037_v18 = vpack.c.b16 %v7035_v31, %v7033_v29  ;;  %v7038_v21 = vpack.c.b16 %v7036_v46, %v7034_v38  ;;  %v11194_v31 = vld [vmem:[%s18168_s8 + $0x158] sm:$0xff]  ;;  %v11193_v38 = vld [vmem:[%s18168_s8 + $0x150] sm:$0xff] }
 0xa67   :  { %v11210_v46 = vld [vmem:[%s18168_s8 + $0x1d8] sm:$0xff] }
 0xa69   :  { %v6839_v37 = vpop.f32.mrf.mxu1 }
 0xa6a   :  { %v6876_v19 = vpack.c.bf16 %v6839_v37, %v6790_v20  ;;  %v11189_v20 = vld [vmem:[%s18168_s8 + $0x130] sm:$0xff] }
 0xa6c   :  { %v6933_v42 = vunpack.c.l.b16 %v6876_v19  ;;  %v6934_v36 = vunpack.c.h.b16 %v6876_v19 }
 0xa6d   :  { %v6792_v40 = vpop.f32.mrf.mxu0 }
 0xa71   :  { %v6841_v62 = vpop.f32.mrf.mxu1 }
 0xa72   :  { %v6877_v15 = vpack.c.bf16 %v6841_v62, %v6792_v40  ;;  %v11198_v40 = vld [vmem:[%s18168_s8 + $0x178] sm:$0xff]  ;;  %v11183_v62 = vld [vmem:[%s18168_s8 + $0x100] sm:$0xff] }
 0xa74   :  { %v6935_v63 = vunpack.c.l.b16 %v6877_v15  ;;  %v6936_v57 = vunpack.c.h.b16 %v6877_v15  ;;  %v11214_v15 = vld [vmem:[%s18168_s8 + $0x1f8] sm:$0xff] }
 0xa75   :  { %v6795_v9 = vpop.f32.mrf.mxu0  ;;  %7720 = vmatpush.bf16.msra.mxu1 %v11214_v15  ;;  %v11224_v15 = vld [vmem:[%s18168_s8 + $0x248] sm:$0xff] }
 0xa76   :  { %v6937_v16 = vpack.c.b16 %v6935_v63, %v6933_v42  ;;  %v6938_v17 = vpack.c.b16 %v6936_v57, %v6934_v36  ;;  %v11197_v42 = vld [vmem:[%s18168_s8 + $0x170] sm:$0xff]  ;;  %v11182_v36 = vld [vmem:[%s18168_s8 + $0xf8] sm:$0xff] }
 0xa77   :  { %v11213_v63 = vld [vmem:[%s18168_s8 + $0x1f0] sm:$0xff] }
 0xa78   :  { %7011 = vmatmul.bf16.vlgmr.msra.gmra.mxu2 %v6937_v16  ;;  %10398 = vmatmul.msk.bf16.vlgmr.msra.gmra.mxu3 %vm19995_vm8, %v6938_v17 }
 0xa79   :  { %7224 = vmatpush.bf16.msra.mxu3 %v11178_v0  ;;  %v6844_v58 = vpop.f32.mrf.mxu1  ;;  %7244 = vmatpush.bf16.msra.mxu2 %v11180_v4  ;;  %v11196_v4 = vld [vmem:[%s18168_s8 + $0x168] sm:$0xff] }
 0xa7a   :  { %v6878_v28 = vpack.c.bf16 %v6844_v58, %v6795_v9  ;;  %7721 = vmatpush.bf16.msra.mxu1 %v11213_v63  ;;  %v11181_v9 = vld [vmem:[%s18168_s8 + $0xf0] sm:$0xff]  ;;  %v11212_v58 = vld [vmem:[%s18168_s8 + $0x1e8] sm:$0xff] }
 0xa7c   :  { %v7154_v13 = vunpack.c.l.b16 %v6878_v28  ;;  %v7155_v50 = vunpack.c.h.b16 %v6878_v28 }
 0xa7d   :  { %7225 = vmatpush.bf16.msra.mxu3 %v11177_v5  ;;  %7245 = vmatpush.bf16.msra.mxu2 %v11179_v55  ;;  %v6797_v41 = vpop.f32.mrf.mxu0 }
 0xa7e   :  { %7722 = vmatpush.bf16.msra.mxu1 %v11212_v58 }
 0xa81   :  { %7226 = vmatpush.bf16.msra.mxu3 %v11176_v45  ;;  %v6846_v35 = vpop.f32.mrf.mxu1  ;;  %v11195_v45 = vld [vmem:[%s18168_s8 + $0x160] sm:$0xff] }
 0xa82   :  { %v6879_v47 = vpack.c.bf16 %v6846_v35, %v6797_v41  ;;  %v11211_v41 = vld [vmem:[%s18168_s8 + $0x1e0] sm:$0xff] }
 0xa83   :  { %7723 = vmatpush.bf16.msra.mxu1 %v11211_v41 }
 0xa84   :  { %v7156_v8 = vunpack.c.l.b16 %v6879_v47  ;;  %v7157_v39 = vunpack.c.h.b16 %v6879_v47  ;;  %v11228_v47 = vld [vmem:[%s18168_s8 + $0x268] sm:$0xff] }
 0xa85   :  { %7227 = vmatpush.bf16.msra.mxu3 %v11175_v61  ;;  %v17973_v51 = vpop.f32.mrf.mxu0 }
 0xa86   :  { %v7158_v53 = vpack.c.b16 %v7156_v8, %v7154_v13  ;;  %v7159_v33 = vpack.c.b16 %v7157_v39, %v7155_v50  ;;  %v11227_v8 = vld [vmem:[%s18168_s8 + $0x260] sm:$0xff]  ;;  %v11230_v39 = vld [vmem:[%s18168_s8 + $0x278] sm:$0xff]  ;;  %v11229_v13 = vld [vmem:[%s18168_s8 + $0x270] sm:$0xff] }
 0xa88   :  { %7111 = vmatmul.bf16.vlgmr.msrb.gmra.mxu2 %v7037_v18  ;;  %10439 = vmatmul.msk.bf16.vlgmr.msrb.gmra.mxu3 %vm19996_vm7, %v7038_v21  ;;  %v11192_v18 = vld [vmem:[%s18168_s8 + $0x148] sm:$0xff] }
 0xa89   :  { %7228 = vmatpush.bf16.msra.mxu3 %v11174_v1  ;;  %7347 = vmatpush.bf16.msrb.mxu2 %v11188_v3  ;;  %v6849_v34 = vpop.f32.mrf.mxu1  ;;  %v11209_v1 = vld [vmem:[%s18168_s8 + $0x1d0] sm:$0xff] }
 0xa8a   :  { %v6880_v16 = vpack.c.bf16 %v6849_v34, %v17973_v51 }
 0xa8c   :  { %v7277_v59 = vunpack.c.l.b16 %v6880_v16  ;;  %v7278_v49 = vunpack.c.h.b16 %v6880_v16  ;;  %v11222_v16 = vld [vmem:[%s18168_s8 + $0x238] sm:$0xff] }
 0xa8d   :  { %7229 = vmatpush.bf16.msra.mxu3 %v11173_v25  ;;  %7348 = vmatpush.bf16.msrb.mxu2 %v11187_v52  ;;  %v6802_v2 = vpop.f32.mrf.mxu0 }
 0xa91   :  { %7230 = vmatpush.bf16.msra.mxu3 %v11172_v7  ;;  %7349 = vmatpush.bf16.msrb.mxu2 %v11186_v22  ;;  %v6851_v27 = vpop.f32.mrf.mxu1 }
 0xa92   :  { %v6881_v57 = vpack.c.bf16 %v6851_v27, %v6802_v2 }
 0xa94   :  { %v7279_v5 = vunpack.c.l.b16 %v6881_v57  ;;  %v7280_v55 = vunpack.c.h.b16 %v6881_v57 }
 0xa95   :  { %7231 = vmatpush.bf16.msra.mxu3 %v11171_v48  ;;  %7350 = vmatpush.bf16.msrb.mxu2 %v11185_v60  ;;  %v6805_v37 = vpop.f32.mrf.mxu0 }
 0xa96   :  { %v7281_v12 = vpack.c.b16 %v7279_v5, %v7277_v59  ;;  %v7282_v35 = vpack.c.b16 %v7280_v55, %v7278_v49  ;;  %v11221_v5 = vld [vmem:[%s18168_s8 + $0x230] sm:$0xff] }
 0xa98   :  { %10500 = vmatmul.msk.bf16.vlgmr.msra.gmra.mxu2 %vm19997_vm3, %v7159_v33  ;;  %7232 = vmatmul.bf16.vlgmr.msra.gmra.mxu3 %v7158_v53 }
 0xa99   :  { %7367 = vmatpush.bf16.msrb.mxu3 %v11190_v6  ;;  %7351 = vmatpush.bf16.msrb.mxu2 %v11184_v30  ;;  %v6854_v19 = vpop.f32.mrf.mxu1  ;;  %v11226_v6 = vld [vmem:[%s18168_s8 + $0x258] sm:$0xff] }
 0xa9a   :  { %v6882_v21 = vpack.c.bf16 %v6854_v19, %v6805_v37 }
 0xa9c   :  { %v7401_v44 = vunpack.c.h.b16 %v6882_v21  ;;  %v7400_v2 = vunpack.c.l.b16 %v6882_v21 }
 0xa9d   :  { %7368 = vmatpush.bf16.msrb.mxu3 %v11189_v20  ;;  %7352 = vmatpush.bf16.msrb.mxu2 %v11183_v62  ;;  %v6807_v0 = vpop.f32.mrf.mxu0 }
 0xaa1   :  { %7470 = vmatpush.bf16.msra.mxu3 %v11198_v40  ;;  %7353 = vmatpush.bf16.msrb.mxu2 %v11182_v36  ;;  %v6856_v17 = vpop.f32.mrf.mxu1 }
 0xaa2   :  { %v6883_v3 = vpack.c.bf16 %v6856_v17, %v6807_v0 }
 0xaa4   :  { %v7403_v34 = vunpack.c.h.b16 %v6883_v3  ;;  %v7402_v7 = vunpack.c.l.b16 %v6883_v3 }
 0xaa5   :  { %7471 = vmatpush.bf16.msra.mxu3 %v11197_v42  ;;  %7354 = vmatpush.bf16.msrb.mxu2 %v11181_v9  ;;  %v6810_v61 = vpop.f32.mrf.mxu0 }
 0xaa6   :  { %v7405_v28 = vpack.c.b16 %v7403_v34, %v7401_v44  ;;  %v7404_v60 = vpack.c.b16 %v7402_v7, %v7400_v2 }
 0xaa8   :  { %7355 = vmatmul.bf16.vlgmr.msrb.gmra.mxu2 %v7281_v12  ;;  %10561 = vmatmul.msk.bf16.vlgmr.msrb.gmra.mxu3 %vm19998_vm10, %v7282_v35 }
 0xaa9   :  { %7472 = vmatpush.bf16.msra.mxu3 %v11196_v4  ;;  %7490 = vmatpush.bf16.msra.mxu2 %v11200_v26  ;;  %v6859_v29 = vpop.f32.mrf.mxu1  ;;  %v11223_v4 = vld [vmem:[%s18168_s8 + $0x240] sm:$0xff] }
 0xaaa   :  { %v6884_v51 = vpack.c.bf16 %v6859_v29, %v6810_v61 }
 0xaac   :  { %v7523_v22 = vunpack.c.l.b16 %v6884_v51  ;;  %v7524_v20 = vunpack.c.h.b16 %v6884_v51 }
 0xaad   :  { %7473 = vmatpush.bf16.msra.mxu3 %v11195_v45  ;;  %7491 = vmatpush.bf16.msra.mxu2 %v11199_v14  ;;  %v6812_v10 = vpop.f32.mrf.mxu0 }
 0xab1   :  { %7474 = vmatpush.bf16.msra.mxu3 %v11194_v31  ;;  %7613 = vmatpush.bf16.msrb.mxu2 %v11210_v46  ;;  %v6861_v25 = vpop.f32.mrf.mxu1 }
 0xab2   :  { %v6885_v52 = vpack.c.bf16 %v6861_v25, %v6812_v10 }
 0xab4   :  { %v7525_v43 = vunpack.c.l.b16 %v6885_v52  ;;  %v7526_v53 = vunpack.c.h.b16 %v6885_v52 }
 0xab5   :  { %7475 = vmatpush.bf16.msra.mxu3 %v11193_v38  ;;  %7614 = vmatpush.bf16.msrb.mxu2 %v11209_v1  ;;  %v6815_v27 = vpop.f32.mrf.mxu0 }
 0xab6   :  { %v7527_v48 = vpack.c.b16 %v7525_v43, %v7523_v22  ;;  %v7528_v42 = vpack.c.b16 %v7526_v53, %v7524_v20  ;;  %v7890_v43 = vld [vmem:[%s18171_s10 + $0x30] sm:$0x3] }
 0xab8   :  { %10622 = vmatmul.msk.bf16.vlgmr.msra.gmra.mxu2 %vm19999_vm11, %v7405_v28  ;;  %7601 = vmatmul.bf16.vlgmr.msrb.gmra.mxu0 %v7527_v48 }
 0xab9   :  { %7476 = vmatpush.bf16.msra.mxu3 %v11192_v18  ;;  %v6864_v23 = vpop.f32.mrf.mxu1  ;;  %7839 = vmatpush.bf16.msra.mxu2 %v11228_v47 }
 0xaba   :  { %v6886_v30 = vpack.c.bf16 %v6864_v23, %v6815_v27  ;;  %v11236_v27 = vld [vmem:[%s18171_s10 + $0x28] sm:$0xff] }
 0xabc   :  { %v7646_v37 = vunpack.c.l.b16 %v6886_v30  ;;  %v7647_v40 = vunpack.c.h.b16 %v6886_v30 }
 0xabd   :  { %7477 = vmatpush.bf16.msra.mxu3 %v11191_v24  ;;  %7840 = vmatpush.bf16.msra.mxu2 %v11227_v8  ;;  %v6817_v50 = vpop.f32.mrf.mxu0  ;;  %v11234_v8 = vld [vmem:[%s18171_s10 + $0x18] sm:$0xff] }
 0xac0   :  { %7478 = vmatmul.bf16.vlgmr.msra.gmra.mxu3 %v7404_v60 }
 0xac1   :  { %7736 = vmatpush.bf16.msrb.mxu3 %v11220_v54  ;;  %v6866_v11 = vpop.f32.mrf.mxu1  ;;  %7841 = vmatpush.bf16.msra.mxu2 %v11226_v6  ;;  %v7920_v54 = vunpack.c.l.b16 %v7890_v43  ;;  %v11233_v6 = vld [vmem:[%s18171_s10 + $0x10] sm:$0xff] }
 0xac2   :  { %v6887_v33 = vpack.c.bf16 %v6866_v11, %v6817_v50  ;;  %v11232_v50 = vld [vmem:[%s18171_s10 + $0x8] sm:$0xff]  ;;  %v11231_v11 = vld [vmem:[%s18171_s10] sm:$0xff] }
 0xac3   :  { %v7927_v28 = vpack.c.b16 %v7920_v54, %v7920_v54 }
 0xac4   :  { %v7648_v19 = vunpack.c.l.b16 %v6887_v33  ;;  %v7649_v62 = vunpack.c.h.b16 %v6887_v33 }
 0xac5   :  { %7737 = vmatpush.bf16.msrb.mxu3 %v11219_v56  ;;  %7842 = vmatpush.bf16.msra.mxu2 %v11225_v32  ;;  %v6820_v57 = vpop.f32.mrf.mxu0  ;;  %v7940_v48 = vsel %vm7938_vm5, %v7927_v28, 0  ;;  %v11235_v56 = vld [vmem:[%s18171_s10 + $0x20] sm:$0xff] }
 0xac6   :  { %v7650_v36 = vpack.c.b16 %v7648_v19, %v7646_v37  ;;  %v7651_v63 = vpack.c.b16 %v7649_v62, %v7647_v40  ;;  %7943 = vmatpush.bf16.msra.mxu0 %v7940_v48 }
 0xac8   :  { %10683 = vmatmul.msk.bf16.vlgmr.msrb.gmra.mxu2 %vm20000_vm15, %v7528_v42  ;;  %7724 = vmatmul.bf16.vlgmr.msra.gmra.mxu1 %v7650_v36 }
 0xac9   :  { %7859 = vmatpush.bf16.msra.mxu3 %v11230_v39  ;;  %v6869_v0 = vpop.f32.mrf.mxu1  ;;  %7843 = vmatpush.bf16.msra.mxu2 %v11224_v15 }
 0xaca   :  { %v6888_v17 = vpack.c.bf16 %v6869_v0, %v6820_v57  ;;  %7944 = vmatpush.bf16.msra.mxu0 %v11236_v27 }
 0xacc   :  { %v7769_v26 = vunpack.c.l.b16 %v6888_v17  ;;  %v7770_v45 = vunpack.c.h.b16 %v6888_v17 }
 0xacd   :  { %7860 = vmatpush.bf16.msra.mxu3 %v11229_v13  ;;  %7844 = vmatpush.bf16.msra.mxu2 %v11223_v4  ;;  %v6822_v9 = vpop.f32.mrf.mxu0 }
 0xace   :  { %7945 = vmatpush.bf16.msra.mxu0 %v11235_v56 }
 0xad0   :  { %10744 = vmatmul.msk.bf16.vlgmr.msrb.gmra.mxu3 %vm20001_vm2, %v7651_v63 }
 0xad1   :  { %v6871_v58 = vpop.f32.mrf.mxu1  ;;  %7845 = vmatpush.bf16.msra.mxu2 %v11222_v16 }
 0xad2   :  { %v6889_v55 = vpack.c.bf16 %v6871_v58, %v6822_v9  ;;  %7946 = vmatpush.bf16.msra.mxu0 %v11234_v8 }
 0xad4   :  { %v7771_v59 = vunpack.c.l.b16 %v6889_v55  ;;  %v7772_v49 = vunpack.c.h.b16 %v6889_v55 }
 0xad5   :  { %7846 = vmatpush.bf16.msra.mxu2 %v11221_v5 }
 0xad6   :  { %v7773_v41 = vpack.c.b16 %v7771_v59, %v7769_v26  ;;  %v7774_v12 = vpack.c.b16 %v7772_v49, %v7770_v45  ;;  %7947 = vmatpush.bf16.msra.mxu0 %v11233_v6 }
 0xad8   :  { %7847 = vmatmul.bf16.vlgmr.msra.gmra.mxu2 %v7773_v41 }
 0xada   :  { %7948 = vmatpush.bf16.msra.mxu0 %v11232_v50 }
 0xade   :  { %7949 = vmatpush.bf16.msra.mxu0 %v11231_v11 }
 0xae0   :  { %10805 = vmatmul.msk.bf16.vlgmr.msra.gmra.mxu3 %vm20002_vm9, %v7774_v12 }
 0xafb   :  { %v7012_v35 = vpop.f32.mrf.mxu2  ;;  %v7026_v61 = vpop.f32.mrf.mxu3 }
 0xafc   :  { %v7027_v14 = vadd.f32 %v7026_v61, %v7012_v35 }
 0xb03   :  { %v7014_v31 = vpop.f32.mrf.mxu2  ;;  %v7028_v46 = vpop.f32.mrf.mxu3 }
 0xb04   :  { %v7029_v29 = vadd.f32 %v7028_v46, %v7014_v31  ;;  %v11245_v46 = vld [vmem:[%s18169_s9] ss:$0 sm:$0xff] }
 0xb0b   :  { %v7112_v38 = vpop.f32.mrf.mxu2  ;;  %v7126_v1 = vpop.f32.mrf.mxu3 }
 0xb0c   :  { %v7113_v3 = vadd.f32 %v7112_v38, %v7027_v14 }
 0xb0e   :  { %v7127_v10 = vadd.f32 %v7126_v1, %v7113_v3 }
 0xb13   :  { %v7114_v18 = vpop.f32.mrf.mxu2  ;;  %v7128_v21 = vpop.f32.mrf.mxu3 }
 0xb14   :  { %v7115_v51 = vadd.f32 %v7114_v18, %v7029_v29 }
 0xb16   :  { %v7129_v25 = vadd.f32 %v7128_v21, %v7115_v51 }
 0xb1b   :  { %v7247_v34 = vpop.f32.mrf.mxu2  ;;  %v7233_v52 = vpop.f32.mrf.mxu3 }
 0xb1c   :  { %v7248_v20 = vadd.f32 %v7247_v34, %v7233_v52  ;;  %v11246_v34 = vld [vmem:[%s18170_s11] ss:$0 sm:$0xff] }
 0xb1e   :  { %v7252_v62 = vadd.f32 %v7248_v20, %v7127_v10 }
 0xb23   :  { %v7249_v24 = vpop.f32.mrf.mxu2  ;;  %v7235_v44 = vpop.f32.mrf.mxu3 }
 0xb24   :  { %v7250_v15 = vadd.f32 %v7249_v24, %v7235_v44 }
 0xb26   :  { %v7253_v4 = vadd.f32 %v7250_v15, %v7129_v25 }
 0xb2b   :  { %v7356_v7 = vpop.f32.mrf.mxu2  ;;  %v7370_v22 = vpop.f32.mrf.mxu3 }
 0xb2c   :  { %v7371_v40 = vadd.f32 %v7370_v22, %v7356_v7 }
 0xb2e   :  { %v7375_v36 = vadd.f32 %v7371_v40, %v7252_v62 }
 0xb33   :  { %v7358_v47 = vpop.f32.mrf.mxu2  ;;  %v7372_v2 = vpop.f32.mrf.mxu3 }
 0xb34   :  { %v7373_v63 = vadd.f32 %v7372_v2, %v7358_v47 }
 0xb35   :  { %v7602_v53 = vpop.f32.mrf.mxu0 }
 0xb36   :  { %v7376_v5 = vadd.f32 %v7373_v63, %v7253_v4 }
 0xb3b   :  { %v7493_v60 = vpop.f32.mrf.mxu2 }
 0xb3d   :  { %v7604_v9 = vpop.f32.mrf.mxu0 }
 0xb43   :  { %v7479_v23 = vpop.f32.mrf.mxu3  ;;  %v7495_v39 = vpop.f32.mrf.mxu2 }
 0xb44   :  { %v7494_v42 = vadd.f32 %v7493_v60, %v7479_v23 }
 0xb45   :  { %v7725_v19 = vpop.f32.mrf.mxu1 }
 0xb46   :  { %v7498_v16 = vadd.f32 %v7494_v42, %v7375_v36 }
 0xb4b   :  { %v7481_v13 = vpop.f32.mrf.mxu3  ;;  %v7616_v30 = vpop.f32.mrf.mxu2 }
 0xb4c   :  { %v7617_v57 = vadd.f32 %v7616_v30, %v7602_v53  ;;  %v7496_v17 = vadd.f32 %v7495_v39, %v7481_v13 }
 0xb4d   :  { %v7727_v41 = vpop.f32.mrf.mxu1 }
 0xb4e   :  { %v7621_v55 = vadd.f32 %v7617_v57, %v7498_v16  ;;  %v7499_v59 = vadd.f32 %v7496_v17, %v7376_v5 }
 0xb53   :  { %v7739_v32 = vpop.f32.mrf.mxu3  ;;  %v7618_v33 = vpop.f32.mrf.mxu2 }
 0xb54   :  { %v7740_v26 = vadd.f32 %v7739_v32, %v7725_v19  ;;  %v7619_v45 = vadd.f32 %v7618_v33, %v7604_v9 }
 0xb56   :  { %v7744_v12 = vadd.f32 %v7740_v26, %v7621_v55  ;;  %v7622_v35 = vadd.f32 %v7619_v45, %v7499_v59 }
 0xb5b   :  { %v7741_v37 = vpop.f32.mrf.mxu3  ;;  %v7848_v0 = vpop.f32.mrf.mxu2 }
 0xb5c   :  { %v7742_v61 = vadd.f32 %v7741_v37, %v7727_v41 }
 0xb5e   :  { %v7745_v38 = vadd.f32 %v7742_v61, %v7622_v35 }
 0xb63   :  { %v7862_v58 = vpop.f32.mrf.mxu3  ;;  %v7850_v14 = vpop.f32.mrf.mxu2 }
 0xb64   :  { %v7863_v49 = vadd.f32 %v7862_v58, %v7848_v0 }
 0xb66   :  { %v7867_v31 = vadd.f32 %v7863_v49, %v7744_v12 }
 0xb68   :  { %v7873_v3 = vadd.f32 %v11245_v46, %v7867_v31 }
 0xb6a   :  { %v7875_v21 = vmax.f32 %v7873_v3, 0.0 }
 0xb6b   :  { %v7864_v29 = vpop.f32.mrf.mxu3 }
 0xb6c   :  { %v7865_v1 = vadd.f32 %v7864_v29, %v7850_v14 }
 0xb6e   :  { %v7868_v10 = vadd.f32 %v7865_v1, %v7745_v38 }
 0xb70   :  { %v7874_v18 = vadd.f32 %v11245_v46, %v7868_v10 }
 0xb72   :  { %v7876_v51 = vmax.f32 %v7874_v18, 0.0 }
 0xb74   :  { %v7877_v25 = vpack.c.bf16 %v7876_v51, %v7875_v21 }
 0xb76   :  { %10830 = vmatmul.msk.bf16.vlgmr.msra.gmra.mxu0 %vm7934_vm13, %v7877_v25 }
 0xbf3   :  { %v7951_v52 = vpop.f32.mrf.mxu0 }
 0xbf4   :  { %v7952_v24 = vadd.f32 %v11246_v34, %v7951_v52 }
 0xbf6   :  { %7956 = vmax.xlane.f32.xlu0 %v7952_v24 }
 0xbfb   :  { %v7953_v44 = vpop.f32.mrf.mxu0 }
 0xbfc   :  { %v7954_v7 = vadd.f32 %v11246_v34, %v7953_v44 }
 0xbfe   :  { %7958 = vmax.xlane.f32.xlu0 %v7954_v7 }
 0xc69   :  { %v7957_v22 = vpop.xlane.xlu0 %7956 }
 0xc6a   :  { %v7960_v43 = vsub.f32 %v7952_v24, %v7957_v22 }
 0xc6c   :  { %v7962_v54 = vmul.f32 1.442695, %v7960_v43 }
 0xc6e   :  { %11247 = vpow2.f32 %v7962_v54 }
 0xc71   :  { %v7959_v47 = vpop.xlane.xlu0 %7958 }
 0xc72   :  { %v7961_v2 = vsub.f32 %v7954_v7, %v7959_v47 }
 0xc74   :  { %v11248_v28 = vpop.eup %11247  ;;  %v7964_v48 = vmul.f32 1.442695, %v7961_v2 }
 0xc75   :  { %7966 = vadd.xlane.f32.xlu1 %v11248_v28 }
 0xc76   :  { %11249 = vpow2.f32 %v7964_v48 }
 0xc7c   :  { %v11250_v27 = vpop.eup %11249 }
 0xc7d   :  { %7968 = vadd.xlane.f32.xlu1 %v11250_v27 }
 0xce8   :  { %v7967_v60 = vpop.xlane.xlu1 %7966 }
 0xce9   :  { %11251 = vlog2.f32 %v7967_v60 }
 0xcef   :  { %v11252_v56 = vpop.eup %11251 }
 0xcf0   :  { %v7971_v23 = vmul.f32 0.6931472, %v11252_v56  ;;  %v7969_v8 = vpop.xlane.xlu1 %7968 }
 0xcf1   :  { %11253 = vlog2.f32 %v7969_v8 }
 0xcf2   :  { %v7974_v39 = vsub.f32 %v7960_v43, %v7971_v23 }
 0xcf4   :  { %7976 = vst [vmem:[%s18172_s12] sm:$0xff] %v7974_v39 }
 0xcf7   :  { %v11254_v6 = vpop.eup %11253 }
 0xcf8   :  { %v7973_v13 = vmul.f32 0.6931472, %v11254_v6 }
 0xcfa   :  { %v7975_v50 = vsub.f32 %v7961_v2, %v7973_v13 }
 0xcfc   :  { %7977 = vst [vmem:[%s18172_s12 + $0x8] sm:$0xff] %v7975_v50 }

</bundles_post_ra>
